<compile_context>
chip_gen: v6e
topology: v6e:2x2x1
jax: 0.10.0
libtpu: 0.0.40
codegen_flags: <defaults>
</compile_context>

<pallas_src>
import jax
import jax.numpy as jnp
from jax import lax
from jax.experimental import pallas as pl
from jax.experimental.pallas import tpu as pltpu


# ---------------- static shape config (implied by the module) ----------------
B = 2
C_IN = 4
L_IN = 40870  # smallest input length for which every conv/pool output is non-empty


def conv_out(l, k, s):
    return (l - k) // s + 1


L1 = conv_out(L_IN, 30, 10)  # 4085  (conv1)
P1 = conv_out(L1, 15, 5)     # 815   (pool1)
L2 = conv_out(P1, 25, 10)    # 80    (conv2)
P2 = conv_out(L2, 10, 5)     # 15    (pool2)
L3 = conv_out(P2, 10, 5)     # 2     (conv3)
P3 = conv_out(L3, 2, 2)      # 1     (pool3)

NG = L1 // 5                 # 817  stride-5 groups (one pool1 window = 3 groups)
NPC = 144                    # pool1 rows produced per stage-1 chunk (mult. of 16)
NCHUNK = 6                   # 6 * 144 = 864 >= P1
NP_PAD = NCHUNK * NPC        # 864  rows in the fused pool1 scratch
NG_PAD = 880                 # padded group count (>= NP_PAD + 2, multiple of 16)


# ------------------------------- fused kernel --------------------------------
def _fused_kernel(xph_ref, w1_ref, b1_ref, w2_ref, b2_ref, w3_ref, b3_ref,
                  o_ref, pool1_ref, conv2_ref, pool2_ref):
    f32 = jnp.float32
    bf16 = jnp.bfloat16

    # hoisted parameter loads (review #10)
    w1v = w1_ref[...]          # (120, 64) bf16
    b1v = b1_ref[...]          # (1, 64)  f32
    b2v = b2_ref[...]          # (1, 32)  f32
    b3v = b3_ref[...]          # (1, 32)  f32

    # ---- stage 1: conv1 (k=30, s=10) + bias + ReLU + maxpool(15, 5), fused ----
    # xph row m*NG_PAD + g is the 120-wide im2col row of conv1 output 5g + m, so
    # the elementwise max over the 5 phase matmuls IS the stride-5 group max and
    # happens on data still in vregs.  pool1[p] = relu(max(gmax[p..p+2]) + b1).
    for c in range(NCHUNK):
        g0 = c * NPC                                   # multiple of 16
        acc = None
        for m in range(5):
            d = jnp.dot(xph_ref[pl.ds(m * NG_PAD + g0, NPC + 2), :], w1v,
                        preferred_element_type=f32)
            acc = d if acc is None else jnp.maximum(acc, d)
        g = jnp.maximum(acc + b1v, 0.0)                # (NPC+2, 64) relu'd group max
        pool1_ref[pl.ds(g0, NPC), :] = jnp.maximum(
            jnp.maximum(g[0:NPC], g[1:NPC + 1]), g[2:NPC + 2])

    # ---- stage 2: conv2 (k=25, s=10) + bias + ReLU, residue-decomposed taps ----
    # Tap j = 10a + b:  pool1[10r + j] = pool1_b[r + a]  with pool1_b = pool1[b::10],
    # so each residue b needs ONE stride-10 read; its 2-3 taps read unit-shifted
    # slices of that value.  5 independent accumulators break the add chain.
    accs = [None] * 5
    for b in range(10):
        pb = pool1_ref[pl.ds(b, L2 + 2, stride=10), :]        # (82, 64) f32
        for a in range(3):
            j = 10 * a + b
            if j >= 25:
                continue
            d = jnp.dot(pb[a:a + L2].astype(bf16), w2_ref[j],
                        preferred_element_type=f32)           # (80, 32)
            k = j % 5
            accs[k] = d if accs[k] is None else accs[k] + d
    acc2 = (accs[0] + accs[1]) + (accs[2] + accs[3]) + accs[4]
    conv2_ref[...] = jnp.maximum(acc2 + b2v, 0.0)             # (80, 32)

    # ---- pool2: maxpool(k=10, s=5) -> (15, 32) --------------------------------
    m2 = conv2_ref[pl.ds(0, P2, stride=5), :]
    for j in range(1, 10):
        m2 = jnp.maximum(m2, conv2_ref[pl.ds(j, P2, stride=5), :])
    pool2_ref[...] = m2

    # ---- conv3 (k=10, s=5) + bias + ReLU, two accumulators --------------------
    a3e = jnp.dot(pool2_ref[pl.ds(0, L3, stride=5), :].astype(bf16), w3_ref[0],
                  preferred_element_type=f32)
    a3o = jnp.dot(pool2_ref[pl.ds(1, L3, stride=5), :].astype(bf16), w3_ref[1],
                  preferred_element_type=f32)
    for j in range(2, 10, 2):
        a3e = a3e + jnp.dot(pool2_ref[pl.ds(j, L3, stride=5), :].astype(bf16),
                            w3_ref[j], preferred_element_type=f32)
        a3o = a3o + jnp.dot(pool2_ref[pl.ds(j + 1, L3, stride=5), :].astype(bf16),
                            w3_ref[j + 1], preferred_element_type=f32)
    conv3 = jnp.maximum(a3e + a3o + b3v, 0.0)                 # (2, 32)

    # ---- pool3: maxpool(k=2, s=2) -> (1, 32) ----------------------------------
    o_ref[...] = jnp.maximum(conv3[0:1, :], conv3[1:2, :])


def fused_branch(xph, w1m, b1, w2k, b2, w3k, b3):
    batch = xph.shape[0]
    return pl.pallas_call(
        _fused_kernel,
        out_shape=jax.ShapeDtypeStruct((batch, P3, 32), jnp.float32),
        grid_spec=pltpu.PrefetchScalarGridSpec(
            num_scalar_prefetch=0,
            grid=(batch,),
            in_specs=[
                pl.BlockSpec((None, 5 * NG_PAD, 120), lambda i: (i, 0, 0)),
                pl.BlockSpec((120, 64), lambda i: (0, 0)),
                pl.BlockSpec((1, 64), lambda i: (0, 0)),
                pl.BlockSpec((25, 64, 32), lambda i: (0, 0, 0)),
                pl.BlockSpec((1, 32), lambda i: (0, 0)),
                pl.BlockSpec((10, 32, 32), lambda i: (0, 0, 0)),
                pl.BlockSpec((1, 32), lambda i: (0, 0)),
            ],
            out_specs=pl.BlockSpec((None, P3, 32), lambda i: (i, 0, 0)),
            scratch_shapes=[
                pltpu.VMEM((NP_PAD, 64), jnp.float32),   # fused conv1+pool1 result
                pltpu.VMEM((L2, 32), jnp.float32),       # conv2 + relu
                pltpu.VMEM((P2, 32), jnp.float32),       # pool2
            ],
        ),
        compiler_params=pltpu.CompilerParams(
            dimension_semantics=("parallel",),           # batch -> v7x megacore
            vmem_limit_bytes=16 * 1024 * 1024,           # ~3 MB actual use
        ),
    )(xph, w1m, b1, w2k, b2, w3k, b3)


# ------------------------------- full forward --------------------------------
@jax.jit
def bacteria_branch_forward(x, params):
    # x: (B, 4, L) channels-first, exactly like the PyTorch module.
    w1, b1, w2, b2, w3, b3 = params
    batch = x.shape[0]

    # conv1 phase-im2col (bf16, done once in the wrapper): row m*NG_PAD + g of
    # the flattened (5*NG_PAD, 120) slab is x[times 10*(5g+m) .. +29] x 4ch,
    # i.e. the merged-K=120 im2col row of conv1 output 5g + m.
    x40 = jnp.transpose(x, (0, 2, 1)).reshape(batch, L_IN // 10, 40)
    x40 = x40.astype(jnp.bfloat16)
    im2col = jnp.concatenate(
        [x40[:, 0:L1], x40[:, 1:L1 + 1], x40[:, 2:L1 + 2]], axis=-1)   # (B,4085,120)
    xph = im2col.reshape(batch, NG, 5, 120).transpose(0, 2, 1, 3)      # (B,5,817,120)
    xph = jnp.pad(xph, ((0, 0), (0, 0), (0, NG_PAD - NG), (0, 0)))
    xph = xph.reshape(batch, 5 * NG_PAD, 120)

    # conv1 weight (64, 4, 30) -> (kt, ci, co) -> (120, 64), bf16
    w1m = jnp.transpose(w1, (2, 1, 0)).reshape(120, 64).astype(jnp.bfloat16)
    w2k = jnp.transpose(w2, (2, 1, 0)).astype(jnp.bfloat16)   # (25, 64, 32)
    w3k = jnp.transpose(w3, (2, 1, 0)).astype(jnp.bfloat16)   # (10, 32, 32)

    y = fused_branch(xph, w1m, b1.reshape(1, 64),
                     w2k, b2.reshape(1, 32), w3k, b3.reshape(1, 32))
    # y is (B, 1, 32) == permute(0, 2, 1) layout; flatten like x.view(B, -1)
    return y.reshape(batch, -1)


# ------------------------- pure-JAX reference (check) -------------------------
@jax.jit
def reference_forward(x, params):
    w1, b1, w2, b2, w3, b3 = params

    def conv1d(v, w, b, s):
        y = lax.conv_general_dilated(v, w, window_strides=(s,), padding='VALID',
                                     dimension_numbers=('NCH', 'OIH', 'NCH'),
                                     precision=lax.Precision.HIGHEST)
        return y + b[None, :, None]

    def maxpool1d(v, k, s):
        return lax.reduce_window(v, -jnp.inf, lax.max, (1, 1, k), (1, 1, s), 'VALID')

    y = jax.nn.relu(conv1d(x, w1, b1, 10))
    y = maxpool1d(y, 15, 5)
    y = jax.nn.relu(conv1d(y, w2, b2, 10))
    y = maxpool1d(y, 10, 5)
    y = jax.nn.relu(conv1d(y, w3, b3, 5))
    y = maxpool1d(y, 2, 2)
    y = jnp.transpose(y, (0, 2, 1))
    return y.reshape(y.shape[0], -1)


# ------------------------------------ main ------------------------------------
if __name__ == "__main__":
    key = jax.random.PRNGKey(0)
    ks = jax.random.split(key, 7)

    def uinit(k, shape, fan_in):
        bound = 1.0 / (fan_in ** 0.5)
        return jax.random.uniform(k, shape, jnp.float32, -bound, bound)

    # Conv1d(4, 64, 30): weight (64, 4, 30), bias (64,)
    w1 = uinit(ks[0], (64, 4, 30), 4 * 30)
    b1 = uinit(ks[1], (64,), 4 * 30)
    # Conv1d(64, 32, 25): weight (32, 64, 25), bias (32,)
    w2 = uinit(ks[2], (32, 64, 25), 64 * 25)
    b2 = uinit(ks[3], (32,), 64 * 25)
    # Conv1d(32, 32, 10): weight (32, 32, 10), bias (32,)
    w3 = uinit(ks[4], (32, 32, 10), 32 * 10)
    b3 = uinit(ks[5], (32,), 32 * 10)
    params = (w1, b1, w2, b2, w3, b3)

    x = jax.random.normal(ks[6], (B, C_IN, L_IN), jnp.float32)

    out = jax.block_until_ready(bacteria_branch_forward(x, params))
    ref = jax.block_until_ready(reference_forward(x, params))

    assert out.shape == (B, P3 * 32), out.shape
    if not jnp.allclose(out, ref, rtol=3e-2, atol=3e-2):
        max_err = jnp.max(jnp.abs(out - ref))
        raise AssertionError(f"mismatch vs reference, max abs err = {max_err}")

    print("KERNEL_OK")
</pallas_src>

<mosaic_0001>
module attributes {stable_mosaic.version = 11 : i64} {
  func.func @_fused_kernel(%arg0: i32, %arg1: memref<1x4400x120xbf16, #tpu.memory_space<vmem>>, %arg2: memref<120x64xbf16, #tpu.memory_space<vmem>>, %arg3: memref<1x64xf32, #tpu.memory_space<vmem>>, %arg4: memref<25x64x32xbf16, #tpu.memory_space<vmem>>, %arg5: memref<1x32xf32, #tpu.memory_space<vmem>>, %arg6: memref<10x32x32xbf16, #tpu.memory_space<vmem>>, %arg7: memref<1x32xf32, #tpu.memory_space<vmem>>, %arg8: memref<1x1x32xf32, #tpu.memory_space<vmem>>, %arg9: memref<864x64xf32, #tpu.memory_space<vmem>>, %arg10: memref<80x32xf32, #tpu.memory_space<vmem>>, %arg11: memref<15x32xf32, #tpu.memory_space<vmem>>) attributes {dimension_semantics = [#tpu.dimension_semantics<parallel>], iteration_bounds = array<i64: 2>, scalar_prefetch = 0 : i64, scratch_operands = 3 : i64, tpu.core_type = #tpu.core_type<tc>, window_params = [{transform_indices = @transform_0, window_bounds = array<i64: 1, 4400, 120>}, {pipeline_mode = #tpu.pipeline_mode<synchronous>, transform_indices = @transform_1, window_bounds = array<i64: 120, 64>}, {pipeline_mode = #tpu.pipeline_mode<synchronous>, transform_indices = @transform_2, window_bounds = array<i64: 1, 64>}, {pipeline_mode = #tpu.pipeline_mode<synchronous>, transform_indices = @transform_3, window_bounds = array<i64: 25, 64, 32>}, {pipeline_mode = #tpu.pipeline_mode<synchronous>, transform_indices = @transform_4, window_bounds = array<i64: 1, 32>}, {pipeline_mode = #tpu.pipeline_mode<synchronous>, transform_indices = @transform_5, window_bounds = array<i64: 10, 32, 32>}, {pipeline_mode = #tpu.pipeline_mode<synchronous>, transform_indices = @transform_6, window_bounds = array<i64: 1, 32>}, {transform_indices = @transform_7, window_bounds = array<i64: 1, 1, 32>}]} {
    %c0 = arith.constant 0 : index
    %c0_0 = arith.constant 0 : index
    %0 = vector.load %arg2[%c0, %c0_0] : memref<120x64xbf16, #tpu.memory_space<vmem>>, vector<120x64xbf16>
    %c0_1 = arith.constant 0 : index
    %c0_2 = arith.constant 0 : index
    %1 = vector.load %arg3[%c0_1, %c0_2] : memref<1x64xf32, #tpu.memory_space<vmem>>, vector<1x64xf32>
    %c0_3 = arith.constant 0 : index
    %c0_4 = arith.constant 0 : index
    %2 = vector.load %arg5[%c0_3, %c0_4] : memref<1x32xf32, #tpu.memory_space<vmem>>, vector<1x32xf32>
    %c0_5 = arith.constant 0 : index
    %c0_6 = arith.constant 0 : index
    %3 = vector.load %arg7[%c0_5, %c0_6] : memref<1x32xf32, #tpu.memory_space<vmem>>, vector<1x32xf32>
    %c0_7 = arith.constant 0 : index
    %c0_8 = arith.constant 0 : index
    %c0_9 = arith.constant 0 : index
    %4 = vector.load %arg1[%c0_7, %c0_8, %c0_9] : memref<1x4400x120xbf16, #tpu.memory_space<vmem>>, vector<1x146x120xbf16>
    %5 = vector.shape_cast %4 : vector<1x146x120xbf16> to vector<146x120xbf16>
    %cst = arith.constant dense<0.000000e+00> : vector<146x64xf32>
    %6 = tpu.matmul %5, %0, %cst {dimension_numbers = #tpu.dot_dimension_numbers<[1], [0], [0], [1], [0, 0, 1, 1], [], []>} : vector<146x120xbf16>, vector<120x64xbf16>, vector<146x64xf32> -> vector<146x64xf32>
    %c0_10 = arith.constant 0 : index
    %c880 = arith.constant 880 : index
    %c0_11 = arith.constant 0 : index
    %7 = vector.load %arg1[%c0_10, %c880, %c0_11] : memref<1x4400x120xbf16, #tpu.memory_space<vmem>>, vector<1x146x120xbf16>
    %8 = vector.shape_cast %7 : vector<1x146x120xbf16> to vector<146x120xbf16>
    %cst_12 = arith.constant dense<0.000000e+00> : vector<146x64xf32>
    %9 = tpu.matmul %8, %0, %cst_12 {dimension_numbers = #tpu.dot_dimension_numbers<[1], [0], [0], [1], [0, 0, 1, 1], [], []>} : vector<146x120xbf16>, vector<120x64xbf16>, vector<146x64xf32> -> vector<146x64xf32>
    %10 = arith.maximumf %6, %9 : vector<146x64xf32>
    %c0_13 = arith.constant 0 : index
    %c1760 = arith.constant 1760 : index
    %c0_14 = arith.constant 0 : index
    %11 = vector.load %arg1[%c0_13, %c1760, %c0_14] : memref<1x4400x120xbf16, #tpu.memory_space<vmem>>, vector<1x146x120xbf16>
    %12 = vector.shape_cast %11 : vector<1x146x120xbf16> to vector<146x120xbf16>
    %cst_15 = arith.constant dense<0.000000e+00> : vector<146x64xf32>
    %13 = tpu.matmul %12, %0, %cst_15 {dimension_numbers = #tpu.dot_dimension_numbers<[1], [0], [0], [1], [0, 0, 1, 1], [], []>} : vector<146x120xbf16>, vector<120x64xbf16>, vector<146x64xf32> -> vector<146x64xf32>
    %14 = arith.maximumf %10, %13 : vector<146x64xf32>
    %c0_16 = arith.constant 0 : index
    %c2640 = arith.constant 2640 : index
    %c0_17 = arith.constant 0 : index
    %15 = vector.load %arg1[%c0_16, %c2640, %c0_17] : memref<1x4400x120xbf16, #tpu.memory_space<vmem>>, vector<1x146x120xbf16>
    %16 = vector.shape_cast %15 : vector<1x146x120xbf16> to vector<146x120xbf16>
    %cst_18 = arith.constant dense<0.000000e+00> : vector<146x64xf32>
    %17 = tpu.matmul %16, %0, %cst_18 {dimension_numbers = #tpu.dot_dimension_numbers<[1], [0], [0], [1], [0, 0, 1, 1], [], []>} : vector<146x120xbf16>, vector<120x64xbf16>, vector<146x64xf32> -> vector<146x64xf32>
    %18 = arith.maximumf %14, %17 : vector<146x64xf32>
    %c0_19 = arith.constant 0 : index
    %c3520 = arith.constant 3520 : index
    %c0_20 = arith.constant 0 : index
    %19 = vector.load %arg1[%c0_19, %c3520, %c0_20] : memref<1x4400x120xbf16, #tpu.memory_space<vmem>>, vector<1x146x120xbf16>
    %20 = vector.shape_cast %19 : vector<1x146x120xbf16> to vector<146x120xbf16>
    %cst_21 = arith.constant dense<0.000000e+00> : vector<146x64xf32>
    %21 = tpu.matmul %20, %0, %cst_21 {dimension_numbers = #tpu.dot_dimension_numbers<[1], [0], [0], [1], [0, 0, 1, 1], [], []>} : vector<146x120xbf16>, vector<120x64xbf16>, vector<146x64xf32> -> vector<146x64xf32>
    %22 = arith.maximumf %18, %21 : vector<146x64xf32>
    %23 = vector.broadcast %1 : vector<1x64xf32> to vector<146x64xf32>
    %24 = arith.addf %22, %23 : vector<146x64xf32>
    %cst_22 = arith.constant 0.000000e+00 : f32
    %25 = vector.broadcast %cst_22 : f32 to vector<146x64xf32>
    %26 = arith.maximumf %24, %25 : vector<146x64xf32>
    %27 = vector.extract_strided_slice %26 {offsets = [0, 0], sizes = [144, 64], strides = [1, 1]} : vector<146x64xf32> to vector<144x64xf32>
    %28 = vector.extract_strided_slice %26 {offsets = [1, 0], sizes = [144, 64], strides = [1, 1]} : vector<146x64xf32> to vector<144x64xf32>
    %29 = arith.maximumf %27, %28 : vector<144x64xf32>
    %30 = vector.extract_strided_slice %26 {offsets = [2, 0], sizes = [144, 64], strides = [1, 1]} : vector<146x64xf32> to vector<144x64xf32>
    %31 = arith.maximumf %29, %30 : vector<144x64xf32>
    %c0_23 = arith.constant 0 : index
    %c0_24 = arith.constant 0 : index
    %32 = vector.load %arg9[%c0_23, %c0_24] : memref<864x64xf32, #tpu.memory_space<vmem>>, vector<144x64xf32>
    tpu.vector_store %arg9[%c0_23, %c0_24], %31 {strides = array<i32>} : memref<864x64xf32, #tpu.memory_space<vmem>>, vector<144x64xf32>,
    %c0_25 = arith.constant 0 : index
    %c144 = arith.constant 144 : index
    %c0_26 = arith.constant 0 : index
    %33 = vector.load %arg1[%c0_25, %c144, %c0_26] : memref<1x4400x120xbf16, #tpu.memory_space<vmem>>, vector<1x146x120xbf16>
    %34 = vector.shape_cast %33 : vector<1x146x120xbf16> to vector<146x120xbf16>
    %cst_27 = arith.constant dense<0.000000e+00> : vector<146x64xf32>
    %35 = tpu.matmul %34, %0, %cst_27 {dimension_numbers = #tpu.dot_dimension_numbers<[1], [0], [0], [1], [0, 0, 1, 1], [], []>} : vector<146x120xbf16>, vector<120x64xbf16>, vector<146x64xf32> -> vector<146x64xf32>
    %c0_28 = arith.constant 0 : index
    %c1024 = arith.constant 1024 : index
    %c0_29 = arith.constant 0 : index
    %36 = vector.load %arg1[%c0_28, %c1024, %c0_29] : memref<1x4400x120xbf16, #tpu.memory_space<vmem>>, vector<1x146x120xbf16>
    %37 = vector.shape_cast %36 : vector<1x146x120xbf16> to vector<146x120xbf16>
    %cst_30 = arith.constant dense<0.000000e+00> : vector<146x64xf32>
    %38 = tpu.matmul %37, %0, %cst_30 {dimension_numbers = #tpu.dot_dimension_numbers<[1], [0], [0], [1], [0, 0, 1, 1], [], []>} : vector<146x120xbf16>, vector<120x64xbf16>, vector<146x64xf32> -> vector<146x64xf32>
    %39 = arith.maximumf %35, %38 : vector<146x64xf32>
    %c0_31 = arith.constant 0 : index
    %c1904 = arith.constant 1904 : index
    %c0_32 = arith.constant 0 : index
    %40 = vector.load %arg1[%c0_31, %c1904, %c0_32] : memref<1x4400x120xbf16, #tpu.memory_space<vmem>>, vector<1x146x120xbf16>
    %41 = vector.shape_cast %40 : vector<1x146x120xbf16> to vector<146x120xbf16>
    %cst_33 = arith.constant dense<0.000000e+00> : vector<146x64xf32>
    %42 = tpu.matmul %41, %0, %cst_33 {dimension_numbers = #tpu.dot_dimension_numbers<[1], [0], [0], [1], [0, 0, 1, 1], [], []>} : vector<146x120xbf16>, vector<120x64xbf16>, vector<146x64xf32> -> vector<146x64xf32>
    %43 = arith.maximumf %39, %42 : vector<146x64xf32>
    %c0_34 = arith.constant 0 : index
    %c2784 = arith.constant 2784 : index
    %c0_35 = arith.constant 0 : index
    %44 = vector.load %arg1[%c0_34, %c2784, %c0_35] : memref<1x4400x120xbf16, #tpu.memory_space<vmem>>, vector<1x146x120xbf16>
    %45 = vector.shape_cast %44 : vector<1x146x120xbf16> to vector<146x120xbf16>
    %cst_36 = arith.constant dense<0.000000e+00> : vector<146x64xf32>
    %46 = tpu.matmul %45, %0, %cst_36 {dimension_numbers = #tpu.dot_dimension_numbers<[1], [0], [0], [1], [0, 0, 1, 1], [], []>} : vector<146x120xbf16>, vector<120x64xbf16>, vector<146x64xf32> -> vector<146x64xf32>
    %47 = arith.maximumf %43, %46 : vector<146x64xf32>
    %c0_37 = arith.constant 0 : index
    %c3664 = arith.constant 3664 : index
    %c0_38 = arith.constant 0 : index
    %48 = vector.load %arg1[%c0_37, %c3664, %c0_38] : memref<1x4400x120xbf16, #tpu.memory_space<vmem>>, vector<1x146x120xbf16>
    %49 = vector.shape_cast %48 : vector<1x146x120xbf16> to vector<146x120xbf16>
    %cst_39 = arith.constant dense<0.000000e+00> : vector<146x64xf32>
    %50 = tpu.matmul %49, %0, %cst_39 {dimension_numbers = #tpu.dot_dimension_numbers<[1], [0], [0], [1], [0, 0, 1, 1], [], []>} : vector<146x120xbf16>, vector<120x64xbf16>, vector<146x64xf32> -> vector<146x64xf32>
    %51 = arith.maximumf %47, %50 : vector<146x64xf32>
    %52 = vector.broadcast %1 : vector<1x64xf32> to vector<146x64xf32>
    %53 = arith.addf %51, %52 : vector<146x64xf32>
    %cst_40 = arith.constant 0.000000e+00 : f32
    %54 = vector.broadcast %cst_40 : f32 to vector<146x64xf32>
    %55 = arith.maximumf %53, %54 : vector<146x64xf32>
    %56 = vector.extract_strided_slice %55 {offsets = [0, 0], sizes = [144, 64], strides = [1, 1]} : vector<146x64xf32> to vector<144x64xf32>
    %57 = vector.extract_strided_slice %55 {offsets = [1, 0], sizes = [144, 64], strides = [1, 1]} : vector<146x64xf32> to vector<144x64xf32>
    %58 = arith.maximumf %56, %57 : vector<144x64xf32>
    %59 = vector.extract_strided_slice %55 {offsets = [2, 0], sizes = [144, 64], strides = [1, 1]} : vector<146x64xf32> to vector<144x64xf32>
    %60 = arith.maximumf %58, %59 : vector<144x64xf32>
    %c144_41 = arith.constant 144 : index
    %c0_42 = arith.constant 0 : index
    %61 = vector.load %arg9[%c144_41, %c0_42] : memref<864x64xf32, #tpu.memory_space<vmem>>, vector<144x64xf32>
    tpu.vector_store %arg9[%c144_41, %c0_42], %60 {strides = array<i32>} : memref<864x64xf32, #tpu.memory_space<vmem>>, vector<144x64xf32>,
    %c0_43 = arith.constant 0 : index
    %c288 = arith.constant 288 : index
    %c0_44 = arith.constant 0 : index
    %62 = vector.load %arg1[%c0_43, %c288, %c0_44] : memref<1x4400x120xbf16, #tpu.memory_space<vmem>>, vector<1x146x120xbf16>
    %63 = vector.shape_cast %62 : vector<1x146x120xbf16> to vector<146x120xbf16>
    %cst_45 = arith.constant dense<0.000000e+00> : vector<146x64xf32>
    %64 = tpu.matmul %63, %0, %cst_45 {dimension_numbers = #tpu.dot_dimension_numbers<[1], [0], [0], [1], [0, 0, 1, 1], [], []>} : vector<146x120xbf16>, vector<120x64xbf16>, vector<146x64xf32> -> vector<146x64xf32>
    %c0_46 = arith.constant 0 : index
    %c1168 = arith.constant 1168 : index
    %c0_47 = arith.constant 0 : index
    %65 = vector.load %arg1[%c0_46, %c1168, %c0_47] : memref<1x4400x120xbf16, #tpu.memory_space<vmem>>, vector<1x146x120xbf16>
    %66 = vector.shape_cast %65 : vector<1x146x120xbf16> to vector<146x120xbf16>
    %cst_48 = arith.constant dense<0.000000e+00> : vector<146x64xf32>
    %67 = tpu.matmul %66, %0, %cst_48 {dimension_numbers = #tpu.dot_dimension_numbers<[1], [0], [0], [1], [0, 0, 1, 1], [], []>} : vector<146x120xbf16>, vector<120x64xbf16>, vector<146x64xf32> -> vector<146x64xf32>
    %68 = arith.maximumf %64, %67 : vector<146x64xf32>
    %c0_49 = arith.constant 0 : index
    %c2048 = arith.constant 2048 : index
    %c0_50 = arith.constant 0 : index
    %69 = vector.load %arg1[%c0_49, %c2048, %c0_50] : memref<1x4400x120xbf16, #tpu.memory_space<vmem>>, vector<1x146x120xbf16>
    %70 = vector.shape_cast %69 : vector<1x146x120xbf16> to vector<146x120xbf16>
    %cst_51 = arith.constant dense<0.000000e+00> : vector<146x64xf32>
    %71 = tpu.matmul %70, %0, %cst_51 {dimension_numbers = #tpu.dot_dimension_numbers<[1], [0], [0], [1], [0, 0, 1, 1], [], []>} : vector<146x120xbf16>, vector<120x64xbf16>, vector<146x64xf32> -> vector<146x64xf32>
    %72 = arith.maximumf %68, %71 : vector<146x64xf32>
    %c0_52 = arith.constant 0 : index
    %c2928 = arith.constant 2928 : index
    %c0_53 = arith.constant 0 : index
    %73 = vector.load %arg1[%c0_52, %c2928, %c0_53] : memref<1x4400x120xbf16, #tpu.memory_space<vmem>>, vector<1x146x120xbf16>
    %74 = vector.shape_cast %73 : vector<1x146x120xbf16> to vector<146x120xbf16>
    %cst_54 = arith.constant dense<0.000000e+00> : vector<146x64xf32>
    %75 = tpu.matmul %74, %0, %cst_54 {dimension_numbers = #tpu.dot_dimension_numbers<[1], [0], [0], [1], [0, 0, 1, 1], [], []>} : vector<146x120xbf16>, vector<120x64xbf16>, vector<146x64xf32> -> vector<146x64xf32>
    %76 = arith.maximumf %72, %75 : vector<146x64xf32>
    %c0_55 = arith.constant 0 : index
    %c3808 = arith.constant 3808 : index
    %c0_56 = arith.constant 0 : index
    %77 = vector.load %arg1[%c0_55, %c3808, %c0_56] : memref<1x4400x120xbf16, #tpu.memory_space<vmem>>, vector<1x146x120xbf16>
    %78 = vector.shape_cast %77 : vector<1x146x120xbf16> to vector<146x120xbf16>
    %cst_57 = arith.constant dense<0.000000e+00> : vector<146x64xf32>
    %79 = tpu.matmul %78, %0, %cst_57 {dimension_numbers = #tpu.dot_dimension_numbers<[1], [0], [0], [1], [0, 0, 1, 1], [], []>} : vector<146x120xbf16>, vector<120x64xbf16>, vector<146x64xf32> -> vector<146x64xf32>
    %80 = arith.maximumf %76, %79 : vector<146x64xf32>
    %81 = vector.broadcast %1 : vector<1x64xf32> to vector<146x64xf32>
    %82 = arith.addf %80, %81 : vector<146x64xf32>
    %cst_58 = arith.constant 0.000000e+00 : f32
    %83 = vector.broadcast %cst_58 : f32 to vector<146x64xf32>
    %84 = arith.maximumf %82, %83 : vector<146x64xf32>
    %85 = vector.extract_strided_slice %84 {offsets = [0, 0], sizes = [144, 64], strides = [1, 1]} : vector<146x64xf32> to vector<144x64xf32>
    %86 = vector.extract_strided_slice %84 {offsets = [1, 0], sizes = [144, 64], strides = [1, 1]} : vector<146x64xf32> to vector<144x64xf32>
    %87 = arith.maximumf %85, %86 : vector<144x64xf32>
    %88 = vector.extract_strided_slice %84 {offsets = [2, 0], sizes = [144, 64], strides = [1, 1]} : vector<146x64xf32> to vector<144x64xf32>
    %89 = arith.maximumf %87, %88 : vector<144x64xf32>
    %c288_59 = arith.constant 288 : index
    %c0_60 = arith.constant 0 : index
    %90 = vector.load %arg9[%c288_59, %c0_60] : memref<864x64xf32, #tpu.memory_space<vmem>>, vector<144x64xf32>
    tpu.vector_store %arg9[%c288_59, %c0_60], %89 {strides = array<i32>} : memref<864x64xf32, #tpu.memory_space<vmem>>, vector<144x64xf32>,
    %c0_61 = arith.constant 0 : index
    %c432 = arith.constant 432 : index
    %c0_62 = arith.constant 0 : index
    %91 = vector.load %arg1[%c0_61, %c432, %c0_62] : memref<1x4400x120xbf16, #tpu.memory_space<vmem>>, vector<1x146x120xbf16>
    %92 = vector.shape_cast %91 : vector<1x146x120xbf16> to vector<146x120xbf16>
    %cst_63 = arith.constant dense<0.000000e+00> : vector<146x64xf32>
    %93 = tpu.matmul %92, %0, %cst_63 {dimension_numbers = #tpu.dot_dimension_numbers<[1], [0], [0], [1], [0, 0, 1, 1], [], []>} : vector<146x120xbf16>, vector<120x64xbf16>, vector<146x64xf32> -> vector<146x64xf32>
    %c0_64 = arith.constant 0 : index
    %c1312 = arith.constant 1312 : index
    %c0_65 = arith.constant 0 : index
    %94 = vector.load %arg1[%c0_64, %c1312, %c0_65] : memref<1x4400x120xbf16, #tpu.memory_space<vmem>>, vector<1x146x120xbf16>
    %95 = vector.shape_cast %94 : vector<1x146x120xbf16> to vector<146x120xbf16>
    %cst_66 = arith.constant dense<0.000000e+00> : vector<146x64xf32>
    %96 = tpu.matmul %95, %0, %cst_66 {dimension_numbers = #tpu.dot_dimension_numbers<[1], [0], [0], [1], [0, 0, 1, 1], [], []>} : vector<146x120xbf16>, vector<120x64xbf16>, vector<146x64xf32> -> vector<146x64xf32>
    %97 = arith.maximumf %93, %96 : vector<146x64xf32>
    %c0_67 = arith.constant 0 : index
    %c2192 = arith.constant 2192 : index
    %c0_68 = arith.constant 0 : index
    %98 = vector.load %arg1[%c0_67, %c2192, %c0_68] : memref<1x4400x120xbf16, #tpu.memory_space<vmem>>, vector<1x146x120xbf16>
    %99 = vector.shape_cast %98 : vector<1x146x120xbf16> to vector<146x120xbf16>
    %cst_69 = arith.constant dense<0.000000e+00> : vector<146x64xf32>
    %100 = tpu.matmul %99, %0, %cst_69 {dimension_numbers = #tpu.dot_dimension_numbers<[1], [0], [0], [1], [0, 0, 1, 1], [], []>} : vector<146x120xbf16>, vector<120x64xbf16>, vector<146x64xf32> -> vector<146x64xf32>
    %101 = arith.maximumf %97, %100 : vector<146x64xf32>
    %c0_70 = arith.constant 0 : index
    %c3072 = arith.constant 3072 : index
    %c0_71 = arith.constant 0 : index
    %102 = vector.load %arg1[%c0_70, %c3072, %c0_71] : memref<1x4400x120xbf16, #tpu.memory_space<vmem>>, vector<1x146x120xbf16>
    %103 = vector.shape_cast %102 : vector<1x146x120xbf16> to vector<146x120xbf16>
    %cst_72 = arith.constant dense<0.000000e+00> : vector<146x64xf32>
    %104 = tpu.matmul %103, %0, %cst_72 {dimension_numbers = #tpu.dot_dimension_numbers<[1], [0], [0], [1], [0, 0, 1, 1], [], []>} : vector<146x120xbf16>, vector<120x64xbf16>, vector<146x64xf32> -> vector<146x64xf32>
    %105 = arith.maximumf %101, %104 : vector<146x64xf32>
    %c0_73 = arith.constant 0 : index
    %c3952 = arith.constant 3952 : index
    %c0_74 = arith.constant 0 : index
    %106 = vector.load %arg1[%c0_73, %c3952, %c0_74] : memref<1x4400x120xbf16, #tpu.memory_space<vmem>>, vector<1x146x120xbf16>
    %107 = vector.shape_cast %106 : vector<1x146x120xbf16> to vector<146x120xbf16>
    %cst_75 = arith.constant dense<0.000000e+00> : vector<146x64xf32>
    %108 = tpu.matmul %107, %0, %cst_75 {dimension_numbers = #tpu.dot_dimension_numbers<[1], [0], [0], [1], [0, 0, 1, 1], [], []>} : vector<146x120xbf16>, vector<120x64xbf16>, vector<146x64xf32> -> vector<146x64xf32>
    %109 = arith.maximumf %105, %108 : vector<146x64xf32>
    %110 = vector.broadcast %1 : vector<1x64xf32> to vector<146x64xf32>
    %111 = arith.addf %109, %110 : vector<146x64xf32>
    %cst_76 = arith.constant 0.000000e+00 : f32
    %112 = vector.broadcast %cst_76 : f32 to vector<146x64xf32>
    %113 = arith.maximumf %111, %112 : vector<146x64xf32>
    %114 = vector.extract_strided_slice %113 {offsets = [0, 0], sizes = [144, 64], strides = [1, 1]} : vector<146x64xf32> to vector<144x64xf32>
    %115 = vector.extract_strided_slice %113 {offsets = [1, 0], sizes = [144, 64], strides = [1, 1]} : vector<146x64xf32> to vector<144x64xf32>
    %116 = arith.maximumf %114, %115 : vector<144x64xf32>
    %117 = vector.extract_strided_slice %113 {offsets = [2, 0], sizes = [144, 64], strides = [1, 1]} : vector<146x64xf32> to vector<144x64xf32>
    %118 = arith.maximumf %116, %117 : vector<144x64xf32>
    %c432_77 = arith.constant 432 : index
    %c0_78 = arith.constant 0 : index
    %119 = vector.load %arg9[%c432_77, %c0_78] : memref<864x64xf32, #tpu.memory_space<vmem>>, vector<144x64xf32>
    tpu.vector_store %arg9[%c432_77, %c0_78], %118 {strides = array<i32>} : memref<864x64xf32, #tpu.memory_space<vmem>>, vector<144x64xf32>,
    %c0_79 = arith.constant 0 : index
    %c576 = arith.constant 576 : index
    %c0_80 = arith.constant 0 : index
    %120 = vector.load %arg1[%c0_79, %c576, %c0_80] : memref<1x4400x120xbf16, #tpu.memory_space<vmem>>, vector<1x146x120xbf16>
    %121 = vector.shape_cast %120 : vector<1x146x120xbf16> to vector<146x120xbf16>
    %cst_81 = arith.constant dense<0.000000e+00> : vector<146x64xf32>
    %122 = tpu.matmul %121, %0, %cst_81 {dimension_numbers = #tpu.dot_dimension_numbers<[1], [0], [0], [1], [0, 0, 1, 1], [], []>} : vector<146x120xbf16>, vector<120x64xbf16>, vector<146x64xf32> -> vector<146x64xf32>
    %c0_82 = arith.constant 0 : index
    %c1456 = arith.constant 1456 : index
    %c0_83 = arith.constant 0 : index
    %123 = vector.load %arg1[%c0_82, %c1456, %c0_83] : memref<1x4400x120xbf16, #tpu.memory_space<vmem>>, vector<1x146x120xbf16>
    %124 = vector.shape_cast %123 : vector<1x146x120xbf16> to vector<146x120xbf16>
    %cst_84 = arith.constant dense<0.000000e+00> : vector<146x64xf32>
    %125 = tpu.matmul %124, %0, %cst_84 {dimension_numbers = #tpu.dot_dimension_numbers<[1], [0], [0], [1], [0, 0, 1, 1], [], []>} : vector<146x120xbf16>, vector<120x64xbf16>, vector<146x64xf32> -> vector<146x64xf32>
    %126 = arith.maximumf %122, %125 : vector<146x64xf32>
    %c0_85 = arith.constant 0 : index
    %c2336 = arith.constant 2336 : index
    %c0_86 = arith.constant 0 : index
    %127 = vector.load %arg1[%c0_85, %c2336, %c0_86] : memref<1x4400x120xbf16, #tpu.memory_space<vmem>>, vector<1x146x120xbf16>
    %128 = vector.shape_cast %127 : vector<1x146x120xbf16> to vector<146x120xbf16>
    %cst_87 = arith.constant dense<0.000000e+00> : vector<146x64xf32>
    %129 = tpu.matmul %128, %0, %cst_87 {dimension_numbers = #tpu.dot_dimension_numbers<[1], [0], [0], [1], [0, 0, 1, 1], [], []>} : vector<146x120xbf16>, vector<120x64xbf16>, vector<146x64xf32> -> vector<146x64xf32>
    %130 = arith.maximumf %126, %129 : vector<146x64xf32>
    %c0_88 = arith.constant 0 : index
    %c3216 = arith.constant 3216 : index
    %c0_89 = arith.constant 0 : index
    %131 = vector.load %arg1[%c0_88, %c3216, %c0_89] : memref<1x4400x120xbf16, #tpu.memory_space<vmem>>, vector<1x146x120xbf16>
    %132 = vector.shape_cast %131 : vector<1x146x120xbf16> to vector<146x120xbf16>
    %cst_90 = arith.constant dense<0.000000e+00> : vector<146x64xf32>
    %133 = tpu.matmul %132, %0, %cst_90 {dimension_numbers = #tpu.dot_dimension_numbers<[1], [0], [0], [1], [0, 0, 1, 1], [], []>} : vector<146x120xbf16>, vector<120x64xbf16>, vector<146x64xf32> -> vector<146x64xf32>
    %134 = arith.maximumf %130, %133 : vector<146x64xf32>
    %c0_91 = arith.constant 0 : index
    %c4096 = arith.constant 4096 : index
    %c0_92 = arith.constant 0 : index
    %135 = vector.load %arg1[%c0_91, %c4096, %c0_92] : memref<1x4400x120xbf16, #tpu.memory_space<vmem>>, vector<1x146x120xbf16>
    %136 = vector.shape_cast %135 : vector<1x146x120xbf16> to vector<146x120xbf16>
    %cst_93 = arith.constant dense<0.000000e+00> : vector<146x64xf32>
    %137 = tpu.matmul %136, %0, %cst_93 {dimension_numbers = #tpu.dot_dimension_numbers<[1], [0], [0], [1], [0, 0, 1, 1], [], []>} : vector<146x120xbf16>, vector<120x64xbf16>, vector<146x64xf32> -> vector<146x64xf32>
    %138 = arith.maximumf %134, %137 : vector<146x64xf32>
    %139 = vector.broadcast %1 : vector<1x64xf32> to vector<146x64xf32>
    %140 = arith.addf %138, %139 : vector<146x64xf32>
    %cst_94 = arith.constant 0.000000e+00 : f32
    %141 = vector.broadcast %cst_94 : f32 to vector<146x64xf32>
    %142 = arith.maximumf %140, %141 : vector<146x64xf32>
    %143 = vector.extract_strided_slice %142 {offsets = [0, 0], sizes = [144, 64], strides = [1, 1]} : vector<146x64xf32> to vector<144x64xf32>
    %144 = vector.extract_strided_slice %142 {offsets = [1, 0], sizes = [144, 64], strides = [1, 1]} : vector<146x64xf32> to vector<144x64xf32>
    %145 = arith.maximumf %143, %144 : vector<144x64xf32>
    %146 = vector.extract_strided_slice %142 {offsets = [2, 0], sizes = [144, 64], strides = [1, 1]} : vector<146x64xf32> to vector<144x64xf32>
    %147 = arith.maximumf %145, %146 : vector<144x64xf32>
    %c576_95 = arith.constant 576 : index
    %c0_96 = arith.constant 0 : index
    %148 = vector.load %arg9[%c576_95, %c0_96] : memref<864x64xf32, #tpu.memory_space<vmem>>, vector<144x64xf32>
    tpu.vector_store %arg9[%c576_95, %c0_96], %147 {strides = array<i32>} : memref<864x64xf32, #tpu.memory_space<vmem>>, vector<144x64xf32>,
    %c0_97 = arith.constant 0 : index
    %c720 = arith.constant 720 : index
    %c0_98 = arith.constant 0 : index
    %149 = vector.load %arg1[%c0_97, %c720, %c0_98] : memref<1x4400x120xbf16, #tpu.memory_space<vmem>>, vector<1x146x120xbf16>
    %150 = vector.shape_cast %149 : vector<1x146x120xbf16> to vector<146x120xbf16>
    %cst_99 = arith.constant dense<0.000000e+00> : vector<146x64xf32>
    %151 = tpu.matmul %150, %0, %cst_99 {dimension_numbers = #tpu.dot_dimension_numbers<[1], [0], [0], [1], [0, 0, 1, 1], [], []>} : vector<146x120xbf16>, vector<120x64xbf16>, vector<146x64xf32> -> vector<146x64xf32>
    %c0_100 = arith.constant 0 : index
    %c1600 = arith.constant 1600 : index
    %c0_101 = arith.constant 0 : index
    %152 = vector.load %arg1[%c0_100, %c1600, %c0_101] : memref<1x4400x120xbf16, #tpu.memory_space<vmem>>, vector<1x146x120xbf16>
    %153 = vector.shape_cast %152 : vector<1x146x120xbf16> to vector<146x120xbf16>
    %cst_102 = arith.constant dense<0.000000e+00> : vector<146x64xf32>
    %154 = tpu.matmul %153, %0, %cst_102 {dimension_numbers = #tpu.dot_dimension_numbers<[1], [0], [0], [1], [0, 0, 1, 1], [], []>} : vector<146x120xbf16>, vector<120x64xbf16>, vector<146x64xf32> -> vector<146x64xf32>
    %155 = arith.maximumf %151, %154 : vector<146x64xf32>
    %c0_103 = arith.constant 0 : index
    %c2480 = arith.constant 2480 : index
    %c0_104 = arith.constant 0 : index
    %156 = vector.load %arg1[%c0_103, %c2480, %c0_104] : memref<1x4400x120xbf16, #tpu.memory_space<vmem>>, vector<1x146x120xbf16>
    %157 = vector.shape_cast %156 : vector<1x146x120xbf16> to vector<146x120xbf16>
    %cst_105 = arith.constant dense<0.000000e+00> : vector<146x64xf32>
    %158 = tpu.matmul %157, %0, %cst_105 {dimension_numbers = #tpu.dot_dimension_numbers<[1], [0], [0], [1], [0, 0, 1, 1], [], []>} : vector<146x120xbf16>, vector<120x64xbf16>, vector<146x64xf32> -> vector<146x64xf32>
    %159 = arith.maximumf %155, %158 : vector<146x64xf32>
    %c0_106 = arith.constant 0 : index
    %c3360 = arith.constant 3360 : index
    %c0_107 = arith.constant 0 : index
    %160 = vector.load %arg1[%c0_106, %c3360, %c0_107] : memref<1x4400x120xbf16, #tpu.memory_space<vmem>>, vector<1x146x120xbf16>
    %161 = vector.shape_cast %160 : vector<1x146x120xbf16> to vector<146x120xbf16>
    %cst_108 = arith.constant dense<0.000000e+00> : vector<146x64xf32>
    %162 = tpu.matmul %161, %0, %cst_108 {dimension_numbers = #tpu.dot_dimension_numbers<[1], [0], [0], [1], [0, 0, 1, 1], [], []>} : vector<146x120xbf16>, vector<120x64xbf16>, vector<146x64xf32> -> vector<146x64xf32>
    %163 = arith.maximumf %159, %162 : vector<146x64xf32>
    %c0_109 = arith.constant 0 : index
    %c4240 = arith.constant 4240 : index
    %c0_110 = arith.constant 0 : index
    %164 = vector.load %arg1[%c0_109, %c4240, %c0_110] : memref<1x4400x120xbf16, #tpu.memory_space<vmem>>, vector<1x146x120xbf16>
    %165 = vector.shape_cast %164 : vector<1x146x120xbf16> to vector<146x120xbf16>
    %cst_111 = arith.constant dense<0.000000e+00> : vector<146x64xf32>
    %166 = tpu.matmul %165, %0, %cst_111 {dimension_numbers = #tpu.dot_dimension_numbers<[1], [0], [0], [1], [0, 0, 1, 1], [], []>} : vector<146x120xbf16>, vector<120x64xbf16>, vector<146x64xf32> -> vector<146x64xf32>
    %167 = arith.maximumf %163, %166 : vector<146x64xf32>
    %168 = vector.broadcast %1 : vector<1x64xf32> to vector<146x64xf32>
    %169 = arith.addf %167, %168 : vector<146x64xf32>
    %cst_112 = arith.constant 0.000000e+00 : f32
    %170 = vector.broadcast %cst_112 : f32 to vector<146x64xf32>
    %171 = arith.maximumf %169, %170 : vector<146x64xf32>
    %172 = vector.extract_strided_slice %171 {offsets = [0, 0], sizes = [144, 64], strides = [1, 1]} : vector<146x64xf32> to vector<144x64xf32>
    %173 = vector.extract_strided_slice %171 {offsets = [1, 0], sizes = [144, 64], strides = [1, 1]} : vector<146x64xf32> to vector<144x64xf32>
    %174 = arith.maximumf %172, %173 : vector<144x64xf32>
    %175 = vector.extract_strided_slice %171 {offsets = [2, 0], sizes = [144, 64], strides = [1, 1]} : vector<146x64xf32> to vector<144x64xf32>
    %176 = arith.maximumf %174, %175 : vector<144x64xf32>
    %c720_113 = arith.constant 720 : index
    %c0_114 = arith.constant 0 : index
    %177 = vector.load %arg9[%c720_113, %c0_114] : memref<864x64xf32, #tpu.memory_space<vmem>>, vector<144x64xf32>
    tpu.vector_store %arg9[%c720_113, %c0_114], %176 {strides = array<i32>} : memref<864x64xf32, #tpu.memory_space<vmem>>, vector<144x64xf32>,
    %c0_115 = arith.constant 0 : index
    %c0_116 = arith.constant 0 : index
    %178 = tpu.strided_load %arg9[%c0_115, %c0_116] {strides = array<i32: 10, 1>} : memref<864x64xf32, #tpu.memory_space<vmem>>, vector<82x64xf32>
    %179 = vector.extract_strided_slice %178 {offsets = [0, 0], sizes = [80, 64], strides = [1, 1]} : vector<82x64xf32> to vector<80x64xf32>
    %180 = arith.truncf %179 : vector<80x64xf32> to vector<80x64xbf16>
    %c0_117 = arith.constant 0 : index
    %c0_118 = arith.constant 0 : index
    %c0_119 = arith.constant 0 : index
    %181 = vector.load %arg4[%c0_117, %c0_118, %c0_119] : memref<25x64x32xbf16, #tpu.memory_space<vmem>>, vector<1x64x32xbf16>
    %182 = vector.shape_cast %181 : vector<1x64x32xbf16> to vector<64x32xbf16>
    %cst_120 = arith.constant dense<0.000000e+00> : vector<80x32xf32>
    %183 = tpu.matmul %180, %182, %cst_120 {dimension_numbers = #tpu.dot_dimension_numbers<[1], [0], [0], [1], [0, 0, 1, 1], [], []>} : vector<80x64xbf16>, vector<64x32xbf16>, vector<80x32xf32> -> vector<80x32xf32>
    %184 = vector.extract_strided_slice %178 {offsets = [1, 0], sizes = [80, 64], strides = [1, 1]} : vector<82x64xf32> to vector<80x64xf32>
    %185 = arith.truncf %184 : vector<80x64xf32> to vector<80x64xbf16>
    %c10 = arith.constant 10 : index
    %c0_121 = arith.constant 0 : index
    %c0_122 = arith.constant 0 : index
    %186 = vector.load %arg4[%c10, %c0_121, %c0_122] : memref<25x64x32xbf16, #tpu.memory_space<vmem>>, vector<1x64x32xbf16>
    %187 = vector.shape_cast %186 : vector<1x64x32xbf16> to vector<64x32xbf16>
    %cst_123 = arith.constant dense<0.000000e+00> : vector<80x32xf32>
    %188 = tpu.matmul %185, %187, %cst_123 {dimension_numbers = #tpu.dot_dimension_numbers<[1], [0], [0], [1], [0, 0, 1, 1], [], []>} : vector<80x64xbf16>, vector<64x32xbf16>, vector<80x32xf32> -> vector<80x32xf32>
    %189 = arith.addf %183, %188 : vector<80x32xf32>
    %190 = vector.extract_strided_slice %178 {offsets = [2, 0], sizes = [80, 64], strides = [1, 1]} : vector<82x64xf32> to vector<80x64xf32>
    %191 = arith.truncf %190 : vector<80x64xf32> to vector<80x64xbf16>
    %c20 = arith.constant 20 : index
    %c0_124 = arith.constant 0 : index
    %c0_125 = arith.constant 0 : index
    %192 = vector.load %arg4[%c20, %c0_124, %c0_125] : memref<25x64x32xbf16, #tpu.memory_space<vmem>>, vector<1x64x32xbf16>
    %193 = vector.shape_cast %192 : vector<1x64x32xbf16> to vector<64x32xbf16>
    %cst_126 = arith.constant dense<0.000000e+00> : vector<80x32xf32>
    %194 = tpu.matmul %191, %193, %cst_126 {dimension_numbers = #tpu.dot_dimension_numbers<[1], [0], [0], [1], [0, 0, 1, 1], [], []>} : vector<80x64xbf16>, vector<64x32xbf16>, vector<80x32xf32> -> vector<80x32xf32>
    %195 = arith.addf %189, %194 : vector<80x32xf32>
    %c1 = arith.constant 1 : index
    %c0_127 = arith.constant 0 : index
    %196 = tpu.strided_load %arg9[%c1, %c0_127] {strides = array<i32: 10, 1>} : memref<864x64xf32, #tpu.memory_space<vmem>>, vector<82x64xf32>
    %197 = vector.extract_strided_slice %196 {offsets = [0, 0], sizes = [80, 64], strides = [1, 1]} : vector<82x64xf32> to vector<80x64xf32>
    %198 = arith.truncf %197 : vector<80x64xf32> to vector<80x64xbf16>
    %c1_128 = arith.constant 1 : index
    %c0_129 = arith.constant 0 : index
    %c0_130 = arith.constant 0 : index
    %199 = vector.load %arg4[%c1_128, %c0_129, %c0_130] : memref<25x64x32xbf16, #tpu.memory_space<vmem>>, vector<1x64x32xbf16>
    %200 = vector.shape_cast %199 : vector<1x64x32xbf16> to vector<64x32xbf16>
    %cst_131 = arith.constant dense<0.000000e+00> : vector<80x32xf32>
    %201 = tpu.matmul %198, %200, %cst_131 {dimension_numbers = #tpu.dot_dimension_numbers<[1], [0], [0], [1], [0, 0, 1, 1], [], []>} : vector<80x64xbf16>, vector<64x32xbf16>, vector<80x32xf32> -> vector<80x32xf32>
    %202 = vector.extract_strided_slice %196 {offsets = [1, 0], sizes = [80, 64], strides = [1, 1]} : vector<82x64xf32> to vector<80x64xf32>
    %203 = arith.truncf %202 : vector<80x64xf32> to vector<80x64xbf16>
    %c11 = arith.constant 11 : index
    %c0_132 = arith.constant 0 : index
    %c0_133 = arith.constant 0 : index
    %204 = vector.load %arg4[%c11, %c0_132, %c0_133] : memref<25x64x32xbf16, #tpu.memory_space<vmem>>, vector<1x64x32xbf16>
    %205 = vector.shape_cast %204 : vector<1x64x32xbf16> to vector<64x32xbf16>
    %cst_134 = arith.constant dense<0.000000e+00> : vector<80x32xf32>
    %206 = tpu.matmul %203, %205, %cst_134 {dimension_numbers = #tpu.dot_dimension_numbers<[1], [0], [0], [1], [0, 0, 1, 1], [], []>} : vector<80x64xbf16>, vector<64x32xbf16>, vector<80x32xf32> -> vector<80x32xf32>
    %207 = arith.addf %201, %206 : vector<80x32xf32>
    %208 = vector.extract_strided_slice %196 {offsets = [2, 0], sizes = [80, 64], strides = [1, 1]} : vector<82x64xf32> to vector<80x64xf32>
    %209 = arith.truncf %208 : vector<80x64xf32> to vector<80x64xbf16>
    %c21 = arith.constant 21 : index
    %c0_135 = arith.constant 0 : index
    %c0_136 = arith.constant 0 : index
    %210 = vector.load %arg4[%c21, %c0_135, %c0_136] : memref<25x64x32xbf16, #tpu.memory_space<vmem>>, vector<1x64x32xbf16>
    %211 = vector.shape_cast %210 : vector<1x64x32xbf16> to vector<64x32xbf16>
    %cst_137 = arith.constant dense<0.000000e+00> : vector<80x32xf32>
    %212 = tpu.matmul %209, %211, %cst_137 {dimension_numbers = #tpu.dot_dimension_numbers<[1], [0], [0], [1], [0, 0, 1, 1], [], []>} : vector<80x64xbf16>, vector<64x32xbf16>, vector<80x32xf32> -> vector<80x32xf32>
    %213 = arith.addf %207, %212 : vector<80x32xf32>
    %c2 = arith.constant 2 : index
    %c0_138 = arith.constant 0 : index
    %214 = tpu.strided_load %arg9[%c2, %c0_138] {strides = array<i32: 10, 1>} : memref<864x64xf32, #tpu.memory_space<vmem>>, vector<82x64xf32>
    %215 = vector.extract_strided_slice %214 {offsets = [0, 0], sizes = [80, 64], strides = [1, 1]} : vector<82x64xf32> to vector<80x64xf32>
    %216 = arith.truncf %215 : vector<80x64xf32> to vector<80x64xbf16>
    %c2_139 = arith.constant 2 : index
    %c0_140 = arith.constant 0 : index
    %c0_141 = arith.constant 0 : index
    %217 = vector.load %arg4[%c2_139, %c0_140, %c0_141] : memref<25x64x32xbf16, #tpu.memory_space<vmem>>, vector<1x64x32xbf16>
    %218 = vector.shape_cast %217 : vector<1x64x32xbf16> to vector<64x32xbf16>
    %cst_142 = arith.constant dense<0.000000e+00> : vector<80x32xf32>
    %219 = tpu.matmul %216, %218, %cst_142 {dimension_numbers = #tpu.dot_dimension_numbers<[1], [0], [0], [1], [0, 0, 1, 1], [], []>} : vector<80x64xbf16>, vector<64x32xbf16>, vector<80x32xf32> -> vector<80x32xf32>
    %220 = vector.extract_strided_slice %214 {offsets = [1, 0], sizes = [80, 64], strides = [1, 1]} : vector<82x64xf32> to vector<80x64xf32>
    %221 = arith.truncf %220 : vector<80x64xf32> to vector<80x64xbf16>
    %c12 = arith.constant 12 : index
    %c0_143 = arith.constant 0 : index
    %c0_144 = arith.constant 0 : index
    %222 = vector.load %arg4[%c12, %c0_143, %c0_144] : memref<25x64x32xbf16, #tpu.memory_space<vmem>>, vector<1x64x32xbf16>
    %223 = vector.shape_cast %222 : vector<1x64x32xbf16> to vector<64x32xbf16>
    %cst_145 = arith.constant dense<0.000000e+00> : vector<80x32xf32>
    %224 = tpu.matmul %221, %223, %cst_145 {dimension_numbers = #tpu.dot_dimension_numbers<[1], [0], [0], [1], [0, 0, 1, 1], [], []>} : vector<80x64xbf16>, vector<64x32xbf16>, vector<80x32xf32> -> vector<80x32xf32>
    %225 = arith.addf %219, %224 : vector<80x32xf32>
    %226 = vector.extract_strided_slice %214 {offsets = [2, 0], sizes = [80, 64], strides = [1, 1]} : vector<82x64xf32> to vector<80x64xf32>
    %227 = arith.truncf %226 : vector<80x64xf32> to vector<80x64xbf16>
    %c22 = arith.constant 22 : index
    %c0_146 = arith.constant 0 : index
    %c0_147 = arith.constant 0 : index
    %228 = vector.load %arg4[%c22, %c0_146, %c0_147] : memref<25x64x32xbf16, #tpu.memory_space<vmem>>, vector<1x64x32xbf16>
    %229 = vector.shape_cast %228 : vector<1x64x32xbf16> to vector<64x32xbf16>
    %cst_148 = arith.constant dense<0.000000e+00> : vector<80x32xf32>
    %230 = tpu.matmul %227, %229, %cst_148 {dimension_numbers = #tpu.dot_dimension_numbers<[1], [0], [0], [1], [0, 0, 1, 1], [], []>} : vector<80x64xbf16>, vector<64x32xbf16>, vector<80x32xf32> -> vector<80x32xf32>
    %231 = arith.addf %225, %230 : vector<80x32xf32>
    %c3 = arith.constant 3 : index
    %c0_149 = arith.constant 0 : index
    %232 = tpu.strided_load %arg9[%c3, %c0_149] {strides = array<i32: 10, 1>} : memref<864x64xf32, #tpu.memory_space<vmem>>, vector<82x64xf32>
    %233 = vector.extract_strided_slice %232 {offsets = [0, 0], sizes = [80, 64], strides = [1, 1]} : vector<82x64xf32> to vector<80x64xf32>
    %234 = arith.truncf %233 : vector<80x64xf32> to vector<80x64xbf16>
    %c3_150 = arith.constant 3 : index
    %c0_151 = arith.constant 0 : index
    %c0_152 = arith.constant 0 : index
    %235 = vector.load %arg4[%c3_150, %c0_151, %c0_152] : memref<25x64x32xbf16, #tpu.memory_space<vmem>>, vector<1x64x32xbf16>
    %236 = vector.shape_cast %235 : vector<1x64x32xbf16> to vector<64x32xbf16>
    %cst_153 = arith.constant dense<0.000000e+00> : vector<80x32xf32>
    %237 = tpu.matmul %234, %236, %cst_153 {dimension_numbers = #tpu.dot_dimension_numbers<[1], [0], [0], [1], [0, 0, 1, 1], [], []>} : vector<80x64xbf16>, vector<64x32xbf16>, vector<80x32xf32> -> vector<80x32xf32>
    %238 = vector.extract_strided_slice %232 {offsets = [1, 0], sizes = [80, 64], strides = [1, 1]} : vector<82x64xf32> to vector<80x64xf32>
    %239 = arith.truncf %238 : vector<80x64xf32> to vector<80x64xbf16>
    %c13 = arith.constant 13 : index
    %c0_154 = arith.constant 0 : index
    %c0_155 = arith.constant 0 : index
    %240 = vector.load %arg4[%c13, %c0_154, %c0_155] : memref<25x64x32xbf16, #tpu.memory_space<vmem>>, vector<1x64x32xbf16>
    %241 = vector.shape_cast %240 : vector<1x64x32xbf16> to vector<64x32xbf16>
    %cst_156 = arith.constant dense<0.000000e+00> : vector<80x32xf32>
    %242 = tpu.matmul %239, %241, %cst_156 {dimension_numbers = #tpu.dot_dimension_numbers<[1], [0], [0], [1], [0, 0, 1, 1], [], []>} : vector<80x64xbf16>, vector<64x32xbf16>, vector<80x32xf32> -> vector<80x32xf32>
    %243 = arith.addf %237, %242 : vector<80x32xf32>
    %244 = vector.extract_strided_slice %232 {offsets = [2, 0], sizes = [80, 64], strides = [1, 1]} : vector<82x64xf32> to vector<80x64xf32>
    %245 = arith.truncf %244 : vector<80x64xf32> to vector<80x64xbf16>
    %c23 = arith.constant 23 : index
    %c0_157 = arith.constant 0 : index
    %c0_158 = arith.constant 0 : index
    %246 = vector.load %arg4[%c23, %c0_157, %c0_158] : memref<25x64x32xbf16, #tpu.memory_space<vmem>>, vector<1x64x32xbf16>
    %247 = vector.shape_cast %246 : vector<1x64x32xbf16> to vector<64x32xbf16>
    %cst_159 = arith.constant dense<0.000000e+00> : vector<80x32xf32>
    %248 = tpu.matmul %245, %247, %cst_159 {dimension_numbers = #tpu.dot_dimension_numbers<[1], [0], [0], [1], [0, 0, 1, 1], [], []>} : vector<80x64xbf16>, vector<64x32xbf16>, vector<80x32xf32> -> vector<80x32xf32>
    %249 = arith.addf %243, %248 : vector<80x32xf32>
    %c4 = arith.constant 4 : index
    %c0_160 = arith.constant 0 : index
    %250 = tpu.strided_load %arg9[%c4, %c0_160] {strides = array<i32: 10, 1>} : memref<864x64xf32, #tpu.memory_space<vmem>>, vector<82x64xf32>
    %251 = vector.extract_strided_slice %250 {offsets = [0, 0], sizes = [80, 64], strides = [1, 1]} : vector<82x64xf32> to vector<80x64xf32>
    %252 = arith.truncf %251 : vector<80x64xf32> to vector<80x64xbf16>
    %c4_161 = arith.constant 4 : index
    %c0_162 = arith.constant 0 : index
    %c0_163 = arith.constant 0 : index
    %253 = vector.load %arg4[%c4_161, %c0_162, %c0_163] : memref<25x64x32xbf16, #tpu.memory_space<vmem>>, vector<1x64x32xbf16>
    %254 = vector.shape_cast %253 : vector<1x64x32xbf16> to vector<64x32xbf16>
    %cst_164 = arith.constant dense<0.000000e+00> : vector<80x32xf32>
    %255 = tpu.matmul %252, %254, %cst_164 {dimension_numbers = #tpu.dot_dimension_numbers<[1], [0], [0], [1], [0, 0, 1, 1], [], []>} : vector<80x64xbf16>, vector<64x32xbf16>, vector<80x32xf32> -> vector<80x32xf32>
    %256 = vector.extract_strided_slice %250 {offsets = [1, 0], sizes = [80, 64], strides = [1, 1]} : vector<82x64xf32> to vector<80x64xf32>
    %257 = arith.truncf %256 : vector<80x64xf32> to vector<80x64xbf16>
    %c14 = arith.constant 14 : index
    %c0_165 = arith.constant 0 : index
    %c0_166 = arith.constant 0 : index
    %258 = vector.load %arg4[%c14, %c0_165, %c0_166] : memref<25x64x32xbf16, #tpu.memory_space<vmem>>, vector<1x64x32xbf16>
    %259 = vector.shape_cast %258 : vector<1x64x32xbf16> to vector<64x32xbf16>
    %cst_167 = arith.constant dense<0.000000e+00> : vector<80x32xf32>
    %260 = tpu.matmul %257, %259, %cst_167 {dimension_numbers = #tpu.dot_dimension_numbers<[1], [0], [0], [1], [0, 0, 1, 1], [], []>} : vector<80x64xbf16>, vector<64x32xbf16>, vector<80x32xf32> -> vector<80x32xf32>
    %261 = arith.addf %255, %260 : vector<80x32xf32>
    %262 = vector.extract_strided_slice %250 {offsets = [2, 0], sizes = [80, 64], strides = [1, 1]} : vector<82x64xf32> to vector<80x64xf32>
    %263 = arith.truncf %262 : vector<80x64xf32> to vector<80x64xbf16>
    %c24 = arith.constant 24 : index
    %c0_168 = arith.constant 0 : index
    %c0_169 = arith.constant 0 : index
    %264 = vector.load %arg4[%c24, %c0_168, %c0_169] : memref<25x64x32xbf16, #tpu.memory_space<vmem>>, vector<1x64x32xbf16>
    %265 = vector.shape_cast %264 : vector<1x64x32xbf16> to vector<64x32xbf16>
    %cst_170 = arith.constant dense<0.000000e+00> : vector<80x32xf32>
    %266 = tpu.matmul %263, %265, %cst_170 {dimension_numbers = #tpu.dot_dimension_numbers<[1], [0], [0], [1], [0, 0, 1, 1], [], []>} : vector<80x64xbf16>, vector<64x32xbf16>, vector<80x32xf32> -> vector<80x32xf32>
    %267 = arith.addf %261, %266 : vector<80x32xf32>
    %c5 = arith.constant 5 : index
    %c0_171 = arith.constant 0 : index
    %268 = tpu.strided_load %arg9[%c5, %c0_171] {strides = array<i32: 10, 1>} : memref<864x64xf32, #tpu.memory_space<vmem>>, vector<82x64xf32>
    %269 = vector.extract_strided_slice %268 {offsets = [0, 0], sizes = [80, 64], strides = [1, 1]} : vector<82x64xf32> to vector<80x64xf32>
    %270 = arith.truncf %269 : vector<80x64xf32> to vector<80x64xbf16>
    %c5_172 = arith.constant 5 : index
    %c0_173 = arith.constant 0 : index
    %c0_174 = arith.constant 0 : index
    %271 = vector.load %arg4[%c5_172, %c0_173, %c0_174] : memref<25x64x32xbf16, #tpu.memory_space<vmem>>, vector<1x64x32xbf16>
    %272 = vector.shape_cast %271 : vector<1x64x32xbf16> to vector<64x32xbf16>
    %cst_175 = arith.constant dense<0.000000e+00> : vector<80x32xf32>
    %273 = tpu.matmul %270, %272, %cst_175 {dimension_numbers = #tpu.dot_dimension_numbers<[1], [0], [0], [1], [0, 0, 1, 1], [], []>} : vector<80x64xbf16>, vector<64x32xbf16>, vector<80x32xf32> -> vector<80x32xf32>
    %274 = arith.addf %195, %273 : vector<80x32xf32>
    %275 = vector.extract_strided_slice %268 {offsets = [1, 0], sizes = [80, 64], strides = [1, 1]} : vector<82x64xf32> to vector<80x64xf32>
    %276 = arith.truncf %275 : vector<80x64xf32> to vector<80x64xbf16>
    %c15 = arith.constant 15 : index
    %c0_176 = arith.constant 0 : index
    %c0_177 = arith.constant 0 : index
    %277 = vector.load %arg4[%c15, %c0_176, %c0_177] : memref<25x64x32xbf16, #tpu.memory_space<vmem>>, vector<1x64x32xbf16>
    %278 = vector.shape_cast %277 : vector<1x64x32xbf16> to vector<64x32xbf16>
    %cst_178 = arith.constant dense<0.000000e+00> : vector<80x32xf32>
    %279 = tpu.matmul %276, %278, %cst_178 {dimension_numbers = #tpu.dot_dimension_numbers<[1], [0], [0], [1], [0, 0, 1, 1], [], []>} : vector<80x64xbf16>, vector<64x32xbf16>, vector<80x32xf32> -> vector<80x32xf32>
    %280 = arith.addf %274, %279 : vector<80x32xf32>
    %c6 = arith.constant 6 : index
    %c0_179 = arith.constant 0 : index
    %281 = tpu.strided_load %arg9[%c6, %c0_179] {strides = array<i32: 10, 1>} : memref<864x64xf32, #tpu.memory_space<vmem>>, vector<82x64xf32>
    %282 = vector.extract_strided_slice %281 {offsets = [0, 0], sizes = [80, 64], strides = [1, 1]} : vector<82x64xf32> to vector<80x64xf32>
    %283 = arith.truncf %282 : vector<80x64xf32> to vector<80x64xbf16>
    %c6_180 = arith.constant 6 : index
    %c0_181 = arith.constant 0 : index
    %c0_182 = arith.constant 0 : index
    %284 = vector.load %arg4[%c6_180, %c0_181, %c0_182] : memref<25x64x32xbf16, #tpu.memory_space<vmem>>, vector<1x64x32xbf16>
    %285 = vector.shape_cast %284 : vector<1x64x32xbf16> to vector<64x32xbf16>
    %cst_183 = arith.constant dense<0.000000e+00> : vector<80x32xf32>
    %286 = tpu.matmul %283, %285, %cst_183 {dimension_numbers = #tpu.dot_dimension_numbers<[1], [0], [0], [1], [0, 0, 1, 1], [], []>} : vector<80x64xbf16>, vector<64x32xbf16>, vector<80x32xf32> -> vector<80x32xf32>
    %287 = arith.addf %213, %286 : vector<80x32xf32>
    %288 = vector.extract_strided_slice %281 {offsets = [1, 0], sizes = [80, 64], strides = [1, 1]} : vector<82x64xf32> to vector<80x64xf32>
    %289 = arith.truncf %288 : vector<80x64xf32> to vector<80x64xbf16>
    %c16 = arith.constant 16 : index
    %c0_184 = arith.constant 0 : index
    %c0_185 = arith.constant 0 : index
    %290 = vector.load %arg4[%c16, %c0_184, %c0_185] : memref<25x64x32xbf16, #tpu.memory_space<vmem>>, vector<1x64x32xbf16>
    %291 = vector.shape_cast %290 : vector<1x64x32xbf16> to vector<64x32xbf16>
    %cst_186 = arith.constant dense<0.000000e+00> : vector<80x32xf32>
    %292 = tpu.matmul %289, %291, %cst_186 {dimension_numbers = #tpu.dot_dimension_numbers<[1], [0], [0], [1], [0, 0, 1, 1], [], []>} : vector<80x64xbf16>, vector<64x32xbf16>, vector<80x32xf32> -> vector<80x32xf32>
    %293 = arith.addf %287, %292 : vector<80x32xf32>
    %c7 = arith.constant 7 : index
    %c0_187 = arith.constant 0 : index
    %294 = tpu.strided_load %arg9[%c7, %c0_187] {strides = array<i32: 10, 1>} : memref<864x64xf32, #tpu.memory_space<vmem>>, vector<82x64xf32>
    %295 = vector.extract_strided_slice %294 {offsets = [0, 0], sizes = [80, 64], strides = [1, 1]} : vector<82x64xf32> to vector<80x64xf32>
    %296 = arith.truncf %295 : vector<80x64xf32> to vector<80x64xbf16>
    %c7_188 = arith.constant 7 : index
    %c0_189 = arith.constant 0 : index
    %c0_190 = arith.constant 0 : index
    %297 = vector.load %arg4[%c7_188, %c0_189, %c0_190] : memref<25x64x32xbf16, #tpu.memory_space<vmem>>, vector<1x64x32xbf16>
    %298 = vector.shape_cast %297 : vector<1x64x32xbf16> to vector<64x32xbf16>
    %cst_191 = arith.constant dense<0.000000e+00> : vector<80x32xf32>
    %299 = tpu.matmul %296, %298, %cst_191 {dimension_numbers = #tpu.dot_dimension_numbers<[1], [0], [0], [1], [0, 0, 1, 1], [], []>} : vector<80x64xbf16>, vector<64x32xbf16>, vector<80x32xf32> -> vector<80x32xf32>
    %300 = arith.addf %231, %299 : vector<80x32xf32>
    %301 = vector.extract_strided_slice %294 {offsets = [1, 0], sizes = [80, 64], strides = [1, 1]} : vector<82x64xf32> to vector<80x64xf32>
    %302 = arith.truncf %301 : vector<80x64xf32> to vector<80x64xbf16>
    %c17 = arith.constant 17 : index
    %c0_192 = arith.constant 0 : index
    %c0_193 = arith.constant 0 : index
    %303 = vector.load %arg4[%c17, %c0_192, %c0_193] : memref<25x64x32xbf16, #tpu.memory_space<vmem>>, vector<1x64x32xbf16>
    %304 = vector.shape_cast %303 : vector<1x64x32xbf16> to vector<64x32xbf16>
    %cst_194 = arith.constant dense<0.000000e+00> : vector<80x32xf32>
    %305 = tpu.matmul %302, %304, %cst_194 {dimension_numbers = #tpu.dot_dimension_numbers<[1], [0], [0], [1], [0, 0, 1, 1], [], []>} : vector<80x64xbf16>, vector<64x32xbf16>, vector<80x32xf32> -> vector<80x32xf32>
    %306 = arith.addf %300, %305 : vector<80x32xf32>
    %c8 = arith.constant 8 : index
    %c0_195 = arith.constant 0 : index
    %307 = tpu.strided_load %arg9[%c8, %c0_195] {strides = array<i32: 10, 1>} : memref<864x64xf32, #tpu.memory_space<vmem>>, vector<82x64xf32>
    %308 = vector.extract_strided_slice %307 {offsets = [0, 0], sizes = [80, 64], strides = [1, 1]} : vector<82x64xf32> to vector<80x64xf32>
    %309 = arith.truncf %308 : vector<80x64xf32> to vector<80x64xbf16>
    %c8_196 = arith.constant 8 : index
    %c0_197 = arith.constant 0 : index
    %c0_198 = arith.constant 0 : index
    %310 = vector.load %arg4[%c8_196, %c0_197, %c0_198] : memref<25x64x32xbf16, #tpu.memory_space<vmem>>, vector<1x64x32xbf16>
    %311 = vector.shape_cast %310 : vector<1x64x32xbf16> to vector<64x32xbf16>
    %cst_199 = arith.constant dense<0.000000e+00> : vector<80x32xf32>
    %312 = tpu.matmul %309, %311, %cst_199 {dimension_numbers = #tpu.dot_dimension_numbers<[1], [0], [0], [1], [0, 0, 1, 1], [], []>} : vector<80x64xbf16>, vector<64x32xbf16>, vector<80x32xf32> -> vector<80x32xf32>
    %313 = arith.addf %249, %312 : vector<80x32xf32>
    %314 = vector.extract_strided_slice %307 {offsets = [1, 0], sizes = [80, 64], strides = [1, 1]} : vector<82x64xf32> to vector<80x64xf32>
    %315 = arith.truncf %314 : vector<80x64xf32> to vector<80x64xbf16>
    %c18 = arith.constant 18 : index
    %c0_200 = arith.constant 0 : index
    %c0_201 = arith.constant 0 : index
    %316 = vector.load %arg4[%c18, %c0_200, %c0_201] : memref<25x64x32xbf16, #tpu.memory_space<vmem>>, vector<1x64x32xbf16>
    %317 = vector.shape_cast %316 : vector<1x64x32xbf16> to vector<64x32xbf16>
    %cst_202 = arith.constant dense<0.000000e+00> : vector<80x32xf32>
    %318 = tpu.matmul %315, %317, %cst_202 {dimension_numbers = #tpu.dot_dimension_numbers<[1], [0], [0], [1], [0, 0, 1, 1], [], []>} : vector<80x64xbf16>, vector<64x32xbf16>, vector<80x32xf32> -> vector<80x32xf32>
    %319 = arith.addf %313, %318 : vector<80x32xf32>
    %c9 = arith.constant 9 : index
    %c0_203 = arith.constant 0 : index
    %320 = tpu.strided_load %arg9[%c9, %c0_203] {strides = array<i32: 10, 1>} : memref<864x64xf32, #tpu.memory_space<vmem>>, vector<82x64xf32>
    %321 = vector.extract_strided_slice %320 {offsets = [0, 0], sizes = [80, 64], strides = [1, 1]} : vector<82x64xf32> to vector<80x64xf32>
    %322 = arith.truncf %321 : vector<80x64xf32> to vector<80x64xbf16>
    %c9_204 = arith.constant 9 : index
    %c0_205 = arith.constant 0 : index
    %c0_206 = arith.constant 0 : index
    %323 = vector.load %arg4[%c9_204, %c0_205, %c0_206] : memref<25x64x32xbf16, #tpu.memory_space<vmem>>, vector<1x64x32xbf16>
    %324 = vector.shape_cast %323 : vector<1x64x32xbf16> to vector<64x32xbf16>
    %cst_207 = arith.constant dense<0.000000e+00> : vector<80x32xf32>
    %325 = tpu.matmul %322, %324, %cst_207 {dimension_numbers = #tpu.dot_dimension_numbers<[1], [0], [0], [1], [0, 0, 1, 1], [], []>} : vector<80x64xbf16>, vector<64x32xbf16>, vector<80x32xf32> -> vector<80x32xf32>
    %326 = arith.addf %267, %325 : vector<80x32xf32>
    %327 = vector.extract_strided_slice %320 {offsets = [1, 0], sizes = [80, 64], strides = [1, 1]} : vector<82x64xf32> to vector<80x64xf32>
    %328 = arith.truncf %327 : vector<80x64xf32> to vector<80x64xbf16>
    %c19 = arith.constant 19 : index
    %c0_208 = arith.constant 0 : index
    %c0_209 = arith.constant 0 : index
    %329 = vector.load %arg4[%c19, %c0_208, %c0_209] : memref<25x64x32xbf16, #tpu.memory_space<vmem>>, vector<1x64x32xbf16>
    %330 = vector.shape_cast %329 : vector<1x64x32xbf16> to vector<64x32xbf16>
    %cst_210 = arith.constant dense<0.000000e+00> : vector<80x32xf32>
    %331 = tpu.matmul %328, %330, %cst_210 {dimension_numbers = #tpu.dot_dimension_numbers<[1], [0], [0], [1], [0, 0, 1, 1], [], []>} : vector<80x64xbf16>, vector<64x32xbf16>, vector<80x32xf32> -> vector<80x32xf32>
    %332 = arith.addf %326, %331 : vector<80x32xf32>
    %333 = arith.addf %280, %293 : vector<80x32xf32>
    %334 = arith.addf %306, %319 : vector<80x32xf32>
    %335 = arith.addf %333, %334 : vector<80x32xf32>
    %336 = arith.addf %335, %332 : vector<80x32xf32>
    %337 = vector.broadcast %2 : vector<1x32xf32> to vector<80x32xf32>
    %338 = arith.addf %336, %337 : vector<80x32xf32>
    %cst_211 = arith.constant 0.000000e+00 : f32
    %339 = vector.broadcast %cst_211 : f32 to vector<80x32xf32>
    %340 = arith.maximumf %338, %339 : vector<80x32xf32>
    %c0_212 = arith.constant 0 : index
    %c0_213 = arith.constant 0 : index
    %341 = vector.load %arg10[%c0_212, %c0_213] : memref<80x32xf32, #tpu.memory_space<vmem>>, vector<80x32xf32>
    tpu.vector_store %arg10[%c0_212, %c0_213], %340 {strides = array<i32>} : memref<80x32xf32, #tpu.memory_space<vmem>>, vector<80x32xf32>,
    %c0_214 = arith.constant 0 : index
    %c0_215 = arith.constant 0 : index
    %342 = tpu.strided_load %arg10[%c0_214, %c0_215] {strides = array<i32: 5, 1>} : memref<80x32xf32, #tpu.memory_space<vmem>>, vector<15x32xf32>
    %c1_216 = arith.constant 1 : index
    %c0_217 = arith.constant 0 : index
    %343 = tpu.strided_load %arg10[%c1_216, %c0_217] {strides = array<i32: 5, 1>} : memref<80x32xf32, #tpu.memory_space<vmem>>, vector<15x32xf32>
    %344 = arith.maximumf %342, %343 : vector<15x32xf32>
    %c2_218 = arith.constant 2 : index
    %c0_219 = arith.constant 0 : index
    %345 = tpu.strided_load %arg10[%c2_218, %c0_219] {strides = array<i32: 5, 1>} : memref<80x32xf32, #tpu.memory_space<vmem>>, vector<15x32xf32>
    %346 = arith.maximumf %344, %345 : vector<15x32xf32>
    %c3_220 = arith.constant 3 : index
    %c0_221 = arith.constant 0 : index
    %347 = tpu.strided_load %arg10[%c3_220, %c0_221] {strides = array<i32: 5, 1>} : memref<80x32xf32, #tpu.memory_space<vmem>>, vector<15x32xf32>
    %348 = arith.maximumf %346, %347 : vector<15x32xf32>
    %c4_222 = arith.constant 4 : index
    %c0_223 = arith.constant 0 : index
    %349 = tpu.strided_load %arg10[%c4_222, %c0_223] {strides = array<i32: 5, 1>} : memref<80x32xf32, #tpu.memory_space<vmem>>, vector<15x32xf32>
    %350 = arith.maximumf %348, %349 : vector<15x32xf32>
    %c5_224 = arith.constant 5 : index
    %c0_225 = arith.constant 0 : index
    %351 = tpu.strided_load %arg10[%c5_224, %c0_225] {strides = array<i32: 5, 1>} : memref<80x32xf32, #tpu.memory_space<vmem>>, vector<15x32xf32>
    %352 = arith.maximumf %350, %351 : vector<15x32xf32>
    %c6_226 = arith.constant 6 : index
    %c0_227 = arith.constant 0 : index
    %353 = tpu.strided_load %arg10[%c6_226, %c0_227] {strides = array<i32: 5, 1>} : memref<80x32xf32, #tpu.memory_space<vmem>>, vector<15x32xf32>
    %354 = arith.maximumf %352, %353 : vector<15x32xf32>
    %c7_228 = arith.constant 7 : index
    %c0_229 = arith.constant 0 : index
    %355 = tpu.strided_load %arg10[%c7_228, %c0_229] {strides = array<i32: 5, 1>} : memref<80x32xf32, #tpu.memory_space<vmem>>, vector<15x32xf32>
    %356 = arith.maximumf %354, %355 : vector<15x32xf32>
    %c8_230 = arith.constant 8 : index
    %c0_231 = arith.constant 0 : index
    %357 = tpu.strided_load %arg10[%c8_230, %c0_231] {strides = array<i32: 5, 1>} : memref<80x32xf32, #tpu.memory_space<vmem>>, vector<15x32xf32>
    %358 = arith.maximumf %356, %357 : vector<15x32xf32>
    %c9_232 = arith.constant 9 : index
    %c0_233 = arith.constant 0 : index
    %359 = tpu.strided_load %arg10[%c9_232, %c0_233] {strides = array<i32: 5, 1>} : memref<80x32xf32, #tpu.memory_space<vmem>>, vector<15x32xf32>
    %360 = arith.maximumf %358, %359 : vector<15x32xf32>
    %c0_234 = arith.constant 0 : index
    %c0_235 = arith.constant 0 : index
    %361 = vector.load %arg11[%c0_234, %c0_235] : memref<15x32xf32, #tpu.memory_space<vmem>>, vector<15x32xf32>
    tpu.vector_store %arg11[%c0_234, %c0_235], %360 {strides = array<i32>} : memref<15x32xf32, #tpu.memory_space<vmem>>, vector<15x32xf32>,
    %c0_236 = arith.constant 0 : index
    %c0_237 = arith.constant 0 : index
    %362 = tpu.strided_load %arg11[%c0_236, %c0_237] {strides = array<i32: 5, 1>} : memref<15x32xf32, #tpu.memory_space<vmem>>, vector<2x32xf32>
    %363 = arith.truncf %362 : vector<2x32xf32> to vector<2x32xbf16>
    %c0_238 = arith.constant 0 : index
    %c0_239 = arith.constant 0 : index
    %c0_240 = arith.constant 0 : index
    %364 = vector.load %arg6[%c0_238, %c0_239, %c0_240] : memref<10x32x32xbf16, #tpu.memory_space<vmem>>, vector<1x32x32xbf16>
    %365 = vector.shape_cast %364 : vector<1x32x32xbf16> to vector<32x32xbf16>
    %cst_241 = arith.constant dense<0.000000e+00> : vector<2x32xf32>
    %366 = tpu.matmul %363, %365, %cst_241 {dimension_numbers = #tpu.dot_dimension_numbers<[1], [0], [0], [1], [0, 0, 1, 1], [], []>} : vector<2x32xbf16>, vector<32x32xbf16>, vector<2x32xf32> -> vector<2x32xf32>
    %c1_242 = arith.constant 1 : index
    %c0_243 = arith.constant 0 : index
    %367 = tpu.strided_load %arg11[%c1_242, %c0_243] {strides = array<i32: 5, 1>} : memref<15x32xf32, #tpu.memory_space<vmem>>, vector<2x32xf32>
    %368 = arith.truncf %367 : vector<2x32xf32> to vector<2x32xbf16>
    %c1_244 = arith.constant 1 : index
    %c0_245 = arith.constant 0 : index
    %c0_246 = arith.constant 0 : index
    %369 = vector.load %arg6[%c1_244, %c0_245, %c0_246] : memref<10x32x32xbf16, #tpu.memory_space<vmem>>, vector<1x32x32xbf16>
    %370 = vector.shape_cast %369 : vector<1x32x32xbf16> to vector<32x32xbf16>
    %cst_247 = arith.constant dense<0.000000e+00> : vector<2x32xf32>
    %371 = tpu.matmul %368, %370, %cst_247 {dimension_numbers = #tpu.dot_dimension_numbers<[1], [0], [0], [1], [0, 0, 1, 1], [], []>} : vector<2x32xbf16>, vector<32x32xbf16>, vector<2x32xf32> -> vector<2x32xf32>
    %c2_248 = arith.constant 2 : index
    %c0_249 = arith.constant 0 : index
    %372 = tpu.strided_load %arg11[%c2_248, %c0_249] {strides = array<i32: 5, 1>} : memref<15x32xf32, #tpu.memory_space<vmem>>, vector<2x32xf32>
    %373 = arith.truncf %372 : vector<2x32xf32> to vector<2x32xbf16>
    %c2_250 = arith.constant 2 : index
    %c0_251 = arith.constant 0 : index
    %c0_252 = arith.constant 0 : index
    %374 = vector.load %arg6[%c2_250, %c0_251, %c0_252] : memref<10x32x32xbf16, #tpu.memory_space<vmem>>, vector<1x32x32xbf16>
    %375 = vector.shape_cast %374 : vector<1x32x32xbf16> to vector<32x32xbf16>
    %cst_253 = arith.constant dense<0.000000e+00> : vector<2x32xf32>
    %376 = tpu.matmul %373, %375, %cst_253 {dimension_numbers = #tpu.dot_dimension_numbers<[1], [0], [0], [1], [0, 0, 1, 1], [], []>} : vector<2x32xbf16>, vector<32x32xbf16>, vector<2x32xf32> -> vector<2x32xf32>
    %377 = arith.addf %366, %376 : vector<2x32xf32>
    %c3_254 = arith.constant 3 : index
    %c0_255 = arith.constant 0 : index
    %378 = tpu.strided_load %arg11[%c3_254, %c0_255] {strides = array<i32: 5, 1>} : memref<15x32xf32, #tpu.memory_space<vmem>>, vector<2x32xf32>
    %379 = arith.truncf %378 : vector<2x32xf32> to vector<2x32xbf16>
    %c3_256 = arith.constant 3 : index
    %c0_257 = arith.constant 0 : index
    %c0_258 = arith.constant 0 : index
    %380 = vector.load %arg6[%c3_256, %c0_257, %c0_258] : memref<10x32x32xbf16, #tpu.memory_space<vmem>>, vector<1x32x32xbf16>
    %381 = vector.shape_cast %380 : vector<1x32x32xbf16> to vector<32x32xbf16>
    %cst_259 = arith.constant dense<0.000000e+00> : vector<2x32xf32>
    %382 = tpu.matmul %379, %381, %cst_259 {dimension_numbers = #tpu.dot_dimension_numbers<[1], [0], [0], [1], [0, 0, 1, 1], [], []>} : vector<2x32xbf16>, vector<32x32xbf16>, vector<2x32xf32> -> vector<2x32xf32>
    %383 = arith.addf %371, %382 : vector<2x32xf32>
    %c4_260 = arith.constant 4 : index
    %c0_261 = arith.constant 0 : index
    %384 = tpu.strided_load %arg11[%c4_260, %c0_261] {strides = array<i32: 5, 1>} : memref<15x32xf32, #tpu.memory_space<vmem>>, vector<2x32xf32>
    %385 = arith.truncf %384 : vector<2x32xf32> to vector<2x32xbf16>
    %c4_262 = arith.constant 4 : index
    %c0_263 = arith.constant 0 : index
    %c0_264 = arith.constant 0 : index
    %386 = vector.load %arg6[%c4_262, %c0_263, %c0_264] : memref<10x32x32xbf16, #tpu.memory_space<vmem>>, vector<1x32x32xbf16>
    %387 = vector.shape_cast %386 : vector<1x32x32xbf16> to vector<32x32xbf16>
    %cst_265 = arith.constant dense<0.000000e+00> : vector<2x32xf32>
    %388 = tpu.matmul %385, %387, %cst_265 {dimension_numbers = #tpu.dot_dimension_numbers<[1], [0], [0], [1], [0, 0, 1, 1], [], []>} : vector<2x32xbf16>, vector<32x32xbf16>, vector<2x32xf32> -> vector<2x32xf32>
    %389 = arith.addf %377, %388 : vector<2x32xf32>
    %c5_266 = arith.constant 5 : index
    %c0_267 = arith.constant 0 : index
    %390 = tpu.strided_load %arg11[%c5_266, %c0_267] {strides = array<i32: 5, 1>} : memref<15x32xf32, #tpu.memory_space<vmem>>, vector<2x32xf32>
    %391 = arith.truncf %390 : vector<2x32xf32> to vector<2x32xbf16>
    %c5_268 = arith.constant 5 : index
    %c0_269 = arith.constant 0 : index
    %c0_270 = arith.constant 0 : index
    %392 = vector.load %arg6[%c5_268, %c0_269, %c0_270] : memref<10x32x32xbf16, #tpu.memory_space<vmem>>, vector<1x32x32xbf16>
    %393 = vector.shape_cast %392 : vector<1x32x32xbf16> to vector<32x32xbf16>
    %cst_271 = arith.constant dense<0.000000e+00> : vector<2x32xf32>
    %394 = tpu.matmul %391, %393, %cst_271 {dimension_numbers = #tpu.dot_dimension_numbers<[1], [0], [0], [1], [0, 0, 1, 1], [], []>} : vector<2x32xbf16>, vector<32x32xbf16>, vector<2x32xf32> -> vector<2x32xf32>
    %395 = arith.addf %383, %394 : vector<2x32xf32>
    %c6_272 = arith.constant 6 : index
    %c0_273 = arith.constant 0 : index
    %396 = tpu.strided_load %arg11[%c6_272, %c0_273] {strides = array<i32: 5, 1>} : memref<15x32xf32, #tpu.memory_space<vmem>>, vector<2x32xf32>
    %397 = arith.truncf %396 : vector<2x32xf32> to vector<2x32xbf16>
    %c6_274 = arith.constant 6 : index
    %c0_275 = arith.constant 0 : index
    %c0_276 = arith.constant 0 : index
    %398 = vector.load %arg6[%c6_274, %c0_275, %c0_276] : memref<10x32x32xbf16, #tpu.memory_space<vmem>>, vector<1x32x32xbf16>
    %399 = vector.shape_cast %398 : vector<1x32x32xbf16> to vector<32x32xbf16>
    %cst_277 = arith.constant dense<0.000000e+00> : vector<2x32xf32>
    %400 = tpu.matmul %397, %399, %cst_277 {dimension_numbers = #tpu.dot_dimension_numbers<[1], [0], [0], [1], [0, 0, 1, 1], [], []>} : vector<2x32xbf16>, vector<32x32xbf16>, vector<2x32xf32> -> vector<2x32xf32>
    %401 = arith.addf %389, %400 : vector<2x32xf32>
    %c7_278 = arith.constant 7 : index
    %c0_279 = arith.constant 0 : index
    %402 = tpu.strided_load %arg11[%c7_278, %c0_279] {strides = array<i32: 5, 1>} : memref<15x32xf32, #tpu.memory_space<vmem>>, vector<2x32xf32>
    %403 = arith.truncf %402 : vector<2x32xf32> to vector<2x32xbf16>
    %c7_280 = arith.constant 7 : index
    %c0_281 = arith.constant 0 : index
    %c0_282 = arith.constant 0 : index
    %404 = vector.load %arg6[%c7_280, %c0_281, %c0_282] : memref<10x32x32xbf16, #tpu.memory_space<vmem>>, vector<1x32x32xbf16>
    %405 = vector.shape_cast %404 : vector<1x32x32xbf16> to vector<32x32xbf16>
    %cst_283 = arith.constant dense<0.000000e+00> : vector<2x32xf32>
    %406 = tpu.matmul %403, %405, %cst_283 {dimension_numbers = #tpu.dot_dimension_numbers<[1], [0], [0], [1], [0, 0, 1, 1], [], []>} : vector<2x32xbf16>, vector<32x32xbf16>, vector<2x32xf32> -> vector<2x32xf32>
    %407 = arith.addf %395, %406 : vector<2x32xf32>
    %c8_284 = arith.constant 8 : index
    %c0_285 = arith.constant 0 : index
    %408 = tpu.strided_load %arg11[%c8_284, %c0_285] {strides = array<i32: 5, 1>} : memref<15x32xf32, #tpu.memory_space<vmem>>, vector<2x32xf32>
    %409 = arith.truncf %408 : vector<2x32xf32> to vector<2x32xbf16>
    %c8_286 = arith.constant 8 : index
    %c0_287 = arith.constant 0 : index
    %c0_288 = arith.constant 0 : index
    %410 = vector.load %arg6[%c8_286, %c0_287, %c0_288] : memref<10x32x32xbf16, #tpu.memory_space<vmem>>, vector<1x32x32xbf16>
    %411 = vector.shape_cast %410 : vector<1x32x32xbf16> to vector<32x32xbf16>
    %cst_289 = arith.constant dense<0.000000e+00> : vector<2x32xf32>
    %412 = tpu.matmul %409, %411, %cst_289 {dimension_numbers = #tpu.dot_dimension_numbers<[1], [0], [0], [1], [0, 0, 1, 1], [], []>} : vector<2x32xbf16>, vector<32x32xbf16>, vector<2x32xf32> -> vector<2x32xf32>
    %413 = arith.addf %401, %412 : vector<2x32xf32>
    %c9_290 = arith.constant 9 : index
    %c0_291 = arith.constant 0 : index
    %414 = tpu.strided_load %arg11[%c9_290, %c0_291] {strides = array<i32: 5, 1>} : memref<15x32xf32, #tpu.memory_space<vmem>>, vector<2x32xf32>
    %415 = arith.truncf %414 : vector<2x32xf32> to vector<2x32xbf16>
    %c9_292 = arith.constant 9 : index
    %c0_293 = arith.constant 0 : index
    %c0_294 = arith.constant 0 : index
    %416 = vector.load %arg6[%c9_292, %c0_293, %c0_294] : memref<10x32x32xbf16, #tpu.memory_space<vmem>>, vector<1x32x32xbf16>
    %417 = vector.shape_cast %416 : vector<1x32x32xbf16> to vector<32x32xbf16>
    %cst_295 = arith.constant dense<0.000000e+00> : vector<2x32xf32>
    %418 = tpu.matmul %415, %417, %cst_295 {dimension_numbers = #tpu.dot_dimension_numbers<[1], [0], [0], [1], [0, 0, 1, 1], [], []>} : vector<2x32xbf16>, vector<32x32xbf16>, vector<2x32xf32> -> vector<2x32xf32>
    %419 = arith.addf %407, %418 : vector<2x32xf32>
    %420 = arith.addf %413, %419 : vector<2x32xf32>
    %421 = vector.broadcast %3 : vector<1x32xf32> to vector<2x32xf32>
    %422 = arith.addf %420, %421 : vector<2x32xf32>
    %cst_296 = arith.constant 0.000000e+00 : f32
    %423 = vector.broadcast %cst_296 : f32 to vector<2x32xf32>
    %424 = arith.maximumf %422, %423 : vector<2x32xf32>
    %425 = vector.extract_strided_slice %424 {offsets = [0, 0], sizes = [1, 32], strides = [1, 1]} : vector<2x32xf32> to vector<1x32xf32>
    %426 = vector.extract_strided_slice %424 {offsets = [1, 0], sizes = [1, 32], strides = [1, 1]} : vector<2x32xf32> to vector<1x32xf32>
    %427 = arith.maximumf %425, %426 : vector<1x32xf32>
    %c0_297 = arith.constant 0 : index
    %c0_298 = arith.constant 0 : index
    %c0_299 = arith.constant 0 : index
    %428 = vector.load %arg8[%c0_297, %c0_298, %c0_299] : memref<1x1x32xf32, #tpu.memory_space<vmem>>, vector<1x1x32xf32>
    %429 = vector.shape_cast %428 : vector<1x1x32xf32> to vector<1x32xf32>
    %430 = vector.shape_cast %427 : vector<1x32xf32> to vector<1x1x32xf32>
    tpu.vector_store %arg8[%c0_297, %c0_298, %c0_299], %430 {strides = array<i32>} : memref<1x1x32xf32, #tpu.memory_space<vmem>>, vector<1x1x32xf32>,
    return
  }
  func.func @transform_0(%arg0: i32) -> (i32, i32, i32) {
    %c0_i32 = arith.constant 0 : i32
    %c0_i32_0 = arith.constant 0 : i32
    %c0_i32_1 = arith.constant 0 : i32
    return %arg0, %c0_i32, %c0_i32_0 : i32, i32, i32
  }
  func.func @transform_1(%arg0: i32) -> (i32, i32) {
    %c0_i32 = arith.constant 0 : i32
    %c0_i32_0 = arith.constant 0 : i32
    %c0_i32_1 = arith.constant 0 : i32
    return %c0_i32, %c0_i32_0 : i32, i32
  }
  func.func @transform_2(%arg0: i32) -> (i32, i32) {
    %c0_i32 = arith.constant 0 : i32
    %c0_i32_0 = arith.constant 0 : i32
    %c0_i32_1 = arith.constant 0 : i32
    return %c0_i32, %c0_i32_0 : i32, i32
  }
  func.func @transform_3(%arg0: i32) -> (i32, i32, i32) {
    %c0_i32 = arith.constant 0 : i32
    %c0_i32_0 = arith.constant 0 : i32
    %c0_i32_1 = arith.constant 0 : i32
    %c0_i32_2 = arith.constant 0 : i32
    return %c0_i32, %c0_i32_0, %c0_i32_1 : i32, i32, i32
  }
  func.func @transform_4(%arg0: i32) -> (i32, i32) {
    %c0_i32 = arith.constant 0 : i32
    %c0_i32_0 = arith.constant 0 : i32
    %c0_i32_1 = arith.constant 0 : i32
    return %c0_i32, %c0_i32_0 : i32, i32
  }
  func.func @transform_5(%arg0: i32) -> (i32, i32, i32) {
    %c0_i32 = arith.constant 0 : i32
    %c0_i32_0 = arith.constant 0 : i32
    %c0_i32_1 = arith.constant 0 : i32
    %c0_i32_2 = arith.constant 0 : i32
    return %c0_i32, %c0_i32_0, %c0_i32_1 : i32, i32, i32
  }
  func.func @transform_6(%arg0: i32) -> (i32, i32) {
    %c0_i32 = arith.constant 0 : i32
    %c0_i32_0 = arith.constant 0 : i32
    %c0_i32_1 = arith.constant 0 : i32
    return %c0_i32, %c0_i32_0 : i32, i32
  }
  func.func @transform_7(%arg0: i32) -> (i32, i32, i32) {
    %c0_i32 = arith.constant 0 : i32
    %c0_i32_0 = arith.constant 0 : i32
    %c0_i32_1 = arith.constant 0 : i32
    return %arg0, %c0_i32, %c0_i32_0 : i32, i32, i32
  }
}

</mosaic_0001>

<bundles_post_ra>
// kernel: bacteria_branch_forward.1
= control target key start
LH: loop header
LB: loop body
LE: loop exit
PB: predicated region body
PF: predicated region fallthrough
CT: control target
= control target key end

     0   :  { %12 = vsyncpa [#allocation6], 0  ;;  %s23509_s0 = inlined_call_operand.vmem [shape: bf16[2,4400,120], index: 0, kind: input, shape index: {}]   ;;  %s23510_s1 = inlined_call_operand.vmem [shape: bf16[120,64], index: 1, kind: input, shape index: {}]   ;;  %s23511_s2 = inlined_call_operand.vmem [shape: f32[1,64], index: 2, kind: input, shape index: {}]   ;;  %s23512_s3 = inlined_call_operand.vmem [shape: bf16[25,64,32], index: 3, kind: input, shape index: {}]   ;;  %s23513_s4 = inlined_call_operand.vmem [shape: f32[1,32], index: 4, kind: input, shape index: {}]   ;;  %s23514_s5 = inlined_call_operand.vmem [shape: bf16[10,32,32], index: 5, kind: input, shape index: {}]   ;;  %s23515_s6 = inlined_call_operand.vmem [shape: f32[1,32], index: 6, kind: input, shape index: {}]   ;;  %s23516_s7 = inlined_call_operand.hbm [shape: f32[2,1,32], index: 7, kind: output, shape index: {}]  }
   0x1   :  { %14 = vsyncpa [#allocation6 + $0x1], 0  ;;  %s17591_s24 = smov 0   ;;  %s17593_s25 = smov 0  }
   0x2   :  { %s17595_s26 = smov 0   ;;  %s17597_s27 = smov 0  }
   0x3 LB: > { %s17612_s28 = sadd.s32 4294967295, %s17546_s27   ;;  %s13190_s29 = sadd.s32 4294967294, %s17546_s27   ;;  %s17546_s27 = sphi %s17597_s27, %s23930_s27   ;;  %s17542_s26 = sphi %s17595_s26, %s23929_s26   ;;  %s17538_s25 = sphi %s17593_s25, %s23928_s25   ;;  %s17534_s24 = sphi %s17591_s24, %s23927_s24  }
   0x4   : > { %s17616_s30 = sadd.s32 1, %s17546_s27   ;;  %s179_s8 = sadd.s32 1, %s17542_s26 }
   0x5   : > { %s176_s9 = ssub.s32 %s17546_s27, %s17616_s30  ;;  %p189_p0 = scmp.ne.s32.totalorder %s17542_s26, %s17538_s25 }
   0x6   : > { %p177_p1 = scmp.eq.s32.totalorder %s176_s9, 0  ;;  %p190_p2 = scmp.eq.s32.totalorder %s17612_s28, 1 }
   0x7   : > { %p195_p3 = scmp.ne.s32.totalorder %s17538_s25, %s17534_s24  ;;  %p196_p4 = scmp.eq.s32.totalorder %s13190_s29, 1 }
   0x8   : > { %s17627_s10 = scalar_select %p177_p1, %s17542_s26, %s179_s8  }
   0x9   : > { %p17629_p5 = por %p190_p2, %p189_p0  ;;  %p17633_p6 = por %p196_p4, %p195_p3 }
   0xa   : > { %p13193_p7 = scmp.ge.s32.totalorder %s17546_s27, 1  ;;  %p240_p8 = scmp.lt.s32.totalorder %s17546_s27, 3 }
   0xc   : > { %p241_p9 = pnand %p13193_p7, %p240_p8 }
   0xe   : > { %244 = sbr.rel (%p241_p9) target bundleno = 1846 (0x736), region = 48 }
  0x13   : > { %v17642_v0 = vld [vmem:[%s23510_s1 + $0x38] ss:$0 sps:$4 sm:$0xff]   ;;  %vm438_vm0 = vcmask 1043456   ;;  %v17647_v1 = vld [vmem:[%s23510_s1 + $0x30] sm:$0xff]   ;;  %p271_p10 = scmp.lt.s32.totalorder %s17612_s28, 1  ;;  %v17665_v3 = vld [vmem:[%s23510_s1 + $0x28] sm:$0xff]  }
  0x14   : > { %16947 = vmatprep.subr.msk.bf16.mxu0 %vm438_vm0, %v17642_v0  ;;  %16948 = vmatprep.subr.msk.bf16.mxu1 %vm438_vm0, %v17642_v0  ;;  %v17655_v2 = vsel %vm438_vm0, %v17642_v0, 0  ;;  %v17673_v4 = vld [vmem:[%s23510_s1 + $0x20] sm:$0xff]   ;;  %vm407_vm1 = vcmask 982016   ;;  %v17691_v7 = vld [vmem:[%s23510_s1 + $0x18] sm:$0xff]   ;;  %v17702_v8 = vld [vmem:[%s23510_s1 + $0x10] sm:$0xff]   ;;  %vm1529_vm2 = vcmask 1046528  }
  0x15   : > { %23620 = vst [vmem:[#allocation8_spill] sm:$0xff] %v17655_v2  ;;  %15088 = vmatpush3.bf16.msra.mxu0 %v17655_v2  ;;  %15124 = vmatpush3.bf16.msra.mxu1 %v17655_v2  ;;  %s272_s19 = scalar_select %p271_p10, %s17612_s28, 1  ;;  %v17711_v9 = vld [vmem:[%s23510_s1 + $0x8] sm:$0xff]   ;;  %v17720_v10 = vld [vmem:[%s23510_s1] sm:$0xff]   ;;  %vm1603_vm3 = vcmask 1045504   ;;  %vm1677_vm4 = vcmask 523264  }
  0x16   : > { %15089 = vmatprep.subr.bf16.mxu0 %v17647_v1  ;;  %15125 = vmatprep.subr.bf16.mxu1 %v17647_v1  ;;  %vm8450_vm5 = vsmask.f32 7424  ;;  %vm17549_vm6 = vmmov 0   ;;  %vm12402_vm7 = vcmask 261120   ;;  %vm12471_vm8 = vcmask 260096   ;;  %s269_s15 = sand.u32 1, %s17538_s25  }
  0x17   : > { %s16977_s22 = smul.u32 2200, %s272_s19  ;;  %s14289_s16 = sshll.u32 %s17612_s28, 4  ;;  %vm13120_vm9 = vcmask 253952  }
  0x18   : > { %s270_s17 = scalar_lea.vmem [#allocation5], %s269_s15  ;;  %s13133_s21 = scalar_lea.hbm %s23516_s7, %s14289_s16 }
  0x19   : > { %15090 = vmatpush3.bf16.msra.mxu0 %v17647_v1  ;;  %15126 = vmatpush3.bf16.msra.mxu1 %v17647_v1  ;;  %s17680_s8 = scalar_lea.vmem %s23509_s0, %s16977_s22  ;;  %s13135_s18 = sshll.u32 %s270_s17, 4  ;;  %s13136_s18 = int_to_ptr.vmem [resolvable:$true] %s13135_s18 }
  0x1a   : > { %15091 = vmatprep.subr.bf16.mxu0 %v17665_v3  ;;  %15127 = vmatprep.subr.bf16.mxu1 %v17665_v3  ;;  %v17027_v5 = vld [vmem:[%s17680_s8] sm:$0xff]   ;;  %v17028_v6 = vld [vmem:[%s17680_s8 + $0x1b8] sm:$0xff]   ;;  %v17029_v11 = vld [vmem:[%s17680_s8 + $0x8] sm:$0xff]   ;;  %s13123_s22 = scalar_lea.sflag [#allocation6], %s269_s15  ;;  %s17550_s23 = smov [#allocation5]  }
  0x1b   : > { %15103 = vmatprep.mubr.msk.bf16.mxu0 %vm407_vm1, %v17027_v5  ;;  %15139 = vmatprep.mubr.msk.bf16.mxu1 %vm407_vm1, %v17028_v6  ;;  %v17030_v12 = vld [vmem:[%s17680_s8 + $0x1c0] sm:$0xff]   ;;  %v17031_v13 = vld [vmem:[%s17680_s8 + $0x10] sm:$0xff]   ;;  %v17032_v14 = vld [vmem:[%s17680_s8 + $0x1c8] sm:$0xff]   ;;  %s17490_s29 = sshll.u32 %s17550_s23, 4  ;;  %s17491_s29 = int_to_ptr.vmem [resolvable:$false] %s17490_s29 }
  0x1c   : > { %v17033_v15 = vld [vmem:[%s17680_s8 + $0x18] sm:$0xff]   ;;  %v17034_v16 = vld [vmem:[%s17680_s8 + $0x1d0] sm:$0xff]   ;;  %v17035_v17 = vld [vmem:[%s17680_s8 + $0x20] sm:$0xff]   ;;  %s17492_s28 = scalar_lea.vmem %s17491_s29, 32  ;;  %p17493_p0 = scmp.lt.s32.totalorder %s13136_s18, %s17491_s29 }
  0x1d   : > { %15092 = vmatpush3.bf16.msra.mxu0 %v17665_v3  ;;  %15128 = vmatpush3.bf16.msra.mxu1 %v17665_v3  ;;  %v17036_v18 = vld [vmem:[%s17680_s8 + $0x1d8] sm:$0xff]   ;;  %v17037_v19 = vld [vmem:[%s17680_s8 + $0x28] sm:$0xff]   ;;  %v17038_v20 = vld [vmem:[%s17680_s8 + $0x1e0] sm:$0xff]  }
  0x1e   : > { %15093 = vmatprep.subr.bf16.mxu0 %v17673_v4  ;;  %15129 = vmatprep.subr.bf16.mxu1 %v17673_v4  ;;  %v17039_v21 = vld [vmem:[%s17680_s8 + $0x30] sm:$0xff]   ;;  %v17040_v22 = vld [vmem:[%s17680_s8 + $0x1e8] sm:$0xff]   ;;  %v17041_v23 = vld [vmem:[%s17680_s8 + $0x38] sm:$0xff]  }
  0x1f   : > { %v17042_v24 = vld [vmem:[%s17680_s8 + $0x1f0] sm:$0xff]   ;;  %v17043_v25 = vld [vmem:[%s17680_s8 + $0x40] sm:$0xff]   ;;  %v17044_v26 = vld [vmem:[%s17680_s8 + $0x1f8] sm:$0xff]  }
  0x20   : > { %v17045_v27 = vld [vmem:[%s17680_s8 + $0x48] ss:$0 sps:$4 sm:$0x11]   ;;  %v17046_v28 = vld [vmem:[%s17680_s8 + $0x200] ss:$0 sps:$4 sm:$0x11]  }
  0x21   : > { %15094 = vmatpush3.bf16.msra.mxu0 %v17673_v4  ;;  %15130 = vmatpush3.bf16.msra.mxu1 %v17673_v4  ;;  %v17047_v29 = vld [vmem:[%s17680_s8 + $0x370] sm:$0xff]   ;;  %v17048_v30 = vld [vmem:[%s17680_s8 + $0x528] sm:$0xff]   ;;  %v17049_v31 = vld [vmem:[%s17680_s8 + $0x378] sm:$0xff]  }
  0x22   : > { %15095 = vmatprep.subr.bf16.mxu0 %v17691_v7  ;;  %15131 = vmatprep.subr.bf16.mxu1 %v17691_v7  ;;  %v17050_v32 = vld [vmem:[%s17680_s8 + $0x530] sm:$0xff]   ;;  %v17051_v33 = vld [vmem:[%s17680_s8 + $0x380] sm:$0xff]   ;;  %v17052_v34 = vld [vmem:[%s17680_s8 + $0x538] sm:$0xff]  }
  0x23   : > { %v17053_v35 = vld [vmem:[%s17680_s8 + $0x388] sm:$0xff]   ;;  %v17054_v36 = vld [vmem:[%s17680_s8 + $0x540] sm:$0xff]   ;;  %v17055_v37 = vld [vmem:[%s17680_s8 + $0x390] sm:$0xff]  }
  0x24   : > { %v17056_v38 = vld [vmem:[%s17680_s8 + $0x548] sm:$0xff]   ;;  %v17057_v39 = vld [vmem:[%s17680_s8 + $0x398] sm:$0xff]   ;;  %v17058_v40 = vld [vmem:[%s17680_s8 + $0x550] sm:$0xff]  }
  0x25   : > { %15096 = vmatpush3.bf16.msra.mxu0 %v17691_v7  ;;  %15132 = vmatpush3.bf16.msra.mxu1 %v17691_v7  ;;  %v17059_v41 = vld [vmem:[%s17680_s8 + $0x3a0] sm:$0xff]   ;;  %v17060_v42 = vld [vmem:[%s17680_s8 + $0x558] sm:$0xff]   ;;  %v17061_v43 = vld [vmem:[%s17680_s8 + $0x3a8] sm:$0xff]  }
  0x26   : > { %15097 = vmatprep.subr.bf16.mxu0 %v17702_v8  ;;  %15133 = vmatprep.subr.bf16.mxu1 %v17702_v8  ;;  %v17062_v44 = vld [vmem:[%s17680_s8 + $0x560] sm:$0xff]   ;;  %v17063_v45 = vld [vmem:[%s17680_s8 + $0x3b0] sm:$0xff]   ;;  %v17064_v46 = vld [vmem:[%s17680_s8 + $0x568] sm:$0xff]  }
  0x27   : > { %v17065_v47 = vld [vmem:[%s17680_s8 + $0x3b8] ss:$0 sps:$4 sm:$0x11]   ;;  %v17066_v48 = vld [vmem:[%s17680_s8 + $0x570] ss:$0 sps:$4 sm:$0x11]  }
  0x28   : > { %v17067_v49 = vld [vmem:[%s17680_s8 + $0x6e0] sm:$0xff]   ;;  %v17068_v50 = vld [vmem:[%s17680_s8 + $0x48] sm:$0xff]   ;;  %v17070_v52 = vld [vmem:[%s17680_s8 + $0x50] sm:$0xff]  }
  0x29   : > { %15098 = vmatpush3.bf16.msra.mxu0 %v17702_v8  ;;  %15134 = vmatpush3.bf16.msra.mxu1 %v17702_v8  ;;  %v17069_v51 = vld [vmem:[%s17680_s8 + $0x6e8] sm:$0xff]   ;;  %v17071_v53 = vld [vmem:[%s17680_s8 + $0x6f0] sm:$0xff]   ;;  %v17072_v54 = vld [vmem:[%s17680_s8 + $0x58] sm:$0xff]  }
  0x2a   : > { %15099 = vmatprep.subr.bf16.mxu0 %v17711_v9  ;;  %15135 = vmatprep.subr.bf16.mxu1 %v17711_v9  ;;  %v17073_v55 = vld [vmem:[%s17680_s8 + $0x6f8] sm:$0xff]   ;;  %v17074_v56 = vld [vmem:[%s17680_s8 + $0x60] sm:$0xff]   ;;  %v17076_v58 = vld [vmem:[%s17680_s8 + $0x68] sm:$0xff]  }
  0x2b   : > { %v17075_v57 = vld [vmem:[%s17680_s8 + $0x700] sm:$0xff]   ;;  %v17077_v59 = vld [vmem:[%s17680_s8 + $0x708] sm:$0xff]   ;;  %v17078_v60 = vld [vmem:[%s17680_s8 + $0x70] sm:$0xff]  }
  0x2c   : > { %v17079_v61 = vld [vmem:[%s17680_s8 + $0x710] sm:$0xff]   ;;  %v17080_v62 = vld [vmem:[%s17680_s8 + $0x78] sm:$0xff]   ;;  %v17087_v6 = vld [vmem:[%s17680_s8 + $0x200] sm:$0xff]  }
  0x2d   : > { %15100 = vmatpush3.bf16.msra.mxu0 %v17711_v9  ;;  %15136 = vmatpush3.bf16.msra.mxu1 %v17711_v9  ;;  %v17081_v63 = vld [vmem:[%s17680_s8 + $0x718] sm:$0xff]   ;;  %v17086_v5 = vld [vmem:[%s17680_s8 + $0x90] ss:$0 sps:$4 sm:$0x11]  }
  0x2e   : > { %15101 = vmatprep.subr.bf16.mxu0 %v17720_v10  ;;  %15137 = vmatprep.subr.bf16.mxu1 %v17720_v10 }
  0x31   : > { %15102 = vmatpush3.bf16.msra.mxu0 %v17720_v10  ;;  %15138 = vmatpush3.bf16.msra.mxu1 %v17720_v10 }
  0x32   : > { %16949 = vmatprep.subr.msk.bf16.mxu0 %vm438_vm0, %v17642_v0  ;;  %16950 = vmatprep.subr.msk.bf16.mxu1 %vm438_vm0, %v17642_v0 }
  0x34   : > { %15104 = vmatmul.mubr.msk.bf16.vlgmr.msra.gmra.mxu0 %vm407_vm1, %v17029_v11  ;;  %15140 = vmatmul.mubr.msk.bf16.vlgmr.msra.gmra.mxu1 %vm407_vm1, %v17030_v12  ;;  %v17091_v11 = vld [vmem:[%s17680_s8 + $0x210] sm:$0xff]   ;;  %v17092_v12 = vld [vmem:[%s17680_s8 + $0x3c8] sm:$0xff]  }
  0x35   : > { %15160 = vmatpush3.bf16.msra.mxu0 %v17655_v2  ;;  %15196 = vmatpush3.bf16.msra.mxu1 %v17655_v2 }
  0x36   : > { %15161 = vmatprep.subr.bf16.mxu0 %v17647_v1  ;;  %15107 = vmatprep.mubr.msk.bf16.mxu0 %vm407_vm1, %v17031_v13  ;;  %v17970_v13 = vld [vmem:[%s23510_s1 + $0x30] sm:$0xff]  }
  0x37   : > { %15143 = vmatprep.mubr.msk.bf16.mxu1 %vm407_vm1, %v17032_v14  ;;  %15197 = vmatprep.subr.bf16.mxu1 %v17647_v1  ;;  %v17093_v14 = vld [vmem:[%s17680_s8 + $0x218] sm:$0xff]  }
  0x39   : > { %15162 = vmatpush3.bf16.msra.mxu0 %v17647_v1  ;;  %15198 = vmatpush3.bf16.msra.mxu1 %v17647_v1 }
  0x3a   : > { %15163 = vmatprep.subr.bf16.mxu0 %v17665_v3  ;;  %15199 = vmatprep.subr.bf16.mxu1 %v17665_v3 }
  0x3c   : > { %15108 = vmatmul.mubr.msk.bf16.gmra.mxu0 %vm407_vm1, %v17033_v15  ;;  %15144 = vmatmul.mubr.msk.bf16.gmra.mxu1 %vm407_vm1, %v17034_v16  ;;  %v17094_v15 = vld [vmem:[%s17680_s8 + $0x3d0] sm:$0xff]   ;;  %v17983_v16 = vld [vmem:[%s23510_s1 + $0x28] sm:$0xff]  }
  0x3d   : > { %15164 = vmatpush3.bf16.msra.mxu0 %v17665_v3  ;;  %15200 = vmatpush3.bf16.msra.mxu1 %v17665_v3 }
  0x3e   : > { %15111 = vmatprep.mubr.msk.bf16.mxu0 %vm407_vm1, %v17035_v17  ;;  %15147 = vmatprep.mubr.msk.bf16.mxu1 %vm407_vm1, %v17036_v18  ;;  %v17095_v17 = vld [vmem:[%s17680_s8 + $0x220] sm:$0xff]   ;;  %v17096_v18 = vld [vmem:[%s17680_s8 + $0x3d8] sm:$0xff]  }
  0x3f   : > { %15165 = vmatprep.subr.bf16.mxu0 %v17673_v4  ;;  %15201 = vmatprep.subr.bf16.mxu1 %v17673_v4 }
  0x41   : > { %15166 = vmatpush3.bf16.msra.mxu0 %v17673_v4  ;;  %15202 = vmatpush3.bf16.msra.mxu1 %v17673_v4 }
  0x42   : > { %15167 = vmatprep.subr.bf16.mxu0 %v17691_v7  ;;  %15203 = vmatprep.subr.bf16.mxu1 %v17691_v7 }
  0x44   : > { %15112 = vmatmul.mubr.msk.bf16.gmra.mxu0 %vm407_vm1, %v17037_v19  ;;  %15148 = vmatmul.mubr.msk.bf16.gmra.mxu1 %vm407_vm1, %v17038_v20  ;;  %v17097_v19 = vld [vmem:[%s17680_s8 + $0x228] sm:$0xff]   ;;  %v17098_v20 = vld [vmem:[%s17680_s8 + $0x3e0] sm:$0xff]  }
  0x45   : > { %15168 = vmatpush3.bf16.msra.mxu0 %v17691_v7  ;;  %15115 = vmatprep.mubr.msk.bf16.mxu0 %vm407_vm1, %v17039_v21  ;;  %v18000_v21 = vld [vmem:[%s23510_s1 + $0x20] sm:$0xff]  }
  0x46   : > { %15151 = vmatprep.mubr.msk.bf16.mxu1 %vm407_vm1, %v17040_v22  ;;  %15204 = vmatpush3.bf16.msra.mxu1 %v17691_v7  ;;  %v17099_v22 = vld [vmem:[%s17680_s8 + $0x230] sm:$0xff]  }
  0x47   : > { %15169 = vmatprep.subr.bf16.mxu0 %v17702_v8  ;;  %15205 = vmatprep.subr.bf16.mxu1 %v17702_v8 }
  0x49   : > { %15170 = vmatpush3.bf16.msra.mxu0 %v17702_v8 }
  0x4a   : > { %15206 = vmatpush3.bf16.msra.mxu1 %v17702_v8  ;;  %15171 = vmatprep.subr.bf16.mxu0 %v17711_v9 }
  0x4b   : > { %15207 = vmatprep.subr.bf16.mxu1 %v17711_v9 }
  0x4c   : > { %15116 = vmatmul.mubr.msk.bf16.gmra.mxu0 %vm407_vm1, %v17041_v23  ;;  %15152 = vmatmul.mubr.msk.bf16.gmra.mxu1 %vm407_vm1, %v17042_v24  ;;  %v18010_v23 = vld [vmem:[%s23510_s1 + $0x18] sm:$0xff]   ;;  %v17100_v24 = vld [vmem:[%s17680_s8 + $0x3e8] sm:$0xff]  }
  0x4d   : > { %15119 = vmatprep.mubr.msk.bf16.mxu0 %vm407_vm1, %v17043_v25  ;;  %15155 = vmatprep.mubr.msk.bf16.mxu1 %vm407_vm1, %v17044_v26  ;;  %v17101_v25 = vld [vmem:[%s17680_s8 + $0x238] sm:$0xff]   ;;  %v17102_v26 = vld [vmem:[%s17680_s8 + $0x3f0] sm:$0xff]  }
  0x4e   : > { %15172 = vmatpush3.bf16.msra.mxu0 %v17711_v9  ;;  %15208 = vmatpush3.bf16.msra.mxu1 %v17711_v9 }
  0x4f   : > { %15173 = vmatprep.subr.bf16.mxu0 %v17720_v10  ;;  %15209 = vmatprep.subr.bf16.mxu1 %v17720_v10 }
  0x52   : > { %15174 = vmatpush3.bf16.msra.mxu0 %v17720_v10  ;;  %15210 = vmatpush3.bf16.msra.mxu1 %v17720_v10 }
  0x53   : > { %16951 = vmatprep.subr.msk.bf16.mxu0 %vm438_vm0, %v17642_v0  ;;  %16952 = vmatprep.subr.msk.bf16.mxu1 %vm438_vm0, %v17642_v0 }
  0x54   : > { %15120 = vmatmul.mubr.msk.bf16.gmra.mxu0 %vm407_vm1, %v17045_v27  ;;  %15156 = vmatmul.mubr.msk.bf16.gmra.mxu1 %vm407_vm1, %v17046_v28  ;;  %v18026_v27 = vld [vmem:[%s23510_s1 + $0x10] sm:$0xff]   ;;  %v17103_v28 = vld [vmem:[%s17680_s8 + $0x240] sm:$0xff]  }
  0x55   : > { %15175 = vmatprep.mubr.msk.bf16.mxu0 %vm407_vm1, %v17047_v29  ;;  %15211 = vmatprep.mubr.msk.bf16.mxu1 %vm407_vm1, %v17048_v30  ;;  %v17104_v29 = vld [vmem:[%s17680_s8 + $0x3f8] sm:$0xff]   ;;  %v18037_v30 = vld [vmem:[%s23510_s1 + $0x8] sm:$0xff]  }
  0x5c   : > { %15176 = vmatmul.mubr.msk.bf16.vlgmr.msra.gmra.mxu0 %vm407_vm1, %v17049_v31  ;;  %15212 = vmatmul.mubr.msk.bf16.vlgmr.msra.gmra.mxu1 %vm407_vm1, %v17050_v32  ;;  %v17105_v31 = vld [vmem:[%s17680_s8 + $0x248] ss:$0 sps:$4 sm:$0x11]   ;;  %v17106_v32 = vld [vmem:[%s17680_s8 + $0x400] ss:$0 sps:$4 sm:$0x11]  }
  0x5d   : > { %15232 = vmatpush3.bf16.msra.mxu0 %v17655_v2  ;;  %15268 = vmatpush3.bf16.msra.mxu1 %v17655_v2 }
  0x5e   : > { %15233 = vmatprep.subr.bf16.mxu0 %v17647_v1  ;;  %15179 = vmatprep.mubr.msk.bf16.mxu0 %vm407_vm1, %v17051_v33  ;;  %v18052_v33 = vld [vmem:[%s23510_s1] sm:$0xff]  }
  0x5f   : > { %15215 = vmatprep.mubr.msk.bf16.mxu1 %vm407_vm1, %v17052_v34  ;;  %15269 = vmatprep.subr.bf16.mxu1 %v17647_v1  ;;  %v17107_v34 = vld [vmem:[%s17680_s8 + $0x570] sm:$0xff]  }
  0x61   : > { %15234 = vmatpush3.bf16.msra.mxu0 %v17647_v1  ;;  %15270 = vmatpush3.bf16.msra.mxu1 %v17647_v1 }
  0x62   : > { %15235 = vmatprep.subr.bf16.mxu0 %v17665_v3  ;;  %15271 = vmatprep.subr.bf16.mxu1 %v17665_v3 }
  0x64   : > { %15180 = vmatmul.mubr.msk.bf16.gmra.mxu0 %vm407_vm1, %v17053_v35  ;;  %15216 = vmatmul.mubr.msk.bf16.gmra.mxu1 %vm407_vm1, %v17054_v36  ;;  %v17108_v35 = vld [vmem:[%s17680_s8 + $0x728] sm:$0xff]   ;;  %v17109_v36 = vld [vmem:[%s17680_s8 + $0x578] sm:$0xff]  }
  0x65   : > { %15236 = vmatpush3.bf16.msra.mxu0 %v17665_v3  ;;  %15272 = vmatpush3.bf16.msra.mxu1 %v17665_v3 }
  0x66   : > { %15183 = vmatprep.mubr.msk.bf16.mxu0 %vm407_vm1, %v17055_v37  ;;  %15219 = vmatprep.mubr.msk.bf16.mxu1 %vm407_vm1, %v17056_v38  ;;  %v17110_v37 = vld [vmem:[%s17680_s8 + $0x730] sm:$0xff]   ;;  %v17111_v38 = vld [vmem:[%s17680_s8 + $0x580] sm:$0xff]  }
  0x67   : > { %15237 = vmatprep.subr.bf16.mxu0 %v17673_v4  ;;  %15273 = vmatprep.subr.bf16.mxu1 %v17673_v4 }
  0x69   : > { %15238 = vmatpush3.bf16.msra.mxu0 %v17673_v4  ;;  %15274 = vmatpush3.bf16.msra.mxu1 %v17673_v4 }
  0x6a   : > { %15239 = vmatprep.subr.bf16.mxu0 %v17691_v7  ;;  %15275 = vmatprep.subr.bf16.mxu1 %v17691_v7 }
  0x6c   : > { %15184 = vmatmul.mubr.msk.bf16.gmra.mxu0 %vm407_vm1, %v17057_v39  ;;  %15220 = vmatmul.mubr.msk.bf16.gmra.mxu1 %vm407_vm1, %v17058_v40  ;;  %v17112_v39 = vld [vmem:[%s17680_s8 + $0x738] sm:$0xff]   ;;  %v17113_v40 = vld [vmem:[%s17680_s8 + $0x588] sm:$0xff]  }
  0x6d   : > { %15240 = vmatpush3.bf16.msra.mxu0 %v17691_v7  ;;  %15187 = vmatprep.mubr.msk.bf16.mxu0 %vm407_vm1, %v17059_v41  ;;  %v17114_v41 = vld [vmem:[%s17680_s8 + $0x740] sm:$0xff]  }
  0x6e   : > { %15223 = vmatprep.mubr.msk.bf16.mxu1 %vm407_vm1, %v17060_v42  ;;  %15276 = vmatpush3.bf16.msra.mxu1 %v17691_v7  ;;  %v17115_v42 = vld [vmem:[%s17680_s8 + $0x590] sm:$0xff]  }
  0x6f   : > { %15241 = vmatprep.subr.bf16.mxu0 %v17702_v8  ;;  %15277 = vmatprep.subr.bf16.mxu1 %v17702_v8 }
  0x71   : > { %15242 = vmatpush3.bf16.msra.mxu0 %v17702_v8 }
  0x72   : > { %15278 = vmatpush3.bf16.msra.mxu1 %v17702_v8  ;;  %15243 = vmatprep.subr.bf16.mxu0 %v17711_v9 }
  0x73   : > { %15279 = vmatprep.subr.bf16.mxu1 %v17711_v9 }
  0x74   : > { %15188 = vmatmul.mubr.msk.bf16.gmra.mxu0 %vm407_vm1, %v17061_v43  ;;  %15224 = vmatmul.mubr.msk.bf16.gmra.mxu1 %vm407_vm1, %v17062_v44  ;;  %v17116_v43 = vld [vmem:[%s17680_s8 + $0x748] sm:$0xff]   ;;  %v17117_v44 = vld [vmem:[%s17680_s8 + $0x598] sm:$0xff]  }
  0x75   : > { %15191 = vmatprep.mubr.msk.bf16.mxu0 %vm407_vm1, %v17063_v45  ;;  %15227 = vmatprep.mubr.msk.bf16.mxu1 %vm407_vm1, %v17064_v46  ;;  %v17118_v45 = vld [vmem:[%s17680_s8 + $0x750] sm:$0xff]   ;;  %v17119_v46 = vld [vmem:[%s17680_s8 + $0x5a0] sm:$0xff]  }
  0x76   : > { %15244 = vmatpush3.bf16.msra.mxu0 %v17711_v9  ;;  %15280 = vmatpush3.bf16.msra.mxu1 %v17711_v9 }
  0x77   : > { %15245 = vmatprep.subr.bf16.mxu0 %v17720_v10  ;;  %15281 = vmatprep.subr.bf16.mxu1 %v17720_v10 }
  0x7a   : > { %15246 = vmatpush3.bf16.msra.mxu0 %v17720_v10  ;;  %15282 = vmatpush3.bf16.msra.mxu1 %v17720_v10 }
  0x7b   : > { %16953 = vmatprep.subr.msk.bf16.mxu0 %vm438_vm0, %v17642_v0  ;;  %16954 = vmatprep.subr.msk.bf16.mxu1 %vm438_vm0, %v17642_v0  ;;  %v17082_v0 = vld [vmem:[%s17680_s8 + $0x80] sm:$0xff]  }
  0x7c   : > { %15192 = vmatmul.mubr.msk.bf16.gmra.mxu0 %vm407_vm1, %v17065_v47  ;;  %15228 = vmatmul.mubr.msk.bf16.gmra.mxu1 %vm407_vm1, %v17066_v48  ;;  %v17120_v47 = vld [vmem:[%s17680_s8 + $0x758] sm:$0xff]   ;;  %v17121_v48 = vld [vmem:[%s17680_s8 + $0x5a8] sm:$0xff]  }
  0x7d   : > { %15247 = vmatprep.mubr.msk.bf16.mxu0 %vm407_vm1, %v17067_v49  ;;  %15283 = vmatprep.mubr.msk.bf16.mxu1 %vm407_vm1, %v17068_v50  ;;  %v17122_v49 = vld [vmem:[%s17680_s8 + $0x760] sm:$0xff]   ;;  %v17123_v50 = vld [vmem:[%s17680_s8 + $0x5b0] sm:$0xff]  }
  0x84   : > { %15248 = vmatmul.mubr.msk.bf16.vlgmr.msra.gmra.mxu0 %vm407_vm1, %v17069_v51  ;;  %15284 = vmatmul.mubr.msk.bf16.vlgmr.msra.gmra.mxu1 %vm407_vm1, %v17070_v52  ;;  %v17124_v51 = vld [vmem:[%s17680_s8 + $0x768] sm:$0xff]   ;;  %v17125_v52 = vld [vmem:[%s17680_s8 + $0x5b8] ss:$0 sps:$4 sm:$0x11]  }
  0x85   : > { %15304 = vmatpush3.bf16.msra.mxu0 %v17655_v2  ;;  %15340 = vmatpush3.bf16.msra.mxu1 %v17655_v2 }
  0x86   : > { %15305 = vmatprep.subr.bf16.mxu0 %v17647_v1  ;;  %15251 = vmatprep.mubr.msk.bf16.mxu0 %vm407_vm1, %v17071_v53  ;;  %v17126_v53 = vld [vmem:[%s17680_s8 + $0x770] ss:$0 sps:$4 sm:$0x11]  }
  0x87   : > { %15287 = vmatprep.mubr.msk.bf16.mxu1 %vm407_vm1, %v17072_v54  ;;  %15341 = vmatprep.subr.bf16.mxu1 %v17647_v1  ;;  %v17127_v54 = vld [vmem:[%s17680_s8 + $0x90] sm:$0xff]  }
  0x89   : > { %15306 = vmatpush3.bf16.msra.mxu0 %v17647_v1  ;;  %15342 = vmatpush3.bf16.msra.mxu1 %v17647_v1  ;;  %v17083_v1 = vld [vmem:[%s17680_s8 + $0x720] sm:$0xff]  }
  0x8a   : > { %15307 = vmatprep.subr.bf16.mxu0 %v17665_v3  ;;  %15343 = vmatprep.subr.bf16.mxu1 %v17665_v3 }
  0x8c   : > { %15252 = vmatmul.mubr.msk.bf16.gmra.mxu0 %vm407_vm1, %v17073_v55  ;;  %15288 = vmatmul.mubr.msk.bf16.gmra.mxu1 %vm407_vm1, %v17074_v56  ;;  %v17128_v55 = vld [vmem:[%s17680_s8 + $0x248] sm:$0xff]  }
  0x8d   : > { %15308 = vmatpush3.bf16.msra.mxu0 %v17665_v3  ;;  %15344 = vmatpush3.bf16.msra.mxu1 %v17665_v3  ;;  %v17084_v3 = vld [vmem:[%s17680_s8 + $0x88] sm:$0xff]  }
  0x8e   : > { %15255 = vmatprep.mubr.msk.bf16.mxu0 %vm407_vm1, %v17075_v57  ;;  %15291 = vmatprep.mubr.msk.bf16.mxu1 %vm407_vm1, %v17076_v58 }
  0x8f   : > { %15309 = vmatprep.subr.bf16.mxu0 %v17673_v4  ;;  %15345 = vmatprep.subr.bf16.mxu1 %v17673_v4 }
  0x91   : > { %15310 = vmatpush3.bf16.msra.mxu0 %v17673_v4  ;;  %15346 = vmatpush3.bf16.msra.mxu1 %v17673_v4  ;;  %v17085_v4 = vld [vmem:[%s17680_s8 + $0x728] ss:$0 sps:$4 sm:$0x11]  }
  0x92   : > { %15311 = vmatprep.subr.bf16.mxu0 %v17691_v7  ;;  %15347 = vmatprep.subr.bf16.mxu1 %v17691_v7 }
  0x94   : > { %15256 = vmatmul.mubr.msk.bf16.gmra.mxu0 %vm407_vm1, %v17077_v59  ;;  %15292 = vmatmul.mubr.msk.bf16.gmra.mxu1 %vm407_vm1, %v17078_v60 }
  0x95   : > { %15312 = vmatpush3.bf16.msra.mxu0 %v17691_v7  ;;  %15259 = vmatprep.mubr.msk.bf16.mxu0 %vm407_vm1, %v17079_v61 }
  0x96   : > { %15295 = vmatprep.mubr.msk.bf16.mxu1 %vm407_vm1, %v17080_v62  ;;  %15348 = vmatpush3.bf16.msra.mxu1 %v17691_v7  ;;  %v17088_v7 = vld [vmem:[%s17680_s8 + $0x3b8] sm:$0xff]  }
  0x97   : > { %15313 = vmatprep.subr.bf16.mxu0 %v17702_v8  ;;  %15349 = vmatprep.subr.bf16.mxu1 %v17702_v8 }
  0x99   : > { %15314 = vmatpush3.bf16.msra.mxu0 %v17702_v8 }
  0x9a   : > { %15350 = vmatpush3.bf16.msra.mxu1 %v17702_v8  ;;  %15315 = vmatprep.subr.bf16.mxu0 %v17711_v9  ;;  %v17949_v8 = vld [vmem:[%s23510_s1 + $0x38] ss:$0 sps:$4 sm:$0xff]  }
  0x9b   : > { %15351 = vmatprep.subr.bf16.mxu1 %v17711_v9 }
  0x9c   : > { %15260 = vmatmul.mubr.msk.bf16.gmra.mxu0 %vm407_vm1, %v17081_v63  ;;  %15296 = vmatmul.mubr.msk.bf16.gmra.mxu1 %vm407_vm1, %v17082_v0  ;;  %v17129_v0 = vld [vmem:[%s17680_s8 + $0x98] sm:$0xff]  }
  0x9d   : > { %15263 = vmatprep.mubr.msk.bf16.mxu0 %vm407_vm1, %v17083_v1  ;;  %15299 = vmatprep.mubr.msk.bf16.mxu1 %vm407_vm1, %v17084_v3  ;;  %v17130_v1 = vld [vmem:[%s17680_s8 + $0x250] sm:$0xff]  }
  0x9e   : > { %15316 = vmatpush3.bf16.msra.mxu0 %v17711_v9  ;;  %15352 = vmatpush3.bf16.msra.mxu1 %v17711_v9  ;;  %v17089_v9 = vld [vmem:[%s17680_s8 + $0x208] sm:$0xff]  }
  0x9f   : > { %15317 = vmatprep.subr.bf16.mxu0 %v17720_v10  ;;  %15353 = vmatprep.subr.bf16.mxu1 %v17720_v10 }
  0xa2   : > { %15318 = vmatpush3.bf16.msra.mxu0 %v17720_v10  ;;  %15354 = vmatpush3.bf16.msra.mxu1 %v17720_v10  ;;  %v17090_v10 = vld [vmem:[%s17680_s8 + $0x3c0] sm:$0xff]  }
  0xa3   : > { %16955 = vmatprep.subr.msk.bf16.mxu0 %vm438_vm0, %v17949_v8  ;;  %16956 = vmatprep.subr.msk.bf16.mxu1 %vm438_vm0, %v17949_v8 }
  0xa4   : > { %15264 = vmatmul.mubr.msk.bf16.gmra.mxu0 %vm407_vm1, %v17085_v4  ;;  %15300 = vmatmul.mubr.msk.bf16.gmra.mxu1 %vm407_vm1, %v17086_v5  ;;  %v17131_v4 = vld [vmem:[%s17680_s8 + $0xa0] sm:$0xff]   ;;  %v17132_v5 = vld [vmem:[%s17680_s8 + $0x258] sm:$0xff]  }
  0xa5   : > { %15319 = vmatprep.mubr.msk.bf16.mxu0 %vm407_vm1, %v17087_v6  ;;  %15355 = vmatprep.mubr.msk.bf16.mxu1 %vm407_vm1, %v17088_v7 }
  0xac   : > { %15320 = vmatmul.mubr.msk.bf16.vlgmr.msra.gmra.mxu0 %vm407_vm1, %v17089_v9  ;;  %15356 = vmatmul.mubr.msk.bf16.vlgmr.msra.gmra.mxu1 %vm407_vm1, %v17090_v10 }
  0xad   : > { %15376 = vmatpush3.bf16.msra.mxu0 %v17655_v2  ;;  %15412 = vmatpush3.bf16.msra.mxu1 %v17655_v2 }
  0xae   : > { %15377 = vmatprep.subr.bf16.mxu0 %v17970_v13  ;;  %15323 = vmatprep.mubr.msk.bf16.mxu0 %vm407_vm1, %v17091_v11  ;;  %v17155_v11 = vld [vmem:[%s17680_s8 + $0x420] sm:$0xff]  }
  0xaf   : > { %15359 = vmatprep.mubr.msk.bf16.mxu1 %vm407_vm1, %v17092_v12  ;;  %15413 = vmatprep.subr.bf16.mxu1 %v17970_v13 }
  0xb1   : > { %15378 = vmatpush3.bf16.msra.mxu0 %v17970_v13  ;;  %15414 = vmatpush3.bf16.msra.mxu1 %v17970_v13 }
  0xb2   : > { %15379 = vmatprep.subr.bf16.mxu0 %v17983_v16  ;;  %15415 = vmatprep.subr.bf16.mxu1 %v17983_v16 }
  0xb4   : > { %15324 = vmatmul.mubr.msk.bf16.gmra.mxu0 %vm407_vm1, %v17093_v14  ;;  %15360 = vmatmul.mubr.msk.bf16.gmra.mxu1 %vm407_vm1, %v17094_v15  ;;  %v17154_v15 = vld [vmem:[%s17680_s8 + $0x5d0] sm:$0xff]  }
  0xb5   : > { %15380 = vmatpush3.bf16.msra.mxu0 %v17983_v16  ;;  %15416 = vmatpush3.bf16.msra.mxu1 %v17983_v16 }
  0xb6   : > { %15327 = vmatprep.mubr.msk.bf16.mxu0 %vm407_vm1, %v17095_v17  ;;  %15363 = vmatprep.mubr.msk.bf16.mxu1 %vm407_vm1, %v17096_v18  ;;  %v17133_v17 = vld [vmem:[%s17680_s8 + $0xa8] sm:$0xff]   ;;  %v17134_v18 = vld [vmem:[%s17680_s8 + $0x260] sm:$0xff]  }
  0xb7   : > { %15381 = vmatprep.subr.bf16.mxu0 %v18000_v21  ;;  %15417 = vmatprep.subr.bf16.mxu1 %v18000_v21 }
  0xb9   : > { %15382 = vmatpush3.bf16.msra.mxu0 %v18000_v21  ;;  %15418 = vmatpush3.bf16.msra.mxu1 %v18000_v21 }
  0xba   : > { %15383 = vmatprep.subr.bf16.mxu0 %v18010_v23  ;;  %15419 = vmatprep.subr.bf16.mxu1 %v18010_v23 }
  0xbc   : > { %15328 = vmatmul.mubr.msk.bf16.gmra.mxu0 %vm407_vm1, %v17097_v19  ;;  %15364 = vmatmul.mubr.msk.bf16.gmra.mxu1 %vm407_vm1, %v17098_v20 }
  0xbd   : > { %15384 = vmatpush3.bf16.msra.mxu0 %v18010_v23  ;;  %15331 = vmatprep.mubr.msk.bf16.mxu0 %vm407_vm1, %v17099_v22  ;;  %v17135_v22 = vld [vmem:[%s17680_s8 + $0xb0] sm:$0xff]  }
  0xbe   : > { %15367 = vmatprep.mubr.msk.bf16.mxu1 %vm407_vm1, %v17100_v24  ;;  %15420 = vmatpush3.bf16.msra.mxu1 %v18010_v23  ;;  %v17136_v24 = vld [vmem:[%s17680_s8 + $0x268] sm:$0xff]  }
  0xbf   : > { %15385 = vmatprep.subr.bf16.mxu0 %v18026_v27  ;;  %15421 = vmatprep.subr.bf16.mxu1 %v18026_v27 }
  0xc1   : > { %15386 = vmatpush3.bf16.msra.mxu0 %v18026_v27 }
  0xc2   : > { %15422 = vmatpush3.bf16.msra.mxu1 %v18026_v27  ;;  %15387 = vmatprep.subr.bf16.mxu0 %v18037_v30 }
  0xc3   : > { %15423 = vmatprep.subr.bf16.mxu1 %v18037_v30 }
  0xc4   : > { %15332 = vmatmul.mubr.msk.bf16.gmra.mxu0 %vm407_vm1, %v17101_v25  ;;  %15368 = vmatmul.mubr.msk.bf16.gmra.mxu1 %vm407_vm1, %v17102_v26  ;;  %v17153_v25 = vld [vmem:[%s17680_s8 + $0x418] sm:$0xff]  }
  0xc5   : > { %15335 = vmatprep.mubr.msk.bf16.mxu0 %vm407_vm1, %v17103_v28  ;;  %15371 = vmatprep.mubr.msk.bf16.mxu1 %vm407_vm1, %v17104_v29  ;;  %v18370_v29 = vld [vmem:[%s23510_s1 + $0x30] sm:$0xff]  }
  0xc6   : > { %15388 = vmatpush3.bf16.msra.mxu0 %v18037_v30  ;;  %15424 = vmatpush3.bf16.msra.mxu1 %v18037_v30  ;;  %23629 = vst [vmem:[#allocation17_spill] sm:$0xff] %v18370_v29 }
  0xc7   : > { %15389 = vmatprep.subr.bf16.mxu0 %v18052_v33  ;;  %15425 = vmatprep.subr.bf16.mxu1 %v18052_v33 }
  0xca   : > { %15390 = vmatpush3.bf16.msra.mxu0 %v18052_v33  ;;  %15426 = vmatpush3.bf16.msra.mxu1 %v18052_v33 }
  0xcb   : > { %16957 = vmatprep.subr.msk.bf16.mxu0 %vm438_vm0, %v17949_v8  ;;  %16958 = vmatprep.subr.msk.bf16.mxu1 %vm438_vm0, %v17949_v8 }
  0xcc   : > { %15336 = vmatmul.mubr.msk.bf16.gmra.mxu0 %vm407_vm1, %v17105_v31  ;;  %15372 = vmatmul.mubr.msk.bf16.gmra.mxu1 %vm407_vm1, %v17106_v32 }
  0xcd   : > { %15391 = vmatprep.mubr.msk.bf16.mxu0 %vm407_vm1, %v17107_v34  ;;  %15427 = vmatprep.mubr.msk.bf16.mxu1 %vm407_vm1, %v17108_v35 }
  0xd4   : > { %15392 = vmatmul.mubr.msk.bf16.vlgmr.msra.gmra.mxu0 %vm407_vm1, %v17109_v36  ;;  %15428 = vmatmul.mubr.msk.bf16.vlgmr.msra.gmra.mxu1 %vm407_vm1, %v17110_v37  ;;  %v17137_v36 = vld [vmem:[%s17680_s8 + $0xb8] sm:$0xff]  }
  0xd5   : > { %15448 = vmatpush3.bf16.msra.mxu0 %v17655_v2  ;;  %15484 = vmatpush3.bf16.msra.mxu1 %v17655_v2 }
  0xd6   : > { %15449 = vmatprep.subr.bf16.mxu0 %v17970_v13  ;;  %15395 = vmatprep.mubr.msk.bf16.mxu0 %vm407_vm1, %v17111_v38  ;;  %v17138_v38 = vld [vmem:[%s17680_s8 + $0x270] sm:$0xff]  }
  0xd7   : > { %15431 = vmatprep.mubr.msk.bf16.mxu1 %vm407_vm1, %v17112_v39  ;;  %15485 = vmatprep.subr.bf16.mxu1 %v17970_v13  ;;  %v17139_v39 = vld [vmem:[%s17680_s8 + $0xc0] sm:$0xff]  }
  0xd9   : > { %15450 = vmatpush3.bf16.msra.mxu0 %v17970_v13  ;;  %15486 = vmatpush3.bf16.msra.mxu1 %v17970_v13 }
  0xda   : > { %15451 = vmatprep.subr.bf16.mxu0 %v17983_v16  ;;  %15487 = vmatprep.subr.bf16.mxu1 %v17983_v16 }
  0xdc   : > { %15396 = vmatmul.mubr.msk.bf16.gmra.mxu0 %vm407_vm1, %v17113_v40  ;;  %15432 = vmatmul.mubr.msk.bf16.gmra.mxu1 %vm407_vm1, %v17114_v41  ;;  %v17140_v41 = vld [vmem:[%s17680_s8 + $0x278] sm:$0xff]  }
  0xdd   : > { %15452 = vmatpush3.bf16.msra.mxu0 %v17983_v16  ;;  %15488 = vmatpush3.bf16.msra.mxu1 %v17983_v16 }
  0xde   : > { %15399 = vmatprep.mubr.msk.bf16.mxu0 %vm407_vm1, %v17115_v42  ;;  %15435 = vmatprep.mubr.msk.bf16.mxu1 %vm407_vm1, %v17116_v43  ;;  %v17152_v42 = vld [vmem:[%s17680_s8 + $0x5c8] sm:$0xff]  }
  0xdf   : > { %15453 = vmatprep.subr.bf16.mxu0 %v18000_v21  ;;  %15489 = vmatprep.subr.bf16.mxu1 %v18000_v21 }
  0xe1   : > { %15454 = vmatpush3.bf16.msra.mxu0 %v18000_v21  ;;  %15490 = vmatpush3.bf16.msra.mxu1 %v18000_v21 }
  0xe2   : > { %15455 = vmatprep.subr.bf16.mxu0 %v18010_v23  ;;  %15491 = vmatprep.subr.bf16.mxu1 %v18010_v23 }
  0xe4   : > { %15400 = vmatmul.mubr.msk.bf16.gmra.mxu0 %vm407_vm1, %v17117_v44  ;;  %15436 = vmatmul.mubr.msk.bf16.gmra.mxu1 %vm407_vm1, %v17118_v45  ;;  %v17151_v45 = vld [vmem:[%s17680_s8 + $0x410] sm:$0xff]  }
  0xe5   : > { %15456 = vmatpush3.bf16.msra.mxu0 %v18010_v23  ;;  %15403 = vmatprep.mubr.msk.bf16.mxu0 %vm407_vm1, %v17119_v46 }
  0xe6   : > { %15439 = vmatprep.mubr.msk.bf16.mxu1 %vm407_vm1, %v17120_v47  ;;  %15492 = vmatpush3.bf16.msra.mxu1 %v18010_v23 }
  0xe7   : > { %15457 = vmatprep.subr.bf16.mxu0 %v18026_v27  ;;  %15493 = vmatprep.subr.bf16.mxu1 %v18026_v27 }
  0xe9   : > { %15458 = vmatpush3.bf16.msra.mxu0 %v18026_v27 }
  0xea   : > { %15494 = vmatpush3.bf16.msra.mxu1 %v18026_v27  ;;  %15459 = vmatprep.subr.bf16.mxu0 %v18037_v30 }
  0xeb   : > { %15495 = vmatprep.subr.bf16.mxu1 %v18037_v30 }
  0xec   : > { %15404 = vmatmul.mubr.msk.bf16.gmra.mxu0 %vm407_vm1, %v17121_v48  ;;  %15440 = vmatmul.mubr.msk.bf16.gmra.mxu1 %vm407_vm1, %v17122_v49 }
  0xed   : > { %15407 = vmatprep.mubr.msk.bf16.mxu0 %vm407_vm1, %v17123_v50  ;;  %15443 = vmatprep.mubr.msk.bf16.mxu1 %vm407_vm1, %v17124_v51  ;;  %v17141_v50 = vld [vmem:[%s17680_s8 + $0xc8] sm:$0xff]   ;;  %v17142_v51 = vld [vmem:[%s17680_s8 + $0x280] sm:$0xff]  }
  0xee   : > { %15460 = vmatpush3.bf16.msra.mxu0 %v18037_v30  ;;  %15496 = vmatpush3.bf16.msra.mxu1 %v18037_v30 }
  0xef   : > { %15461 = vmatprep.subr.bf16.mxu0 %v18052_v33  ;;  %15497 = vmatprep.subr.bf16.mxu1 %v18052_v33 }
  0xf2   : > { %15462 = vmatpush3.bf16.msra.mxu0 %v18052_v33  ;;  %15498 = vmatpush3.bf16.msra.mxu1 %v18052_v33 }
  0xf3   : > { %16959 = vmatprep.subr.msk.bf16.mxu0 %vm438_vm0, %v17949_v8  ;;  %16960 = vmatprep.subr.msk.bf16.mxu1 %vm438_vm0, %v17949_v8  ;;  %v17156_v8 = vld [vmem:[%s17680_s8 + $0x5d8] sm:$0xff]  }
  0xf4   : > { %v18138_v56 = vpop.f32.mrf.mxu0  ;;  %v18140_v57 = vpop.f32.mrf.mxu1  ;;  %15408 = vmatmul.mubr.msk.bf16.gmra.mxu0 %vm407_vm1, %v17125_v52  ;;  %15444 = vmatmul.mubr.msk.bf16.gmra.mxu1 %vm407_vm1, %v17126_v53  ;;  %v17143_v53 = vld [vmem:[%s17680_s8 + $0xd0] sm:$0xff]   ;;  %v17149_v52 = vld [vmem:[%s17680_s8 + $0x408] sm:$0xff]  }
  0xf5   : > { %15463 = vmatprep.mubr.msk.bf16.mxu0 %vm407_vm1, %v17127_v54  ;;  %15499 = vmatprep.mubr.msk.bf16.mxu1 %vm407_vm1, %v17128_v55  ;;  %v17144_v54 = vld [vmem:[%s17680_s8 + $0x288] sm:$0xff]  }
  0xf6   : > { %v18148_v59 = vpop.f32.mrf.mxu0  ;;  %v18150_v60 = vpop.f32.mrf.mxu1 }
  0xf8   : > { %v18154_v62 = vpop.f32.mrf.mxu0  ;;  %v18156_v63 = vpop.f32.mrf.mxu1 }
  0xfa   : > { %v18164_v6 = vpop.f32.mrf.mxu0  ;;  %v18166_v7 = vpop.f32.mrf.mxu1 }
  0xfc   : > { %v18170_v9 = vpop.f32.mrf.mxu0  ;;  %v18172_v10 = vpop.f32.mrf.mxu1  ;;  %15464 = vmatmul.mubr.msk.bf16.vlgmr.msra.gmra.mxu0 %vm407_vm1, %v17129_v0  ;;  %15500 = vmatmul.mubr.msk.bf16.vlgmr.msra.gmra.mxu1 %vm407_vm1, %v17130_v1 }
  0xfd   : > { %15520 = vmatpush3.bf16.msra.mxu0 %v17655_v2  ;;  %15556 = vmatpush3.bf16.msra.mxu1 %v17655_v2 }
  0xfe   : > { %v18180_v12 = vpop.f32.mrf.mxu0  ;;  %v18182_v14 = vpop.f32.mrf.mxu1  ;;  %15521 = vmatprep.subr.bf16.mxu0 %v17970_v13  ;;  %15467 = vmatprep.mubr.msk.bf16.mxu0 %vm407_vm1, %v17131_v4 }
  0xff   : > { %15503 = vmatprep.mubr.msk.bf16.mxu1 %vm407_vm1, %v17132_v5  ;;  %15557 = vmatprep.subr.bf16.mxu1 %v17970_v13 }
 0x100   : > { %v18192_v19 = vpop.f32.mrf.mxu0  ;;  %v18194_v20 = vpop.f32.mrf.mxu1 }
 0x101   : > { %15522 = vmatpush3.bf16.msra.mxu0 %v17970_v13  ;;  %15558 = vmatpush3.bf16.msra.mxu1 %v17970_v13 }
 0x102   : > { %v18202_v26 = vpop.f32.mrf.mxu0  ;;  %v18204_v28 = vpop.f32.mrf.mxu1  ;;  %15523 = vmatprep.subr.bf16.mxu0 %v17983_v16  ;;  %15559 = vmatprep.subr.bf16.mxu1 %v17983_v16 }
 0x104   : > { %v18210_v31 = vpop.f32.mrf.mxu0  ;;  %v18212_v32 = vpop.f32.mrf.mxu1  ;;  %15468 = vmatmul.mubr.msk.bf16.gmra.mxu0 %vm407_vm1, %v17133_v17  ;;  %15504 = vmatmul.mubr.msk.bf16.gmra.mxu1 %vm407_vm1, %v17134_v18 }
 0x105   : > { %15524 = vmatpush3.bf16.msra.mxu0 %v17983_v16  ;;  %15560 = vmatpush3.bf16.msra.mxu1 %v17983_v16 }
 0x106   : > { %v18220_v34 = vpop.f32.mrf.mxu0  ;;  %v18222_v35 = vpop.f32.mrf.mxu1  ;;  %15471 = vmatprep.mubr.msk.bf16.mxu0 %vm407_vm1, %v17135_v22  ;;  %15507 = vmatprep.mubr.msk.bf16.mxu1 %vm407_vm1, %v17136_v24 }
 0x107   : > { %15525 = vmatprep.subr.bf16.mxu0 %v18000_v21  ;;  %15561 = vmatprep.subr.bf16.mxu1 %v18000_v21 }
 0x108   : > { %v18233_v40 = vpop.f32.mrf.mxu0  ;;  %v18235_v16 = vpop.f32.mrf.mxu1 }
 0x109   : > { %15526 = vmatpush3.bf16.msra.mxu0 %v18000_v21  ;;  %15562 = vmatpush3.bf16.msra.mxu1 %v18000_v21  ;;  %v17150_v21 = vld [vmem:[%s17680_s8 + $0x5c0] sm:$0xff]  }
 0x10a   : > { %v18242_v43 = vpop.f32.mrf.mxu0  ;;  %v18244_v44 = vpop.f32.mrf.mxu1  ;;  %15527 = vmatprep.subr.bf16.mxu0 %v18010_v23  ;;  %15563 = vmatprep.subr.bf16.mxu1 %v18010_v23 }
 0x10c   : > { %v18250_v46 = vpop.f32.mrf.mxu0  ;;  %v18252_v47 = vpop.f32.mrf.mxu1  ;;  %15472 = vmatmul.mubr.msk.bf16.gmra.mxu0 %vm407_vm1, %v17137_v36  ;;  %15508 = vmatmul.mubr.msk.bf16.gmra.mxu1 %vm407_vm1, %v17138_v38  ;;  %v17145_v36 = vld [vmem:[%s17680_s8 + $0xd8] ss:$0 sps:$4 sm:$0x11]   ;;  %v17146_v38 = vld [vmem:[%s17680_s8 + $0x290] ss:$0 sps:$4 sm:$0x11]  }
 0x10d   : > { %15528 = vmatpush3.bf16.msra.mxu0 %v18010_v23  ;;  %15475 = vmatprep.mubr.msk.bf16.mxu0 %vm407_vm1, %v17139_v39 }
 0x10e   : > { %v18260_v48 = vpop.f32.mrf.mxu0  ;;  %v18262_v49 = vpop.f32.mrf.mxu1  ;;  %15511 = vmatprep.mubr.msk.bf16.mxu1 %vm407_vm1, %v17140_v41  ;;  %15564 = vmatpush3.bf16.msra.mxu1 %v18010_v23 }
 0x10f   : > { %15529 = vmatprep.subr.bf16.mxu0 %v18026_v27  ;;  %15565 = vmatprep.subr.bf16.mxu1 %v18026_v27 }
 0x110   : > { %v18274_v55 = vpop.f32.mrf.mxu0  ;;  %v18276_v0 = vpop.f32.mrf.mxu1 }
 0x111   : > { %15530 = vmatpush3.bf16.msra.mxu0 %v18026_v27 }
 0x112   : > { %v18281_v23 = vpop.f32.mrf.mxu0  ;;  %v18283_v4 = vpop.f32.mrf.mxu1  ;;  %15566 = vmatpush3.bf16.msra.mxu1 %v18026_v27  ;;  %15531 = vmatprep.subr.bf16.mxu0 %v18037_v30 }
 0x113   : > { %23621 = vst [vmem:[#allocation9_spill] sm:$0xff] %v18281_v23  ;;  %23622 = vst [vmem:[#allocation10_spill] sm:$0xff] %v18283_v4  ;;  %15567 = vmatprep.subr.bf16.mxu1 %v18037_v30  ;;  %v18477_v4 = vld [vmem:[%s23510_s1 + $0x8] sm:$0xff]  }
 0x114   : > { %v18290_v17 = vpop.f32.mrf.mxu0  ;;  %v18292_v18 = vpop.f32.mrf.mxu1  ;;  %15476 = vmatmul.mubr.msk.bf16.gmra.mxu0 %vm407_vm1, %v17141_v50  ;;  %15512 = vmatmul.mubr.msk.bf16.gmra.mxu1 %vm407_vm1, %v17142_v51  ;;  %v17147_v51 = vld [vmem:[%s17680_s8 + $0x400] sm:$0xff]  }
 0x115   : > { %23623 = vst [vmem:[#allocation11_spill] sm:$0xff] %v18290_v17  ;;  %23624 = vst [vmem:[#allocation12_spill] sm:$0xff] %v18292_v18  ;;  %15479 = vmatprep.mubr.msk.bf16.mxu0 %vm407_vm1, %v17143_v53  ;;  %15515 = vmatprep.mubr.msk.bf16.mxu1 %vm407_vm1, %v17144_v54  ;;  %v17148_v53 = vld [vmem:[%s17680_s8 + $0x5b8] sm:$0xff]   ;;  %v17162_v17 = vld [vmem:[%s17680_s8 + $0x5f0] sm:$0xff]  }
 0x116   : > { %v18300_v22 = vpop.f32.mrf.mxu0  ;;  %v18302_v24 = vpop.f32.mrf.mxu1  ;;  %15532 = vmatpush3.bf16.msra.mxu0 %v18037_v30  ;;  %15568 = vmatpush3.bf16.msra.mxu1 %v18037_v30  ;;  %v17161_v18 = vld [vmem:[%s17680_s8 + $0x438] sm:$0xff]  }
 0x117   : > { %23625 = vst [vmem:[#allocation13_spill] sm:$0xff] %v18300_v22  ;;  %23626 = vst [vmem:[#allocation14_spill] sm:$0xff] %v18302_v24  ;;  %15533 = vmatprep.subr.bf16.mxu0 %v18052_v33  ;;  %15569 = vmatprep.subr.bf16.mxu1 %v18052_v33 }
 0x118   : > { %v15122_v41 = vpop.f32.mrf.mxu0  ;;  %v15158_v50 = vpop.f32.mrf.mxu1 }
 0x119   : > { %v18325_v41 = vld [vmem:[%s23510_s1 + $0x38] ss:$0 sps:$4 sm:$0xff]  }
 0x11a   : > { %v18314_v54 = vpop.f32.mrf.mxu0  ;;  %v18316_v27 = vpop.f32.mrf.mxu1  ;;  %15534 = vmatpush3.bf16.msra.mxu0 %v18052_v33  ;;  %15570 = vmatpush3.bf16.msra.mxu1 %v18052_v33 }
 0x11b   : > { %23627 = vst [vmem:[#allocation15_spill] sm:$0xff] %v18314_v54  ;;  %23628 = vst [vmem:[#allocation16_spill] sm:$0xff] %v18316_v27  ;;  %16961 = vmatprep.subr.msk.bf16.mxu0 %vm438_vm0, %v18325_v41  ;;  %16962 = vmatprep.subr.msk.bf16.mxu1 %vm438_vm0, %v18325_v41 }
 0x11c   : > { %v18331_v50 = vpop.f32.mrf.mxu0  ;;  %v18333_v33 = vpop.f32.mrf.mxu1  ;;  %15480 = vmatmul.mubr.msk.bf16.gmra.mxu0 %vm407_vm1, %v17145_v36  ;;  %15516 = vmatmul.mubr.msk.bf16.gmra.mxu1 %vm407_vm1, %v17146_v38 }
 0x11d   : > { %15535 = vmatprep.mubr.msk.bf16.mxu0 %vm407_vm1, %v17147_v51  ;;  %15571 = vmatprep.mubr.msk.bf16.mxu1 %vm407_vm1, %v17148_v53 }
 0x11e   : > { %v18339_v30 = vpop.f32.mrf.mxu0  ;;  %v18341_v39 = vpop.f32.mrf.mxu1 }
 0x120   : > { %v18343_v5 = vpop.f32.mrf.mxu0  ;;  %v18345_v1 = vpop.f32.mrf.mxu1 }
 0x122   : > { %v18351_v37 = vpop.f32.mrf.mxu0  ;;  %v18353_v36 = vpop.f32.mrf.mxu1 }
 0x124   : > { %v18355_v38 = vpop.f32.mrf.mxu0  ;;  %v18357_v51 = vpop.f32.mrf.mxu1  ;;  %15536 = vmatmul.mubr.msk.bf16.vlgmr.msra.gmra.mxu0 %vm407_vm1, %v17149_v52  ;;  %15572 = vmatmul.mubr.msk.bf16.vlgmr.msra.gmra.mxu1 %vm407_vm1, %v17150_v21 }
 0x125   : > { %15592 = vmatpush3.bf16.msra.mxu0 %v17655_v2  ;;  %15628 = vmatpush3.bf16.msra.mxu1 %v17655_v2  ;;  %v17158_v2 = vld [vmem:[%s17680_s8 + $0x5e0] sm:$0xff]  }
 0x126   : > { %v18363_v53 = vpop.f32.mrf.mxu0  ;;  %v18365_v13 = vpop.f32.mrf.mxu1  ;;  %15593 = vmatprep.subr.bf16.mxu0 %v18370_v29  ;;  %15539 = vmatprep.mubr.msk.bf16.mxu0 %vm407_vm1, %v17151_v45 }
 0x127   : > { %15575 = vmatprep.mubr.msk.bf16.mxu1 %vm407_vm1, %v17152_v42  ;;  %15629 = vmatprep.subr.bf16.mxu1 %v18370_v29  ;;  %v18393_v42 = vld [vmem:[%s23510_s1 + $0x28] sm:$0xff]  }
 0x128   : > { %v18376_v21 = vpop.f32.mrf.mxu0  ;;  %v18378_v52 = vpop.f32.mrf.mxu1  ;;  %23630 = vst [vmem:[#allocation18_spill] sm:$0xff] %v18393_v42 }
 0x129   : > { %15594 = vmatpush3.bf16.msra.mxu0 %v18370_v29  ;;  %15630 = vmatpush3.bf16.msra.mxu1 %v18370_v29  ;;  %v17157_v29 = vld [vmem:[%s17680_s8 + $0x428] sm:$0xff]  }
 0x12a   : > { %v18386_v3 = vpop.f32.mrf.mxu0  ;;  %v18388_v61 = vpop.f32.mrf.mxu1  ;;  %15595 = vmatprep.subr.bf16.mxu0 %v18393_v42  ;;  %15631 = vmatprep.subr.bf16.mxu1 %v18393_v42 }
 0x12c   : > { %v18397_v45 = vpop.f32.mrf.mxu0  ;;  %v18399_v58 = vpop.f32.mrf.mxu1  ;;  %15540 = vmatmul.mubr.msk.bf16.gmra.mxu0 %vm407_vm1, %v17153_v25  ;;  %15576 = vmatmul.mubr.msk.bf16.gmra.mxu1 %vm407_vm1, %v17154_v15  ;;  %v18414_v25 = vld [vmem:[%s23510_s1 + $0x20] sm:$0xff]  }
 0x12d   : > { %23631 = vst [vmem:[#allocation19_spill] sm:$0xff] %v18399_v58  ;;  %15596 = vmatpush3.bf16.msra.mxu0 %v18393_v42  ;;  %15632 = vmatpush3.bf16.msra.mxu1 %v18393_v42  ;;  %23633 = vst [vmem:[#allocation21_spill] sm:$0xff] %v18414_v25 }
 0x12e   : > { %v18405_v27 = vpop.f32.mrf.mxu0  ;;  %v18407_v54 = vpop.f32.mrf.mxu1  ;;  %15543 = vmatprep.mubr.msk.bf16.mxu0 %vm407_vm1, %v17155_v11  ;;  %15579 = vmatprep.mubr.msk.bf16.mxu1 %vm407_vm1, %v17156_v8  ;;  %v17159_v8 = vld [vmem:[%s17680_s8 + $0x430] sm:$0xff]   ;;  %v17160_v11 = vld [vmem:[%s17680_s8 + $0x5e8] sm:$0xff]  }
 0x12f   : > { %23632 = vst [vmem:[#allocation20_spill] sm:$0xff] %v18407_v54  ;;  %15597 = vmatprep.subr.bf16.mxu0 %v18414_v25  ;;  %15633 = vmatprep.subr.bf16.mxu1 %v18414_v25  ;;  %v18435_v54 = vld [vmem:[%s23510_s1 + $0x18] sm:$0xff]  }
 0x130   : > { %v18418_v15 = vpop.f32.mrf.mxu0  ;;  %v18420_v42 = vpop.f32.mrf.mxu1  ;;  %23636 = vst [vmem:[#allocation24_spill] sm:$0xff] %v18435_v54 }
 0x131   : > { %23634 = vst [vmem:[#allocation22_spill] sm:$0xff] %v18420_v42  ;;  %15598 = vmatpush3.bf16.msra.mxu0 %v18414_v25  ;;  %15634 = vmatpush3.bf16.msra.mxu1 %v18414_v25 }
 0x132   : > { %v18428_v24 = vpop.f32.mrf.mxu0  ;;  %v18430_v22 = vpop.f32.mrf.mxu1  ;;  %15599 = vmatprep.subr.bf16.mxu0 %v18435_v54  ;;  %15635 = vmatprep.subr.bf16.mxu1 %v18435_v54 }
 0x133   : > { %23635 = vst [vmem:[#allocation23_spill] sm:$0xff] %v18430_v22 }
 0x134   : > { %v18439_v42 = vpop.f32.mrf.mxu0  ;;  %v18441_v25 = vpop.f32.mrf.mxu1  ;;  %15544 = vmatmul.mubr.msk.bf16.gmra.mxu0 %vm407_vm1, %v17157_v29  ;;  %15580 = vmatmul.mubr.msk.bf16.gmra.mxu1 %vm407_vm1, %v17158_v2  ;;  %v18458_v29 = vld [vmem:[%s23510_s1 + $0x10] sm:$0xff]   ;;  %v17163_v2 = vld [vmem:[%s17680_s8 + $0x440] sm:$0xff]  }
 0x135   : > { %23637 = vst [vmem:[#allocation25_spill] sm:$0xff] %v18441_v25  ;;  %15600 = vmatpush3.bf16.msra.mxu0 %v18435_v54  ;;  %15547 = vmatprep.mubr.msk.bf16.mxu0 %vm407_vm1, %v17159_v8  ;;  %23639 = vst [vmem:[#allocation27_spill] sm:$0xff] %v18458_v29  ;;  %v17164_v8 = vld [vmem:[%s17680_s8 + $0x5f8] sm:$0xff]  }
 0x136   : > { %v18447_v22 = vpop.f32.mrf.mxu0  ;;  %v18449_v58 = vpop.f32.mrf.mxu1  ;;  %15583 = vmatprep.mubr.msk.bf16.mxu1 %vm407_vm1, %v17160_v11  ;;  %15636 = vmatpush3.bf16.msra.mxu1 %v18435_v54 }
 0x137   : > { %23638 = vst [vmem:[#allocation26_spill] sm:$0xff] %v18449_v58  ;;  %15601 = vmatprep.subr.bf16.mxu0 %v18458_v29  ;;  %15637 = vmatprep.subr.bf16.mxu1 %v18458_v29 }
 0x138   : > { %v18464_v25 = vpop.f32.mrf.mxu0  ;;  %v18466_v58 = vpop.f32.mrf.mxu1 }
 0x139   : > { %23640 = vst [vmem:[#allocation28_spill] sm:$0xff] %v18466_v58  ;;  %15602 = vmatpush3.bf16.msra.mxu0 %v18458_v29 }
 0x13a   : > { %v18469_v11 = vpop.f32.mrf.mxu0  ;;  %v18471_v54 = vpop.f32.mrf.mxu1  ;;  %15638 = vmatpush3.bf16.msra.mxu1 %v18458_v29  ;;  %15603 = vmatprep.subr.bf16.mxu0 %v18477_v4 }
 0x13b   : > { %23641 = vst [vmem:[#allocation29_spill] sm:$0xff] %v18469_v11  ;;  %23642 = vst [vmem:[#allocation30_spill] sm:$0xff] %v18471_v54  ;;  %15639 = vmatprep.subr.bf16.mxu1 %v18477_v4  ;;  %v17165_v11 = vld [vmem:[%s17680_s8 + $0x448] ss:$0 sps:$4 sm:$0x11]  }
 0x13c   : > { %v18481_v58 = vpop.f32.mrf.mxu0  ;;  %v18483_v23 = vpop.f32.mrf.mxu1  ;;  %15548 = vmatmul.mubr.msk.bf16.gmra.mxu0 %vm407_vm1, %v17161_v18  ;;  %15584 = vmatmul.mubr.msk.bf16.gmra.mxu1 %vm407_vm1, %v17162_v17  ;;  %v23647_v18 = vmax.f32 %v18138_v56, %v18140_v57  ;;  %v17167_v56 = vld [vmem:[%s17680_s8 + $0x770] sm:$0xff]   ;;  %v17168_v57 = vld [vmem:[%s17680_s8 + $0xd8] sm:$0xff]  }
 0x13d   : > { %23643 = vst [vmem:[#allocation31_spill] sm:$0xff] %v18481_v58  ;;  %23644 = vst [vmem:[#allocation32_spill] sm:$0xff] %v18483_v23  ;;  %15551 = vmatprep.mubr.msk.bf16.mxu0 %vm407_vm1, %v17163_v2  ;;  %15587 = vmatprep.mubr.msk.bf16.mxu1 %vm407_vm1, %v17164_v8  ;;  %v17166_v58 = vld [vmem:[%s17680_s8 + $0x600] ss:$0 sps:$4 sm:$0x11]   ;;  %v23648_v2 = vmax.f32 %v18148_v59, %v18150_v60  ;;  %v23650_v59 = vmax.f32 %v18164_v6, %v18166_v7 }
 0x13e   : > { %v18489_v29 = vpop.f32.mrf.mxu0  ;;  %v18491_v54 = vpop.f32.mrf.mxu1  ;;  %15604 = vmatpush3.bf16.msra.mxu0 %v18477_v4  ;;  %15640 = vmatpush3.bf16.msra.mxu1 %v18477_v4  ;;  %v993_v17 = vmax.f32 %v23647_v18, %v18331_v50 }
 0x13f   : > { %23645 = vst [vmem:[#allocation33_spill] sm:$0xff] %v18489_v29  ;;  %23646 = vst [vmem:[#allocation34_spill] sm:$0xff] %v18491_v54  ;;  %v991_v8 = vmax.f32 %v23648_v2, %v18339_v30  ;;  %v23649_v54 = vmax.f32 %v18154_v62, %v18156_v63  ;;  %v18512_v29 = vld [vmem:[%s23510_s1] sm:$0xff]   ;;  %v18522_v60 = vmax.f32 %v23650_v59, %v18351_v37 }
 0x140   : > { %15605 = vmatprep.subr.bf16.mxu0 %v18512_v29  ;;  %15641 = vmatprep.subr.bf16.mxu1 %v18512_v29  ;;  %v15194_v30 = vpop.f32.mrf.mxu0  ;;  %v15230_v62 = vpop.f32.mrf.mxu1  ;;  %v23651_v63 = vmax.f32 %v18170_v9, %v18172_v10  ;;  %v1221_v6 = vmax.f32 %v993_v17, %v18333_v33  ;;  %v23654_v37 = vmax.f32 %v18202_v26, %v18204_v28 }
 0x141   : > { %v994_v23 = vmax.f32 %v23649_v54, %v18343_v5  ;;  %v23652_v54 = vmax.f32 %v18180_v12, %v18182_v14  ;;  %v1219_v7 = vmax.f32 %v991_v8, %v18341_v39  ;;  %v1220_v10 = vmax.f32 %v18522_v60, %v18353_v36  ;;  %v23670_v62 = vld [vmem:[#allocation19_spill] sm:$0xff] }
 0x142   : > { %v18528_v5 = vmax.f32 %v23651_v63, %v18355_v38  ;;  %v18536_v18 = vpop.f32.mrf.mxu0  ;;  %v18538_v2 = vpop.f32.mrf.mxu1  ;;  %15606 = vmatpush3.bf16.msra.mxu0 %v18512_v29  ;;  %15642 = vmatpush3.bf16.msra.mxu1 %v18512_v29  ;;  %v23653_v12 = vmax.f32 %v18192_v19, %v18194_v20  ;;  %v23655_v26 = vmax.f32 %v18210_v31, %v18212_v32 }
 0x143   : > { %v18534_v50 = vmax.f32 %v23652_v54, %v18363_v53  ;;  %v1222_v9 = vmax.f32 %v994_v23, %v18345_v1  ;;  %16963 = vmatprep.subr.msk.bf16.mxu0 %vm438_vm0, %v18325_v41  ;;  %16964 = vmatprep.subr.msk.bf16.mxu1 %vm438_vm0, %v18325_v41  ;;  %v18561_v1 = vmax.f32 %v23654_v37, %v18386_v3  ;;  %v18566_v23 = vld [vmem:[%s23511_s2] ss:$0 sm:$0xff]  ;;  %v23689_v37 = vld [vmem:[#allocation16_spill] sm:$0xff] }
 0x144   : > { %v18555_v14 = vmax.f32 %v23653_v12, %v18376_v21  ;;  %v15249_v39 = vpop.f32.mrf.mxu0  ;;  %v18568_v41 = vpop.f32.mrf.mxu1  ;;  %15552 = vmatmul.mubr.msk.bf16.gmra.mxu0 %vm407_vm1, %v17165_v11  ;;  %15588 = vmatmul.mubr.msk.bf16.gmra.mxu1 %vm407_vm1, %v17166_v58  ;;  %v1225_v19 = vmax.f32 %v18528_v5, %v18357_v51  ;;  %v18582_v28 = vmax.f32 %v23655_v26, %v18397_v45  ;;  %v23666_v8 = vld [vmem:[#allocation31_spill] sm:$0xff]  ;;  %v23671_v5 = vld [vmem:[#allocation20_spill] sm:$0xff]  ;;  %v23674_v26 = vld [vmem:[#allocation25_spill] sm:$0xff] }
 0x145   : > { %v1223_v3 = vmax.f32 %v18534_v50, %v18365_v13  ;;  %v1449_v20 = vmax.f32 %v1221_v6, %v15249_v39  ;;  %15607 = vmatprep.mubr.msk.bf16.mxu0 %vm407_vm1, %v17167_v56  ;;  %15643 = vmatprep.mubr.msk.bf16.mxu1 %vm407_vm1, %v17168_v57  ;;  %v23656_v58 = vmax.f32 %v18220_v34, %v18222_v35  ;;  %v17169_v34 = vld [vmem:[%s17680_s8 + $0x778] sm:$0xff]   ;;  %v17170_v35 = vld [vmem:[%s17680_s8 + $0xe0] sm:$0xff]  }
 0x146   : > { %v23657_v36 = vmax.f32 %v18233_v40, %v18235_v16  ;;  %v23658_v51 = vmax.f32 %v18242_v43, %v18244_v44  ;;  %v1369_v31 = vpop.f32.mrf.mxu0  ;;  %v18602_v32 = vpop.f32.mrf.mxu1  ;;  %v23659_v40 = vmax.f32 %v18250_v46, %v18252_v47  ;;  %v23660_v43 = vmax.f32 %v18260_v48, %v18262_v49  ;;  %v23664_v48 = vld [vmem:[#allocation10_spill] sm:$0xff]  ;;  %v23667_v56 = vld [vmem:[#allocation11_spill] sm:$0xff]  ;;  %v23668_v57 = vld [vmem:[#allocation12_spill] sm:$0xff] }
 0x147   : > { %v18588_v33 = vmax.f32 %v23656_v58, %v18405_v27  ;;  %v1474_v27 = vadd.f32 %v18566_v23, %v1449_v20  ;;  %v1226_v21 = vmax.f32 %v18555_v14, %v18378_v52  ;;  %v23661_v46 = vmax.f32 %v18274_v55, %v18276_v0  ;;  %v23672_v6 = vld [vmem:[#allocation22_spill] sm:$0xff]  ;;  %v23673_v12 = vld [vmem:[#allocation23_spill] sm:$0xff] }
 0x148   : > { %v18594_v38 = vmax.f32 %v23657_v36, %v18418_v15  ;;  %v18600_v53 = vmax.f32 %v23658_v51, %v18428_v24  ;;  %v18610_v16 = vmax.f32 %v23659_v40, %v18439_v42  ;;  %v18616_v44 = vmax.f32 %v23660_v43, %v18447_v22  ;;  %v23662_v42 = vld [vmem:[#allocation29_spill] sm:$0xff]  ;;  %v15250_v11 = vpop.f32.mrf.mxu0  ;;  %v18635_v17 = vpop.f32.mrf.mxu1  ;;  %v23676_v43 = vld [vmem:[#allocation28_spill] sm:$0xff]  ;;  %v23687_v36 = vld [vmem:[#allocation34_spill] sm:$0xff] }
 0x149   : > { %v1447_v24 = vmax.f32 %v1219_v7, %v1369_v31  ;;  %v18627_v47 = vmax.f32 %v23661_v46, %v18464_v25  ;;  %v23663_v15 = vld [vmem:[#allocation9_spill] sm:$0xff]  ;;  %v23669_v59 = vmax.f32 %v23667_v56, %v23668_v57  ;;  %v18643_v30 = vmax.f32 %v1474_v27, 0.0  ;;  %v17171_v25 = vld [vmem:[%s17680_s8 + $0x780] sm:$0xff]   ;;  %v23682_v56 = vld [vmem:[#allocation30_spill] sm:$0xff] }
 0x14a   : > { %v23665_v49 = vmax.f32 %v23663_v15, %v23664_v48  ;;  %v1450_v0 = vmax.f32 %v1222_v9, %v15250_v11  ;;  %v1372_v39 = vpop.f32.mrf.mxu0  ;;  %v18655_v20 = vpop.f32.mrf.mxu1  ;;  %v23675_v9 = vld [vmem:[#allocation26_spill] sm:$0xff]  ;;  %v17172_v40 = vld [vmem:[%s17680_s8 + $0xe8] sm:$0xff]   ;;  %v23688_v58 = vld [vmem:[#allocation15_spill] sm:$0xff] }
 0x14b   : > { %v18641_v60 = vmax.f32 %v23669_v59, %v23666_v8  ;;  %v1472_v55 = vadd.f32 %v18566_v23, %v1447_v24  ;;  %v23677_v24 = vld [vmem:[#allocation33_spill] sm:$0xff]  ;;  %v23683_v59 = vld [vmem:[#allocation32_spill] sm:$0xff]  ;;  %v23690_v7 = vmax.f32 %v23688_v58, %v23689_v37 }
 0x14c   : > { %v18633_v22 = vmax.f32 %v23665_v49, %v23662_v42  ;;  %v1475_v31 = vadd.f32 %v18566_v23, %v1450_v0  ;;  %v23678_v46 = vld [vmem:[#allocation13_spill] sm:$0xff]  ;;  %v23679_v42 = vld [vmem:[#allocation14_spill] sm:$0xff]  ;;  %v1448_v49 = vmax.f32 %v1220_v10, %v1372_v39  ;;  %v15253_v11 = vpop.f32.mrf.mxu0  ;;  %v18673_v8 = vpop.f32.mrf.mxu1  ;;  %15608 = vmatmul.mubr.msk.bf16.vlgmr.msra.gmra.mxu0 %vm407_vm1, %v17169_v34  ;;  %15644 = vmatmul.mubr.msk.bf16.vlgmr.msra.gmra.mxu1 %vm407_vm1, %v17170_v35  ;;  %v1533_v10 = vrot.slane %v18643_v30, 1 }
 0x14d   : > { %v18661_v51 = vmax.f32 %v1472_v55, 0.0  ;;  %v23680_v15 = vmax.f32 %v23678_v46, %v23679_v42  ;;  %23681 = vst [vmem:[#allocation29_spill] sm:$0xff] %v18673_v8  ;;  %v1453_v46 = vmax.f32 %v1225_v19, %v15253_v11  ;;  %v1607_v34 = vrot.slane %v18643_v30, 2  ;;  %15611 = vmatprep.mubr.msk.bf16.mxu0 %vm407_vm1, %v17171_v25  ;;  %15647 = vmatprep.mubr.msk.bf16.mxu1 %vm407_vm1, %v17172_v40  ;;  %v17174_v27 = vld [vmem:[%s17680_s8 + $0xf0] sm:$0xff]  }
 0x14e   : > { %v18681_v0 = vmax.f32 %v1475_v31, 0.0  ;;  %v1473_v39 = vadd.f32 %v18566_v23, %v1448_v49  ;;  %v1385_v42 = vpop.f32.mrf.mxu0  ;;  %v23686_v31 = vld [vmem:[#allocation17_spill] sm:$0xff]  ;;  %v18709_v54 = vmax.f32 %v23690_v7, %v18536_v18 }
 0x14f   : > { %v18671_v48 = vmax.f32 %v23680_v15, %v23677_v24  ;;  %v23684_v24 = vld [vmem:[#allocation8_spill] sm:$0xff]  ;;  %v1530_v35 = vrot.slane %v18661_v51, 1  ;;  %v18689_v15 = vpop.f32.mrf.mxu1  ;;  %v1478_v55 = vadd.f32 %v18566_v23, %v1453_v46  ;;  %v1451_v57 = vmax.f32 %v1223_v3, %v1385_v42  ;;  %v17175_v18 = vld [vmem:[%s17680_s8 + $0x790] sm:$0xff]  }
 0x150   : > { %15664 = vmatpush3.bf16.msra.mxu0 %v23684_v24  ;;  %15700 = vmatpush3.bf16.msra.mxu1 %v23684_v24  ;;  %23685 = vst [vmem:[#allocation9_spill] sm:$0xff] %v18689_v15  ;;  %v1535_v19 = vrot.slane %v18681_v0, 1  ;;  %v23547_v11 = vrot.slane %v18681_v0, 2  ;;  %v17173_v49 = vld [vmem:[%s17680_s8 + $0x788] sm:$0xff]   ;;  %v1604_v46 = vrot.slane %v18661_v51, 2  ;;  %v1492_v13 = vmax.f32 %v1473_v39, 0.0  ;;  %v15254_v50 = vpop.f32.mrf.mxu0 }
 0x151   : > { %15665 = vmatprep.subr.bf16.mxu0 %v23686_v31  ;;  %15701 = vmatprep.subr.bf16.mxu1 %v23686_v31  ;;  %v18712_v3 = vpop.f32.mrf.mxu1  ;;  %v18718_v63 = vmax.f32 %v1478_v55, 0.0  ;;  %v1476_v25 = vadd.f32 %v18566_v23, %v1451_v57  ;;  %v1454_v39 = vmax.f32 %v1226_v21, %v15254_v50  ;;  %v23693_v55 = vld [vmem:[#allocation18_spill] sm:$0xff] }
 0x152   : > { %23691 = vst [vmem:[#allocation10_spill] sm:$0xff] %v18712_v3  ;;  %v1536_v40 = vsel %vm1529_vm2, %v1533_v10, %v1535_v19  ;;  %v1610_v42 = vsel %vm1603_vm3, %v1607_v34, %v23547_v11  ;;  %v1531_v37 = vrot.slane %v1492_v13, 1  ;;  %v1605_v58 = vrot.slane %v1492_v13, 2  ;;  %v1388_v45 = vpop.f32.mrf.mxu0  ;;  %v17176_v15 = vld [vmem:[%s17680_s8 + $0xf8] sm:$0xff]  }
 0x153   : > { %v1587_v7 = vmax.f32 %v18643_v30, %v1536_v40  ;;  %v18728_v11 = vpop.f32.mrf.mxu1  ;;  %v1541_v57 = vrot.slane %v18718_v63, 1  ;;  %v18734_v3 = vmax.f32 %v1476_v25, 0.0  ;;  %v23694_v30 = vmax.f32 %v18561_v1, %v18388_v61 }
 0x154   : > { %15666 = vmatpush3.bf16.msra.mxu0 %v23686_v31  ;;  %15702 = vmatpush3.bf16.msra.mxu1 %v23686_v31  ;;  %23692 = vst [vmem:[#allocation31_spill] sm:$0xff] %v18728_v11  ;;  %v1532_v14 = vsel %vm1529_vm2, %v1530_v35, %v1531_v37  ;;  %v1534_v21 = vsel %vm1529_vm2, %v1531_v37, %v1533_v10  ;;  %v15257_v11 = vpop.f32.mrf.mxu0 }
 0x155   : > { %15667 = vmatprep.subr.bf16.mxu0 %v23693_v55  ;;  %15703 = vmatprep.subr.bf16.mxu1 %v23693_v55  ;;  %v1452_v40 = vmax.f32 %v23694_v30, %v1388_v45  ;;  %v1661_v52 = vmax.f32 %v1587_v7, %v1610_v42  ;;  %v1606_v50 = vsel %vm1603_vm3, %v1604_v46, %v1605_v58  ;;  %v18743_v8 = vpop.f32.mrf.mxu1  ;;  %v1537_v1 = vrot.slane %v18734_v3, 1 }
 0x156   : > { %15612 = vmatmul.mubr.msk.bf16.gmra.mxu0 %vm407_vm1, %v17173_v49  ;;  %v1585_v25 = vmax.f32 %v18661_v51, %v1532_v14  ;;  %v1586_v31 = vmax.f32 %v1492_v13, %v1534_v21  ;;  %v1608_v61 = vsel %vm1603_vm3, %v1605_v58, %v1607_v34  ;;  %15648 = vmatmul.mubr.msk.bf16.gmra.mxu1 %vm407_vm1, %v17174_v27  ;;  %v1611_v45 = vrot.slane %v18734_v3, 2  ;;  %v1401_v34 = vpop.f32.mrf.mxu0  ;;  %v17177_v27 = vld [vmem:[%s17680_s8 + $0x798] sm:$0xff]  }
 0x157   : > { %1680 = vst.msk [vmem:[#allocation2 + $0x10] sm:$0xff] %vm1677_vm4, %v1661_v52  ;;  %v1479_v10 = vadd.f32 %v18566_v23, %v1454_v39  ;;  %v1477_v35 = vadd.f32 %v18566_v23, %v1452_v40  ;;  %v23695_v51 = vmax.f32 %v18582_v28, %v23670_v62  ;;  %v18758_v46 = vpop.f32.mrf.mxu1  ;;  %15615 = vmatprep.mubr.msk.bf16.mxu0 %vm407_vm1, %v17175_v18  ;;  %v17178_v28 = vld [vmem:[%s17680_s8 + $0x100] sm:$0xff]  }
 0x158   : > { %15668 = vmatpush3.bf16.msra.mxu0 %v23693_v55  ;;  %15704 = vmatpush3.bf16.msra.mxu1 %v23693_v55  ;;  %v1659_v13 = vmax.f32 %v1585_v25, %v1606_v50  ;;  %v1660_v42 = vmax.f32 %v1586_v31, %v1608_v61  ;;  %v1538_v7 = vsel %vm1529_vm2, %v1535_v19, %v1537_v1  ;;  %v15258_v30 = vpop.f32.mrf.mxu0  ;;  %v23698_v19 = vld [vmem:[#allocation21_spill] sm:$0xff] }
 0x159   : > { %v1457_v49 = vmax.f32 %v23695_v51, %v15257_v11  ;;  %v23696_v37 = vmax.f32 %v18588_v33, %v23671_v5  ;;  %15651 = vmatprep.mubr.msk.bf16.mxu1 %vm407_vm1, %v17176_v15  ;;  %v1588_v62 = vmax.f32 %v18681_v0, %v1538_v7  ;;  %v23697_v11 = vrot.slane %v18681_v0, 2  ;;  %v18775_v31 = vpop.f32.mrf.mxu1  ;;  %15669 = vmatprep.subr.bf16.mxu0 %v23698_v19 }
 0x15a   : > { %v18773_v55 = vmax.f32 %v1479_v10, 0.0  ;;  %v1496_v18 = vmax.f32 %v1477_v35, 0.0  ;;  %15705 = vmatprep.subr.bf16.mxu1 %v23698_v19  ;;  %v1236_v33 = vmax.f32 %v18709_v54, %v18538_v2  ;;  %1678 = vst.msk [vmem:[#allocation2] sm:$0xff] %vm1677_vm4, %v1659_v13  ;;  %1679 = vst.msk [vmem:[#allocation2 + $0x8] sm:$0xff] %vm1677_vm4, %v1660_v42  ;;  %v23699_v15 = vmax.f32 %v18594_v38, %v23672_v6  ;;  %v1404_v25 = vpop.f32.mrf.mxu0  ;;  %v23700_v10 = vld [vmem:[#allocation24_spill] sm:$0xff] }
 0x15b   : > { %v1455_v58 = vmax.f32 %v23696_v37, %v1401_v34  ;;  %v1612_v39 = vsel %vm1603_vm3, %v23697_v11, %v1611_v45  ;;  %v1482_v5 = vadd.f32 %v18566_v23, %v1457_v49  ;;  %v18791_v61 = vpop.f32.mrf.mxu1  ;;  %v17179_v35 = vld [vmem:[%s17680_s8 + $0x7a0] sm:$0xff]   ;;  %v17180_v34 = vld [vmem:[%s17680_s8 + $0x108] sm:$0xff]   ;;  %v23701_v42 = vrot.slane %v18718_v63, 2 }
 0x15c   : > { %v1458_v40 = vmax.f32 %v23699_v15, %v15258_v30  ;;  %15670 = vmatpush3.bf16.msra.mxu0 %v23698_v19  ;;  %v1662_v52 = vmax.f32 %v1588_v62, %v1612_v39  ;;  %v1543_v14 = vrot.slane %v18773_v55, 1  ;;  %v1617_v21 = vrot.slane %v18773_v55, 2  ;;  %15706 = vmatpush3.bf16.msra.mxu1 %v23698_v19  ;;  %v15261_v62 = vpop.f32.mrf.mxu0 }
 0x15d   : > { %v1480_v0 = vadd.f32 %v18566_v23, %v1455_v58  ;;  %v1539_v50 = vrot.slane %v1496_v18, 1  ;;  %15671 = vmatprep.subr.bf16.mxu0 %v23700_v10  ;;  %v1613_v51 = vrot.slane %v1496_v18, 2  ;;  %v18796_v38 = vmax.f32 %v1482_v5, 0.0  ;;  %15707 = vmatprep.subr.bf16.mxu1 %v23700_v10  ;;  %v18814_v11 = vpop.f32.mrf.mxu1 }
 0x15e   : > { %v1483_v49 = vadd.f32 %v18566_v23, %v1458_v40  ;;  %1681 = vst.msk [vmem:[#allocation2 + $0x18] sm:$0xff] %vm1677_vm4, %v1662_v52  ;;  %v1544_v13 = vsel %vm1529_vm2, %v1541_v57, %v1543_v14  ;;  %v1618_v7 = vsel %vm1603_vm3, %v23701_v42, %v1617_v21  ;;  %15616 = vmatmul.mubr.msk.bf16.gmra.mxu0 %vm407_vm1, %v17177_v27  ;;  %v1417_v40 = vpop.f32.mrf.mxu0 }
 0x15f   : > { %v18798_v6 = vmax.f32 %v1480_v0, 0.0  ;;  %v1540_v37 = vsel %vm1529_vm2, %v1537_v1, %v1539_v50  ;;  %v1542_v58 = vsel %vm1529_vm2, %v1539_v50, %v1541_v57  ;;  %v1591_v39 = vmax.f32 %v18718_v63, %v1544_v13  ;;  %15652 = vmatmul.mubr.msk.bf16.gmra.mxu1 %vm407_vm1, %v17178_v28  ;;  %v18827_v52 = vpop.f32.mrf.mxu1  ;;  %15619 = vmatprep.mubr.msk.bf16.mxu0 %vm407_vm1, %v17179_v35  ;;  %v17182_v50 = vld [vmem:[%s17680_s8 + $0x110] sm:$0xff]  }
 0x160   : > { %v1589_v30 = vmax.f32 %v18734_v3, %v1540_v37  ;;  %v1590_v19 = vmax.f32 %v1496_v18, %v1542_v58  ;;  %v1614_v5 = vsel %vm1603_vm3, %v1611_v45, %v1613_v51  ;;  %v23702_v1 = vmov %v23701_v42  ;;  %15672 = vmatpush3.bf16.msra.mxu0 %v23700_v10  ;;  %v17181_v3 = vld [vmem:[%s17680_s8 + $0x7a8] sm:$0xff]  }
 0x161   : > { %v1616_v57 = vsel %vm1603_vm3, %v1613_v51, %v23702_v1  ;;  %v1549_v0 = vrot.slane %v18796_v38, 1  ;;  %v1623_v15 = vrot.slane %v18796_v38, 2  ;;  %v1545_v27 = vrot.slane %v18798_v6, 1  ;;  %15655 = vmatprep.mubr.msk.bf16.mxu1 %vm407_vm1, %v17180_v34  ;;  %15708 = vmatpush3.bf16.msra.mxu1 %v23700_v10  ;;  %v17183_v51 = vld [vmem:[%s17680_s8 + $0x7b0] sm:$0xff]   ;;  %v18848_v34 = vpop.f32.mrf.mxu1  ;;  %v23705_v10 = vld [vmem:[#allocation27_spill] sm:$0xff] }
 0x162   : > { %v1665_v45 = vmax.f32 %v1591_v39, %v1618_v7  ;;  %v1663_v63 = vmax.f32 %v1589_v30, %v1614_v5  ;;  %v1664_v28 = vmax.f32 %v1590_v19, %v1616_v57  ;;  %v1619_v18 = vrot.slane %v18798_v6, 2  ;;  %v15262_v39 = vpop.f32.mrf.mxu0  ;;  %15673 = vmatprep.subr.bf16.mxu0 %v23705_v10  ;;  %15709 = vmatprep.subr.bf16.mxu1 %v23705_v10  ;;  %v17184_v30 = vld [vmem:[%s17680_s8 + $0x118] sm:$0xff]  }
 0x163   : > { %v1546_v13 = vsel %vm1529_vm2, %v1543_v14, %v1545_v27  ;;  %v18840_v42 = vmax.f32 %v1483_v49, 0.0  ;;  %v23703_v35 = vmax.f32 %v18600_v53, %v23673_v12  ;;  %v23704_v37 = vmax.f32 %v18610_v16, %v23674_v26  ;;  %v18870_v1 = vpop.f32.mrf.mxu1 }
 0x164   : > { %1684 = vst.msk [vmem:[#allocation2 + $0x30] sm:$0xff] %vm1677_vm4, %v1665_v45  ;;  %1682 = vst.msk [vmem:[#allocation2 + $0x20] sm:$0xff] %vm1677_vm4, %v1663_v63  ;;  %v1592_v53 = vmax.f32 %v18773_v55, %v1546_v13  ;;  %v1620_v16 = vsel %vm1603_vm3, %v1617_v21, %v1619_v18  ;;  %v23706_v12 = vmax.f32 %v18616_v44, %v23675_v9  ;;  %v1420_v5 = vpop.f32.mrf.mxu0  ;;  %15674 = vmatpush3.bf16.msra.mxu0 %v23705_v10 }
 0x165   : > { %v1456_v7 = vmax.f32 %v23703_v35, %v1404_v25  ;;  %v1461_v58 = vmax.f32 %v23704_v37, %v15261_v62  ;;  %1683 = vst.msk [vmem:[#allocation2 + $0x28] sm:$0xff] %vm1677_vm4, %v1664_v28  ;;  %v23707_v14 = vmax.f32 %v18627_v47, %v23676_v43  ;;  %v1551_v49 = vrot.slane %v18840_v42, 1  ;;  %15710 = vmatpush3.bf16.msra.mxu1 %v23705_v10  ;;  %v18887_v13 = vpop.f32.mrf.mxu1 }
 0x166   : > { %v1459_v26 = vmax.f32 %v23706_v12, %v1417_v40  ;;  %v1625_v62 = vrot.slane %v18840_v42, 2  ;;  %v1666_v21 = vmax.f32 %v1592_v53, %v1620_v16  ;;  %v23708_v47 = vmax.f32 %v18633_v22, %v23682_v56  ;;  %v15265_v28 = vpop.f32.mrf.mxu0  ;;  %15620 = vmatmul.mubr.msk.bf16.gmra.mxu0 %vm407_vm1, %v17181_v3  ;;  %15675 = vmatprep.subr.bf16.mxu0 %v18477_v4 }
 0x167   : > { %v1462_v25 = vmax.f32 %v23707_v14, %v15262_v39  ;;  %v1481_v19 = vadd.f32 %v18566_v23, %v1456_v7  ;;  %v1486_v55 = vadd.f32 %v18566_v23, %v1461_v58  ;;  %v1552_v57 = vsel %vm1529_vm2, %v1549_v0, %v1551_v49  ;;  %15656 = vmatmul.mubr.msk.bf16.gmra.mxu1 %vm407_vm1, %v17182_v50  ;;  %v18902_v53 = vpop.f32.mrf.mxu1 }
 0x168   : > { %v1484_v44 = vadd.f32 %v18566_v23, %v1459_v26  ;;  %v1460_v43 = vmax.f32 %v23708_v47, %v1420_v5  ;;  %v1626_v40 = vsel %vm1603_vm3, %v1623_v15, %v1625_v62  ;;  %1685 = vst.msk [vmem:[#allocation2 + $0x38] sm:$0xff] %vm1677_vm4, %v1666_v21  ;;  %v1595_v22 = vmax.f32 %v18796_v38, %v1552_v57  ;;  %v1433_v10 = vpop.f32.mrf.mxu0  ;;  %v17185_v26 = vld [vmem:[%s17680_s8 + $0x7b8] ss:$0 sps:$4 sm:$0x11]   ;;  %v17188_v38 = vld [vmem:[%s17680_s8 + $0x448] sm:$0xff]  }
 0x169   : > { %v1487_v9 = vadd.f32 %v18566_v23, %v1462_v25  ;;  %v1500_v45 = vmax.f32 %v1481_v19, 0.0  ;;  %v18885_v63 = vmax.f32 %v1486_v55, 0.0  ;;  %15623 = vmatprep.mubr.msk.bf16.mxu0 %vm407_vm1, %v17183_v51  ;;  %15659 = vmatprep.mubr.msk.bf16.mxu1 %vm407_vm1, %v17184_v30  ;;  %v15302_v5 = vpop.f32.mrf.mxu1  ;;  %v17186_v21 = vld [vmem:[%s17680_s8 + $0x120] ss:$0 sps:$4 sm:$0x11]  }
 0x16a   : > { %v18893_v56 = vmax.f32 %v1484_v44, 0.0  ;;  %v1485_v7 = vadd.f32 %v18566_v23, %v1460_v43  ;;  %15676 = vmatpush3.bf16.msra.mxu0 %v18477_v4  ;;  %v1669_v16 = vmax.f32 %v1595_v22, %v1626_v40  ;;  %15711 = vmatprep.subr.bf16.mxu1 %v18477_v4  ;;  %v15266_v55 = vpop.f32.mrf.mxu0  ;;  %v17187_v44 = vld [vmem:[%s17680_s8 + $0x290] sm:$0xff]   ;;  %v18948_v22 = vld [vmem:[%s23510_s1 + $0x38] ss:$0 sps:$4 sm:$0xff]  }
 0x16b   : > { %v18895_v35 = vmax.f32 %v1487_v9, 0.0  ;;  %v1547_v37 = vrot.slane %v1500_v45, 1  ;;  %v1621_v58 = vrot.slane %v1500_v45, 2  ;;  %v1557_v3 = vrot.slane %v18885_v63, 1  ;;  %15677 = vmatprep.subr.bf16.mxu0 %v18512_v29  ;;  %15712 = vmatpush3.bf16.msra.mxu1 %v18477_v4  ;;  %v18938_v40 = vpop.f32.mrf.mxu1 }
 0x16c   : > { %v1631_v39 = vrot.slane %v18885_v63, 2  ;;  %v1553_v50 = vrot.slane %v18893_v56, 1  ;;  %v1627_v51 = vrot.slane %v18893_v56, 2  ;;  %1688 = vst.msk [vmem:[#allocation2 + $0x50] sm:$0xff] %vm1677_vm4, %v1669_v16  ;;  %15713 = vmatprep.subr.bf16.mxu1 %v18512_v29  ;;  %v1504_v43 = vmax.f32 %v1485_v7, 0.0  ;;  %v1436_v57 = vpop.f32.mrf.mxu0  ;;  %23709 = vst [vmem:[#allocation11_spill] sm:$0xff] %v18938_v40 }
 0x16d   : > { %v1559_v12 = vrot.slane %v18895_v35, 1  ;;  %v1548_v30 = vsel %vm1529_vm2, %v1545_v27, %v1547_v37  ;;  %v1550_v14 = vsel %vm1529_vm2, %v1547_v37, %v1549_v0  ;;  %v1622_v25 = vsel %vm1603_vm3, %v1619_v18, %v1621_v58  ;;  %v23719_v40 = vld [vmem:[#allocation9_spill] sm:$0xff] }
 0x16e   : > { %v1624_v19 = vsel %vm1603_vm3, %v1621_v58, %v1623_v15  ;;  %v1593_v27 = vmax.f32 %v18798_v6, %v1548_v30  ;;  %v1594_v9 = vmax.f32 %v1500_v45, %v1550_v14  ;;  %v1554_v0 = vsel %vm1529_vm2, %v1551_v49, %v1553_v50  ;;  %15678 = vmatpush3.bf16.msra.mxu0 %v18512_v29  ;;  %v18957_v30 = vpop.f32.mrf.mxu1 }
 0x16f   : > { %v1628_v47 = vsel %vm1603_vm3, %v1625_v62, %v1627_v51  ;;  %v1596_v15 = vmax.f32 %v18840_v42, %v1554_v0  ;;  %v1560_v18 = vsel %vm1529_vm2, %v1557_v3, %v1559_v12  ;;  %v1633_v4 = vrot.slane %v18895_v35, 2  ;;  %16965 = vmatprep.subr.msk.bf16.mxu0 %vm438_vm0, %v18948_v22  ;;  %15624 = vmatmul.mubr.msk.bf16.gmra.mxu0 %vm407_vm1, %v17185_v26 }
 0x170   : > { %v1667_v6 = vmax.f32 %v1593_v27, %v1622_v25  ;;  %v1668_v49 = vmax.f32 %v1594_v9, %v1624_v19  ;;  %v1599_v62 = vmax.f32 %v18885_v63, %v1560_v18  ;;  %v23710_v45 = vmax.f32 %v18641_v60, %v23683_v59  ;;  %v18955_v63 = vpop.f32.mrf.mxu0  ;;  %15714 = vmatpush3.bf16.msra.mxu1 %v18512_v29 }
 0x171   : > { %v1670_v7 = vmax.f32 %v1596_v15, %v1628_v47  ;;  %v1634_v37 = vsel %vm1603_vm3, %v1631_v39, %v1633_v4  ;;  %v1555_v58 = vrot.slane %v1504_v43, 1  ;;  %v1629_v16 = vrot.slane %v1504_v43, 2  ;;  %15660 = vmatmul.mubr.msk.bf16.gmra.mxu1 %vm407_vm1, %v17186_v21  ;;  %15679 = vmatprep.mubr.msk.bf16.mxu0 %vm407_vm1, %v17187_v44  ;;  %v17190_v44 = vld [vmem:[%s17680_s8 + $0x450] sm:$0xff]  }
 0x172   : > { %v1465_v42 = vmax.f32 %v23710_v45, %v15265_v28  ;;  %1686 = vst.msk [vmem:[#allocation2 + $0x40] sm:$0xff] %vm1677_vm4, %v1667_v6  ;;  %1687 = vst.msk [vmem:[#allocation2 + $0x48] sm:$0xff] %vm1677_vm4, %v1668_v49  ;;  %v1673_v60 = vmax.f32 %v1599_v62, %v1634_v37  ;;  %v23711_v28 = vmax.f32 %v18671_v48, %v23687_v36  ;;  %v18976_v5 = vpop.f32.mrf.mxu0  ;;  %v18978_v36 = vpop.f32.mrf.mxu1  ;;  %15715 = vmatprep.mubr.msk.bf16.mxu1 %vm407_vm1, %v17188_v38  ;;  %v17191_v6 = vld [vmem:[%s17680_s8 + $0x2a0] sm:$0xff]   ;;  %v17192_v49 = vld [vmem:[%s17680_s8 + $0x458] sm:$0xff]  }
 0x173   : > { %v1464_v25 = vmax.f32 %v1236_v33, %v1436_v57  ;;  %1689 = vst.msk [vmem:[#allocation2 + $0x58] sm:$0xff] %vm1677_vm4, %v1670_v7  ;;  %v1556_v29 = vsel %vm1529_vm2, %v1553_v50, %v1555_v58  ;;  %v1558_v26 = vsel %vm1529_vm2, %v1555_v58, %v1557_v3  ;;  %v1630_v19 = vsel %vm1603_vm3, %v1627_v51, %v1629_v16  ;;  %v17189_v3 = vld [vmem:[%s17680_s8 + $0x298] sm:$0xff]  }
 0x174   : > { %v1490_v59 = vadd.f32 %v18566_v23, %v1465_v42  ;;  %v1463_v14 = vmax.f32 %v23711_v28, %v1433_v10  ;;  %v1632_v55 = vsel %vm1603_vm3, %v1629_v16, %v1631_v39  ;;  %1692 = vst.msk [vmem:[#allocation2 + $0x70] sm:$0xff] %vm1677_vm4, %v1673_v60  ;;  %v1597_v2 = vmax.f32 %v18893_v56, %v1556_v29  ;;  %v18989_v10 = vpop.f32.mrf.mxu0  ;;  %v18991_v50 = vpop.f32.mrf.mxu1  ;;  %v19027_v28 = vld [vmem:[%s23510_s1 + $0x30] sm:$0xff]  }
 0x175   : > { %v1598_v54 = vmax.f32 %v1504_v43, %v1558_v26  ;;  %16966 = vmatprep.subr.msk.bf16.mxu1 %vm438_vm0, %v18948_v22  ;;  %v1489_v39 = vadd.f32 %v18566_v23, %v1464_v25  ;;  %v17194_v26 = vld [vmem:[%s17680_s8 + $0x460] sm:$0xff]  }
 0x176   : > { %v1509_v48 = vmax.f32 %v1490_v59, 0.0  ;;  %v1488_v33 = vadd.f32 %v18566_v23, %v1463_v14  ;;  %v1671_v51 = vmax.f32 %v1597_v2, %v1630_v19  ;;  %v18994_v0 = vpop.f32.mrf.mxu0  ;;  %v18996_v47 = vpop.f32.mrf.mxu1  ;;  %v17195_v19 = vld [vmem:[%s17680_s8 + $0x2b0] sm:$0xff]  }
 0x177   : > { %v1672_v21 = vmax.f32 %v1598_v54, %v1632_v55  ;;  %v1508_v9 = vmax.f32 %v1489_v39, 0.0  ;;  %15680 = vmatmul.mubr.msk.bf16.vlgmr.msra.gmra.mxu0 %vm407_vm1, %v17189_v3  ;;  %v19050_v39 = vld [vmem:[%s23510_s1 + $0x28] sm:$0xff]  }
 0x178   : > { %v1565_v56 = vrot.slane %v1509_v48, 1  ;;  %v1507_v27 = vmax.f32 %v1488_v33, 0.0  ;;  %1690 = vst.msk [vmem:[#allocation2 + $0x60] sm:$0xff] %vm1677_vm4, %v1671_v51  ;;  %v19000_v43 = vpop.f32.mrf.mxu0  ;;  %v19002_v57 = vpop.f32.mrf.mxu1  ;;  %v1639_v62 = vrot.slane %v1509_v48, 2  ;;  %15736 = vmatpush3.bf16.msra.mxu0 %v23684_v24  ;;  %15683 = vmatprep.mubr.msk.bf16.mxu0 %vm407_vm1, %v17191_v6  ;;  %v17196_v48 = vld [vmem:[%s17680_s8 + $0x468] sm:$0xff]   ;;  %23712 = vst [vmem:[#allocation12_spill] sm:$0xff] %v19050_v39 }
 0x179   : > { %1691 = vst.msk [vmem:[#allocation2 + $0x68] sm:$0xff] %vm1677_vm4, %v1672_v21  ;;  %v1563_v15 = vrot.slane %v1508_v9, 1  ;;  %v1637_v18 = vrot.slane %v1508_v9, 2  ;;  %15716 = vmatmul.mubr.msk.bf16.vlgmr.msra.gmra.mxu1 %vm407_vm1, %v17190_v44  ;;  %15737 = vmatprep.subr.bf16.mxu0 %v19027_v28  ;;  %v17200_v6 = vld [vmem:[%s17680_s8 + $0x478] sm:$0xff]  }
 0x17a   : > { %v1561_v23 = vrot.slane %v1507_v27, 1  ;;  %v1635_v38 = vrot.slane %v1507_v27, 2  ;;  %v19017_v58 = vpop.f32.mrf.mxu0  ;;  %v19019_v16 = vpop.f32.mrf.mxu1  ;;  %15772 = vmatpush3.bf16.msra.mxu1 %v23684_v24  ;;  %15719 = vmatprep.mubr.msk.bf16.mxu1 %vm407_vm1, %v17192_v49 }
 0x17b   : > { %v1566_v37 = vsel %vm1529_vm2, %v1563_v15, %v1565_v56  ;;  %v1640_v14 = vsel %vm1603_vm3, %v1637_v18, %v1639_v62  ;;  %15773 = vmatprep.subr.bf16.mxu1 %v19027_v28 }
 0x17c   : > { %v1562_v45 = vsel %vm1529_vm2, %v1559_v12, %v1561_v23  ;;  %v1636_v42 = vsel %vm1603_vm3, %v1633_v4, %v1635_v38  ;;  %v1564_v7 = vsel %vm1529_vm2, %v1561_v23, %v1563_v15  ;;  %v1602_v59 = vmax.f32 %v1508_v9, %v1566_v37  ;;  %v19031_v25 = vpop.f32.mrf.mxu0  ;;  %v19033_v29 = vpop.f32.mrf.mxu1  ;;  %15738 = vmatpush3.bf16.msra.mxu0 %v19027_v28  ;;  %v17197_v9 = vld [vmem:[%s17680_s8 + $0x2b8] sm:$0xff]   ;;  %v17198_v23 = vld [vmem:[%s17680_s8 + $0x470] sm:$0xff]  }
 0x17d   : > { %v1600_v60 = vmax.f32 %v18895_v35, %v1562_v45  ;;  %v1601_v12 = vmax.f32 %v1507_v27, %v1564_v7  ;;  %v1638_v4 = vsel %vm1603_vm3, %v1635_v38, %v1637_v18  ;;  %v17193_v35 = vld [vmem:[%s17680_s8 + $0x2a8] sm:$0xff]   ;;  %15739 = vmatprep.subr.bf16.mxu0 %v19050_v39  ;;  %v19075_v27 = vld [vmem:[%s23510_s1 + $0x20] sm:$0xff]   ;;  %v19095_v45 = vld [vmem:[%s23510_s1 + $0x18] sm:$0xff]  }
 0x17e   : > { %v1676_v54 = vmax.f32 %v1602_v59, %v1640_v14  ;;  %v19042_v33 = vpop.f32.mrf.mxu0  ;;  %v19044_v3 = vpop.f32.mrf.mxu1  ;;  %15774 = vmatpush3.bf16.msra.mxu1 %v19027_v28  ;;  %23713 = vst [vmem:[#allocation19_spill] sm:$0xff] %v19075_v27  ;;  %v17199_v18 = vld [vmem:[%s17680_s8 + $0x2c0] sm:$0xff]   ;;  %23714 = vst [vmem:[#allocation20_spill] sm:$0xff] %v19095_v45  ;;  %v17201_v14 = vld [vmem:[%s17680_s8 + $0x2c8] sm:$0xff]  }
 0x17f   : > { %v1674_v55 = vmax.f32 %v1600_v60, %v1636_v42  ;;  %v1675_v2 = vmax.f32 %v1601_v12, %v1638_v4  ;;  %15684 = vmatmul.mubr.msk.bf16.gmra.mxu0 %vm407_vm1, %v17193_v35  ;;  %15775 = vmatprep.subr.bf16.mxu1 %v19050_v39  ;;  %v19117_v12 = vld [vmem:[%s23510_s1 + $0x10] sm:$0xff]   ;;  %v17202_v35 = vld [vmem:[%s17680_s8 + $0x480] sm:$0xff]  }
 0x180   : > { %1695 = vst.msk [vmem:[#allocation2 + $0x88] sm:$0xff] %vm1677_vm4, %v1676_v54  ;;  %v19057_v51 = vpop.f32.mrf.mxu0  ;;  %v19059_v21 = vpop.f32.mrf.mxu1  ;;  %15740 = vmatpush3.bf16.msra.mxu0 %v19050_v39  ;;  %15687 = vmatprep.mubr.msk.bf16.mxu0 %vm407_vm1, %v17195_v19  ;;  %23715 = vst [vmem:[#allocation22_spill] sm:$0xff] %v19117_v12  ;;  %v17204_v54 = vld [vmem:[%s17680_s8 + $0x488] sm:$0xff]  }
 0x181   : > { %1693 = vst.msk [vmem:[#allocation2 + $0x78] sm:$0xff] %vm1677_vm4, %v1674_v55  ;;  %1694 = vst.msk [vmem:[#allocation2 + $0x80] sm:$0xff] %vm1677_vm4, %v1675_v2  ;;  %15720 = vmatmul.mubr.msk.bf16.gmra.mxu1 %vm407_vm1, %v17194_v26  ;;  %15741 = vmatprep.subr.bf16.mxu0 %v19075_v27  ;;  %v17203_v26 = vld [vmem:[%s17680_s8 + $0x2d0] sm:$0xff]   ;;  %v19136_v2 = vld [vmem:[%s23510_s1 + $0x8] sm:$0xff]  }
 0x182   : > { %v19065_v56 = vpop.f32.mrf.mxu0  ;;  %v19067_v44 = vpop.f32.mrf.mxu1  ;;  %15723 = vmatprep.mubr.msk.bf16.mxu1 %vm407_vm1, %v17196_v48  ;;  %15776 = vmatpush3.bf16.msra.mxu1 %v19050_v39  ;;  %23716 = vst [vmem:[#allocation23_spill] sm:$0xff] %v19136_v2  ;;  %v17207_v39 = vld [vmem:[%s17680_s8 + $0x600] sm:$0xff]  }
 0x183   : > { %15777 = vmatprep.subr.bf16.mxu1 %v19075_v27 }
 0x184   : > { %v19080_v38 = vpop.f32.mrf.mxu0  ;;  %v19082_v15 = vpop.f32.mrf.mxu1  ;;  %15742 = vmatpush3.bf16.msra.mxu0 %v19075_v27 }
 0x185   : > { %15743 = vmatprep.subr.bf16.mxu0 %v19095_v45 }
 0x186   : > { %v19088_v49 = vpop.f32.mrf.mxu0  ;;  %v19090_v62 = vpop.f32.mrf.mxu1  ;;  %15778 = vmatpush3.bf16.msra.mxu1 %v19075_v27  ;;  %v17206_v27 = vld [vmem:[%s17680_s8 + $0x490] ss:$0 sps:$4 sm:$0x11]  }
 0x187   : > { %15688 = vmatmul.mubr.msk.bf16.gmra.mxu0 %vm407_vm1, %v17197_v9  ;;  %15779 = vmatprep.subr.bf16.mxu1 %v19095_v45 }
 0x188   : > { %v19099_v42 = vpop.f32.mrf.mxu0  ;;  %v19101_v7 = vpop.f32.mrf.mxu1  ;;  %15744 = vmatpush3.bf16.msra.mxu0 %v19095_v45  ;;  %15691 = vmatprep.mubr.msk.bf16.mxu0 %vm407_vm1, %v17199_v18 }
 0x189   : > { %15724 = vmatmul.mubr.msk.bf16.gmra.mxu1 %vm407_vm1, %v17198_v23  ;;  %15745 = vmatprep.subr.bf16.mxu0 %v19117_v12 }
 0x18a   : > { %v19107_v37 = vpop.f32.mrf.mxu0  ;;  %v19109_v60 = vpop.f32.mrf.mxu1  ;;  %15727 = vmatprep.mubr.msk.bf16.mxu1 %vm407_vm1, %v17200_v6  ;;  %15780 = vmatpush3.bf16.msra.mxu1 %v19095_v45  ;;  %v2116_v6 = vmax.f32 %v18568_v41, %v18955_v63  ;;  %v17205_v45 = vld [vmem:[%s17680_s8 + $0x2d8] ss:$0 sps:$4 sm:$0x11]   ;;  %v2115_v41 = vmax.f32 %v18655_v20, %v18994_v0  ;;  %v23718_v63 = vld [vmem:[#allocation29_spill] sm:$0xff]  ;;  %v23721_v0 = vld [vmem:[#allocation31_spill] sm:$0xff] }
 0x18b   : > { %15781 = vmatprep.subr.bf16.mxu1 %v19117_v12 }
 0x18c   : > { %v19120_v59 = vpop.f32.mrf.mxu0  ;;  %v19122_v4 = vpop.f32.mrf.mxu1  ;;  %15746 = vmatpush3.bf16.msra.mxu0 %v19117_v12 }
 0x18d   : > { %15747 = vmatprep.subr.bf16.mxu0 %v19136_v2 }
 0x18e   : > { %v19129_v19 = vpop.f32.mrf.mxu0  ;;  %v19131_v55 = vpop.f32.mrf.mxu1  ;;  %15782 = vmatpush3.bf16.msra.mxu1 %v19117_v12 }
 0x18f   : > { %15692 = vmatmul.mubr.msk.bf16.gmra.mxu0 %vm407_vm1, %v17201_v14  ;;  %15783 = vmatprep.subr.bf16.mxu1 %v19136_v2  ;;  %v19161_v14 = vld [vmem:[%s23510_s1] sm:$0xff]  }
 0x190   : > { %v19141_v48 = vpop.f32.mrf.mxu0  ;;  %v19143_v9 = vpop.f32.mrf.mxu1  ;;  %15695 = vmatprep.mubr.msk.bf16.mxu0 %vm407_vm1, %v17203_v26  ;;  %15748 = vmatpush3.bf16.msra.mxu0 %v19136_v2  ;;  %v2117_v26 = vmax.f32 %v18635_v17, %v18989_v10  ;;  %v17208_v17 = vld [vmem:[%s17680_s8 + $0x7b8] sm:$0xff]   ;;  %v2344_v10 = vmax.f32 %v2116_v6, %v18957_v30  ;;  %v2343_v30 = vmax.f32 %v2115_v41, %v18996_v47 }
 0x191   : > { %15728 = vmatmul.mubr.msk.bf16.gmra.mxu1 %vm407_vm1, %v17202_v35  ;;  %15749 = vmatprep.subr.bf16.mxu0 %v19161_v14  ;;  %v2114_v35 = vmax.f32 %v18602_v32, %v18976_v5  ;;  %v2125_v47 = vmax.f32 %v18775_v31, %v19080_v38  ;;  %v2126_v31 = vmax.f32 %v18827_v52, %v19107_v37 }
 0x192   : > { %v19149_v23 = vpop.f32.mrf.mxu0  ;;  %v19151_v18 = vpop.f32.mrf.mxu1  ;;  %15731 = vmatprep.mubr.msk.bf16.mxu1 %vm407_vm1, %v17204_v54  ;;  %15784 = vmatpush3.bf16.msra.mxu1 %v19136_v2  ;;  %v2120_v2 = vmax.f32 %v23718_v63, %v19000_v43  ;;  %v2119_v43 = vmax.f32 %v23721_v0, %v19042_v33 }
 0x193   : > { %23717 = vst [vmem:[#allocation25_spill] sm:$0xff] %v19151_v18  ;;  %15785 = vmatprep.subr.bf16.mxu1 %v19161_v14  ;;  %v2118_v18 = vmax.f32 %v23719_v40, %v19017_v58  ;;  %v2342_v40 = vmax.f32 %v2114_v35, %v18978_v36  ;;  %v2345_v58 = vmax.f32 %v2117_v26, %v18991_v50 }
 0x194   : > { %v15338_v54 = vpop.f32.mrf.mxu0  ;;  %v15374_v12 = vpop.f32.mrf.mxu1  ;;  %15750 = vmatpush3.bf16.msra.mxu0 %v19161_v14  ;;  %v2124_v50 = vmax.f32 %v18743_v8, %v19057_v51  ;;  %v2123_v51 = vmax.f32 %v18791_v61, %v19088_v49  ;;  %v19233_v61 = vld [vmem:[%s23511_s2] ss:$0 sm:$0xff]  ;;  %v2130_v6 = vmax.f32 %v18902_v53, %v19149_v23 }
 0x195   : > { %v23720_v12 = vld [vmem:[#allocation10_spill] sm:$0xff]  ;;  %16967 = vmatprep.subr.msk.bf16.mxu0 %vm438_vm0, %v18948_v22  ;;  %v19204_v36 = vmax.f32 %v2118_v18, %v19019_v16  ;;  %v19217_v16 = vmax.f32 %v2119_v43, %v19044_v3  ;;  %v2127_v3 = vmax.f32 %v18870_v1, %v19129_v19  ;;  %v19244_v1 = vmax.f32 %v2125_v47, %v19082_v15 }
 0x196   : > { %v19178_v32 = vpop.f32.mrf.mxu0  ;;  %v19180_v5 = vpop.f32.mrf.mxu1  ;;  %v2121_v20 = vmax.f32 %v23720_v12, %v19031_v25  ;;  %15786 = vmatpush3.bf16.msra.mxu1 %v19161_v14  ;;  %v19199_v25 = vmax.f32 %v2120_v2, %v19002_v57  ;;  %v17209_v2 = vld [vmem:[%s17680_s8 + $0x608] sm:$0xff]  }
 0x197   : > { %15696 = vmatmul.mubr.msk.bf16.gmra.mxu0 %vm407_vm1, %v17205_v45  ;;  %16968 = vmatprep.subr.msk.bf16.mxu1 %vm438_vm0, %v18948_v22  ;;  %v2122_v22 = vmax.f32 %v18758_v46, %v19065_v56  ;;  %v2128_v46 = vmax.f32 %v18814_v11, %v19099_v42  ;;  %v2129_v56 = vmax.f32 %v18848_v34, %v19120_v59  ;;  %v17210_v42 = vld [vmem:[%s17680_s8 + $0x7c0] sm:$0xff]  }
 0x198   : > { %v15393_v54 = vpop.f32.mrf.mxu0  ;;  %v15429_v63 = vpop.f32.mrf.mxu1  ;;  %15751 = vmatprep.mubr.msk.bf16.mxu0 %vm407_vm1, %v17207_v39  ;;  %v19238_v34 = vmax.f32 %v2124_v50, %v19059_v21  ;;  %v2132_v59 = vmax.f32 %v18887_v13, %v19141_v48  ;;  %v17211_v21 = vld [vmem:[%s17680_s8 + $0x610] sm:$0xff]   ;;  %v19269_v23 = vmax.f32 %v2127_v3, %v19131_v55  ;;  %v23724_v3 = vld [vmem:[#allocation12_spill] sm:$0xff] }
 0x199   : > { %v2572_v33 = vmax.f32 %v2344_v10, %v15393_v54  ;;  %15732 = vmatmul.mubr.msk.bf16.gmra.mxu1 %vm407_vm1, %v17206_v27  ;;  %v19214_v27 = vmax.f32 %v2121_v20, %v19033_v29  ;;  %v19241_v37 = vmax.f32 %v2122_v22, %v19067_v44  ;;  %v19254_v44 = vmax.f32 %v2123_v51, %v19090_v62  ;;  %v17214_v51 = vld [vmem:[%s17680_s8 + $0x7d0] sm:$0xff]  }
 0x19a   : > { %v2492_v57 = vpop.f32.mrf.mxu0  ;;  %v2720_v45 = vpop.f32.mrf.mxu1  ;;  %15787 = vmatprep.mubr.msk.bf16.mxu1 %vm407_vm1, %v17208_v17  ;;  %v17212_v17 = vld [vmem:[%s17680_s8 + $0x7c8] sm:$0xff]   ;;  %v19257_v15 = vmax.f32 %v2128_v46, %v19101_v7  ;;  %v19260_v10 = vmax.f32 %v2126_v31, %v19109_v60  ;;  %v19266_v53 = vmax.f32 %v2129_v56, %v19122_v4  ;;  %v19275_v7 = vmax.f32 %v2132_v59, %v19143_v9  ;;  %v17216_v59 = vld [vmem:[%s17680_s8 + $0x7d8] sm:$0xff]  }
 0x19b   : > { %v2800_v39 = vmax.f32 %v2572_v33, %v15429_v63  ;;  %v2570_v8 = vmax.f32 %v2342_v40, %v2492_v57  ;;  %v23722_v55 = vld [vmem:[#allocation25_spill] sm:$0xff]  ;;  %v17213_v57 = vld [vmem:[%s17680_s8 + $0x618] sm:$0xff]  }
 0x19c   : > { %v15394_v29 = vpop.f32.mrf.mxu0  ;;  %v15430_v38 = vpop.f32.mrf.mxu1  ;;  %v19283_v40 = vmax.f32 %v2130_v6, %v23722_v55 }
 0x19d   : > { %v2819_v11 = vadd.f32 %v19233_v61, %v2800_v39  ;;  %v2798_v49 = vmax.f32 %v2570_v8, %v2720_v45  ;;  %v2573_v52 = vmax.f32 %v2345_v58, %v15394_v29  ;;  %v23723_v58 = vld [vmem:[#allocation11_spill] sm:$0xff] }
 0x19e   : > { %v2495_v19 = vpop.f32.mrf.mxu0  ;;  %v2723_v18 = vpop.f32.mrf.mxu1  ;;  %v2131_v54 = vmax.f32 %v23723_v58, %v19178_v32 }
 0x19f   : > { %v2817_v35 = vadd.f32 %v19233_v61, %v2798_v49  ;;  %v2801_v26 = vmax.f32 %v2573_v52, %v15430_v38  ;;  %v2571_v41 = vmax.f32 %v2343_v30, %v2495_v19  ;;  %v19262_v13 = vmax.f32 %v2819_v11, 0.0  ;;  %15752 = vmatmul.mubr.msk.bf16.vlgmr.msra.gmra.mxu0 %vm407_vm1, %v17209_v2 }
 0x1a0   : > { %v15397_v48 = vpop.f32.mrf.mxu0  ;;  %v15433_v12 = vpop.f32.mrf.mxu1  ;;  %15808 = vmatpush3.bf16.msra.mxu0 %v23684_v24  ;;  %15755 = vmatprep.mubr.msk.bf16.mxu0 %vm407_vm1, %v17211_v21 }
 0x1a1   : > { %v2820_v62 = vadd.f32 %v19233_v61, %v2801_v26  ;;  %15788 = vmatmul.mubr.msk.bf16.vlgmr.msra.gmra.mxu1 %vm407_vm1, %v17210_v42  ;;  %v19277_v60 = vmax.f32 %v2817_v35, 0.0  ;;  %v2799_v20 = vmax.f32 %v2571_v41, %v2723_v18  ;;  %v2576_v0 = vmax.f32 %v19199_v25, %v15397_v48  ;;  %15809 = vmatprep.subr.bf16.mxu0 %v19027_v28  ;;  %v17215_v42 = vld [vmem:[%s17680_s8 + $0x620] sm:$0xff]  }
 0x1a2   : > { %v2508_v43 = vpop.f32.mrf.mxu0  ;;  %v2736_v4 = vpop.f32.mrf.mxu1  ;;  %15844 = vmatpush3.bf16.msra.mxu1 %v23684_v24  ;;  %15791 = vmatprep.mubr.msk.bf16.mxu1 %vm407_vm1, %v17212_v17  ;;  %v2877_v30 = vrot.slane %v19262_v13, 1  ;;  %v2950_v25 = vrot.slane %v19262_v13, 2 }
 0x1a3   : > { %v19287_v9 = vmax.f32 %v2820_v62, 0.0  ;;  %v2574_v63 = vmax.f32 %v19204_v36, %v2508_v43  ;;  %v2818_v33 = vadd.f32 %v19233_v61, %v2799_v20  ;;  %v2804_v50 = vmax.f32 %v2576_v0, %v15433_v12  ;;  %15845 = vmatprep.subr.bf16.mxu1 %v19027_v28 }
 0x1a4   : > { %v15398_v22 = vpop.f32.mrf.mxu0  ;;  %v15434_v47 = vpop.f32.mrf.mxu1  ;;  %15810 = vmatpush3.bf16.msra.mxu0 %v19027_v28  ;;  %v2874_v46 = vrot.slane %v19277_v60, 1  ;;  %v2947_v31 = vrot.slane %v19277_v60, 2 }
 0x1a5   : > { %v2879_v45 = vrot.slane %v19287_v9, 1  ;;  %v2952_v36 = vrot.slane %v19287_v9, 2  ;;  %v2802_v39 = vmax.f32 %v2574_v63, %v2736_v4  ;;  %v2577_v8 = vmax.f32 %v19214_v27, %v15398_v22  ;;  %15811 = vmatprep.subr.bf16.mxu0 %v23724_v3 }
 0x1a6   : > { %v2837_v56 = vmax.f32 %v2818_v33, 0.0  ;;  %v2823_v29 = vadd.f32 %v19233_v61, %v2804_v50  ;;  %v2511_v38 = vpop.f32.mrf.mxu0  ;;  %v2739_v2 = vpop.f32.mrf.mxu1  ;;  %15846 = vmatpush3.bf16.msra.mxu1 %v19027_v28 }
 0x1a7   : > { %v2880_v27 = vsel %vm1529_vm2, %v2877_v30, %v2879_v45  ;;  %v2953_v11 = vsel %vm1603_vm3, %v2950_v25, %v2952_v36  ;;  %v2821_v49 = vadd.f32 %v19233_v61, %v2802_v39  ;;  %v2805_v52 = vmax.f32 %v2577_v8, %v15434_v47  ;;  %15847 = vmatprep.subr.bf16.mxu1 %v23724_v3 }
 0x1a8   : > { %v2931_v19 = vmax.f32 %v19262_v13, %v2880_v27  ;;  %v2875_v18 = vrot.slane %v2837_v56, 1  ;;  %v2948_v6 = vrot.slane %v2837_v56, 2  ;;  %v19318_v35 = vmax.f32 %v2823_v29, 0.0  ;;  %v15401_v26 = vpop.f32.mrf.mxu0  ;;  %v15437_v41 = vpop.f32.mrf.mxu1  ;;  %15756 = vmatmul.mubr.msk.bf16.gmra.mxu0 %vm407_vm1, %v17213_v57  ;;  %v17217_v57 = vld [vmem:[%s17680_s8 + $0x628] sm:$0xff]  }
 0x1a9   : > { %v19321_v21 = vmax.f32 %v2821_v49, 0.0  ;;  %v2824_v17 = vadd.f32 %v19233_v61, %v2805_v52  ;;  %v2575_v48 = vmax.f32 %v19217_v16, %v2511_v38  ;;  %v2580_v12 = vmax.f32 %v19238_v34, %v15401_v26  ;;  %15792 = vmatmul.mubr.msk.bf16.gmra.mxu1 %vm407_vm1, %v17214_v51  ;;  %15812 = vmatpush3.bf16.msra.mxu0 %v23724_v3  ;;  %v23726_v49 = vld [vmem:[#allocation20_spill] sm:$0xff]  ;;  %v17219_v52 = vld [vmem:[%s17680_s8 + $0x630] sm:$0xff]  }
 0x1aa   : > { %v3004_v13 = vmax.f32 %v2931_v19, %v2953_v11  ;;  %v2876_v62 = vsel %vm1529_vm2, %v2874_v46, %v2875_v18  ;;  %v2878_v20 = vsel %vm1529_vm2, %v2875_v18, %v2877_v30  ;;  %v2949_v0 = vsel %vm1603_vm3, %v2947_v31, %v2948_v6  ;;  %v2524_v43 = vpop.f32.mrf.mxu0  ;;  %v2752_v4 = vpop.f32.mrf.mxu1  ;;  %15848 = vmatpush3.bf16.msra.mxu1 %v23724_v3  ;;  %v17218_v31 = vld [vmem:[%s17680_s8 + $0x7e0] sm:$0xff]   ;;  %v17220_v19 = vld [vmem:[%s17680_s8 + $0x7e8] sm:$0xff]  }
 0x1ab   : > { %v2929_v16 = vmax.f32 %v19277_v60, %v2876_v62  ;;  %v2930_v55 = vmax.f32 %v2837_v56, %v2878_v20  ;;  %v2951_v34 = vsel %vm1603_vm3, %v2948_v6, %v2950_v25  ;;  %v2885_v63 = vrot.slane %v19318_v35, 1  ;;  %15759 = vmatprep.mubr.msk.bf16.mxu0 %vm407_vm1, %v17215_v42  ;;  %15795 = vmatprep.mubr.msk.bf16.mxu1 %vm407_vm1, %v17216_v59  ;;  %v23725_v25 = vld [vmem:[#allocation19_spill] sm:$0xff] }
 0x1ac   : > { %3022 = vst.msk [vmem:[#allocation2 + $0xa0] sm:$0xff] %vm1677_vm4, %v3004_v13  ;;  %v2958_v30 = vrot.slane %v19318_v35, 2  ;;  %v2881_v33 = vrot.slane %v19321_v21, 1  ;;  %v2954_v50 = vrot.slane %v19321_v21, 2  ;;  %v19341_v22 = vmax.f32 %v2824_v17, 0.0  ;;  %v15402_v60 = vpop.f32.mrf.mxu0  ;;  %v15438_v47 = vpop.f32.mrf.mxu1  ;;  %15813 = vmatprep.subr.bf16.mxu0 %v23725_v25  ;;  %15849 = vmatprep.subr.bf16.mxu1 %v23725_v25 }
 0x1ad   : > { %v3002_v39 = vmax.f32 %v2929_v16, %v2949_v0  ;;  %v3003_v8 = vmax.f32 %v2930_v55, %v2951_v34  ;;  %v2803_v51 = vmax.f32 %v2575_v48, %v2739_v2  ;;  %v2808_v46 = vmax.f32 %v2580_v12, %v15437_v41  ;;  %15814 = vmatpush3.bf16.msra.mxu0 %v23725_v25 }
 0x1ae   : > { %v2882_v56 = vsel %vm1529_vm2, %v2879_v45, %v2881_v33  ;;  %v2955_v29 = vsel %vm1603_vm3, %v2952_v36, %v2954_v50  ;;  %v2887_v38 = vrot.slane %v19341_v22, 1  ;;  %v2960_v2 = vrot.slane %v19341_v22, 2  ;;  %v2527_v27 = vpop.f32.mrf.mxu0  ;;  %v2755_v11 = vpop.f32.mrf.mxu1  ;;  %15850 = vmatpush3.bf16.msra.mxu1 %v23725_v25  ;;  %15815 = vmatprep.subr.bf16.mxu0 %v23726_v49 }
 0x1af   : > { %3020 = vst.msk [vmem:[#allocation2 + $0x90] sm:$0xff] %vm1677_vm4, %v3002_v39  ;;  %3021 = vst.msk [vmem:[#allocation2 + $0x98] sm:$0xff] %vm1677_vm4, %v3003_v8  ;;  %v2932_v45 = vmax.f32 %v19287_v9, %v2882_v56  ;;  %v2822_v42 = vadd.f32 %v19233_v61, %v2803_v51  ;;  %v2827_v36 = vadd.f32 %v19233_v61, %v2808_v46  ;;  %15851 = vmatprep.subr.bf16.mxu1 %v23726_v49  ;;  %v17221_v51 = vld [vmem:[%s17680_s8 + $0x638] sm:$0xff]  }
 0x1b0   : > { %v2578_v59 = vmax.f32 %v19241_v37, %v2524_v43  ;;  %v2888_v18 = vsel %vm1529_vm2, %v2885_v63, %v2887_v38  ;;  %v2961_v9 = vsel %vm1603_vm3, %v2958_v30, %v2960_v2  ;;  %v2581_v6 = vmax.f32 %v19244_v1, %v15402_v60  ;;  %v15405_v37 = vpop.f32.mrf.mxu0  ;;  %v15441_v41 = vpop.f32.mrf.mxu1  ;;  %15760 = vmatmul.mubr.msk.bf16.gmra.mxu0 %vm407_vm1, %v17217_v57  ;;  %v23727_v46 = vld [vmem:[#allocation22_spill] sm:$0xff] }
 0x1b1   : > { %v2579_v26 = vmax.f32 %v19254_v44, %v2527_v27  ;;  %v3005_v17 = vmax.f32 %v2932_v45, %v2955_v29  ;;  %v2935_v48 = vmax.f32 %v19318_v35, %v2888_v18  ;;  %v2841_v12 = vmax.f32 %v2822_v42, 0.0  ;;  %15796 = vmatmul.mubr.msk.bf16.gmra.mxu1 %vm407_vm1, %v17218_v31  ;;  %15816 = vmatpush3.bf16.msra.mxu0 %v23726_v49 }
 0x1b2   : > { %v19385_v13 = vmax.f32 %v2827_v36, 0.0  ;;  %v2806_v62 = vmax.f32 %v2578_v59, %v2752_v4  ;;  %v2809_v20 = vmax.f32 %v2581_v6, %v15438_v47  ;;  %v2584_v1 = vmax.f32 %v19257_v15, %v15405_v37  ;;  %v2540_v44 = vpop.f32.mrf.mxu0  ;;  %v2768_v43 = vpop.f32.mrf.mxu1  ;;  %15763 = vmatprep.mubr.msk.bf16.mxu0 %vm407_vm1, %v17219_v52  ;;  %15799 = vmatprep.mubr.msk.bf16.mxu1 %vm407_vm1, %v17220_v19  ;;  %v17223_v52 = vld [vmem:[%s17680_s8 + $0x640] sm:$0xff]  }
 0x1b3   : > { %v2807_v0 = vmax.f32 %v2579_v26, %v2755_v11  ;;  %3023 = vst.msk [vmem:[#allocation2 + $0xa8] sm:$0xff] %vm1677_vm4, %v3005_v17  ;;  %v3008_v16 = vmax.f32 %v2935_v48, %v2961_v9  ;;  %v2883_v55 = vrot.slane %v2841_v12, 1  ;;  %v2956_v34 = vrot.slane %v2841_v12, 2  ;;  %15852 = vmatpush3.bf16.msra.mxu1 %v23726_v49  ;;  %15817 = vmatprep.subr.bf16.mxu0 %v23727_v46  ;;  %v17222_v11 = vld [vmem:[%s17680_s8 + $0x7f0] sm:$0xff]   ;;  %v23728_v19 = vld [vmem:[#allocation23_spill] sm:$0xff] }
 0x1b4   : > { %v2893_v60 = vrot.slane %v19385_v13, 1  ;;  %v2966_v4 = vrot.slane %v19385_v13, 2  ;;  %v2825_v15 = vadd.f32 %v19233_v61, %v2806_v62  ;;  %v2828_v47 = vadd.f32 %v19233_v61, %v2809_v20  ;;  %v19399_v39 = vpop.f32.mrf.mxu0  ;;  %v19401_v8 = vpop.f32.mrf.mxu1  ;;  %15853 = vmatprep.subr.bf16.mxu1 %v23727_v46 }
 0x1b5   : > { %v2826_v57 = vadd.f32 %v19233_v61, %v2807_v0  ;;  %3026 = vst.msk [vmem:[#allocation2 + $0xc0] sm:$0xff] %vm1677_vm4, %v3008_v16  ;;  %v2884_v31 = vsel %vm1529_vm2, %v2881_v33, %v2883_v55  ;;  %v2886_v56 = vsel %vm1529_vm2, %v2883_v55, %v2885_v63  ;;  %v2957_v29 = vsel %vm1603_vm3, %v2954_v50, %v2956_v34  ;;  %v17224_v50 = vld [vmem:[%s17680_s8 + $0x7f8] sm:$0xff]  }
 0x1b6   : > { %v2959_v27 = vsel %vm1603_vm3, %v2956_v34, %v2958_v30  ;;  %15818 = vmatpush3.bf16.msra.mxu0 %v23727_v46  ;;  %v2933_v45 = vmax.f32 %v19321_v21, %v2884_v31  ;;  %v2934_v42 = vmax.f32 %v2841_v12, %v2886_v56  ;;  %v2844_v33 = vmax.f32 %v2825_v15, 0.0  ;;  %v19425_v59 = vpop.f32.mrf.mxu0  ;;  %v19427_v63 = vpop.f32.mrf.mxu1 }
 0x1b7   : > { %v19423_v36 = vmax.f32 %v2828_v47, 0.0  ;;  %15819 = vmatprep.subr.bf16.mxu0 %v23728_v19  ;;  %v2845_v35 = vmax.f32 %v2826_v57, 0.0  ;;  %v2812_v18 = vmax.f32 %v2584_v1, %v15441_v41  ;;  %v2582_v30 = vmax.f32 %v19260_v10, %v2540_v44  ;;  %15854 = vmatpush3.bf16.msra.mxu1 %v23727_v46 }
 0x1b8   : > { %v2585_v9 = vmax.f32 %v19266_v53, %v19399_v39  ;;  %v3006_v21 = vmax.f32 %v2933_v45, %v2957_v29  ;;  %v3007_v6 = vmax.f32 %v2934_v42, %v2959_v27  ;;  %v2889_v26 = vrot.slane %v2844_v33, 1  ;;  %v19435_v17 = vpop.f32.mrf.mxu0  ;;  %v19437_v48 = vpop.f32.mrf.mxu1  ;;  %15764 = vmatmul.mubr.msk.bf16.gmra.mxu0 %vm407_vm1, %v17221_v51  ;;  %15855 = vmatprep.subr.bf16.mxu1 %v23728_v19  ;;  %v17225_v51 = vld [vmem:[%s17680_s8 + $0x648] ss:$0 sps:$4 sm:$0x11]  }
 0x1b9   : > { %v2962_v37 = vrot.slane %v2844_v33, 2  ;;  %v2895_v41 = vrot.slane %v19423_v36, 1  ;;  %v2968_v10 = vrot.slane %v19423_v36, 2  ;;  %v2891_v12 = vrot.slane %v2845_v35, 1  ;;  %15800 = vmatmul.mubr.msk.bf16.gmra.mxu1 %vm407_vm1, %v17222_v11  ;;  %15767 = vmatprep.mubr.msk.bf16.mxu0 %vm407_vm1, %v17223_v52 }
 0x1ba   : > { %v2964_v53 = vrot.slane %v2845_v35, 2  ;;  %3024 = vst.msk [vmem:[#allocation2 + $0xb0] sm:$0xff] %vm1677_vm4, %v3006_v21  ;;  %3025 = vst.msk [vmem:[#allocation2 + $0xb8] sm:$0xff] %vm1677_vm4, %v3007_v6  ;;  %v2890_v62 = vsel %vm1529_vm2, %v2887_v38, %v2889_v26  ;;  %v2831_v0 = vadd.f32 %v19233_v61, %v2812_v18  ;;  %v2810_v1 = vmax.f32 %v2582_v30, %v2768_v43  ;;  %v19454_v44 = vpop.f32.mrf.mxu0  ;;  %v19456_v16 = vpop.f32.mrf.mxu1  ;;  %v17226_v11 = vld [vmem:[%s17680_s8 + $0x800] ss:$0 sps:$4 sm:$0x11]  }
 0x1bb   : > { %v2963_v20 = vsel %vm1603_vm3, %v2960_v2, %v2962_v37  ;;  %15803 = vmatprep.mubr.msk.bf16.mxu1 %vm407_vm1, %v17224_v50  ;;  %v2936_v55 = vmax.f32 %v19341_v22, %v2890_v62  ;;  %v2896_v38 = vsel %vm1529_vm2, %v2893_v60, %v2895_v41  ;;  %v2969_v2 = vsel %vm1603_vm3, %v2966_v4, %v2968_v10  ;;  %v17228_v18 = vld [vmem:[%s17680_s8 + $0x2d8] sm:$0xff]  }
 0x1bc   : > { %v2892_v43 = vsel %vm1529_vm2, %v2889_v26, %v2891_v12  ;;  %15820 = vmatpush3.bf16.msra.mxu0 %v23728_v19  ;;  %v2939_v22 = vmax.f32 %v19385_v13, %v2896_v38  ;;  %v2894_v34 = vsel %vm1529_vm2, %v2891_v12, %v2893_v60  ;;  %v2965_v47 = vsel %vm1603_vm3, %v2962_v37, %v2964_v53  ;;  %v15410_v57 = vpop.f32.mrf.mxu0  ;;  %v15446_v39 = vpop.f32.mrf.mxu1  ;;  %v17227_v60 = vld [vmem:[%s17680_s8 + $0x120] sm:$0xff]  }
 0x1bd   : > { %v2937_v15 = vmax.f32 %v2844_v33, %v2892_v43  ;;  %15856 = vmatpush3.bf16.msra.mxu1 %v23728_v19  ;;  %v3009_v31 = vmax.f32 %v2936_v55, %v2963_v20  ;;  %v2938_v56 = vmax.f32 %v2845_v35, %v2894_v34  ;;  %v2967_v29 = vsel %vm1603_vm3, %v2964_v53, %v2966_v4  ;;  %v19535_v53 = vld [vmem:[%s23510_s1 + $0x38] ss:$0 sps:$4 sm:$0xff]   ;;  %v17229_v43 = vld [vmem:[%s17680_s8 + $0x128] sm:$0xff]  }
 0x1be   : > { %v19482_v27 = vmax.f32 %v2831_v0, 0.0  ;;  %15821 = vmatprep.subr.bf16.mxu0 %v19161_v14  ;;  %15857 = vmatprep.subr.bf16.mxu1 %v19161_v14  ;;  %v3012_v52 = vmax.f32 %v2939_v22, %v2969_v2  ;;  %v2829_v42 = vadd.f32 %v19233_v61, %v2810_v1  ;;  %v2813_v33 = vmax.f32 %v2585_v9, %v19401_v8  ;;  %v2559_v50 = vpop.f32.mrf.mxu0  ;;  %v2787_v35 = vpop.f32.mrf.mxu1 }
 0x1bf   : > { %v3010_v45 = vmax.f32 %v2937_v15, %v2965_v47  ;;  %v2359_v13 = vmax.f32 %v2131_v54, %v19180_v5  ;;  %3027 = vst.msk [vmem:[#allocation2 + $0xc8] sm:$0xff] %vm1677_vm4, %v3009_v31  ;;  %v3011_v4 = vmax.f32 %v2938_v56, %v2967_v29  ;;  %v2583_v21 = vmax.f32 %v19269_v23, %v19425_v59  ;;  %v17230_v47 = vld [vmem:[%s17680_s8 + $0x2e0] sm:$0xff]  }
 0x1c0   : > { %v2901_v30 = vrot.slane %v19482_v27, 1  ;;  %15822 = vmatpush3.bf16.msra.mxu0 %v19161_v14  ;;  %3030 = vst.msk [vmem:[#allocation2 + $0xe0] sm:$0xff] %vm1677_vm4, %v3012_v52  ;;  %v19502_v8 = vmax.f32 %v2829_v42, 0.0  ;;  %v2832_v9 = vadd.f32 %v19233_v61, %v2813_v33  ;;  %v2588_v32 = vmax.f32 %v19275_v7, %v19435_v17  ;;  %v19509_v58 = vpop.f32.mrf.mxu0  ;;  %v19511_v54 = vpop.f32.mrf.mxu1  ;;  %v17231_v52 = vld [vmem:[%s17680_s8 + $0x130] sm:$0xff]  }
 0x1c1   : > { %3028 = vst.msk [vmem:[#allocation2 + $0xd0] sm:$0xff] %vm1677_vm4, %v3010_v45  ;;  %v2586_v5 = vmax.f32 %v19283_v40, %v19454_v44  ;;  %15768 = vmatmul.mubr.msk.bf16.gmra.mxu0 %vm407_vm1, %v17225_v51  ;;  %15858 = vmatpush3.bf16.msra.mxu1 %v19161_v14  ;;  %3029 = vst.msk [vmem:[#allocation2 + $0xd8] sm:$0xff] %vm1677_vm4, %v3011_v4  ;;  %v2974_v23 = vrot.slane %v19482_v27, 2  ;;  %v2811_v59 = vmax.f32 %v2583_v21, %v19427_v63 }
 0x1c2   : > { %v2587_v6 = vmax.f32 %v2359_v13, %v2559_v50  ;;  %15804 = vmatmul.mubr.msk.bf16.gmra.mxu1 %vm407_vm1, %v17226_v11  ;;  %15823 = vmatprep.mubr.msk.bf16.mxu0 %vm407_vm1, %v17227_v60  ;;  %v2897_v40 = vrot.slane %v19502_v8, 1  ;;  %v2970_v26 = vrot.slane %v19502_v8, 2  ;;  %v19524_v37 = vmax.f32 %v2832_v9, 0.0  ;;  %v19527_v12 = vpop.f32.mrf.mxu0  ;;  %v19529_v63 = vpop.f32.mrf.mxu1 }
 0x1c3   : > { %v2816_v17 = vmax.f32 %v2588_v32, %v19437_v48  ;;  %15859 = vmatprep.mubr.msk.bf16.mxu1 %vm407_vm1, %v17228_v18  ;;  %16969 = vmatprep.subr.msk.bf16.mxu0 %vm438_vm0, %v19535_v53  ;;  %v2830_v62 = vadd.f32 %v19233_v61, %v2811_v59  ;;  %v2814_v48 = vmax.f32 %v2586_v5, %v19456_v16  ;;  %v17232_v18 = vld [vmem:[%s17680_s8 + $0x2e8] sm:$0xff]  }
 0x1c4   : > { %v2815_v20 = vmax.f32 %v2587_v6, %v2787_v35  ;;  %16970 = vmatprep.subr.msk.bf16.mxu1 %vm438_vm0, %v19535_v53  ;;  %v2898_v1 = vsel %vm1529_vm2, %v2895_v41, %v2897_v40  ;;  %v2971_v44 = vsel %vm1603_vm3, %v2968_v10, %v2970_v26  ;;  %v2903_v55 = vrot.slane %v19524_v37, 1  ;;  %v19553_v16 = vpop.f32.mrf.mxu0  ;;  %v19555_v2 = vpop.f32.mrf.mxu1 }
 0x1c5   : > { %v2976_v38 = vrot.slane %v19524_v37, 2  ;;  %v2940_v22 = vmax.f32 %v19423_v36, %v2898_v1  ;;  %v2849_v34 = vmax.f32 %v2830_v62, 0.0  ;;  %v2835_v15 = vadd.f32 %v19233_v61, %v2816_v17 }
 0x1c6   : > { %v2833_v41 = vadd.f32 %v19233_v61, %v2814_v48  ;;  %v2904_v10 = vsel %vm1529_vm2, %v2901_v30, %v2903_v55  ;;  %v2834_v39 = vadd.f32 %v19233_v61, %v2815_v20  ;;  %v19569_v31 = vpop.f32.mrf.mxu0  ;;  %v19571_v36 = vpop.f32.mrf.mxu1  ;;  %v17254_v20 = vld [vmem:[%s17680_s8 + $0x660] sm:$0xff]  }
 0x1c7   : > { %v2977_v57 = vsel %vm1603_vm3, %v2974_v23, %v2976_v38  ;;  %v3013_v56 = vmax.f32 %v2940_v22, %v2971_v44  ;;  %v2943_v29 = vmax.f32 %v19482_v27, %v2904_v10  ;;  %v2899_v11 = vrot.slane %v2849_v34, 1 }
 0x1c8   : > { %v2972_v60 = vrot.slane %v2849_v34, 2  ;;  %v2854_v45 = vmax.f32 %v2835_v15, 0.0  ;;  %v2852_v42 = vmax.f32 %v2833_v41, 0.0  ;;  %v2853_v33 = vmax.f32 %v2834_v39, 0.0  ;;  %v19577_v50 = vpop.f32.mrf.mxu0  ;;  %v19579_v35 = vpop.f32.mrf.mxu1 }
 0x1c9   : > { %15824 = vmatmul.mubr.msk.bf16.vlgmr.msra.gmra.mxu0 %vm407_vm1, %v17229_v43  ;;  %3031 = vst.msk [vmem:[#allocation2 + $0xe8] sm:$0xff] %vm1677_vm4, %v3013_v56  ;;  %v3016_v13 = vmax.f32 %v2943_v29, %v2977_v57  ;;  %v2900_v4 = vsel %vm1529_vm2, %v2897_v40, %v2899_v11  ;;  %v2902_v21 = vsel %vm1529_vm2, %v2899_v11, %v2901_v30  ;;  %v17233_v43 = vld [vmem:[%s17680_s8 + $0x138] sm:$0xff]   ;;  %v17235_v29 = vld [vmem:[%s17680_s8 + $0x140] sm:$0xff]  }
 0x1ca   : > { %v2973_v9 = vsel %vm1603_vm3, %v2970_v26, %v2972_v60  ;;  %15860 = vmatmul.mubr.msk.bf16.vlgmr.msra.gmra.mxu1 %vm407_vm1, %v17230_v47  ;;  %v2941_v32 = vmax.f32 %v19502_v8, %v2900_v4  ;;  %v2942_v5 = vmax.f32 %v2849_v34, %v2902_v21  ;;  %v2975_v59 = vsel %vm1603_vm3, %v2972_v60, %v2974_v23  ;;  %v19593_v17 = vpop.f32.mrf.mxu0  ;;  %v19595_v62 = vpop.f32.mrf.mxu1  ;;  %v17234_v47 = vld [vmem:[%s17680_s8 + $0x2f0] sm:$0xff]   ;;  %v17251_v21 = vld [vmem:[%s17680_s8 + $0x4a0] sm:$0xff]  }
 0x1cb   : > { %v2909_v6 = vrot.slane %v2854_v45, 1  ;;  %15880 = vmatpush3.bf16.msra.mxu0 %v23684_v24  ;;  %15916 = vmatpush3.bf16.msra.mxu1 %v23684_v24  ;;  %3034 = vst.msk [vmem:[#allocation2 + $0x100] sm:$0xff] %vm1677_vm4, %v3016_v13  ;;  %v2982_v27 = vrot.slane %v2854_v45, 2  ;;  %v2905_v30 = vrot.slane %v2852_v42, 1  ;;  %v2978_v40 = vrot.slane %v2852_v42, 2  ;;  %v17236_v45 = vld [vmem:[%s17680_s8 + $0x2f8] sm:$0xff]  }
 0x1cc   : > { %v2907_v26 = vrot.slane %v2853_v33, 1  ;;  %15881 = vmatprep.subr.bf16.mxu0 %v19027_v28  ;;  %15827 = vmatprep.mubr.msk.bf16.mxu0 %vm407_vm1, %v17231_v52  ;;  %v3014_v8 = vmax.f32 %v2941_v32, %v2973_v9  ;;  %v3015_v23 = vmax.f32 %v2942_v5, %v2975_v59  ;;  %v2980_v48 = vrot.slane %v2853_v33, 2  ;;  %v19603_v1 = vpop.f32.mrf.mxu0  ;;  %v19605_v44 = vpop.f32.mrf.mxu1  ;;  %v19651_v9 = vld [vmem:[%s23510_s1 + $0x28] sm:$0xff]  }
 0x1cd   : > { %15863 = vmatprep.mubr.msk.bf16.mxu1 %vm407_vm1, %v17232_v18  ;;  %15917 = vmatprep.subr.bf16.mxu1 %v19027_v28  ;;  %v2906_v22 = vsel %vm1529_vm2, %v2903_v55, %v2905_v30  ;;  %v2979_v34 = vsel %vm1603_vm3, %v2976_v38, %v2978_v40  ;;  %v19626_v38 = vld [vmem:[%s23510_s1 + $0x30] sm:$0xff]   ;;  %23730 = vst [vmem:[#allocation28_spill] sm:$0xff] %v19651_v9 }
 0x1ce   : > { %v2908_v15 = vsel %vm1529_vm2, %v2905_v30, %v2907_v26  ;;  %v2910_v41 = vsel %vm1529_vm2, %v2907_v26, %v2909_v6  ;;  %3032 = vst.msk [vmem:[#allocation2 + $0xf0] sm:$0xff] %vm1677_vm4, %v3014_v8  ;;  %3033 = vst.msk [vmem:[#allocation2 + $0xf8] sm:$0xff] %vm1677_vm4, %v3015_v23  ;;  %v2944_v10 = vmax.f32 %v19524_v37, %v2906_v22  ;;  %v19619_v56 = vpop.f32.mrf.mxu0  ;;  %v19621_v55 = vpop.f32.mrf.mxu1  ;;  %v17239_v26 = vld [vmem:[%s17680_s8 + $0x150] sm:$0xff]  }
 0x1cf   : > { %v2945_v57 = vmax.f32 %v2852_v42, %v2908_v15  ;;  %v2946_v28 = vmax.f32 %v2853_v33, %v2910_v41  ;;  %v2981_v39 = vsel %vm1603_vm3, %v2978_v40, %v2980_v48  ;;  %23729 = vst [vmem:[#allocation26_spill] sm:$0xff] %v19626_v38  ;;  %15882 = vmatpush3.bf16.msra.mxu0 %v19626_v38  ;;  %v17238_v40 = vld [vmem:[%s17680_s8 + $0x300] sm:$0xff]   ;;  %v17250_v30 = vld [vmem:[%s17680_s8 + $0x650] sm:$0xff]  }
 0x1d0   : > { %v2983_v11 = vsel %vm1603_vm3, %v2980_v48, %v2982_v27  ;;  %15918 = vmatpush3.bf16.msra.mxu1 %v19626_v38  ;;  %v3017_v42 = vmax.f32 %v2944_v10, %v2979_v34  ;;  %v19639_v13 = vpop.f32.mrf.mxu0  ;;  %v19641_v4 = vpop.f32.mrf.mxu1  ;;  %15883 = vmatprep.subr.bf16.mxu0 %v23724_v3  ;;  %v17237_v27 = vld [vmem:[%s17680_s8 + $0x148] sm:$0xff]  }
 0x1d1   : > { %v3018_v33 = vmax.f32 %v2945_v57, %v2981_v39  ;;  %v3019_v18 = vmax.f32 %v2946_v28, %v2983_v11  ;;  %15828 = vmatmul.mubr.msk.bf16.gmra.mxu0 %vm407_vm1, %v17233_v43  ;;  %15919 = vmatprep.subr.bf16.mxu1 %v19651_v9  ;;  %v17240_v48 = vld [vmem:[%s17680_s8 + $0x308] sm:$0xff]   ;;  %v17241_v28 = vld [vmem:[%s17680_s8 + $0x158] sm:$0xff]   ;;  %v17243_v11 = vld [vmem:[%s17680_s8 + $0x160] sm:$0xff]  }
 0x1d2   : > { %15864 = vmatmul.mubr.msk.bf16.gmra.mxu1 %vm407_vm1, %v17234_v47  ;;  %3035 = vst.msk [vmem:[#allocation2 + $0x108] sm:$0xff] %vm1677_vm4, %v3017_v42  ;;  %v19657_v3 = vpop.f32.mrf.mxu0  ;;  %v19659_v32 = vpop.f32.mrf.mxu1  ;;  %15831 = vmatprep.mubr.msk.bf16.mxu0 %vm407_vm1, %v17235_v29  ;;  %v17242_v29 = vld [vmem:[%s17680_s8 + $0x310] sm:$0xff]   ;;  %v17249_v43 = vld [vmem:[%s17680_s8 + $0x498] sm:$0xff]  }
 0x1d3   : > { %3036 = vst.msk [vmem:[#allocation2 + $0x110] sm:$0xff] %vm1677_vm4, %v3018_v33  ;;  %3037 = vst.msk [vmem:[#allocation2 + $0x118] sm:$0xff] %vm1677_vm4, %v3019_v18  ;;  %15884 = vmatpush3.bf16.msra.mxu0 %v19651_v9  ;;  %15867 = vmatprep.mubr.msk.bf16.mxu1 %vm407_vm1, %v17236_v45  ;;  %v17247_v33 = vld [vmem:[%s17680_s8 + $0x490] sm:$0xff]  }
 0x1d4   : > { %15920 = vmatpush3.bf16.msra.mxu1 %v19651_v9  ;;  %v19667_v59 = vpop.f32.mrf.mxu0  ;;  %v19669_v6 = vpop.f32.mrf.mxu1  ;;  %15885 = vmatprep.subr.bf16.mxu0 %v23725_v25 }
 0x1d5   : > { %15921 = vmatprep.subr.bf16.mxu1 %v23725_v25 }
 0x1d6   : > { %v19678_v8 = vpop.f32.mrf.mxu0  ;;  %v19680_v23 = vpop.f32.mrf.mxu1 }
 0x1d7   : > { %15886 = vmatpush3.bf16.msra.mxu0 %v23725_v25 }
 0x1d8   : > { %15922 = vmatpush3.bf16.msra.mxu1 %v23725_v25  ;;  %15887 = vmatprep.subr.bf16.mxu0 %v23726_v49  ;;  %v19688_v22 = vpop.f32.mrf.mxu0  ;;  %v19690_v34 = vpop.f32.mrf.mxu1 }
 0x1d9   : > { %15832 = vmatmul.mubr.msk.bf16.gmra.mxu0 %vm407_vm1, %v17237_v27  ;;  %15923 = vmatprep.subr.bf16.mxu1 %v23726_v49 }
 0x1da   : > { %15868 = vmatmul.mubr.msk.bf16.gmra.mxu1 %vm407_vm1, %v17238_v40  ;;  %15835 = vmatprep.mubr.msk.bf16.mxu0 %vm407_vm1, %v17239_v26  ;;  %v19698_v25 = vpop.f32.mrf.mxu0  ;;  %v19700_v41 = vpop.f32.mrf.mxu1  ;;  %v17245_v40 = vld [vmem:[%s17680_s8 + $0x168] ss:$0 sps:$4 sm:$0x11]  }
 0x1db   : > { %15888 = vmatpush3.bf16.msra.mxu0 %v23726_v49  ;;  %15871 = vmatprep.mubr.msk.bf16.mxu1 %vm407_vm1, %v17240_v48 }
 0x1dc   : > { %15924 = vmatpush3.bf16.msra.mxu1 %v23726_v49  ;;  %15889 = vmatprep.subr.bf16.mxu0 %v23727_v46  ;;  %v19708_v10 = vpop.f32.mrf.mxu0  ;;  %v19710_v57 = vpop.f32.mrf.mxu1  ;;  %v17244_v49 = vld [vmem:[%s17680_s8 + $0x318] sm:$0xff]  }
 0x1dd   : > { %15925 = vmatprep.subr.bf16.mxu1 %v23727_v46 }
 0x1de   : > { %v19718_v45 = vpop.f32.mrf.mxu0  ;;  %v19720_v42 = vpop.f32.mrf.mxu1 }
 0x1df   : > { %23731 = vst [vmem:[#allocation33_spill] sm:$0xff] %v19718_v45  ;;  %23732 = vst [vmem:[#allocation13_spill] sm:$0xff] %v19720_v42  ;;  %15890 = vmatpush3.bf16.msra.mxu0 %v23727_v46  ;;  %v17264_v42 = vld [vmem:[%s17680_s8 + $0x688] sm:$0xff]  }
 0x1e0   : > { %15926 = vmatpush3.bf16.msra.mxu1 %v23727_v46  ;;  %15891 = vmatprep.subr.bf16.mxu0 %v23728_v19  ;;  %v19728_v18 = vpop.f32.mrf.mxu0  ;;  %v19730_v27 = vpop.f32.mrf.mxu1 }
 0x1e1   : > { %23733 = vst [vmem:[#allocation14_spill] sm:$0xff] %v19728_v18  ;;  %23734 = vst [vmem:[#allocation30_spill] sm:$0xff] %v19730_v27  ;;  %15836 = vmatmul.mubr.msk.bf16.gmra.mxu0 %vm407_vm1, %v17241_v28  ;;  %15927 = vmatprep.subr.bf16.mxu1 %v23728_v19  ;;  %v17261_v27 = vld [vmem:[%s17680_s8 + $0x4c8] sm:$0xff]  }
 0x1e2   : > { %15872 = vmatmul.mubr.msk.bf16.gmra.mxu1 %vm407_vm1, %v17242_v29  ;;  %15839 = vmatprep.mubr.msk.bf16.mxu0 %vm407_vm1, %v17243_v11  ;;  %v19738_v46 = vpop.f32.mrf.mxu0  ;;  %v19740_v26 = vpop.f32.mrf.mxu1  ;;  %v17246_v11 = vld [vmem:[%s17680_s8 + $0x320] ss:$0 sps:$4 sm:$0x11]   ;;  %v19899_v18 = vld [vmem:[%s23510_s1 + $0x8] sm:$0xff]  }
 0x1e3   : > { %23735 = vst [vmem:[#allocation32_spill] sm:$0xff] %v19738_v46  ;;  %23736 = vst [vmem:[#allocation17_spill] sm:$0xff] %v19740_v26  ;;  %15875 = vmatprep.mubr.msk.bf16.mxu1 %vm407_vm1, %v17244_v49  ;;  %15892 = vmatpush3.bf16.msra.mxu0 %v23728_v19  ;;  %v17248_v49 = vld [vmem:[%s17680_s8 + $0x648] sm:$0xff]   ;;  %v19857_v26 = vld [vmem:[%s23510_s1 + $0x18] sm:$0xff]  }
 0x1e4   : > { %15928 = vmatpush3.bf16.msra.mxu1 %v23728_v19  ;;  %15893 = vmatprep.subr.bf16.mxu0 %v19161_v14  ;;  %v15482_v28 = vpop.f32.mrf.mxu0  ;;  %v15518_v29 = vpop.f32.mrf.mxu1  ;;  %23744 = vst [vmem:[#allocation29_spill] sm:$0xff] %v19857_v26  ;;  %v17259_v46 = vld [vmem:[%s17680_s8 + $0x4c0] sm:$0xff]  }
 0x1e5   : > { %15929 = vmatprep.subr.bf16.mxu1 %v19161_v14 }
 0x1e6   : > { %v19752_v39 = vpop.f32.mrf.mxu0  ;;  %v19754_v47 = vpop.f32.mrf.mxu1 }
 0x1e7   : > { %23737 = vst [vmem:[#allocation34_spill] sm:$0xff] %v19752_v39  ;;  %23738 = vst [vmem:[#allocation15_spill] sm:$0xff] %v19754_v47  ;;  %15894 = vmatpush3.bf16.msra.mxu0 %v19161_v14 }
 0x1e8   : > { %15930 = vmatpush3.bf16.msra.mxu1 %v19161_v14  ;;  %16971 = vmatprep.subr.msk.bf16.mxu0 %vm438_vm0, %v19535_v53  ;;  %v19763_v28 = vpop.f32.mrf.mxu0  ;;  %v19765_v29 = vpop.f32.mrf.mxu1 }
 0x1e9   : > { %15840 = vmatmul.mubr.msk.bf16.gmra.mxu0 %vm407_vm1, %v17245_v40  ;;  %16972 = vmatprep.subr.msk.bf16.mxu1 %vm438_vm0, %v19535_v53 }
 0x1ea   : > { %15876 = vmatmul.mubr.msk.bf16.gmra.mxu1 %vm407_vm1, %v17246_v11  ;;  %15895 = vmatprep.mubr.msk.bf16.mxu0 %vm407_vm1, %v17247_v33  ;;  %v19772_v19 = vpop.f32.mrf.mxu0  ;;  %v19774_v14 = vpop.f32.mrf.mxu1  ;;  %v17252_v11 = vld [vmem:[%s17680_s8 + $0x658] sm:$0xff]  }
 0x1eb   : > { %15931 = vmatprep.mubr.msk.bf16.mxu1 %vm407_vm1, %v17248_v49 }
 0x1ec   : > { %v19777_v48 = vpop.f32.mrf.mxu0  ;;  %v19779_v15 = vpop.f32.mrf.mxu1 }
 0x1ee   : > { %v19783_v40 = vpop.f32.mrf.mxu0  ;;  %v19785_v5 = vpop.f32.mrf.mxu1 }
 0x1f0   : > { %v19789_v33 = vpop.f32.mrf.mxu0  ;;  %v19791_v52 = vpop.f32.mrf.mxu1 }
 0x1f1   : > { %15896 = vmatmul.mubr.msk.bf16.vlgmr.msra.gmra.mxu0 %vm407_vm1, %v17249_v43 }
 0x1f2   : > { %15932 = vmatmul.mubr.msk.bf16.vlgmr.msra.gmra.mxu1 %vm407_vm1, %v17250_v30  ;;  %15952 = vmatpush3.bf16.msra.mxu0 %v23684_v24  ;;  %v19796_v49 = vpop.f32.mrf.mxu0  ;;  %v19798_v60 = vpop.f32.mrf.mxu1  ;;  %v17253_v30 = vld [vmem:[%s17680_s8 + $0x4a8] sm:$0xff]  }
 0x1f3   : > { %15988 = vmatpush3.bf16.msra.mxu1 %v23684_v24  ;;  %15953 = vmatprep.subr.bf16.mxu0 %v19626_v38  ;;  %v17257_v24 = vld [vmem:[%s17680_s8 + $0x4b8] sm:$0xff]  }
 0x1f4   : > { %15899 = vmatprep.mubr.msk.bf16.mxu0 %vm407_vm1, %v17251_v21  ;;  %15935 = vmatprep.mubr.msk.bf16.mxu1 %vm407_vm1, %v17252_v11  ;;  %v19804_v37 = vpop.f32.mrf.mxu0  ;;  %v19806_v43 = vpop.f32.mrf.mxu1  ;;  %v17255_v21 = vld [vmem:[%s17680_s8 + $0x4b0] sm:$0xff]   ;;  %v17256_v11 = vld [vmem:[%s17680_s8 + $0x668] sm:$0xff]  }
 0x1f5   : > { %15989 = vmatprep.subr.bf16.mxu1 %v19626_v38 }
 0x1f6   : > { %15954 = vmatpush3.bf16.msra.mxu0 %v19626_v38  ;;  %v19812_v61 = vpop.f32.mrf.mxu0  ;;  %v19814_v51 = vpop.f32.mrf.mxu1 }
 0x1f7   : > { %15990 = vmatpush3.bf16.msra.mxu1 %v19626_v38  ;;  %15955 = vmatprep.subr.bf16.mxu0 %v19651_v9 }
 0x1f8   : > { %15991 = vmatprep.subr.bf16.mxu1 %v19651_v9  ;;  %v19821_v0 = vpop.f32.mrf.mxu0  ;;  %v19823_v7 = vpop.f32.mrf.mxu1 }
 0x1f9   : > { %23739 = vst [vmem:[#allocation16_spill] sm:$0xff] %v19823_v7  ;;  %15900 = vmatmul.mubr.msk.bf16.gmra.mxu0 %vm407_vm1, %v17253_v30  ;;  %v19838_v30 = vld [vmem:[%s23510_s1 + $0x20] sm:$0xff]  }
 0x1fa   : > { %15936 = vmatmul.mubr.msk.bf16.gmra.mxu1 %vm407_vm1, %v17254_v20  ;;  %15956 = vmatpush3.bf16.msra.mxu0 %v19651_v9  ;;  %v19828_v47 = vpop.f32.mrf.mxu0  ;;  %v19830_v38 = vpop.f32.mrf.mxu1  ;;  %23741 = vst [vmem:[#allocation21_spill] sm:$0xff] %v19838_v30 }
 0x1fb   : > { %23740 = vst [vmem:[#allocation18_spill] sm:$0xff] %v19830_v38  ;;  %15992 = vmatpush3.bf16.msra.mxu1 %v19651_v9  ;;  %15903 = vmatprep.mubr.msk.bf16.mxu0 %vm407_vm1, %v17255_v21  ;;  %v17258_v9 = vld [vmem:[%s17680_s8 + $0x670] sm:$0xff]  }
 0x1fc   : > { %15939 = vmatprep.mubr.msk.bf16.mxu1 %vm407_vm1, %v17256_v11  ;;  %15957 = vmatprep.subr.bf16.mxu0 %v19838_v30  ;;  %v19841_v20 = vpop.f32.mrf.mxu0  ;;  %v19843_v39 = vpop.f32.mrf.mxu1 }
 0x1fd   : > { %23742 = vst [vmem:[#allocation24_spill] sm:$0xff] %v19843_v39  ;;  %15993 = vmatprep.subr.bf16.mxu1 %v19838_v30  ;;  %v17260_v39 = vld [vmem:[%s17680_s8 + $0x678] sm:$0xff]  }
 0x1fe   : > { %15958 = vmatpush3.bf16.msra.mxu0 %v19838_v30  ;;  %v19849_v21 = vpop.f32.mrf.mxu0  ;;  %v19851_v11 = vpop.f32.mrf.mxu1 }
 0x1ff   : > { %23743 = vst [vmem:[#allocation27_spill] sm:$0xff] %v19851_v11  ;;  %15994 = vmatpush3.bf16.msra.mxu1 %v19838_v30  ;;  %15959 = vmatprep.subr.bf16.mxu0 %v19857_v26 }
 0x200   : > { %15995 = vmatprep.subr.bf16.mxu1 %v19857_v26  ;;  %v19863_v38 = vpop.f32.mrf.mxu0  ;;  %v19865_v7 = vpop.f32.mrf.mxu1 }
 0x201   : > { %23745 = vst [vmem:[#allocation9_spill] sm:$0xff] %v19865_v7  ;;  %15904 = vmatmul.mubr.msk.bf16.gmra.mxu0 %vm407_vm1, %v17257_v24  ;;  %v19880_v24 = vld [vmem:[%s23510_s1 + $0x10] sm:$0xff]  }
 0x202   : > { %15940 = vmatmul.mubr.msk.bf16.gmra.mxu1 %vm407_vm1, %v17258_v9  ;;  %15960 = vmatpush3.bf16.msra.mxu0 %v19857_v26  ;;  %v19870_v30 = vpop.f32.mrf.mxu0  ;;  %v19872_v11 = vpop.f32.mrf.mxu1  ;;  %23747 = vst [vmem:[#allocation31_spill] sm:$0xff] %v19880_v24 }
 0x203   : > { %23746 = vst [vmem:[#allocation10_spill] sm:$0xff] %v19872_v11  ;;  %15907 = vmatprep.mubr.msk.bf16.mxu0 %vm407_vm1, %v17259_v46  ;;  %15943 = vmatprep.mubr.msk.bf16.mxu1 %vm407_vm1, %v17260_v39  ;;  %v17262_v46 = vld [vmem:[%s17680_s8 + $0x680] sm:$0xff]   ;;  %v17263_v39 = vld [vmem:[%s17680_s8 + $0x4d0] sm:$0xff]  }
 0x204   : > { %15996 = vmatpush3.bf16.msra.mxu1 %v19857_v26  ;;  %15961 = vmatprep.subr.bf16.mxu0 %v19880_v24  ;;  %v19883_v9 = vpop.f32.mrf.mxu0  ;;  %v19885_v7 = vpop.f32.mrf.mxu1 }
 0x205   : > { %23748 = vst [vmem:[#allocation25_spill] sm:$0xff] %v19885_v7  ;;  %15997 = vmatprep.subr.bf16.mxu1 %v19880_v24 }
 0x206   : > { %15962 = vmatpush3.bf16.msra.mxu0 %v19880_v24  ;;  %v19892_v11 = vpop.f32.mrf.mxu0  ;;  %v19894_v26 = vpop.f32.mrf.mxu1 }
 0x207   : > { %23749 = vst [vmem:[#allocation11_spill] sm:$0xff] %v19892_v11  ;;  %23750 = vst [vmem:[#allocation12_spill] sm:$0xff] %v19894_v26  ;;  %15963 = vmatprep.subr.bf16.mxu0 %v19899_v18 }
 0x208   : > { %15998 = vmatpush3.bf16.msra.mxu1 %v19880_v24  ;;  %v19904_v7 = vpop.f32.mrf.mxu0  ;;  %v19906_v45 = vpop.f32.mrf.mxu1 }
 0x209   : > { %23751 = vst [vmem:[#allocation19_spill] sm:$0xff] %v19906_v45  ;;  %15908 = vmatmul.mubr.msk.bf16.gmra.mxu0 %vm407_vm1, %v17261_v27  ;;  %15999 = vmatprep.subr.bf16.mxu1 %v19899_v18  ;;  %v23753_v27 = vmax.f32 %v19509_v58, %v19511_v54  ;;  %v23755_v45 = vmax.f32 %v19553_v16, %v19555_v2 }
 0x20a   : > { %15944 = vmatmul.mubr.msk.bf16.gmra.mxu1 %vm407_vm1, %v17262_v46  ;;  %15911 = vmatprep.mubr.msk.bf16.mxu0 %vm407_vm1, %v17263_v39  ;;  %v19912_v26 = vpop.f32.mrf.mxu0  ;;  %v19914_v11 = vpop.f32.mrf.mxu1  ;;  %v23754_v46 = vmax.f32 %v19527_v12, %v19529_v63  ;;  %v23756_v12 = vmax.f32 %v19569_v31, %v19571_v36  ;;  %v23757_v16 = vmax.f32 %v19577_v50, %v19579_v35 }
 0x20b   : > { %23752 = vst [vmem:[#allocation20_spill] sm:$0xff] %v19914_v11  ;;  %15947 = vmatprep.mubr.msk.bf16.mxu1 %vm407_vm1, %v17264_v42  ;;  %15964 = vmatpush3.bf16.msra.mxu0 %v19899_v18  ;;  %v3686_v24 = vmax.f32 %v23753_v27, %v19763_v28  ;;  %v3687_v11 = vmax.f32 %v23755_v45, %v19777_v48  ;;  %v19934_v42 = vld [vmem:[%s23510_s1] sm:$0xff]   ;;  %v17265_v28 = vld [vmem:[%s17680_s8 + $0x4d8] ss:$0 sps:$4 sm:$0x11]  }
 0x20c   : > { %v3684_v39 = vmax.f32 %v23754_v46, %v19772_v19  ;;  %16000 = vmatpush3.bf16.msra.mxu1 %v19899_v18  ;;  %15965 = vmatprep.subr.bf16.mxu0 %v19934_v42  ;;  %v15554_v58 = vpop.f32.mrf.mxu0  ;;  %v15590_v54 = vpop.f32.mrf.mxu1  ;;  %v19943_v63 = vmax.f32 %v23756_v12, %v19783_v40  ;;  %v19949_v2 = vmax.f32 %v23757_v16, %v19789_v33  ;;  %v17266_v45 = vld [vmem:[%s17680_s8 + $0x690] ss:$0 sps:$4 sm:$0x11]   ;;  %v17267_v48 = vld [vmem:[%s17680_s8 + $0x800] sm:$0xff]   ;;  %v17268_v46 = vld [vmem:[%s17680_s8 + $0x168] sm:$0xff]  }
 0x20d   : > { %16001 = vmatprep.subr.bf16.mxu1 %v19934_v42  ;;  %v3914_v58 = vmax.f32 %v3686_v24, %v19765_v29  ;;  %v3915_v36 = vmax.f32 %v3687_v11, %v19779_v15  ;;  %v23758_v50 = vmax.f32 %v19593_v17, %v19595_v62  ;;  %v23759_v40 = vmax.f32 %v19603_v1, %v19605_v44  ;;  %v23770_v24 = vld [vmem:[#allocation13_spill] sm:$0xff]  ;;  %v23772_v54 = vld [vmem:[#allocation14_spill] sm:$0xff]  ;;  %v23775_v16 = vld [vmem:[#allocation16_spill] sm:$0xff] }
 0x20e   : > { %v19953_v19 = vpop.f32.mrf.mxu0  ;;  %v19955_v27 = vpop.f32.mrf.mxu1  ;;  %v3912_v31 = vmax.f32 %v3684_v39, %v19774_v14  ;;  %v23760_v15 = vmax.f32 %v19619_v56, %v19621_v55  ;;  %v3913_v17 = vmax.f32 %v19943_v63, %v19785_v5  ;;  %v3918_v62 = vmax.f32 %v19949_v2, %v19791_v52 }
 0x20f   : > { %15966 = vmatpush3.bf16.msra.mxu0 %v19934_v42  ;;  %v19969_v35 = vmax.f32 %v23758_v50, %v19796_v49  ;;  %v19975_v29 = vmax.f32 %v23759_v40, %v19804_v37  ;;  %v23763_v55 = vmax.f32 %v19667_v59, %v19669_v6  ;;  %v23764_v52 = vmax.f32 %v19678_v8, %v19680_v23  ;;  %v20036_v6 = vld [vmem:[%s23511_s2] ss:$0 sm:$0xff] }
 0x210   : > { %16002 = vmatpush3.bf16.msra.mxu1 %v19934_v42  ;;  %16973 = vmatprep.subr.msk.bf16.mxu0 %vm438_vm0, %v19535_v53  ;;  %v19981_v14 = vmax.f32 %v23760_v15, %v19812_v61  ;;  %v15609_v33 = vpop.f32.mrf.mxu0  ;;  %v19983_v11 = vpop.f32.mrf.mxu1  ;;  %v23761_v61 = vmax.f32 %v19639_v13, %v19641_v4  ;;  %v23766_v5 = vmax.f32 %v19698_v25, %v19700_v41  ;;  %v23779_v15 = vld [vmem:[#allocation9_spill] sm:$0xff] }
 0x211   : > { %15912 = vmatmul.mubr.msk.bf16.gmra.mxu0 %vm407_vm1, %v17265_v28  ;;  %16974 = vmatprep.subr.msk.bf16.mxu1 %vm438_vm0, %v19535_v53  ;;  %v4142_v1 = vmax.f32 %v3914_v58, %v15609_v33  ;;  %v23762_v53 = vmax.f32 %v19657_v3, %v19659_v32  ;;  %v20010_v37 = vmax.f32 %v23763_v55, %v19841_v20  ;;  %v23768_v20 = vld [vmem:[#allocation11_spill] sm:$0xff]  ;;  %v23773_v28 = vld [vmem:[#allocation30_spill] sm:$0xff] }
 0x212   : > { %15948 = vmatmul.mubr.msk.bf16.gmra.mxu1 %vm407_vm1, %v17266_v45  ;;  %15967 = vmatprep.mubr.msk.bf16.mxu0 %vm407_vm1, %v17267_v48  ;;  %v19998_v44 = vmax.f32 %v23761_v61, %v19821_v0  ;;  %v20016_v13 = vmax.f32 %v23764_v52, %v19849_v21  ;;  %v4062_v0 = vpop.f32.mrf.mxu0  ;;  %v20018_v4 = vpop.f32.mrf.mxu1  ;;  %v23765_v3 = vmax.f32 %v19688_v22, %v19690_v34  ;;  %v23769_v21 = vld [vmem:[#allocation33_spill] sm:$0xff]  ;;  %v23776_v45 = vld [vmem:[#allocation18_spill] sm:$0xff] }
 0x213   : > { %v20004_v56 = vmax.f32 %v23762_v53, %v19828_v47  ;;  %16003 = vmatprep.mubr.msk.bf16.mxu1 %vm407_vm1, %v17268_v46  ;;  %v20031_v59 = vmax.f32 %v23766_v5, %v19870_v30  ;;  %v4161_v8 = vadd.f32 %v20036_v6, %v4142_v1  ;;  %v4140_v23 = vmax.f32 %v3912_v31, %v4062_v0  ;;  %v17269_v30 = vld [vmem:[%s17680_s8 + $0x808] sm:$0xff]   ;;  %v23780_v33 = vld [vmem:[#allocation10_spill] sm:$0xff] }
 0x214   : > { %v20025_v32 = vmax.f32 %v23765_v3, %v19863_v38  ;;  %v3916_v22 = vmax.f32 %v19969_v35, %v19798_v60  ;;  %v3919_v38 = vmax.f32 %v19975_v29, %v19806_v43  ;;  %v23767_v25 = vmax.f32 %v19708_v10, %v19710_v57  ;;  %v15610_v47 = vpop.f32.mrf.mxu0  ;;  %v20051_v49 = vpop.f32.mrf.mxu1  ;;  %v23777_v46 = vld [vmem:[#allocation24_spill] sm:$0xff]  ;;  %v17271_v53 = vld [vmem:[%s17680_s8 + $0x810] sm:$0xff]   ;;  %v17272_v55 = vld [vmem:[%s17680_s8 + $0x178] sm:$0xff]  }
 0x215   : > { %v23771_v60 = vmax.f32 %v23769_v21, %v23770_v24  ;;  %v23774_v12 = vmax.f32 %v23772_v54, %v23773_v28  ;;  %v4159_v10 = vadd.f32 %v20036_v6, %v4140_v23  ;;  %v4143_v57 = vmax.f32 %v3915_v36, %v15610_v47  ;;  %v23781_v52 = vld [vmem:[#allocation25_spill] sm:$0xff]  ;;  %v23782_v3 = vld [vmem:[#allocation32_spill] sm:$0xff] }
 0x216   : > { %v20049_v41 = vmax.f32 %v23767_v25, %v19883_v9  ;;  %v17270_v9 = vld [vmem:[%s17680_s8 + $0x170] sm:$0xff]   ;;  %v20074_v31 = vmax.f32 %v4161_v8, 0.0  ;;  %v4065_v50 = vpop.f32.mrf.mxu0  ;;  %v20076_v35 = vpop.f32.mrf.mxu1  ;;  %v23785_v21 = vld [vmem:[#allocation12_spill] sm:$0xff] }
 0x217   : > { %v20058_v39 = vmax.f32 %v23771_v60, %v23768_v20  ;;  %v20064_v63 = vmax.f32 %v23774_v12, %v19904_v7  ;;  %v23778_v7 = vld [vmem:[#allocation27_spill] sm:$0xff]  ;;  %v4162_v61 = vadd.f32 %v20036_v6, %v4143_v57  ;;  %v23783_v5 = vld [vmem:[#allocation17_spill] sm:$0xff]  ;;  %v20095_v25 = vmax.f32 %v4159_v10, 0.0 }
 0x218   : > { %v23784_v8 = vmax.f32 %v23782_v3, %v23783_v5  ;;  %v4141_v47 = vmax.f32 %v3913_v17, %v4065_v50  ;;  %v15613_v20 = vpop.f32.mrf.mxu0  ;;  %v23786_v60 = vld [vmem:[#allocation19_spill] sm:$0xff]  ;;  %v20104_v57 = vpop.f32.mrf.mxu1  ;;  %v23788_v17 = vld [vmem:[#allocation34_spill] sm:$0xff]  ;;  %v4219_v3 = vrot.slane %v20074_v31, 1  ;;  %v4292_v5 = vrot.slane %v20074_v31, 2  ;;  %v17276_v43 = vld [vmem:[%s17680_s8 + $0x188] sm:$0xff]  }
 0x219   : > { %15968 = vmatmul.mubr.msk.bf16.vlgmr.msra.gmra.mxu0 %vm407_vm1, %v17269_v30  ;;  %v20102_v28 = vmax.f32 %v4162_v61, 0.0  ;;  %v4146_v12 = vmax.f32 %v3918_v62, %v15613_v20  ;;  %v23789_v10 = vld [vmem:[#allocation15_spill] sm:$0xff]  ;;  %v23791_v62 = vld [vmem:[#allocation26_spill] sm:$0xff]  ;;  %v4216_v54 = vrot.slane %v20095_v25, 1  ;;  %v4289_v24 = vrot.slane %v20095_v25, 2 }
 0x21a   : > { %v20093_v23 = vmax.f32 %v23784_v8, %v19912_v26  ;;  %16004 = vmatmul.mubr.msk.bf16.vlgmr.msra.gmra.mxu1 %vm407_vm1, %v17270_v9  ;;  %v23787_v26 = vld [vmem:[#allocation8_spill] sm:$0xff]  ;;  %v23790_v50 = vmax.f32 %v23788_v17, %v23789_v10  ;;  %v4160_v61 = vadd.f32 %v20036_v6, %v4141_v47  ;;  %v4078_v8 = vpop.f32.mrf.mxu0  ;;  %v20122_v10 = vpop.f32.mrf.mxu1  ;;  %15971 = vmatprep.mubr.msk.bf16.mxu0 %vm407_vm1, %v17271_v53 }
 0x21b   : > { %16024 = vmatpush3.bf16.msra.mxu0 %v23787_v26  ;;  %16060 = vmatpush3.bf16.msra.mxu1 %v23787_v26  ;;  %v4221_v9 = vrot.slane %v20102_v28, 1  ;;  %v23588_v20 = vrot.slane %v20102_v28, 2  ;;  %v4165_v17 = vadd.f32 %v20036_v6, %v4146_v12  ;;  %23792 = vst [vmem:[#allocation22_spill] sm:$0xff] %v20122_v10  ;;  %v23793_v47 = vld [vmem:[#allocation20_spill] sm:$0xff] }
 0x21c   : > { %v20112_v30 = vmax.f32 %v23790_v50, %v19953_v19  ;;  %16025 = vmatprep.subr.bf16.mxu0 %v23791_v62  ;;  %v4144_v19 = vmax.f32 %v3916_v22, %v4078_v8  ;;  %16007 = vmatprep.mubr.msk.bf16.mxu1 %vm407_vm1, %v17272_v55  ;;  %v4179_v0 = vmax.f32 %v4160_v61, 0.0  ;;  %v15614_v1 = vpop.f32.mrf.mxu0  ;;  %v17273_v22 = vld [vmem:[%s17680_s8 + $0x818] sm:$0xff]   ;;  %v20139_v50 = vpop.f32.mrf.mxu1  ;;  %v17274_v61 = vld [vmem:[%s17680_s8 + $0x180] sm:$0xff]  }
 0x21d   : > { %16061 = vmatprep.subr.bf16.mxu1 %v23791_v62  ;;  %v4222_v12 = vsel %vm1529_vm2, %v4219_v3, %v4221_v9  ;;  %v4295_v53 = vsel %vm1603_vm3, %v4292_v5, %v23588_v20  ;;  %v20136_v55 = vmax.f32 %v4165_v17, 0.0  ;;  %23794 = vst [vmem:[#allocation23_spill] sm:$0xff] %v20139_v50  ;;  %v4147_v48 = vmax.f32 %v3919_v38, %v15614_v1  ;;  %v23795_v17 = vld [vmem:[#allocation28_spill] sm:$0xff] }
 0x21e   : > { %v4163_v8 = vadd.f32 %v20036_v6, %v4144_v19  ;;  %v4273_v36 = vmax.f32 %v20074_v31, %v4222_v12  ;;  %v4217_v40 = vrot.slane %v4179_v0, 1  ;;  %v4290_v58 = vrot.slane %v4179_v0, 2  ;;  %v4081_v2 = vpop.f32.mrf.mxu0  ;;  %v17275_v19 = vld [vmem:[%s17680_s8 + $0x820] sm:$0xff]   ;;  %v20158_v10 = vpop.f32.mrf.mxu1 }
 0x21f   : > { %16026 = vmatpush3.bf16.msra.mxu0 %v23791_v62  ;;  %16062 = vmatpush3.bf16.msra.mxu1 %v23791_v62  ;;  %v23796_v31 = vmax.f32 %v19981_v14, %v19814_v51 }
 0x220   : > { %16027 = vmatprep.subr.bf16.mxu0 %v23795_v17  ;;  %v20153_v50 = vmax.f32 %v4163_v8, 0.0  ;;  %16063 = vmatprep.subr.bf16.mxu1 %v23795_v17  ;;  %v4346_v29 = vmax.f32 %v4273_v36, %v4295_v53  ;;  %v4218_v38 = vsel %vm1529_vm2, %v4216_v54, %v4217_v40  ;;  %v4220_v1 = vsel %vm1529_vm2, %v4217_v40, %v4219_v3  ;;  %v15617_v20 = vpop.f32.mrf.mxu0 }
 0x221   : > { %v4145_v12 = vmax.f32 %v23796_v31, %v4081_v2  ;;  %v4291_v62 = vsel %vm1603_vm3, %v4289_v24, %v4290_v58  ;;  %15972 = vmatmul.mubr.msk.bf16.gmra.mxu0 %vm407_vm1, %v17273_v22  ;;  %v4271_v8 = vmax.f32 %v20095_v25, %v4218_v38  ;;  %v4272_v34 = vmax.f32 %v4179_v0, %v4220_v1  ;;  %v20169_v2 = vpop.f32.mrf.mxu1 }
 0x222   : > { %v4293_v51 = vsel %vm1603_vm3, %v4290_v58, %v4292_v5  ;;  %v4223_v14 = vrot.slane %v20153_v50, 1  ;;  %16008 = vmatmul.mubr.msk.bf16.gmra.mxu1 %vm407_vm1, %v17274_v61  ;;  %4364 = vst.msk [vmem:[#allocation2 + $0x130] sm:$0xff] %vm1677_vm4, %v4346_v29  ;;  %v4296_v40 = vrot.slane %v20153_v50, 2  ;;  %v4166_v36 = vadd.f32 %v20036_v6, %v4147_v48  ;;  %v4094_v25 = vpop.f32.mrf.mxu0  ;;  %15975 = vmatprep.mubr.msk.bf16.mxu0 %vm407_vm1, %v17275_v19  ;;  %v17277_v19 = vld [vmem:[%s17680_s8 + $0x828] sm:$0xff]   ;;  %v17278_v29 = vld [vmem:[%s17680_s8 + $0x190] sm:$0xff]  }
 0x223   : > { %16028 = vmatpush3.bf16.msra.mxu0 %v23795_v17  ;;  %v4164_v24 = vadd.f32 %v20036_v6, %v4145_v12  ;;  %v23797_v0 = vmax.f32 %v19998_v44, %v23775_v16  ;;  %16064 = vmatpush3.bf16.msra.mxu1 %v23795_v17  ;;  %v4344_v54 = vmax.f32 %v4271_v8, %v4291_v62  ;;  %v20186_v53 = vpop.f32.mrf.mxu1  ;;  %v23799_v16 = vrot.slane %v20102_v28, 2 }
 0x224   : > { %v4345_v3 = vmax.f32 %v4272_v34, %v4293_v51  ;;  %v4224_v5 = vsel %vm1529_vm2, %v4221_v9, %v4223_v14  ;;  %v23798_v22 = vmax.f32 %v20004_v56, %v23776_v45  ;;  %16011 = vmatprep.mubr.msk.bf16.mxu1 %vm407_vm1, %v17276_v43  ;;  %v20193_v61 = vmax.f32 %v4166_v36, 0.0  ;;  %v15618_v17 = vpop.f32.mrf.mxu0  ;;  %v23800_v9 = vld [vmem:[#allocation21_spill] sm:$0xff] }
 0x225   : > { %v4150_v58 = vmax.f32 %v23797_v0, %v15617_v20  ;;  %v4274_v44 = vmax.f32 %v20102_v28, %v4224_v5  ;;  %v4297_v20 = vsel %vm1603_vm3, %v23799_v16, %v4296_v40  ;;  %v4183_v34 = vmax.f32 %v4164_v24, 0.0  ;;  %16029 = vmatprep.subr.bf16.mxu0 %v23800_v9  ;;  %16065 = vmatprep.subr.bf16.mxu1 %v23800_v9  ;;  %v20206_v43 = vpop.f32.mrf.mxu1  ;;  %v23802_v36 = vld [vmem:[#allocation29_spill] sm:$0xff] }
 0x226   : > { %v4148_v48 = vmax.f32 %v23798_v22, %v4094_v25  ;;  %4362 = vst.msk [vmem:[#allocation2 + $0x120] sm:$0xff] %vm1677_vm4, %v4344_v54  ;;  %4363 = vst.msk [vmem:[#allocation2 + $0x128] sm:$0xff] %vm1677_vm4, %v4345_v3  ;;  %v4300_v56 = vrot.slane %v20136_v55, 2  ;;  %v23801_v31 = vmax.f32 %v20010_v37, %v23777_v46  ;;  %v4229_v1 = vrot.slane %v20193_v61, 1  ;;  %v4097_v51 = vpop.f32.mrf.mxu0  ;;  %v17279_v24 = vld [vmem:[%s17680_s8 + $0x830] sm:$0xff]   ;;  %v17280_v54 = vld [vmem:[%s17680_s8 + $0x198] sm:$0xff]  }
 0x227   : > { %v4169_v45 = vadd.f32 %v20036_v6, %v4150_v58  ;;  %16030 = vmatpush3.bf16.msra.mxu0 %v23800_v9  ;;  %v4347_v38 = vmax.f32 %v4274_v44, %v4297_v20  ;;  %v4302_v62 = vrot.slane %v20193_v61, 2  ;;  %v4225_v8 = vrot.slane %v4183_v34, 1  ;;  %16066 = vmatpush3.bf16.msra.mxu1 %v23800_v9  ;;  %v20220_v25 = vpop.f32.mrf.mxu1 }
 0x228   : > { %v4167_v28 = vadd.f32 %v20036_v6, %v4148_v48  ;;  %v4151_v12 = vmax.f32 %v23801_v31, %v15618_v17  ;;  %16031 = vmatprep.subr.bf16.mxu0 %v23802_v36  ;;  %v4298_v37 = vrot.slane %v4183_v34, 2  ;;  %16067 = vmatprep.subr.bf16.mxu1 %v23802_v36  ;;  %v23803_v3 = vrot.slane %v20136_v55, 1  ;;  %v15621_v20 = vpop.f32.mrf.mxu0 }
 0x229   : > { %v20215_v46 = vmax.f32 %v4169_v45, 0.0  ;;  %4365 = vst.msk [vmem:[#allocation2 + $0x138] sm:$0xff] %vm1677_vm4, %v4347_v38  ;;  %v4303_v22 = vsel %vm1603_vm3, %v4300_v56, %v4302_v62  ;;  %v4226_v48 = vsel %vm1529_vm2, %v4223_v14, %v4225_v8  ;;  %15976 = vmatmul.mubr.msk.bf16.gmra.mxu0 %vm407_vm1, %v17277_v19 }
 0x22a   : > { %v20217_v0 = vmax.f32 %v4167_v28, 0.0  ;;  %v4170_v58 = vadd.f32 %v20036_v6, %v4151_v12  ;;  %v4230_v5 = vsel %vm1529_vm2, %v23803_v3, %v4229_v1  ;;  %v23804_v44 = vmov %v23803_v3  ;;  %v20237_v12 = vpop.f32.mrf.mxu1  ;;  %16012 = vmatmul.mubr.msk.bf16.gmra.mxu1 %vm407_vm1, %v17278_v29  ;;  %v4110_v19 = vpop.f32.mrf.mxu0  ;;  %15979 = vmatprep.mubr.msk.bf16.mxu0 %vm407_vm1, %v17279_v24 }
 0x22b   : > { %v4228_v16 = vsel %vm1529_vm2, %v4225_v8, %v23804_v44  ;;  %v4277_v17 = vmax.f32 %v20136_v55, %v4230_v5  ;;  %v4275_v45 = vmax.f32 %v20153_v50, %v4226_v48  ;;  %v4299_v31 = vsel %vm1603_vm3, %v4296_v40, %v4298_v37  ;;  %16032 = vmatpush3.bf16.msra.mxu0 %v23802_v36 }
 0x22c   : > { %v4276_v28 = vmax.f32 %v4183_v34, %v4228_v16  ;;  %v4301_v14 = vsel %vm1603_vm3, %v4298_v37, %v4300_v56  ;;  %v4235_v38 = vrot.slane %v20215_v46, 1  ;;  %v4308_v8 = vrot.slane %v20215_v46, 2  ;;  %v20247_v29 = vpop.f32.mrf.mxu1  ;;  %16015 = vmatprep.mubr.msk.bf16.mxu1 %vm407_vm1, %v17280_v54  ;;  %16068 = vmatpush3.bf16.msra.mxu1 %v23802_v36  ;;  %v15622_v44 = vpop.f32.mrf.mxu0  ;;  %v17281_v54 = vld [vmem:[%s17680_s8 + $0x838] sm:$0xff]  }
 0x22d   : > { %v4231_v3 = vrot.slane %v20217_v0, 1  ;;  %v4350_v50 = vmax.f32 %v4277_v17, %v4303_v22  ;;  %v4348_v55 = vmax.f32 %v4275_v45, %v4299_v31  ;;  %v4304_v34 = vrot.slane %v20217_v0, 2  ;;  %v23807_v16 = vld [vmem:[#allocation31_spill] sm:$0xff] }
 0x22e   : > { %v4349_v40 = vmax.f32 %v4276_v28, %v4301_v14  ;;  %v20254_v37 = vmax.f32 %v4170_v58, 0.0  ;;  %v23805_v24 = vmax.f32 %v20016_v13, %v23778_v7  ;;  %v23806_v22 = vmax.f32 %v20025_v32, %v23779_v15  ;;  %16033 = vmatprep.subr.bf16.mxu0 %v23807_v16  ;;  %16069 = vmatprep.subr.bf16.mxu1 %v23807_v16  ;;  %v20278_v58 = vpop.f32.mrf.mxu1  ;;  %v17283_v17 = vld [vmem:[%s17680_s8 + $0x840] sm:$0xff]   ;;  %v4113_v31 = vpop.f32.mrf.mxu0 }
 0x22f   : > { %v4232_v56 = vsel %vm1529_vm2, %v4229_v1, %v4231_v3  ;;  %4368 = vst.msk [vmem:[#allocation2 + $0x150] sm:$0xff] %vm1677_vm4, %v4350_v50  ;;  %4366 = vst.msk [vmem:[#allocation2 + $0x140] sm:$0xff] %vm1677_vm4, %v4348_v55  ;;  %v4305_v32 = vsel %vm1603_vm3, %v4302_v62, %v4304_v34  ;;  %v23808_v7 = vmax.f32 %v20031_v59, %v23780_v33  ;;  %16034 = vmatpush3.bf16.msra.mxu0 %v23807_v16  ;;  %v17284_v59 = vld [vmem:[%s17680_s8 + $0x1a8] sm:$0xff]  }
 0x230   : > { %v4149_v5 = vmax.f32 %v23805_v24, %v4097_v51  ;;  %v4154_v48 = vmax.f32 %v23806_v22, %v15621_v20  ;;  %4367 = vst.msk [vmem:[#allocation2 + $0x148] sm:$0xff] %vm1677_vm4, %v4349_v40  ;;  %v4278_v13 = vmax.f32 %v20193_v61, %v4232_v56  ;;  %v23809_v1 = vmax.f32 %v20049_v41, %v23781_v52  ;;  %v17282_v20 = vld [vmem:[%s17680_s8 + $0x1a0] sm:$0xff]   ;;  %v20293_v50 = vpop.f32.mrf.mxu1 }
 0x231   : > { %v4152_v15 = vmax.f32 %v23808_v7, %v4110_v19  ;;  %v4237_v45 = vrot.slane %v20254_v37, 1  ;;  %v4310_v61 = vrot.slane %v20254_v37, 2  ;;  %v23810_v14 = vmax.f32 %v20058_v39, %v23785_v21  ;;  %16070 = vmatpush3.bf16.msra.mxu1 %v23807_v16  ;;  %15980 = vmatmul.mubr.msk.bf16.gmra.mxu0 %vm407_vm1, %v17281_v54 }
 0x232   : > { %v4155_v51 = vmax.f32 %v23809_v1, %v15622_v44  ;;  %v4168_v28 = vadd.f32 %v20036_v6, %v4149_v5  ;;  %v4173_v62 = vadd.f32 %v20036_v6, %v4154_v48  ;;  %v4351_v33 = vmax.f32 %v4278_v13, %v4305_v32  ;;  %v15625_v5 = vpop.f32.mrf.mxu0  ;;  %16035 = vmatprep.subr.bf16.mxu0 %v19899_v18  ;;  %v20313_v44 = vpop.f32.mrf.mxu1 }
 0x233   : > { %v4171_v41 = vadd.f32 %v20036_v6, %v4152_v15  ;;  %v4153_v19 = vmax.f32 %v23810_v14, %v4113_v31  ;;  %v4238_v55 = vsel %vm1529_vm2, %v4235_v38, %v4237_v45  ;;  %v4311_v40 = vsel %vm1603_vm3, %v4308_v8, %v4310_v61  ;;  %16016 = vmatmul.mubr.msk.bf16.gmra.mxu1 %vm407_vm1, %v17282_v20 }
 0x234   : > { %v4174_v52 = vadd.f32 %v20036_v6, %v4155_v51  ;;  %v4187_v56 = vmax.f32 %v4168_v28, 0.0  ;;  %v20302_v24 = vmax.f32 %v4173_v62, 0.0  ;;  %4369 = vst.msk [vmem:[#allocation2 + $0x158] sm:$0xff] %vm1677_vm4, %v4351_v33  ;;  %v4281_v39 = vmax.f32 %v20215_v46, %v4238_v55  ;;  %15983 = vmatprep.mubr.msk.bf16.mxu0 %vm407_vm1, %v17283_v17  ;;  %v4126_v15 = vpop.f32.mrf.mxu0  ;;  %16019 = vmatprep.mubr.msk.bf16.mxu1 %vm407_vm1, %v17284_v59  ;;  %v20324_v17 = vpop.f32.mrf.mxu1  ;;  %v17286_v55 = vld [vmem:[%s17680_s8 + $0x1b0] ss:$0 sps:$4 sm:$0x11]  }
 0x235   : > { %v20308_v21 = vmax.f32 %v4171_v41, 0.0  ;;  %v4172_v48 = vadd.f32 %v20036_v6, %v4153_v19  ;;  %16036 = vmatpush3.bf16.msra.mxu0 %v19899_v18  ;;  %16071 = vmatprep.subr.bf16.mxu1 %v19899_v18 }
 0x236   : > { %v20310_v22 = vmax.f32 %v4174_v52, 0.0  ;;  %v4233_v13 = vrot.slane %v4187_v56, 1  ;;  %v4306_v54 = vrot.slane %v4187_v56, 2  ;;  %v4243_v32 = vrot.slane %v20302_v24, 1  ;;  %16037 = vmatprep.subr.bf16.mxu0 %v19934_v42  ;;  %v15626_v41 = vpop.f32.mrf.mxu0  ;;  %16072 = vmatpush3.bf16.msra.mxu1 %v19899_v18 }
 0x237   : > { %v4316_v7 = vrot.slane %v20302_v24, 2  ;;  %v4354_v1 = vmax.f32 %v4281_v39, %v4311_v40  ;;  %v4239_v51 = vrot.slane %v20308_v21, 1  ;;  %v4312_v28 = vrot.slane %v20308_v21, 2  ;;  %v17285_v52 = vld [vmem:[%s17680_s8 + $0x848] ss:$0 sps:$4 sm:$0x11]   ;;  %16073 = vmatprep.subr.bf16.mxu1 %v19934_v42 }
 0x238   : > { %v4245_v20 = vrot.slane %v20310_v22, 1  ;;  %v4234_v62 = vsel %vm1529_vm2, %v4231_v3, %v4233_v13  ;;  %v4236_v31 = vsel %vm1529_vm2, %v4233_v13, %v4235_v38  ;;  %v4307_v59 = vsel %vm1603_vm3, %v4304_v34, %v4306_v54  ;;  %v15662_v34 = vpop.f32.mrf.mxu1 }
 0x239   : > { %v4309_v33 = vsel %vm1603_vm3, %v4306_v54, %v4308_v8  ;;  %4372 = vst.msk [vmem:[#allocation2 + $0x170] sm:$0xff] %vm1677_vm4, %v4354_v1  ;;  %v4279_v3 = vmax.f32 %v20217_v0, %v4234_v62  ;;  %v4280_v14 = vmax.f32 %v4187_v56, %v4236_v31  ;;  %v4240_v38 = vsel %vm1529_vm2, %v4237_v45, %v4239_v51  ;;  %v4129_v0 = vpop.f32.mrf.mxu0  ;;  %v17287_v45 = vld [vmem:[%s17680_s8 + $0x320] sm:$0xff]   ;;  %v17288_v62 = vld [vmem:[%s17680_s8 + $0x4d8] sm:$0xff]  }
 0x23a   : > { %v4313_v19 = vsel %vm1603_vm3, %v4310_v61, %v4312_v28  ;;  %v4282_v46 = vmax.f32 %v20254_v37, %v4240_v38  ;;  %v4246_v8 = vsel %vm1529_vm2, %v4243_v32, %v4245_v20  ;;  %v4318_v40 = vrot.slane %v20310_v22, 2  ;;  %16038 = vmatpush3.bf16.msra.mxu0 %v19934_v42  ;;  %v20359_v37 = vpop.f32.mrf.mxu1  ;;  %v17481_v31 = vld [vmem:[%s23510_s1 + $0x38] ss:$0 sps:$4 sm:$0xff]   ;;  %16074 = vmatpush3.bf16.msra.mxu1 %v19934_v42 }
 0x23b   : > { %v4191_v39 = vmax.f32 %v4172_v48, 0.0  ;;  %v4352_v56 = vmax.f32 %v4279_v3, %v4307_v59  ;;  %v4353_v61 = vmax.f32 %v4280_v14, %v4309_v33  ;;  %v4285_v13 = vmax.f32 %v20302_v24, %v4246_v8  ;;  %23812 = vst [vmem:[#allocation11_spill] sm:$0xff] %v20359_v37  ;;  %16975 = vmatprep.subr.msk.bf16.mxu0 %vm438_vm0, %v17481_v31  ;;  %v20369_v41 = vpop.f32.mrf.mxu0  ;;  %v17305_v37 = vld [vmem:[%s17680_s8 + $0x368] ss:$0 sps:$4 sm:$0x11]  }
 0x23c   : > { %v23811_v54 = vmax.f32 %v20064_v63, %v23786_v60  ;;  %v4355_v48 = vmax.f32 %v4282_v46, %v4313_v19  ;;  %v4319_v59 = vsel %vm1603_vm3, %v4316_v7, %v4318_v40  ;;  %15984 = vmatmul.mubr.msk.bf16.gmra.mxu0 %vm407_vm1, %v17285_v52  ;;  %v23814_v14 = vmax.f32 %v20112_v30, %v19955_v27  ;;  %v20382_v19 = vpop.f32.mrf.mxu1 }
 0x23d   : > { %v4241_v33 = vrot.slane %v4191_v39, 1  ;;  %v4314_v24 = vrot.slane %v4191_v39, 2  ;;  %4370 = vst.msk [vmem:[#allocation2 + $0x160] sm:$0xff] %vm1677_vm4, %v4352_v56  ;;  %4371 = vst.msk [vmem:[#allocation2 + $0x168] sm:$0xff] %vm1677_vm4, %v4353_v61  ;;  %v4358_v63 = vmax.f32 %v4285_v13, %v4319_v59  ;;  %16020 = vmatmul.mubr.msk.bf16.gmra.mxu1 %vm407_vm1, %v17286_v55  ;;  %16039 = vmatprep.mubr.msk.bf16.mxu0 %vm407_vm1, %v17287_v45 }
 0x23e   : > { %v4158_v1 = vmax.f32 %v23811_v54, %v15625_v5  ;;  %v23813_v5 = vmax.f32 %v20093_v23, %v23793_v47  ;;  %v4157_v38 = vmax.f32 %v23814_v14, %v4129_v0  ;;  %4373 = vst.msk [vmem:[#allocation2 + $0x178] sm:$0xff] %vm1677_vm4, %v4355_v48  ;;  %v20390_v47 = vpop.f32.mrf.mxu0  ;;  %v20396_v55 = vpop.f32.mrf.mxu1  ;;  %16075 = vmatprep.mubr.msk.bf16.mxu1 %vm407_vm1, %v17288_v62 }
 0x23f   : > { %v4242_v52 = vsel %vm1529_vm2, %v4239_v51, %v4241_v33  ;;  %v4244_v34 = vsel %vm1529_vm2, %v4241_v33, %v4243_v32  ;;  %v4315_v46 = vsel %vm1603_vm3, %v4312_v28, %v4314_v24  ;;  %v4317_v23 = vsel %vm1603_vm3, %v4314_v24, %v4316_v7  ;;  %4376 = vst.msk [vmem:[#allocation2 + $0x190] sm:$0xff] %vm1677_vm4, %v4358_v63  ;;  %v17289_v28 = vld [vmem:[%s17680_s8 + $0x328] sm:$0xff]   ;;  %v17291_v33 = vld [vmem:[%s17680_s8 + $0x330] sm:$0xff]  }
 0x240   : > { %v4177_v60 = vadd.f32 %v20036_v6, %v4158_v1  ;;  %v4156_v3 = vmax.f32 %v23813_v5, %v4126_v15  ;;  %v4283_v27 = vmax.f32 %v20308_v21, %v4242_v52  ;;  %v4284_v30 = vmax.f32 %v4191_v39, %v4244_v34  ;;  %16976 = vmatprep.subr.msk.bf16.mxu1 %vm438_vm0, %v17481_v31  ;;  %v20401_v7 = vpop.f32.mrf.mxu0  ;;  %v20404_v45 = vpop.f32.mrf.mxu1  ;;  %v17290_v21 = vld [vmem:[%s17680_s8 + $0x4e0] sm:$0xff]   ;;  %v17292_v24 = vld [vmem:[%s17680_s8 + $0x4e8] sm:$0xff]  }
 0x241   : > { %v4176_v32 = vadd.f32 %v20036_v6, %v4157_v38 }
 0x242   : > { %v4196_v15 = vmax.f32 %v4177_v60, 0.0  ;;  %v4175_v51 = vadd.f32 %v20036_v6, %v4156_v3  ;;  %v4356_v8 = vmax.f32 %v4283_v27, %v4315_v46  ;;  %v4357_v0 = vmax.f32 %v4284_v30, %v4317_v23  ;;  %v20407_v61 = vpop.f32.mrf.mxu0  ;;  %v20411_v54 = vpop.f32.mrf.mxu1 }
 0x243   : > { %v4195_v56 = vmax.f32 %v4176_v32, 0.0 }
 0x244   : > { %v4194_v39 = vmax.f32 %v4175_v51, 0.0  ;;  %4374 = vst.msk [vmem:[#allocation2 + $0x180] sm:$0xff] %vm1677_vm4, %v4356_v8  ;;  %4375 = vst.msk [vmem:[#allocation2 + $0x188] sm:$0xff] %vm1677_vm4, %v4357_v0  ;;  %v4251_v13 = vrot.slane %v4196_v15, 1  ;;  %v20413_v59 = vpop.f32.mrf.mxu0  ;;  %16040 = vmatmul.mubr.msk.bf16.vlgmr.msra.gmra.mxu0 %vm407_vm1, %v17289_v28  ;;  %v4324_v63 = vrot.slane %v4196_v15, 2  ;;  %v20418_v60 = vpop.f32.mrf.mxu1  ;;  %v17294_v8 = vld [vmem:[%s17680_s8 + $0x4f0] sm:$0xff]  }
 0x245   : > { %v4249_v31 = vrot.slane %v4195_v56, 1  ;;  %v4322_v48 = vrot.slane %v4195_v56, 2  ;;  %16076 = vmatmul.mubr.msk.bf16.vlgmr.msra.gmra.mxu1 %vm407_vm1, %v17290_v21  ;;  %16096 = vmatpush3.bf16.msra.mxu0 %v23787_v26  ;;  %v17483_v21 = vld [vmem:[%s23510_s1 + $0x28] sm:$0xff]  }
 0x246   : > { %v4247_v1 = vrot.slane %v4194_v39, 1  ;;  %v4320_v62 = vrot.slane %v4194_v39, 2  ;;  %v20430_v52 = vpop.f32.mrf.mxu0  ;;  %16132 = vmatpush3.bf16.msra.mxu1 %v23787_v26  ;;  %v20435_v27 = vpop.f32.mrf.mxu1  ;;  %16043 = vmatprep.mubr.msk.bf16.mxu0 %vm407_vm1, %v17291_v33  ;;  %v17293_v26 = vld [vmem:[%s17680_s8 + $0x338] sm:$0xff]  }
 0x247   : > { %v4252_v38 = vsel %vm1529_vm2, %v4249_v31, %v4251_v13  ;;  %v4325_v30 = vsel %vm1603_vm3, %v4322_v48, %v4324_v63  ;;  %16079 = vmatprep.mubr.msk.bf16.mxu1 %vm407_vm1, %v17292_v24  ;;  %v17297_v24 = vld [vmem:[%s17680_s8 + $0x348] sm:$0xff]  }
 0x248   : > { %v4248_v5 = vsel %vm1529_vm2, %v4245_v20, %v4247_v1  ;;  %v4321_v3 = vsel %vm1603_vm3, %v4318_v40, %v4320_v62  ;;  %v4250_v14 = vsel %vm1529_vm2, %v4247_v1, %v4249_v31  ;;  %v4288_v23 = vmax.f32 %v4195_v56, %v4252_v38  ;;  %v17482_v40 = vld [vmem:[%s23510_s1 + $0x30] sm:$0xff]   ;;  %v20441_v15 = vpop.f32.mrf.mxu0  ;;  %v20446_v28 = vpop.f32.mrf.mxu1  ;;  %v17296_v56 = vld [vmem:[%s17680_s8 + $0x4f8] sm:$0xff]   ;;  %v17300_v38 = vld [vmem:[%s17680_s8 + $0x508] sm:$0xff]  }
 0x249   : > { %v4286_v34 = vmax.f32 %v20310_v22, %v4248_v5  ;;  %v4287_v46 = vmax.f32 %v4194_v39, %v4250_v14  ;;  %v4323_v20 = vsel %vm1603_vm3, %v4320_v62, %v4322_v48  ;;  %16097 = vmatprep.subr.bf16.mxu0 %v17482_v40  ;;  %16133 = vmatprep.subr.bf16.mxu1 %v17482_v40  ;;  %v17295_v39 = vld [vmem:[%s17680_s8 + $0x340] sm:$0xff]   ;;  %v17299_v14 = vld [vmem:[%s17680_s8 + $0x350] sm:$0xff]  }
 0x24a   : > { %v4361_v32 = vmax.f32 %v4288_v23, %v4325_v30  ;;  %16098 = vmatpush3.bf16.msra.mxu0 %v17482_v40  ;;  %v20449_v0 = vpop.f32.mrf.mxu0  ;;  %v20459_v13 = vpop.f32.mrf.mxu1  ;;  %16134 = vmatpush3.bf16.msra.mxu1 %v17482_v40  ;;  %v17298_v5 = vld [vmem:[%s17680_s8 + $0x500] sm:$0xff]  }
 0x24b   : > { %v4359_v22 = vmax.f32 %v4286_v34, %v4321_v3  ;;  %v4360_v51 = vmax.f32 %v4287_v46, %v4323_v20  ;;  %16099 = vmatprep.subr.bf16.mxu0 %v17483_v21  ;;  %16135 = vmatprep.subr.bf16.mxu1 %v17483_v21  ;;  %v8408_v20 = vld [vmem:[#allocation2 + $0x50] ss:$10 sm:$0xff]  ;;  %v8406_v30 = vld [vmem:[#allocation2] ss:$10 sm:$0xff] }
 0x24c   : > { %4379 = vst.msk [vmem:[#allocation2 + $0x1a8] sm:$0xff] %vm1677_vm4, %v4361_v32  ;;  %v20461_v1 = vpop.f32.mrf.mxu0  ;;  %16044 = vmatmul.mubr.msk.bf16.gmra.mxu0 %vm407_vm1, %v17293_v26  ;;  %v20464_v62 = vpop.f32.mrf.mxu1 }
 0x24d   : > { %4377 = vst.msk [vmem:[#allocation2 + $0x198] sm:$0xff] %vm1677_vm4, %v4359_v22  ;;  %4378 = vst.msk [vmem:[#allocation2 + $0x1a0] sm:$0xff] %vm1677_vm4, %v4360_v51  ;;  %16080 = vmatmul.mubr.msk.bf16.gmra.mxu1 %vm407_vm1, %v17294_v8  ;;  %16047 = vmatprep.mubr.msk.bf16.mxu0 %vm407_vm1, %v17295_v39  ;;  %v17301_v22 = vld [vmem:[%s17680_s8 + $0x358] sm:$0xff]   ;;  %v20510_v51 = vpack.c.bf16 %v8408_v20, %v8406_v30  ;;  %v17302_v8 = vld [vmem:[%s17680_s8 + $0x510] sm:$0xff]   ;;  %v4800_v20 = vmax.f32 %v19983_v11, %v20369_v41 }
 0x24e   : > { %16100 = vmatpush3.bf16.msra.mxu0 %v17483_v21  ;;  %v20467_v31 = vpop.f32.mrf.mxu0  ;;  %16083 = vmatprep.mubr.msk.bf16.mxu1 %vm407_vm1, %v17296_v56  ;;  %v20471_v48 = vpop.f32.mrf.mxu1  ;;  %v4799_v11 = vmax.f32 %v20076_v35, %v20407_v61  ;;  %v23822_v61 = vld [vmem:[#allocation23_spill] sm:$0xff] }
 0x24f   : > { %16136 = vmatpush3.bf16.msra.mxu1 %v17483_v21  ;;  %16101 = vmatprep.subr.bf16.mxu0 %v23800_v9  ;;  %23815 = vst [vmem:[#allocation33_spill] sm:$0xff] %v20510_v51  ;;  %v17303_v21 = vld [vmem:[%s17680_s8 + $0x360] sm:$0xff]   ;;  %v5028_v35 = vmax.f32 %v4800_v20, %v20382_v19 }
 0x250   : > { %v20474_v33 = vpop.f32.mrf.mxu0  ;;  %16137 = vmatprep.subr.bf16.mxu1 %v23800_v9  ;;  %v20478_v63 = vpop.f32.mrf.mxu1 }
 0x252   : > { %16102 = vmatpush3.bf16.msra.mxu0 %v23800_v9  ;;  %v20482_v3 = vpop.f32.mrf.mxu0  ;;  %v20487_v34 = vpop.f32.mrf.mxu1 }
 0x253   : > { %16103 = vmatprep.subr.bf16.mxu0 %v23802_v36  ;;  %16138 = vmatpush3.bf16.msra.mxu1 %v23800_v9 }
 0x254   : > { %v20490_v46 = vpop.f32.mrf.mxu0  ;;  %16048 = vmatmul.mubr.msk.bf16.gmra.mxu0 %vm407_vm1, %v17297_v24  ;;  %16139 = vmatprep.subr.bf16.mxu1 %v23802_v36  ;;  %v20494_v23 = vpop.f32.mrf.mxu1 }
 0x255   : > { %16084 = vmatmul.mubr.msk.bf16.gmra.mxu1 %vm407_vm1, %v17298_v5  ;;  %16051 = vmatprep.mubr.msk.bf16.mxu0 %vm407_vm1, %v17299_v14  ;;  %v8454_v5 = vshll.u32 %v20510_v51, 16 }
 0x256   : > { %16104 = vmatpush3.bf16.msra.mxu0 %v23802_v36  ;;  %v20498_v40 = vpop.f32.mrf.mxu0  ;;  %16087 = vmatprep.mubr.msk.bf16.mxu1 %vm407_vm1, %v17300_v38  ;;  %v20502_v9 = vpop.f32.mrf.mxu1 }
 0x257   : > { %16140 = vmatpush3.bf16.msra.mxu1 %v23802_v36  ;;  %16105 = vmatprep.subr.bf16.mxu0 %v23807_v16  ;;  %v17304_v36 = vld [vmem:[%s17680_s8 + $0x518] sm:$0xff]  }
 0x258   : > { %v20506_v26 = vpop.f32.mrf.mxu0  ;;  %16141 = vmatprep.subr.bf16.mxu1 %v23807_v16  ;;  %v20512_v32 = vpop.f32.mrf.mxu1 }
 0x259   : > { %23816 = vst [vmem:[#allocation13_spill] sm:$0xff] %v20512_v32 }
 0x25a   : > { %16106 = vmatpush3.bf16.msra.mxu0 %v23807_v16  ;;  %v20517_v39 = vpop.f32.mrf.mxu0  ;;  %v20521_v56 = vpop.f32.mrf.mxu1 }
 0x25b   : > { %16107 = vmatprep.subr.bf16.mxu0 %v19899_v18  ;;  %23817 = vst [vmem:[#allocation14_spill] sm:$0xff] %v20521_v56  ;;  %16142 = vmatpush3.bf16.msra.mxu1 %v23807_v16  ;;  %v8412_v16 = vld [vmem:[#allocation2 + $0xf0] ss:$10 sm:$0xff] }
 0x25c   : > { %v20524_v24 = vpop.f32.mrf.mxu0  ;;  %16052 = vmatmul.mubr.msk.bf16.gmra.mxu0 %vm407_vm1, %v17301_v22  ;;  %16143 = vmatprep.subr.bf16.mxu1 %v19899_v18  ;;  %v20529_v14 = vpop.f32.mrf.mxu1  ;;  %v8410_v22 = vld [vmem:[#allocation2 + $0xa0] ss:$10 sm:$0xff] }
 0x25d   : > { %23818 = vst [vmem:[#allocation30_spill] sm:$0xff] %v20529_v14  ;;  %16088 = vmatmul.mubr.msk.bf16.gmra.mxu1 %vm407_vm1, %v17302_v8  ;;  %16055 = vmatprep.mubr.msk.bf16.mxu0 %vm407_vm1, %v17303_v21  ;;  %v4798_v8 = vmax.f32 %v20018_v4, %v20390_v47  ;;  %v4801_v21 = vmax.f32 %v20051_v49, %v20401_v7  ;;  %v8456_v14 = vrot.slane %v8454_v5, 1  ;;  %v17307_v56 = vld [vmem:[%s17680_s8 + $0x690] sm:$0xff]   ;;  %v17308_v7 = vld [vmem:[%s17680_s8 + $0x848] sm:$0xff]   ;;  %v8452_v5 = vshrl.u32 %v20510_v51, 16 }
 0x25e   : > { %v20533_v38 = vpop.f32.mrf.mxu0  ;;  %16091 = vmatprep.mubr.msk.bf16.mxu1 %vm407_vm1, %v17304_v36  ;;  %16108 = vmatpush3.bf16.msra.mxu0 %v19899_v18  ;;  %v20539_v30 = vpop.f32.mrf.mxu1  ;;  %v20555_v32 = vpack.c.bf16 %v8412_v16, %v8410_v22  ;;  %v23821_v4 = vld [vmem:[#allocation22_spill] sm:$0xff] }
 0x25f   : > { %23819 = vst [vmem:[#allocation16_spill] sm:$0xff] %v20539_v30  ;;  %16144 = vmatpush3.bf16.msra.mxu1 %v19899_v18  ;;  %16109 = vmatprep.subr.bf16.mxu0 %v19934_v42  ;;  %v4804_v18 = vmax.f32 %v20104_v57, %v20413_v59  ;;  %v17306_v30 = vld [vmem:[%s17680_s8 + $0x520] ss:$0 sps:$4 sm:$0x11]   ;;  %v4802_v47 = vmax.f32 %v23821_v4, %v20430_v52  ;;  %v23590_v52 = vmov 0.0  }
 0x260   : > { %v15698_v36 = vpop.f32.mrf.mxu0  ;;  %16145 = vmatprep.subr.bf16.mxu1 %v19934_v42  ;;  %v15734_v41 = vpop.f32.mrf.mxu1  ;;  %23820 = vst [vmem:[#allocation18_spill] sm:$0xff] %v20555_v32  ;;  %v4805_v57 = vmax.f32 %v23822_v61, %v20441_v15  ;;  %v4803_v59 = vmax.f32 %v20158_v10, %v20449_v0  ;;  %v5026_v22 = vmax.f32 %v4798_v8, %v20396_v55  ;;  %v8459_v55 = vshll.u32 %v20555_v32, 16 }
 0x261   : > { %v5029_v36 = vmax.f32 %v4801_v21, %v20404_v45  ;;  %v20577_v19 = vor.u32 %v8456_v14, %v8452_v5  ;;  %v5027_v10 = vmax.f32 %v4799_v11, %v20411_v54  ;;  %v20581_v15 = vmax.f32 %v4804_v18, %v20418_v60  ;;  %v17311_v18 = vld [vmem:[%s17680_s8 + $0x6a0] sm:$0xff]  }
 0x262   : > { %v20559_v49 = vpop.f32.mrf.mxu0  ;;  %16110 = vmatpush3.bf16.msra.mxu0 %v19934_v42  ;;  %v20569_v16 = vpop.f32.mrf.mxu1  ;;  %v20587_v45 = vmax.f32 %v4802_v47, %v20435_v27  ;;  %v4806_v54 = vmax.f32 %v20186_v53, %v20467_v31  ;;  %v4809_v60 = vmax.f32 %v20206_v43, %v20474_v33  ;;  %v20600_v27 = vmax.f32 %v4803_v59, %v20459_v13  ;;  %v17309_v13 = vld [vmem:[%s17680_s8 + $0x698] sm:$0xff]  }
 0x263   : > { %16146 = vmatpush3.bf16.msra.mxu1 %v19934_v42  ;;  %16167 = vmatprep.subr.bf16.mxu0 %v23590_v52  ;;  %v4807_v53 = vmax.f32 %v20220_v25, %v20482_v3  ;;  %v4812_v43 = vmax.f32 %v20237_v12, %v20490_v46  ;;  %v4811_v33 = vmax.f32 %v20293_v50, %v20517_v39  ;;  %v17310_v3 = vld [vmem:[%s17680_s8 + $0x850] sm:$0xff]  }
 0x264   : > { %v15753_v41 = vpop.f32.mrf.mxu0  ;;  %16056 = vmatmul.mubr.msk.bf16.gmra.mxu0 %vm407_vm1, %v17305_v37  ;;  %16195 = vmatprep.subr.bf16.mxu1 %v23590_v52  ;;  %v15789_v0 = vpop.f32.mrf.mxu1  ;;  %v4808_v37 = vmax.f32 %v20169_v2, %v20461_v1  ;;  %v4810_v1 = vmax.f32 %v20247_v29, %v20498_v40  ;;  %v20620_v29 = vmax.f32 %v4806_v54, %v20471_v48  ;;  %v17312_v40 = vld [vmem:[%s17680_s8 + $0x858] sm:$0xff]  }
 0x265   : > { %v5256_v42 = vmax.f32 %v5028_v35, %v15753_v41  ;;  %16092 = vmatmul.mubr.msk.bf16.gmra.mxu1 %vm407_vm1, %v17306_v30  ;;  %16111 = vmatprep.mubr.msk.bf16.mxu0 %vm407_vm1, %v17307_v56  ;;  %v20597_v56 = vmax.f32 %v4805_v57, %v20446_v28  ;;  %v4813_v28 = vmax.f32 %v20278_v58, %v20506_v26  ;;  %v17323_v26 = vld [vmem:[%s23512_s3 + $0x158] sm:$0xff]  }
 0x266   : > { %v5176_v14 = vpop.f32.mrf.mxu0  ;;  %16147 = vmatprep.mubr.msk.bf16.mxu1 %vm407_vm1, %v17308_v7  ;;  %v5404_v2 = vpop.f32.mrf.mxu1  ;;  %v20617_v12 = vmax.f32 %v4808_v37, %v20464_v62  ;;  %v20623_v58 = vmax.f32 %v4809_v60, %v20478_v63  ;;  %v4816_v46 = vmax.f32 %v20313_v44, %v20524_v24  ;;  %v4814_v39 = vmax.f32 %v20324_v17, %v20533_v38  ;;  %v17324_v63 = vld [vmem:[%s23512_s3 + $0x18] sm:$0xff]   ;;  %v23823_v38 = vld [vmem:[#allocation13_spill] sm:$0xff] }
 0x267   : > { %v5484_v20 = vmax.f32 %v5256_v42, %v15789_v0  ;;  %v5254_v30 = vmax.f32 %v5026_v22, %v5176_v14  ;;  %v20638_v44 = vmax.f32 %v4807_v53, %v20487_v34  ;;  %v20641_v24 = vmax.f32 %v4812_v43, %v20494_v23  ;;  %v23824_v61 = vld [vmem:[#allocation14_spill] sm:$0xff]  ;;  %v23826_v0 = vld [vmem:[#allocation16_spill] sm:$0xff]  ;;  %v23827_v37 = vld [vmem:[#allocation11_spill] sm:$0xff] }
 0x268   : > { %v15754_v31 = vpop.f32.mrf.mxu0  ;;  %v15790_v25 = vpop.f32.mrf.mxu1  ;;  %v20644_v7 = vmax.f32 %v4810_v1, %v20502_v9  ;;  %v20650_v35 = vmax.f32 %v4813_v28, %v23823_v38  ;;  %v20653_v57 = vmax.f32 %v4811_v33, %v23824_v61  ;;  %v20658_v23 = vrot.slane %v8459_v55, 1  ;;  %v23825_v9 = vld [vmem:[#allocation30_spill] sm:$0xff]  ;;  %v20687_v53 = vld [vmem:[%s23511_s2] ss:$0 sm:$0xff]  ;;  %v17313_v28 = vld [vmem:[%s17680_s8 + $0x6a8] sm:$0xff]  }
 0x269   : > { %v5503_v8 = vadd.f32 %v20036_v6, %v5484_v20  ;;  %v5482_v21 = vmax.f32 %v5254_v30, %v5404_v2  ;;  %v5257_v11 = vmax.f32 %v5029_v36, %v15754_v31  ;;  %v20661_v22 = vmax.f32 %v4816_v46, %v23825_v9  ;;  %v17326_v20 = vld [vmem:[%s23512_s3 + $0x10] sm:$0xff]   ;;  %23828 = vst [vmem:[#allocation24_spill] sm:$0xff] %v20687_v53 }
 0x26a   : > { %v5179_v50 = vpop.f32.mrf.mxu0  ;;  %v5407_v47 = vpop.f32.mrf.mxu1  ;;  %v20671_v55 = vmax.f32 %v4814_v39, %v23826_v0  ;;  %v4815_v54 = vmax.f32 %v23827_v37, %v20559_v49 }
 0x26b   : > { %v5501_v62 = vadd.f32 %v20036_v6, %v5482_v21  ;;  %v5485_v4 = vmax.f32 %v5257_v11, %v15790_v25  ;;  %v5255_v48 = vmax.f32 %v5027_v10, %v5179_v50  ;;  %v20646_v5 = vmax.f32 %v5503_v8, 0.0  ;;  %v17314_v11 = vld [vmem:[%s17680_s8 + $0x860] sm:$0xff]   ;;  %v17315_v25 = vld [vmem:[%s17680_s8 + $0x6b0] sm:$0xff]  }
 0x26c   : > { %v15757_v17 = vpop.f32.mrf.mxu0  ;;  %16112 = vmatmul.mubr.msk.bf16.vlgmr.msra.gmra.mxu0 %vm407_vm1, %v17309_v13  ;;  %v15793_v59 = vpop.f32.mrf.mxu1 }
 0x26d   : > { %v5504_v34 = vadd.f32 %v20036_v6, %v5485_v4  ;;  %16148 = vmatmul.mubr.msk.bf16.vlgmr.msra.gmra.mxu1 %vm407_vm1, %v17310_v3  ;;  %16115 = vmatprep.mubr.msk.bf16.mxu0 %vm407_vm1, %v17311_v18  ;;  %v20663_v36 = vmax.f32 %v5501_v62, 0.0  ;;  %v5483_v41 = vmax.f32 %v5255_v48, %v5407_v47  ;;  %v5260_v10 = vmax.f32 %v20581_v15, %v15757_v17  ;;  %v17325_v6 = vld [vmem:[%s23512_s3 + $0x150] sm:$0xff]   ;;  %v17331_v47 = vld [vmem:[%s23512_s3 + $0x148] sm:$0xff]  }
 0x26e   : > { %v5192_v42 = vpop.f32.mrf.mxu0  ;;  %16151 = vmatprep.mubr.msk.bf16.mxu1 %vm407_vm1, %v17312_v40  ;;  %16168 = vmatpush3.bf16.msra.mxu0 %v17323_v26  ;;  %v5420_v15 = vpop.f32.mrf.mxu1  ;;  %v5561_v30 = vrot.slane %v20646_v5, 1  ;;  %v5634_v2 = vrot.slane %v20646_v5, 2  ;;  %v17316_v26 = vld [vmem:[%s17680_s8 + $0x868] sm:$0xff]  }
 0x26f   : > { %v20675_v60 = vmax.f32 %v5504_v34, 0.0  ;;  %v5258_v14 = vmax.f32 %v20587_v45, %v5192_v42  ;;  %16196 = vmatpush3.bf16.msra.mxu1 %v17324_v63  ;;  %16169 = vmatprep.subr.bf16.mxu0 %v23590_v52  ;;  %v5502_v45 = vadd.f32 %v20687_v53, %v5483_v41  ;;  %v5488_v43 = vmax.f32 %v5260_v10, %v15793_v59  ;;  %v17332_v59 = vld [vmem:[%s23512_s3 + $0x8] sm:$0xff]  }
 0x270   : > { %v15758_v1 = vpop.f32.mrf.mxu0  ;;  %16197 = vmatprep.subr.bf16.mxu1 %v23590_v52  ;;  %v15794_v21 = vpop.f32.mrf.mxu1  ;;  %v5558_v3 = vrot.slane %v20663_v36, 1  ;;  %v5631_v18 = vrot.slane %v20663_v36, 2 }
 0x271   : > { %v5563_v31 = vrot.slane %v20675_v60, 1  ;;  %v5636_v13 = vrot.slane %v20675_v60, 2  ;;  %v5486_v33 = vmax.f32 %v5258_v14, %v5420_v15  ;;  %v5261_v8 = vmax.f32 %v20597_v56, %v15758_v1 }
 0x272   : > { %v5521_v46 = vmax.f32 %v5502_v45, 0.0  ;;  %v5507_v50 = vadd.f32 %v20687_v53, %v5488_v43  ;;  %v5195_v40 = vpop.f32.mrf.mxu0  ;;  %16170 = vmatpush3.bf16.msra.mxu0 %v17325_v6  ;;  %v5423_v48 = vpop.f32.mrf.mxu1 }
 0x273   : > { %v5564_v39 = vsel %vm1529_vm2, %v5561_v30, %v5563_v31  ;;  %v5637_v56 = vsel %vm1603_vm3, %v5634_v2, %v5636_v13  ;;  %v5505_v62 = vadd.f32 %v20687_v53, %v5486_v33  ;;  %v5489_v4 = vmax.f32 %v5261_v8, %v15794_v21  ;;  %16198 = vmatpush3.bf16.msra.mxu1 %v17326_v20  ;;  %v17317_v21 = vld [vmem:[%s17680_s8 + $0x6b8] sm:$0xff]  }
 0x274   : > { %v5615_v63 = vmax.f32 %v20646_v5, %v5564_v39  ;;  %v5559_v17 = vrot.slane %v5521_v46, 1  ;;  %v5632_v38 = vrot.slane %v5521_v46, 2  ;;  %v20712_v61 = vmax.f32 %v5507_v50, 0.0  ;;  %v15761_v34 = vpop.f32.mrf.mxu0  ;;  %16116 = vmatmul.mubr.msk.bf16.gmra.mxu0 %vm407_vm1, %v17313_v28  ;;  %16171 = vmatprep.subr.bf16.mxu0 %v23590_v52  ;;  %v15797_v42 = vpop.f32.mrf.mxu1  ;;  %v17318_v50 = vld [vmem:[%s17680_s8 + $0x870] sm:$0xff]  }
 0x275   : > { %v20719_v9 = vmax.f32 %v5505_v62, 0.0  ;;  %v5508_v41 = vadd.f32 %v20687_v53, %v5489_v4  ;;  %v5259_v10 = vmax.f32 %v20600_v27, %v5195_v40  ;;  %v5264_v5 = vmax.f32 %v20617_v12, %v15761_v34  ;;  %16152 = vmatmul.mubr.msk.bf16.gmra.mxu1 %vm407_vm1, %v17314_v11  ;;  %16119 = vmatprep.mubr.msk.bf16.mxu0 %vm407_vm1, %v17315_v25  ;;  %v17319_v40 = vld [vmem:[%s17680_s8 + $0x6c0] sm:$0xff]  }
 0x276   : > { %v5688_v6 = vmax.f32 %v5615_v63, %v5637_v56  ;;  %v5560_v0 = vsel %vm1529_vm2, %v5558_v3, %v5559_v17  ;;  %v5562_v14 = vsel %vm1529_vm2, %v5559_v17, %v5561_v30  ;;  %v5633_v15 = vsel %vm1603_vm3, %v5631_v18, %v5632_v38  ;;  %v5208_v20 = vpop.f32.mrf.mxu0  ;;  %16155 = vmatprep.mubr.msk.bf16.mxu1 %vm407_vm1, %v17316_v26  ;;  %v5436_v1 = vpop.f32.mrf.mxu1  ;;  %v17333_v30 = vld [vmem:[%s23512_s3 + $0x140] sm:$0xff]  }
 0x277   : > { %v5613_v27 = vmax.f32 %v20663_v36, %v5560_v0  ;;  %v5614_v45 = vmax.f32 %v5521_v46, %v5562_v14  ;;  %v5635_v12 = vsel %vm1603_vm3, %v5632_v38, %v5634_v2  ;;  %v5569_v43 = vrot.slane %v20712_v61, 1  ;;  %16199 = vmatprep.subr.bf16.mxu1 %v23590_v52  ;;  %16172 = vmatpush3.bf16.msra.mxu0 %v17331_v47 }
 0x278   : > { %5706 = vst.msk [vmem:[#allocation2 + $0x1c0] sm:$0xff] %vm1677_vm4, %v5688_v6  ;;  %v5642_v28 = vrot.slane %v20712_v61, 2  ;;  %v5565_v36 = vrot.slane %v20719_v9, 1  ;;  %v5638_v2 = vrot.slane %v20719_v9, 2  ;;  %v20741_v33 = vmax.f32 %v5508_v41, 0.0  ;;  %v15762_v8 = vpop.f32.mrf.mxu0  ;;  %16200 = vmatpush3.bf16.msra.mxu1 %v17332_v59  ;;  %16173 = vmatprep.subr.bf16.mxu0 %v23590_v52  ;;  %v15798_v46 = vpop.f32.mrf.mxu1 }
 0x279   : > { %v5686_v11 = vmax.f32 %v5613_v27, %v5633_v15  ;;  %v5687_v25 = vmax.f32 %v5614_v45, %v5635_v12  ;;  %v5487_v3 = vmax.f32 %v5259_v10, %v5423_v48  ;;  %v5492_v18 = vmax.f32 %v5264_v5, %v15797_v42  ;;  %16201 = vmatprep.subr.bf16.mxu1 %v23590_v52  ;;  %v17320_v48 = vld [vmem:[%s17680_s8 + $0x878] sm:$0xff]  }
 0x27a   : > { %v5566_v26 = vsel %vm1529_vm2, %v5563_v31, %v5565_v36  ;;  %v5639_v39 = vsel %vm1603_vm3, %v5636_v13, %v5638_v2  ;;  %v5571_v56 = vrot.slane %v20741_v33, 1  ;;  %v5644_v62 = vrot.slane %v20741_v33, 2  ;;  %v5211_v4 = vpop.f32.mrf.mxu0  ;;  %v5439_v38 = vpop.f32.mrf.mxu1  ;;  %v17334_v13 = vld [vmem:[%s23512_s3] sm:$0xff]  }
 0x27b   : > { %5704 = vst.msk [vmem:[#allocation2 + $0x1b0] sm:$0xff] %vm1677_vm4, %v5686_v11  ;;  %5705 = vst.msk [vmem:[#allocation2 + $0x1b8] sm:$0xff] %vm1677_vm4, %v5687_v25  ;;  %v5616_v47 = vmax.f32 %v20675_v60, %v5566_v26  ;;  %v5506_v31 = vadd.f32 %v20687_v53, %v5487_v3  ;;  %v5511_v63 = vadd.f32 %v20687_v53, %v5492_v18  ;;  %16174 = vmatpush3.bf16.msra.mxu0 %v17333_v30  ;;  %v17321_v3 = vld [vmem:[%s17680_s8 + $0x6c8] sm:$0xff]  }
 0x27c   : > { %v5262_v17 = vmax.f32 %v20620_v29, %v5208_v20  ;;  %v5572_v34 = vsel %vm1529_vm2, %v5569_v43, %v5571_v56  ;;  %v5645_v60 = vsel %vm1603_vm3, %v5642_v28, %v5644_v62  ;;  %v5265_v29 = vmax.f32 %v20623_v58, %v15762_v8  ;;  %v15765_v41 = vpop.f32.mrf.mxu0  ;;  %16120 = vmatmul.mubr.msk.bf16.gmra.mxu0 %vm407_vm1, %v17317_v21  ;;  %v15801_v0 = vpop.f32.mrf.mxu1 }
 0x27d   : > { %v5263_v59 = vmax.f32 %v20638_v44, %v5211_v4  ;;  %v5689_v10 = vmax.f32 %v5616_v47, %v5639_v39  ;;  %v5619_v5 = vmax.f32 %v20712_v61, %v5572_v34  ;;  %v5525_v42 = vmax.f32 %v5506_v31, 0.0  ;;  %16156 = vmatmul.mubr.msk.bf16.gmra.mxu1 %vm407_vm1, %v17318_v50  ;;  %16123 = vmatprep.mubr.msk.bf16.mxu0 %vm407_vm1, %v17319_v40  ;;  %v17322_v39 = vld [vmem:[%s17680_s8 + $0x880] sm:$0xff]   ;;  %v17327_v4 = vld [vmem:[%s17680_s8 + $0x6d0] sm:$0xff]  }
 0x27e   : > { %v20784_v6 = vmax.f32 %v5511_v63, 0.0  ;;  %v5490_v14 = vmax.f32 %v5262_v17, %v5436_v1  ;;  %v5493_v15 = vmax.f32 %v5265_v29, %v15798_v46  ;;  %v5268_v58 = vmax.f32 %v20641_v24, %v15765_v41  ;;  %v5224_v44 = vpop.f32.mrf.mxu0  ;;  %16159 = vmatprep.mubr.msk.bf16.mxu1 %vm407_vm1, %v17320_v48  ;;  %v5452_v8 = vpop.f32.mrf.mxu1  ;;  %16202 = vmatpush3.bf16.msra.mxu1 %v17334_v13 }
 0x27f   : > { %v5491_v20 = vmax.f32 %v5263_v59, %v5439_v38  ;;  %5707 = vst.msk [vmem:[#allocation2 + $0x1c8] sm:$0xff] %vm1677_vm4, %v5689_v10  ;;  %v5692_v27 = vmax.f32 %v5619_v5, %v5645_v60  ;;  %v5567_v45 = vrot.slane %v5525_v42, 1  ;;  %v5640_v12 = vrot.slane %v5525_v42, 2  ;;  %16223 = vmatprep.subr.bf16.mxu0 %v23590_v52  ;;  %16251 = vmatprep.subr.bf16.mxu1 %v23590_v52 }
 0x280   : > { %v5577_v30 = vrot.slane %v20784_v6, 1  ;;  %v5650_v1 = vrot.slane %v20784_v6, 2  ;;  %v5509_v24 = vadd.f32 %v20687_v53, %v5490_v14  ;;  %v5512_v21 = vadd.f32 %v20687_v53, %v5493_v15  ;;  %v20797_v25 = vpop.f32.mrf.mxu0  ;;  %v15802_v26 = vpop.f32.mrf.mxu1 }
 0x281   : > { %v5510_v11 = vadd.f32 %v20687_v53, %v5491_v20  ;;  %5710 = vst.msk [vmem:[#allocation2 + $0x1e0] sm:$0xff] %vm1677_vm4, %v5692_v27  ;;  %v5568_v18 = vsel %vm1529_vm2, %v5565_v36, %v5567_v45  ;;  %v5570_v46 = vsel %vm1529_vm2, %v5567_v45, %v5569_v43  ;;  %v5641_v50 = vsel %vm1603_vm3, %v5638_v2, %v5640_v12  ;;  %v17328_v43 = vld [vmem:[%s17680_s8 + $0x888] sm:$0xff]  }
 0x282   : > { %v5643_v40 = vsel %vm1603_vm3, %v5640_v12, %v5642_v28  ;;  %v5617_v48 = vmax.f32 %v20719_v9, %v5568_v18  ;;  %v5618_v47 = vmax.f32 %v5525_v42, %v5570_v46  ;;  %v5528_v31 = vmax.f32 %v5509_v24, 0.0  ;;  %v20819_v63 = vpop.f32.mrf.mxu0  ;;  %v5455_v28 = vpop.f32.mrf.mxu1  ;;  %v17329_v24 = vld [vmem:[%s17680_s8 + $0x6d8] ss:$0 sps:$4 sm:$0x11]  }
 0x283   : > { %v20817_v36 = vmax.f32 %v5512_v21, 0.0  ;;  %v5529_v17 = vmax.f32 %v5510_v11, 0.0  ;;  %v5496_v38 = vmax.f32 %v5268_v58, %v15801_v0  ;;  %v5266_v2 = vmax.f32 %v20644_v7, %v5224_v44  ;;  %v17330_v46 = vld [vmem:[%s17680_s8 + $0x890] ss:$0 sps:$4 sm:$0x11]   ;;  %s17486_s8 = scalar_lea.vmem %s13136_s18, 16 }
 0x284   : > { %v5269_v61 = vmax.f32 %v20650_v35, %v20797_v25  ;;  %v5690_v13 = vmax.f32 %v5617_v48, %v5641_v50  ;;  %v5691_v34 = vmax.f32 %v5618_v47, %v5643_v40  ;;  %v5573_v60 = vrot.slane %v5528_v31, 1  ;;  %v20825_v9 = vpop.f32.mrf.mxu0  ;;  %16124 = vmatmul.mubr.msk.bf16.gmra.mxu0 %vm407_vm1, %v17321_v3  ;;  %v15805_v42 = vpop.f32.mrf.mxu1  ;;  %p17487_p11 = scmp.ne.s32.totalorder %s13136_s18, %s17486_s8  ;;  %p17494_p1 = scmp.lt.s32.totalorder %s17492_s28, %s17486_s8 }
 0x285   : > { %v5646_v29 = vrot.slane %v5528_v31, 2  ;;  %v5579_v59 = vrot.slane %v20817_v36, 1  ;;  %v5652_v41 = vrot.slane %v20817_v36, 2  ;;  %v5575_v10 = vrot.slane %v5529_v17, 1  ;;  %16160 = vmatmul.mubr.msk.bf16.gmra.mxu1 %vm407_vm1, %v17322_v39  ;;  %16127 = vmatprep.mubr.msk.bf16.mxu0 %vm407_vm1, %v17327_v4 }
 0x286   : > { %v5648_v5 = vrot.slane %v5529_v17, 2  ;;  %5708 = vst.msk [vmem:[#allocation2 + $0x1d0] sm:$0xff] %vm1677_vm4, %v5690_v13  ;;  %5709 = vst.msk [vmem:[#allocation2 + $0x1d8] sm:$0xff] %vm1677_vm4, %v5691_v34  ;;  %v5574_v7 = vsel %vm1529_vm2, %v5571_v56, %v5573_v60  ;;  %v5515_v0 = vadd.f32 %v20687_v53, %v5496_v38  ;;  %v5494_v14 = vmax.f32 %v5266_v2, %v5452_v8  ;;  %v5240_v15 = vpop.f32.mrf.mxu0  ;;  %p17488_p12 = pnand %p17487_p11, %p17629_p5  ;;  %p17495_p2 = por %p17494_p1, %p17493_p0 }
 0x287   : > { %v5647_v35 = vsel %vm1603_vm3, %v5644_v62, %v5646_v29  ;;  %16163 = vmatprep.mubr.msk.bf16.mxu1 %vm407_vm1, %v17328_v43  ;;  %v5620_v20 = vmax.f32 %v20741_v33, %v5574_v7  ;;  %v5580_v58 = vsel %vm1529_vm2, %v5577_v30, %v5579_v59  ;;  %v5653_v56 = vsel %vm1603_vm3, %v5650_v1, %v5652_v41  ;;  %v5468_v62 = vpop.f32.mrf.mxu1 }
 0x288   : > { %v5576_v44 = vsel %vm1529_vm2, %v5573_v60, %v5575_v10  ;;  %v5623_v27 = vmax.f32 %v20784_v6, %v5580_v58  ;;  %v5578_v45 = vsel %vm1529_vm2, %v5575_v10, %v5577_v30  ;;  %v5649_v8 = vsel %vm1603_vm3, %v5646_v29, %v5648_v5  ;;  %v15770_v33 = vpop.f32.mrf.mxu0  ;;  %p17489_p13 = pneg %p17488_p12 }
 0x289   : > { %v5621_v12 = vmax.f32 %v5528_v31, %v5576_v44  ;;  %v5693_v21 = vmax.f32 %v5620_v20, %v5647_v35  ;;  %v5622_v11 = vmax.f32 %v5529_v17, %v5578_v45  ;;  %v5651_v25 = vsel %vm1603_vm3, %v5648_v5, %v5650_v1  ;;  %v15806_v18 = vpop.f32.mrf.mxu1 }
 0x28a   : > { %v20855_v3 = vmax.f32 %v5515_v0, 0.0  ;;  %v5696_v50 = vmax.f32 %v5623_v27, %v5653_v56  ;;  %v5513_v39 = vadd.f32 %v20687_v53, %v5494_v14  ;;  %v5497_v6 = vmax.f32 %v5269_v61, %v15802_v26  ;;  %v5243_v4 = vpop.f32.mrf.mxu0  ;;  %p17496_p3 = pnand %p17495_p2, %p17489_p13 }
 0x28b   : > { %v5694_v40 = vmax.f32 %v5621_v12, %v5649_v8  ;;  %v5043_v30 = vmax.f32 %v4815_v54, %v20569_v16  ;;  %5711 = vst.msk [vmem:[#allocation2 + $0x1e8] sm:$0xff] %vm1677_vm4, %v5693_v21  ;;  %v5695_v48 = vmax.f32 %v5622_v11, %v5651_v25  ;;  %v5267_v1 = vmax.f32 %v20653_v57, %v20819_v63  ;;  %v5471_v47 = vpop.f32.mrf.mxu1 }
 0x28c   : > { %v8462_v31 = vsel %vm8450_vm5, %v20577_v19, %v20658_v23  ;;  %5714 = vst.msk [vmem:[#allocation2 + $0x200] sm:$0xff] %vm1677_vm4, %v5696_v50  ;;  %v20871_v26 = vmax.f32 %v5513_v39, 0.0  ;;  %v5516_v49 = vadd.f32 %v20687_v53, %v5497_v6  ;;  %v5272_v16 = vmax.f32 %v20661_v22, %v20825_v9  ;;  %v20877_v54 = vpop.f32.mrf.mxu0  ;;  %16128 = vmatmul.mubr.msk.bf16.gmra.mxu0 %vm407_vm1, %v17329_v24 }
 0x28d   : > { %5712 = vst.msk [vmem:[#allocation2 + $0x1f0] sm:$0xff] %vm1677_vm4, %v5694_v40  ;;  %v5270_v37 = vmax.f32 %v20671_v55, %v5240_v15  ;;  %5713 = vst.msk [vmem:[#allocation2 + $0x1f8] sm:$0xff] %vm1677_vm4, %v5695_v48  ;;  %v5585_v19 = vrot.slane %v20855_v3, 1  ;;  %v5658_v57 = vrot.slane %v20855_v3, 2  ;;  %v5495_v63 = vmax.f32 %v5267_v1, %v5455_v28  ;;  %v20883_v17 = vpop.f32.mrf.mxu1  ;;  %16164 = vmatmul.mubr.msk.bf16.gmra.mxu1 %vm407_vm1, %v17330_v46 }
 0x28e   : > { %v5271_v43 = vmax.f32 %v5043_v30, %v5243_v4  ;;  %16175 = vmatprep.mubr.msk.bf16.mxu0 %vm17549_vm6, %v23590_v52  ;;  %v5581_v22 = vrot.slane %v20871_v26, 1  ;;  %v5654_v55 = vrot.slane %v20871_v26, 2  ;;  %v20890_v38 = vmax.f32 %v5516_v49, 0.0  ;;  %v20892_v61 = vpop.f32.mrf.mxu0  ;;  %16203 = vmatprep.mubr.msk.bf16.mxu1 %vm17549_vm6, %v23590_v52 }
 0x28f   : > { %v5500_v2 = vmax.f32 %v5272_v16, %v15805_v42  ;;  %v5514_v28 = vadd.f32 %v20687_v53, %v5495_v63  ;;  %v5498_v13 = vmax.f32 %v5270_v37, %v5468_v62  ;;  %v20899_v29 = vpop.f32.mrf.mxu1 }
 0x290   : > { %v5499_v34 = vmax.f32 %v5271_v43, %v5471_v47  ;;  %v5582_v9 = vsel %vm1529_vm2, %v5579_v59, %v5581_v22  ;;  %v5655_v10 = vsel %vm1603_vm3, %v5652_v41, %v5654_v55  ;;  %v5587_v5 = vrot.slane %v20890_v38, 1  ;;  %v20909_v7 = vpop.f32.mrf.mxu0 }
 0x291   : > { %v5660_v42 = vrot.slane %v20890_v38, 2  ;;  %v5624_v35 = vmax.f32 %v20817_v36, %v5582_v9  ;;  %v5533_v0 = vmax.f32 %v5514_v28, 0.0  ;;  %v5519_v14 = vadd.f32 %v20687_v53, %v5500_v2  ;;  %v20914_v20 = vpop.f32.mrf.mxu1 }
 0x292   : > { %v5517_v15 = vadd.f32 %v20687_v53, %v5498_v13  ;;  %v5588_v59 = vsel %vm1529_vm2, %v5585_v19, %v5587_v5  ;;  %v5518_v41 = vadd.f32 %v20687_v53, %v5499_v34  ;;  %v20921_v44 = vpop.f32.mrf.mxu0 }
 0x293   : > { %v5661_v58 = vsel %vm1603_vm3, %v5658_v57, %v5660_v42  ;;  %v5697_v62 = vmax.f32 %v5624_v35, %v5655_v10  ;;  %v5627_v36 = vmax.f32 %v20855_v3, %v5588_v59  ;;  %v5583_v27 = vrot.slane %v5533_v0, 1  ;;  %v20924_v12 = vpop.f32.mrf.mxu1  ;;  %v8416_v10 = vld [vmem:[#allocation2 + $0x190] ss:$10 sm:$0xff] }
 0x294   : > { %v5656_v45 = vrot.slane %v5533_v0, 2  ;;  %v5538_v8 = vmax.f32 %v5519_v14, 0.0  ;;  %v5536_v33 = vmax.f32 %v5517_v15, 0.0  ;;  %v5537_v24 = vmax.f32 %v5518_v41, 0.0  ;;  %v20928_v11 = vpop.f32.mrf.mxu0  ;;  %16176 = vmatmul.mubr.msk.bf16.vlgmr.msra.gmra.mxu0 %vm1677_vm4, %v8462_v31  ;;  %v8414_v41 = vld [vmem:[#allocation2 + $0x140] ss:$10 sm:$0xff] }
 0x295   : > { %5715 = vst.msk [vmem:[#allocation2 + $0x208] sm:$0xff] %vm1677_vm4, %v5697_v62  ;;  %v5700_v25 = vmax.f32 %v5627_v36, %v5661_v58  ;;  %v5584_v18 = vsel %vm1529_vm2, %v5581_v22, %v5583_v27  ;;  %v5586_v3 = vsel %vm1529_vm2, %v5583_v27, %v5585_v19  ;;  %v20935_v50 = vpop.f32.mrf.mxu1  ;;  %16204 = vmatmul.mubr.msk.bf16.vlgmr.msra.gmra.mxu1 %vm1677_vm4, %v20510_v51 }
 0x296   : > { %v5657_v46 = vsel %vm1603_vm3, %v5654_v55, %v5656_v45  ;;  %v5625_v40 = vmax.f32 %v20871_v26, %v5584_v18  ;;  %v5626_v39 = vmax.f32 %v5533_v0, %v5586_v3  ;;  %v5659_v6 = vsel %vm1603_vm3, %v5656_v45, %v5658_v57  ;;  %v20941_v4 = vpop.f32.mrf.mxu0  ;;  %16179 = vmatprep.mubr.msk.bf16.mxu0 %vm17549_vm6, %v23590_v52 }
 0x297   : > { %16207 = vmatprep.mubr.msk.bf16.mxu1 %vm17549_vm6, %v23590_v52  ;;  %5718 = vst.msk [vmem:[#allocation2 + $0x220] sm:$0xff] %vm1677_vm4, %v5700_v25  ;;  %v5593_v30 = vrot.slane %v5538_v8, 1  ;;  %v5589_v48 = vrot.slane %v5536_v33, 1  ;;  %v5662_v1 = vrot.slane %v5536_v33, 2  ;;  %v5591_v47 = vrot.slane %v5537_v24, 1  ;;  %v20948_v31 = vpop.f32.mrf.mxu1 }
 0x298   : > { %v5698_v26 = vmax.f32 %v5625_v40, %v5657_v46  ;;  %v5699_v49 = vmax.f32 %v5626_v39, %v5659_v6  ;;  %v5666_v16 = vrot.slane %v5538_v8, 2  ;;  %v5664_v37 = vrot.slane %v5537_v24, 2  ;;  %v20950_v19 = vpop.f32.mrf.mxu0 }
 0x299   : > { %v5590_v57 = vsel %vm1529_vm2, %v5587_v5, %v5589_v48  ;;  %v5663_v63 = vsel %vm1603_vm3, %v5660_v42, %v5662_v1  ;;  %v5592_v43 = vsel %vm1529_vm2, %v5589_v48, %v5591_v47  ;;  %v5594_v22 = vsel %vm1529_vm2, %v5591_v47, %v5593_v30  ;;  %v20956_v55 = vpop.f32.mrf.mxu1 }
 0x29a   : > { %5716 = vst.msk [vmem:[#allocation2 + $0x210] sm:$0xff] %vm1677_vm4, %v5698_v26  ;;  %5717 = vst.msk [vmem:[#allocation2 + $0x218] sm:$0xff] %vm1677_vm4, %v5699_v49  ;;  %v5628_v2 = vmax.f32 %v20890_v38, %v5590_v57  ;;  %v5629_v28 = vmax.f32 %v5536_v33, %v5592_v43  ;;  %v5630_v13 = vmax.f32 %v5537_v24, %v5594_v22  ;;  %v20962_v9 = vpop.f32.mrf.mxu0  ;;  %v8463_v8 = vshrl.u32 %v20555_v32, 16 }
 0x29b   : > { %v5665_v34 = vsel %vm1603_vm3, %v5662_v1, %v5664_v37  ;;  %v5667_v5 = vsel %vm1603_vm3, %v5664_v37, %v5666_v16  ;;  %v20971_v14 = vpop.f32.mrf.mxu1  ;;  %v20977_v36 = vpack.c.bf16 %v8416_v10, %v8414_v41 }
 0x29c   : > { %v5701_v38 = vmax.f32 %v5628_v2, %v5663_v63  ;;  %v5702_v15 = vmax.f32 %v5629_v28, %v5665_v34  ;;  %v5703_v59 = vmax.f32 %v5630_v13, %v5667_v5  ;;  %v20973_v58 = vpop.f32.mrf.mxu0  ;;  %v8465_v3 = vor.u32 %v8463_v8, %v20658_v23 }
 0x29d   : > { %v20975_v62 = vpop.f32.mrf.mxu1  ;;  %23829 = vst [vmem:[#allocation27_spill] sm:$0xff] %v20977_v36  ;;  %16208 = vmatmul.mubr.msk.bf16.gmra.mxu1 %vm1677_vm4, %v20555_v32  ;;  %v8467_v33 = vshll.u32 %v20977_v36, 16  ;;  %v8471_v39 = vshrl.u32 %v20977_v36, 16 }
 0x29e   : > { %5719 = vst.msk [vmem:[#allocation2 + $0x228] sm:$0xff] %vm1677_vm4, %v5701_v38  ;;  %5720 = vst.msk [vmem:[#allocation2 + $0x230] sm:$0xff] %vm1677_vm4, %v5702_v15  ;;  %v20986_v45 = vpop.f32.mrf.mxu0  ;;  %16211 = vmatprep.mubr.msk.bf16.mxu1 %vm17549_vm6, %v23590_v52 }
 0x29f   : > { %5721 = vst.msk [vmem:[#allocation2 + $0x238] sm:$0xff] %vm1677_vm4, %v5703_v59  ;;  %v20992_v24 = vpop.f32.mrf.mxu1  ;;  %v8469_v46 = vrot.slane %v8467_v33, 1 }
 0x2a0   : > { %v20996_v18 = vpop.f32.mrf.mxu0 }
 0x2a1   : > { %v20999_v40 = vpop.f32.mrf.mxu1  ;;  %v8470_v48 = vsel %vm8450_vm5, %v8465_v3, %v8469_v46  ;;  %v21009_v47 = vor.u32 %v8471_v39, %v8469_v46 }
 0x2a2   : > { %v21004_v30 = vpop.f32.mrf.mxu0  ;;  %16180 = vmatmul.mubr.msk.bf16.gmra.mxu0 %vm1677_vm4, %v8470_v48 }
 0x2a3   : > { %v21007_v1 = vpop.f32.mrf.mxu1  ;;  %23830 = vst [vmem:[#allocation9_spill] sm:$0xff] %v21009_v47  ;;  %16183 = vmatprep.mubr.msk.bf16.mxu0 %vm17549_vm6, %v23590_v52 }
 0x2a4   : > { %v21012_v26 = vpop.f32.mrf.mxu0 }
 0x2a5   : > { %v21014_v23 = vpop.f32.mrf.mxu1  ;;  %16212 = vmatmul.mubr.msk.bf16.gmra.mxu1 %vm1677_vm4, %v20977_v36 }
 0x2a6   : > { %v21022_v16 = vpop.f32.mrf.mxu0  ;;  %16215 = vmatprep.mubr.msk.bf16.mxu1 %vm17549_vm6, %v23590_v52 }
 0x2a7   : > { %23831 = vst [vmem:[#allocation10_spill] sm:$0xff] %v21022_v16  ;;  %v21026_v37 = vpop.f32.mrf.mxu1  ;;  %v23854_v16 = vmax.f32 %v20928_v11, %v20935_v50  ;;  %v23856_v11 = vmax.f32 %v20950_v19, %v20956_v55  ;;  %v23858_v19 = vmax.f32 %v20986_v45, %v20992_v24 }
 0x2a8   : > { %23832 = vst [vmem:[#allocation25_spill] sm:$0xff] %v21026_v37  ;;  %v21030_v63 = vpop.f32.mrf.mxu0 }
 0x2a9   : > { %23833 = vst [vmem:[#allocation32_spill] sm:$0xff] %v21030_v63  ;;  %v21032_v43 = vpop.f32.mrf.mxu1 }
 0x2aa   : > { %23834 = vst [vmem:[#allocation17_spill] sm:$0xff] %v21032_v43  ;;  %v21036_v2 = vpop.f32.mrf.mxu0 }
 0x2ab   : > { %v21038_v28 = vpop.f32.mrf.mxu1 }
 0x2ac   : > { %v21040_v13 = vpop.f32.mrf.mxu0 }
 0x2ad   : > { %23835 = vst [vmem:[#allocation12_spill] sm:$0xff] %v21040_v13  ;;  %v21042_v34 = vpop.f32.mrf.mxu1 }
 0x2ae   : > { %23836 = vst [vmem:[#allocation19_spill] sm:$0xff] %v21042_v34  ;;  %v21046_v5 = vpop.f32.mrf.mxu0 }
 0x2af   : > { %23837 = vst [vmem:[#allocation8_spill] sm:$0xff] %v21046_v5  ;;  %v21048_v38 = vpop.f32.mrf.mxu1 }
 0x2b0   : > { %23838 = vst [vmem:[#allocation34_spill] sm:$0xff] %v21048_v38  ;;  %v15842_v59 = vpop.f32.mrf.mxu0 }
 0x2b1   : > { %v15878_v41 = vpop.f32.mrf.mxu1 }
 0x2b2   : > { %v21052_v8 = vpop.f32.mrf.mxu0 }
 0x2b3   : > { %v21054_v33 = vpop.f32.mrf.mxu1 }
 0x2b4   : > { %v15897_v3 = vpop.f32.mrf.mxu0 }
 0x2b5   : > { %v15933_v46 = vpop.f32.mrf.mxu1 }
 0x2b6   : > { %v6290_v39 = vpop.f32.mrf.mxu0 }
 0x2b7   : > { %v21056_v48 = vpop.f32.mrf.mxu1 }
 0x2b8   : > { %v15898_v52 = vpop.f32.mrf.mxu0 }
 0x2b9   : > { %v21058_v10 = vpop.f32.mrf.mxu1 }
 0x2ba   : > { %v6293_v22 = vpop.f32.mrf.mxu0 }
 0x2bb   : > { %v21060_v57 = vpop.f32.mrf.mxu1 }
 0x2bc   : > { %v15901_v49 = vpop.f32.mrf.mxu0 }
 0x2bd   : > { %v21062_v6 = vpop.f32.mrf.mxu1 }
 0x2be   : > { %v6306_v59 = vpop.f32.mrf.mxu0 }
 0x2bf   : > { %v21064_v41 = vpop.f32.mrf.mxu1 }
 0x2c0   : > { %23839 = vst [vmem:[#allocation15_spill] sm:$0xff] %v21064_v41  ;;  %v15902_v15 = vpop.f32.mrf.mxu0 }
 0x2c1   : > { %v21066_v25 = vpop.f32.mrf.mxu1  ;;  %v21123_v50 = vmax.f32 %v23856_v11, %v15902_v15  ;;  %v23871_v15 = vld [vmem:[#allocation12_spill] sm:$0xff] }
 0x2c2   : > { %23840 = vst [vmem:[#allocation26_spill] sm:$0xff] %v21066_v25  ;;  %v6309_v27 = vpop.f32.mrf.mxu0 }
 0x2c3   : > { %v21068_v0 = vpop.f32.mrf.mxu1 }
 0x2c4   : > { %23841 = vst [vmem:[#allocation20_spill] sm:$0xff] %v21068_v0  ;;  %v15905_v35 = vpop.f32.mrf.mxu0 }
 0x2c5   : > { %v21070_v42 = vpop.f32.mrf.mxu1 }
 0x2c6   : > { %23842 = vst [vmem:[#allocation28_spill] sm:$0xff] %v21070_v42  ;;  %v6322_v21 = vpop.f32.mrf.mxu0 }
 0x2c7   : > { %v21072_v56 = vpop.f32.mrf.mxu1  ;;  %v21140_v55 = vmax.f32 %v23858_v19, %v6322_v21  ;;  %v23864_v21 = vld [vmem:[#allocation24_spill] sm:$0xff] }
 0x2c8   : > { %23843 = vst [vmem:[#allocation21_spill] sm:$0xff] %v21072_v56  ;;  %v15906_v60 = vpop.f32.mrf.mxu0 }
 0x2c9   : > { %v21074_v51 = vpop.f32.mrf.mxu1 }
 0x2ca   : > { %23844 = vst [vmem:[#allocation29_spill] sm:$0xff] %v21074_v51  ;;  %v6325_v32 = vpop.f32.mrf.mxu0  ;;  %v6141_v51 = vmax.f32 %v20921_v44, %v20924_v12  ;;  %v6374_v44 = vmax.f32 %v23854_v16, %v15901_v49 }
 0x2cb   : > { %v21076_v36 = vpop.f32.mrf.mxu1 }
 0x2cc   : > { %23845 = vst [vmem:[#allocation31_spill] sm:$0xff] %v21076_v36  ;;  %v15909_v47 = vpop.f32.mrf.mxu0  ;;  %v23851_v36 = vmax.f32 %v20877_v54, %v20883_v17  ;;  %v6145_v54 = vmax.f32 %v20962_v9, %v20971_v14 }
 0x2cd   : > { %v21078_v38 = vpop.f32.mrf.mxu1 }
 0x2ce   : > { %23846 = vst [vmem:[#allocation22_spill] sm:$0xff] %v21078_v38  ;;  %v6338_v5 = vpop.f32.mrf.mxu0  ;;  %v6370_v38 = vmax.f32 %v23851_v36, %v15897_v3  ;;  %v6149_v36 = vmax.f32 %v21004_v30, %v21007_v1  ;;  %v21125_v9 = vmax.f32 %v6145_v54, %v6309_v27  ;;  %v6602_v1 = vmax.f32 %v6374_v44, %v21062_v6 }
 0x2cf   : > { %v21080_v34 = vpop.f32.mrf.mxu1  ;;  %v23859_v27 = vmax.f32 %v20996_v18, %v20999_v40  ;;  %v23866_v18 = vld [vmem:[#allocation26_spill] sm:$0xff] }
 0x2d0   : > { %23847 = vst [vmem:[#allocation23_spill] sm:$0xff] %v21080_v34  ;;  %v15910_v13 = vpop.f32.mrf.mxu0  ;;  %v23852_v34 = vmax.f32 %v20892_v61, %v20899_v29  ;;  %v6157_v61 = vmax.f32 %v21052_v8, %v21054_v33  ;;  %v6603_v40 = vmax.f32 %v21123_v50, %v23866_v18  ;;  %v23872_v8 = vld [vmem:[#allocation19_spill] sm:$0xff] }
 0x2d1   : > { %v21082_v43 = vpop.f32.mrf.mxu1  ;;  %v23873_v33 = vmax.f32 %v23871_v15, %v23872_v8  ;;  %v23876_v54 = vld [vmem:[#allocation29_spill] sm:$0xff]  ;;  %v23886_v8 = vmov 0.0  }
 0x2d2   : > { %23848 = vst [vmem:[#allocation13_spill] sm:$0xff] %v21082_v43  ;;  %v6341_v63 = vpop.f32.mrf.mxu0  ;;  %v6368_v43 = vmax.f32 %v23852_v34, %v6290_v39 }
 0x2d3   : > { %v21084_v42 = vpop.f32.mrf.mxu1 }
 0x2d4   : > { %23849 = vst [vmem:[#allocation14_spill] sm:$0xff] %v21084_v42  ;;  %v15913_v0 = vpop.f32.mrf.mxu0  ;;  %v23853_v42 = vmax.f32 %v20909_v7, %v20914_v20  ;;  %v6596_v29 = vmax.f32 %v6368_v43, %v21056_v48  ;;  %v23855_v7 = vmax.f32 %v20941_v4, %v20948_v31  ;;  %v23857_v4 = vmax.f32 %v20973_v58, %v20975_v62  ;;  %v23862_v58 = vld [vmem:[#allocation25_spill] sm:$0xff] }
 0x2d5   : > { %v21086_v56 = vpop.f32.mrf.mxu1  ;;  %v21178_v3 = vmax.f32 %v23873_v33, %v15913_v0  ;;  %v17335_v0 = vld [vmem:[%s23512_s3 + $0x298] sm:$0xff]  }
 0x2d6   : > { %23850 = vst [vmem:[#allocation30_spill] sm:$0xff] %v21086_v56  ;;  %v6354_v25 = vpop.f32.mrf.mxu0  ;;  %v6371_v37 = vmax.f32 %v23853_v42, %v15898_v52  ;;  %v6369_v56 = vmax.f32 %v6141_v51, %v6293_v22  ;;  %v6598_v52 = vmax.f32 %v6370_v38, %v15933_v46  ;;  %v21118_v20 = vmax.f32 %v23855_v7, %v6306_v59  ;;  %v23874_v59 = vld [vmem:[#allocation28_spill] sm:$0xff]  ;;  %v23878_v7 = vld [vmem:[#allocation22_spill] sm:$0xff] }
 0x2d7   : > { %v21093_v41 = vpop.f32.mrf.mxu1  ;;  %v21135_v31 = vmax.f32 %v23857_v4, %v15905_v35  ;;  %v23861_v35 = vld [vmem:[#allocation10_spill] sm:$0xff]  ;;  %v23879_v11 = vld [vmem:[#allocation23_spill] sm:$0xff]  ;;  %16224 = vmatpush3.bf16.msra.mxu0 %v17335_v0 }
 0x2d8   : > { %v15914_v53 = vpop.f32.mrf.mxu0  ;;  %v6599_v14 = vmax.f32 %v6371_v37, %v21058_v10  ;;  %v6597_v30 = vmax.f32 %v6369_v56, %v21060_v57  ;;  %v21145_v37 = vmax.f32 %v23859_v27, %v15906_v60  ;;  %v21147_v56 = vmax.f32 %v6149_v36, %v6325_v32  ;;  %v23865_v60 = vld [vmem:[#allocation15_spill] sm:$0xff]  ;;  %v23881_v27 = vld [vmem:[#allocation8_spill] sm:$0xff]  ;;  %16225 = vmatprep.subr.bf16.mxu0 %v23886_v8 }
 0x2d9   : > { %v15950_v12 = vpop.f32.mrf.mxu1  ;;  %v6153_v53 = vmax.f32 %v21036_v2, %v21038_v28  ;;  %v23860_v57 = vmax.f32 %v21012_v26, %v21014_v23  ;;  %v23863_v62 = vmax.f32 %v23861_v35, %v23862_v58  ;;  %v6600_v32 = vmax.f32 %v21118_v20, %v23865_v60  ;;  %v23867_v28 = vld [vmem:[#allocation20_spill] sm:$0xff]  ;;  %v23869_v23 = vld [vmem:[#allocation17_spill] sm:$0xff] }
 0x2da   : > { %v6357_v17 = vpop.f32.mrf.mxu0  ;;  %v23868_v26 = vld [vmem:[#allocation32_spill] sm:$0xff]  ;;  %v23875_v12 = vld [vmem:[#allocation21_spill] sm:$0xff] }
 0x2db   : > { %v21112_v51 = vpop.f32.mrf.mxu1  ;;  %v21152_v43 = vmax.f32 %v23860_v57, %v15909_v47  ;;  %v21157_v22 = vmax.f32 %v23863_v62, %v6338_v5  ;;  %v6601_v47 = vmax.f32 %v21125_v9, %v23867_v28  ;;  %v23870_v34 = vmax.f32 %v23868_v26, %v23869_v23  ;;  %v23880_v4 = vld [vmem:[#allocation13_spill] sm:$0xff] }
 0x2dc   : > { %v15969_v42 = vpop.f32.mrf.mxu0  ;;  %v21173_v38 = vmax.f32 %v6153_v53, %v6341_v63  ;;  %v17338_v60 = vld [vmem:[%s23512_s3 + $0x170] sm:$0xff]  }
 0x2dd   : > { %v6826_v49 = vmax.f32 %v6598_v52, %v15969_v42  ;;  %v21130_v16 = vpop.f32.mrf.mxu1  ;;  %v21171_v10 = vmax.f32 %v23870_v34, %v15910_v13  ;;  %v23877_v52 = vld [vmem:[#allocation31_spill] sm:$0xff]  ;;  %v23885_v26 = vld [vmem:[#allocation30_spill] sm:$0xff] }
 0x2de   : > { %v6746_v6 = vpop.f32.mrf.mxu0 }
 0x2df   : > { %v6845_v45 = vadd.f32 %v23864_v21, %v6826_v49  ;;  %v6824_v24 = vmax.f32 %v6596_v29, %v6746_v6  ;;  %v21160_v2 = vpop.f32.mrf.mxu1  ;;  %v23882_v6 = vld [vmem:[#allocation34_spill] sm:$0xff] }
 0x2e0   : > { %v15970_v5 = vpop.f32.mrf.mxu0  ;;  %v23883_v57 = vmax.f32 %v23881_v27, %v23882_v6 }
 0x2e1   : > { %v6843_v46 = vadd.f32 %v23864_v21, %v6824_v24  ;;  %v6827_v39 = vmax.f32 %v6599_v14, %v15970_v5  ;;  %v21181_v48 = vpop.f32.mrf.mxu1  ;;  %v21189_v36 = vmax.f32 %v6845_v45, 0.0  ;;  %v23884_v24 = vld [vmem:[#allocation14_spill] sm:$0xff] }
 0x2e2   : > { %v6749_v53 = vpop.f32.mrf.mxu0  ;;  %v21208_v35 = vmax.f32 %v23883_v57, %v6354_v25  ;;  %v21221_v25 = vmax.f32 %v6157_v61, %v6357_v17 }
 0x2e3   : > { %v6846_v14 = vadd.f32 %v23864_v21, %v6827_v39  ;;  %v21201_v49 = vpop.f32.mrf.mxu1  ;;  %v21210_v58 = vmax.f32 %v6843_v46, 0.0  ;;  %v6825_v62 = vmax.f32 %v6597_v30, %v6749_v53  ;;  %v6903_v33 = vrot.slane %v21189_v36, 1  ;;  %v17336_v53 = vld [vmem:[%s23512_s3 + $0x290] sm:$0xff]  }
 0x2e4   : > { %v15973_v45 = vpop.f32.mrf.mxu0  ;;  %v6976_v30 = vrot.slane %v21189_v36, 2  ;;  %16226 = vmatpush3.bf16.msra.mxu0 %v17336_v53 }
 0x2e5   : > { %v21216_v34 = vmax.f32 %v6846_v14, 0.0  ;;  %v6830_v5 = vmax.f32 %v6602_v1, %v15973_v45  ;;  %v21218_v15 = vpop.f32.mrf.mxu1  ;;  %v6844_v46 = vadd.f32 %v23864_v21, %v6825_v62  ;;  %v17337_v1 = vld [vmem:[%s23512_s3 + $0x178] sm:$0xff]   ;;  %v6900_v57 = vrot.slane %v21210_v58, 1  ;;  %16227 = vmatprep.subr.bf16.mxu0 %v23886_v8 }
 0x2e6   : > { %v6762_v39 = vpop.f32.mrf.mxu0  ;;  %v6973_v62 = vrot.slane %v21210_v58, 2  ;;  %16252 = vmatpush3.bf16.msra.mxu1 %v17337_v1 }
 0x2e7   : > { %v6905_v0 = vrot.slane %v21216_v34, 1  ;;  %v6978_v17 = vrot.slane %v21216_v34, 2  ;;  %v6849_v61 = vadd.f32 %v23864_v21, %v6830_v5  ;;  %v6828_v14 = vmax.f32 %v6600_v32, %v6762_v39  ;;  %v21235_v27 = vpop.f32.mrf.mxu1  ;;  %16253 = vmatprep.subr.bf16.mxu1 %v23886_v8 }
 0x2e8   : > { %v6863_v45 = vmax.f32 %v6844_v46, 0.0  ;;  %v15974_v23 = vpop.f32.mrf.mxu0  ;;  %v17340_v46 = vld [vmem:[%s23512_s3 + $0x288] sm:$0xff]  }
 0x2e9   : > { %v6906_v5 = vsel %vm1529_vm2, %v6903_v33, %v6905_v0  ;;  %v6979_v32 = vsel %vm1603_vm3, %v6976_v30, %v6978_v17  ;;  %v21246_v39 = vmax.f32 %v6849_v61, 0.0  ;;  %v6847_v6 = vadd.f32 %v23864_v21, %v6828_v14  ;;  %v21249_v19 = vpop.f32.mrf.mxu1  ;;  %16228 = vmatpush3.bf16.msra.mxu0 %v17340_v46 }
 0x2ea   : > { %v6957_v53 = vmax.f32 %v21189_v36, %v6906_v5  ;;  %v6901_v1 = vrot.slane %v6863_v45, 1  ;;  %v6974_v42 = vrot.slane %v6863_v45, 2  ;;  %v6831_v61 = vmax.f32 %v6603_v40, %v15974_v23  ;;  %v6765_v20 = vpop.f32.mrf.mxu0  ;;  %16254 = vmatpush3.bf16.msra.mxu1 %v17338_v60  ;;  %v17339_v23 = vld [vmem:[%s23512_s3 + $0x168] sm:$0xff]   ;;  %16229 = vmatprep.subr.bf16.mxu0 %v23886_v8 }
 0x2eb   : > { %v6911_v29 = vrot.slane %v21246_v39, 1  ;;  %v21263_v63 = vmax.f32 %v6847_v6, 0.0  ;;  %v6829_v13 = vmax.f32 %v6601_v47, %v6765_v20  ;;  %v21268_v44 = vpop.f32.mrf.mxu1  ;;  %16255 = vmatprep.subr.bf16.mxu1 %v23886_v8  ;;  %v17342_v20 = vld [vmem:[%s23512_s3 + $0x280] sm:$0xff]   ;;  %v23888_v46 = vmax.f32 %v21140_v55, %v23875_v12 }
 0x2ec   : > { %v7030_v36 = vmax.f32 %v6957_v53, %v6979_v32  ;;  %v6902_v5 = vsel %vm1529_vm2, %v6900_v57, %v6901_v1  ;;  %v6904_v50 = vsel %vm1529_vm2, %v6901_v1, %v6903_v33  ;;  %v6975_v18 = vsel %vm1603_vm3, %v6973_v62, %v6974_v42  ;;  %v15977_v40 = vpop.f32.mrf.mxu0  ;;  %v21312_v12 = vld [vmem:[%s23511_s2] ss:$0 sm:$0xff] }
 0x2ed   : > { %v6955_v6 = vmax.f32 %v21210_v58, %v6902_v5  ;;  %v6956_v14 = vmax.f32 %v6863_v45, %v6904_v50  ;;  %v6977_v9 = vsel %vm1603_vm3, %v6974_v42, %v6976_v30  ;;  %v6907_v28 = vrot.slane %v21263_v63, 1  ;;  %v21279_v47 = vpop.f32.mrf.mxu1  ;;  %16230 = vmatpush3.bf16.msra.mxu0 %v17342_v20 }
 0x2ee   : > { %7048 = vst.msk [vmem:[#allocation2 + $0x250] sm:$0xff] %vm1677_vm4, %v7030_v36  ;;  %v6980_v60 = vrot.slane %v21263_v63, 2  ;;  %v6850_v58 = vadd.f32 %v23864_v21, %v6831_v61  ;;  %v6848_v33 = vadd.f32 %v23864_v21, %v6829_v13  ;;  %v23887_v42 = vmax.f32 %v21135_v31, %v23874_v59  ;;  %v6778_v57 = vpop.f32.mrf.mxu0  ;;  %16256 = vmatpush3.bf16.msra.mxu1 %v17339_v23 }
 0x2ef   : > { %v7028_v62 = vmax.f32 %v6955_v6, %v6975_v18  ;;  %v7029_v45 = vmax.f32 %v6956_v14, %v6977_v9  ;;  %v6908_v32 = vsel %vm1529_vm2, %v6905_v0, %v6907_v28  ;;  %v6832_v53 = vmax.f32 %v23888_v46, %v6778_v57  ;;  %v21297_v1 = vpop.f32.mrf.mxu1  ;;  %v17341_v14 = vld [vmem:[%s23512_s3 + $0x160] sm:$0xff]   ;;  %16257 = vmatprep.subr.bf16.mxu1 %v23886_v8 }
 0x2f0   : > { %v6834_v30 = vmax.f32 %v23887_v42, %v15977_v40  ;;  %v6958_v61 = vmax.f32 %v21216_v34, %v6908_v32  ;;  %v6981_v21 = vsel %vm1603_vm3, %v6978_v17, %v6980_v60  ;;  %v21301_v13 = vmax.f32 %v6850_v58, 0.0  ;;  %v15978_v59 = vpop.f32.mrf.mxu0  ;;  %16279 = vmatprep.subr.bf16.mxu0 %v23886_v8 }
 0x2f1   : > { %v6867_v31 = vmax.f32 %v6848_v33, 0.0  ;;  %7046 = vst.msk [vmem:[#allocation2 + $0x240] sm:$0xff] %vm1677_vm4, %v7028_v62  ;;  %7047 = vst.msk [vmem:[#allocation2 + $0x248] sm:$0xff] %vm1677_vm4, %v7029_v45  ;;  %v6984_v55 = vrot.slane %v21246_v39, 2  ;;  %v6851_v0 = vadd.f32 %v21312_v12, %v6832_v53  ;;  %v23889_v17 = vmax.f32 %v21145_v37, %v23876_v54  ;;  %v21319_v5 = vpop.f32.mrf.mxu1 }
 0x2f2   : > { %v6853_v34 = vadd.f32 %v21312_v12, %v6834_v30  ;;  %v7031_v50 = vmax.f32 %v6958_v61, %v6981_v21  ;;  %v6913_v18 = vrot.slane %v21301_v13, 1  ;;  %v6986_v40 = vrot.slane %v21301_v13, 2  ;;  %v6781_v6 = vpop.f32.mrf.mxu0  ;;  %16258 = vmatpush3.bf16.msra.mxu1 %v17341_v14 }
 0x2f3   : > { %v6835_v36 = vmax.f32 %v23889_v17, %v15978_v59  ;;  %v6909_v23 = vrot.slane %v6867_v31, 1  ;;  %v6982_v9 = vrot.slane %v6867_v31, 2  ;;  %v21327_v33 = vmax.f32 %v6851_v0, 0.0  ;;  %v21330_v54 = vpop.f32.mrf.mxu1  ;;  %16307 = vmatprep.subr.bf16.mxu1 %v23886_v8 }
 0x2f4   : > { %v21325_v58 = vmax.f32 %v6853_v34, 0.0  ;;  %7049 = vst.msk [vmem:[#allocation2 + $0x258] sm:$0xff] %vm1677_vm4, %v7031_v50  ;;  %v6914_v20 = vsel %vm1529_vm2, %v6911_v29, %v6913_v18  ;;  %v6987_v42 = vsel %vm1603_vm3, %v6984_v55, %v6986_v40  ;;  %v15981_v62 = vpop.f32.mrf.mxu0  ;;  %v23891_v50 = vmax.f32 %v21152_v43, %v23878_v7 }
 0x2f5   : > { %v6854_v37 = vadd.f32 %v21312_v12, %v6835_v36  ;;  %v6910_v30 = vsel %vm1529_vm2, %v6907_v28, %v6909_v23  ;;  %v6912_v57 = vsel %vm1529_vm2, %v6909_v23, %v6911_v29  ;;  %v6961_v45 = vmax.f32 %v21246_v39, %v6914_v20  ;;  %v16017_v61 = vpop.f32.mrf.mxu1 }
 0x2f6   : > { %v6959_v32 = vmax.f32 %v21263_v63, %v6910_v30  ;;  %v6960_v46 = vmax.f32 %v6867_v31, %v6912_v57  ;;  %v6983_v53 = vsel %vm1603_vm3, %v6980_v60, %v6982_v9  ;;  %v6985_v21 = vsel %vm1603_vm3, %v6982_v9, %v6984_v55  ;;  %v6794_v34 = vpop.f32.mrf.mxu0 }
 0x2f7   : > { %v6919_v28 = vrot.slane %v21325_v58, 1  ;;  %v6992_v59 = vrot.slane %v21325_v58, 2  ;;  %v6915_v29 = vrot.slane %v21327_v33, 1  ;;  %v7034_v14 = vmax.f32 %v6961_v45, %v6987_v42  ;;  %v21350_v31 = vpop.f32.mrf.mxu1 }
 0x2f8   : > { %v7032_v0 = vmax.f32 %v6959_v32, %v6983_v53  ;;  %v7033_v39 = vmax.f32 %v6960_v46, %v6985_v21  ;;  %v6988_v63 = vrot.slane %v21327_v33, 2  ;;  %v21353_v17 = vmax.f32 %v6854_v37, 0.0  ;;  %v15982_v9 = vpop.f32.mrf.mxu0 }
 0x2f9   : > { %v6916_v60 = vsel %vm1529_vm2, %v6913_v18, %v6915_v29  ;;  %v23890_v55 = vmax.f32 %v21147_v56, %v23877_v52  ;;  %v6838_v23 = vmax.f32 %v23891_v50, %v15981_v62  ;;  %7052 = vst.msk [vmem:[#allocation2 + $0x270] sm:$0xff] %vm1677_vm4, %v7034_v14  ;;  %v23892_v37 = vmax.f32 %v21157_v22, %v23879_v11  ;;  %v16018_v7 = vpop.f32.mrf.mxu1 }
 0x2fa   : > { %7050 = vst.msk [vmem:[#allocation2 + $0x260] sm:$0xff] %vm1677_vm4, %v7032_v0  ;;  %7051 = vst.msk [vmem:[#allocation2 + $0x268] sm:$0xff] %vm1677_vm4, %v7033_v39  ;;  %v6962_v20 = vmax.f32 %v21301_v13, %v6916_v60  ;;  %v6989_v18 = vsel %vm1603_vm3, %v6986_v40, %v6988_v63  ;;  %v23893_v52 = vmax.f32 %v21171_v10, %v23880_v4  ;;  %v6994_v42 = vrot.slane %v21353_v17, 2  ;;  %v6797_v13 = vpop.f32.mrf.mxu0 }
 0x2fb   : > { %v6833_v36 = vmax.f32 %v23890_v55, %v6781_v6  ;;  %v6836_v56 = vmax.f32 %v23892_v37, %v6794_v34  ;;  %v6921_v6 = vrot.slane %v21353_v17, 1  ;;  %v6857_v57 = vadd.f32 %v21312_v12, %v6838_v23  ;;  %v21381_v4 = vpop.f32.mrf.mxu1 }
 0x2fc   : > { %v6839_v43 = vmax.f32 %v23893_v52, %v15982_v9  ;;  %v7035_v62 = vmax.f32 %v6962_v20, %v6989_v18  ;;  %v23894_v11 = vmax.f32 %v21173_v38, %v23884_v24  ;;  %v6995_v32 = vsel %vm1603_vm3, %v6992_v59, %v6994_v42  ;;  %v15985_v61 = vpop.f32.mrf.mxu0 }
 0x2fd   : > { %v6852_v30 = vadd.f32 %v21312_v12, %v6833_v36  ;;  %v6855_v40 = vadd.f32 %v21312_v12, %v6836_v56  ;;  %v6922_v45 = vsel %vm1529_vm2, %v6919_v28, %v6921_v6  ;;  %v21385_v53 = vmax.f32 %v6857_v57, 0.0  ;;  %v16021_v24 = vpop.f32.mrf.mxu1 }
 0x2fe   : > { %v6858_v22 = vadd.f32 %v21312_v12, %v6839_v43  ;;  %v6837_v10 = vmax.f32 %v23894_v11, %v6797_v13  ;;  %7053 = vst.msk [vmem:[#allocation2 + $0x278] sm:$0xff] %vm1677_vm4, %v7035_v62  ;;  %v6965_v21 = vmax.f32 %v21325_v58, %v6922_v45  ;;  %v6810_v36 = vpop.f32.mrf.mxu0 }
 0x2ff   : > { %v6871_v46 = vmax.f32 %v6852_v30, 0.0  ;;  %v21389_v34 = vmax.f32 %v6855_v40, 0.0  ;;  %v6927_v60 = vrot.slane %v21385_v53, 1  ;;  %v7000_v55 = vrot.slane %v21385_v53, 2  ;;  %v7259_v20 = vpop.f32.mrf.mxu1 }
 0x300   : > { %v21391_v14 = vmax.f32 %v6858_v22, 0.0  ;;  %v6856_v38 = vadd.f32 %v21312_v12, %v6837_v10  ;;  %v7038_v50 = vmax.f32 %v6965_v21, %v6995_v32  ;;  %v15986_v43 = vpop.f32.mrf.mxu0 }
 0x301   : > { %v6917_v0 = vrot.slane %v6871_v46, 1  ;;  %v6990_v39 = vrot.slane %v6871_v46, 2  ;;  %v6923_v23 = vrot.slane %v21389_v34, 1  ;;  %v6996_v9 = vrot.slane %v21389_v34, 2  ;;  %v16022_v62 = vpop.f32.mrf.mxu1 }
 0x302   : > { %v6929_v58 = vrot.slane %v21391_v14, 1  ;;  %7056 = vst.msk [vmem:[#allocation2 + $0x290] sm:$0xff] %vm1677_vm4, %v7038_v50 }
 0x303   : > { %v6918_v18 = vsel %vm1529_vm2, %v6915_v29, %v6917_v0  ;;  %v6920_v37 = vsel %vm1529_vm2, %v6917_v0, %v6919_v28  ;;  %v6991_v56 = vsel %vm1603_vm3, %v6988_v63, %v6990_v39  ;;  %v6993_v52 = vsel %vm1603_vm3, %v6990_v39, %v6992_v59  ;;  %v6813_v63 = vpop.f32.mrf.mxu0  ;;  %v8420_v0 = vld [vmem:[#allocation2 + $0x230] ss:$10 sm:$0xff] }
 0x304   : > { %v6963_v7 = vmax.f32 %v21327_v33, %v6918_v18  ;;  %v6964_v30 = vmax.f32 %v6871_v46, %v6920_v37  ;;  %v6924_v57 = vsel %vm1529_vm2, %v6921_v6, %v6923_v23  ;;  %v6997_v13 = vsel %vm1603_vm3, %v6994_v42, %v6996_v9  ;;  %v7262_v42 = vpop.f32.mrf.mxu1 }
 0x305   : > { %v6966_v40 = vmax.f32 %v21353_v17, %v6924_v57  ;;  %v6930_v28 = vsel %vm1529_vm2, %v6927_v60, %v6929_v58  ;;  %v7002_v29 = vrot.slane %v21391_v14, 2  ;;  %v6875_v59 = vmax.f32 %v6856_v38, 0.0  ;;  %v21417_v21 = vpop.f32.mrf.mxu0 }
 0x306   : > { %v7036_v22 = vmax.f32 %v6963_v7, %v6991_v56  ;;  %v7037_v11 = vmax.f32 %v6964_v30, %v6993_v52  ;;  %v6969_v33 = vmax.f32 %v21385_v53, %v6930_v28  ;;  %v23895_v6 = vmax.f32 %v21178_v3, %v23885_v26  ;;  %v21428_v39 = vpop.f32.mrf.mxu1 }
 0x307   : > { %v7039_v45 = vmax.f32 %v6966_v40, %v6997_v13  ;;  %v7003_v17 = vsel %vm1603_vm3, %v7000_v55, %v7002_v29  ;;  %v6925_v32 = vrot.slane %v6875_v59, 1  ;;  %v6998_v46 = vrot.slane %v6875_v59, 2  ;;  %v21433_v18 = vpop.f32.mrf.mxu0 }
 0x308   : > { %v6842_v10 = vmax.f32 %v23895_v6, %v15985_v61  ;;  %7054 = vst.msk [vmem:[#allocation2 + $0x280] sm:$0xff] %vm1677_vm4, %v7036_v22  ;;  %7055 = vst.msk [vmem:[#allocation2 + $0x288] sm:$0xff] %vm1677_vm4, %v7037_v11  ;;  %v7042_v38 = vmax.f32 %v6969_v33, %v7003_v17  ;;  %v23896_v53 = vmax.f32 %v21208_v35, %v21093_v41  ;;  %v21438_v37 = vpop.f32.mrf.mxu1 }
 0x309   : > { %v23897_v26 = vmax.f32 %v21221_v25, %v21112_v51  ;;  %7057 = vst.msk [vmem:[#allocation2 + $0x298] sm:$0xff] %vm1677_vm4, %v7039_v45  ;;  %v6926_v50 = vsel %vm1529_vm2, %v6923_v23, %v6925_v32  ;;  %v6928_v20 = vsel %vm1529_vm2, %v6925_v32, %v6927_v60  ;;  %v8418_v25 = vld [vmem:[#allocation2 + $0x1e0] ss:$10 sm:$0xff]  ;;  %v6999_v56 = vsel %vm1603_vm3, %v6996_v9, %v6998_v46  ;;  %v21445_v43 = vpop.f32.mrf.mxu0 }
 0x30a   : > { %v6861_v24 = vadd.f32 %v21312_v12, %v6842_v10  ;;  %v6840_v3 = vmax.f32 %v23896_v53, %v6810_v36  ;;  %7060 = vst.msk [vmem:[#allocation2 + $0x2b0] sm:$0xff] %vm1677_vm4, %v7042_v38  ;;  %v6967_v41 = vmax.f32 %v21389_v34, %v6926_v50  ;;  %v6968_v35 = vmax.f32 %v6875_v59, %v6928_v20  ;;  %v21447_v34 = vpop.f32.mrf.mxu1 }
 0x30b   : > { %v6841_v61 = vmax.f32 %v23897_v26, %v6813_v63  ;;  %v7001_v52 = vsel %vm1603_vm3, %v6998_v46, %v7000_v55  ;;  %v21443_v60 = vpack.c.bf16 %v8420_v0, %v8418_v25  ;;  %v21451_v62 = vpop.f32.mrf.mxu0  ;;  %v23898_v0 = vld [vmem:[#allocation9_spill] sm:$0xff]  ;;  %v23899_v25 = vld [vmem:[#allocation27_spill] sm:$0xff] }
 0x30c   : > { %v6880_v36 = vmax.f32 %v6861_v24, 0.0  ;;  %v6859_v51 = vadd.f32 %v21312_v12, %v6840_v3  ;;  %v7040_v7 = vmax.f32 %v6967_v41, %v6999_v56  ;;  %v7041_v30 = vmax.f32 %v6968_v35, %v7001_v52  ;;  %v21456_v40 = vpop.f32.mrf.mxu1 }
 0x30d   : > { %v6860_v23 = vadd.f32 %v21312_v12, %v6841_v61  ;;  %16216 = vmatmul.mubr.msk.bf16.gmra.mxu1 %vm1677_vm4, %v21443_v60  ;;  %v8475_v9 = vshll.u32 %v21443_v60, 16  ;;  %v21460_v11 = vpop.f32.mrf.mxu0  ;;  %v8479_v50 = vshrl.u32 %v21443_v60, 16  ;;  %v8733_v56 = vrot.slane %v23899_v25, 1  ;;  %v17350_v25 = vld [vmem:[%s23512_s3 + $0x20] sm:$0xff]  }
 0x30e   : > { %v6878_v57 = vmax.f32 %v6859_v51, 0.0  ;;  %7058 = vst.msk [vmem:[#allocation2 + $0x2a0] sm:$0xff] %vm1677_vm4, %v7040_v7  ;;  %7059 = vst.msk [vmem:[#allocation2 + $0x2a8] sm:$0xff] %vm1677_vm4, %v7041_v30  ;;  %v6935_v55 = vrot.slane %v6880_v36, 1  ;;  %16219 = vmatprep.mubr.msk.bf16.mxu1 %vm17549_vm6, %v23886_v8  ;;  %v7008_v33 = vrot.slane %v6880_v36, 2  ;;  %v21462_v10 = vpop.f32.mrf.mxu1  ;;  %v23617_v52 = vrot.slane %v21443_v60, 1 }
 0x30f   : > { %v6879_v13 = vmax.f32 %v6860_v23, 0.0  ;;  %v8477_v6 = vrot.slane %v8475_v9, 1  ;;  %v21470_v46 = vpop.f32.mrf.mxu0 }
 0x310   : > { %v6931_v28 = vrot.slane %v6878_v57, 1  ;;  %v7004_v59 = vrot.slane %v6878_v57, 2  ;;  %v21473_v3 = vpop.f32.mrf.mxu1  ;;  %v21505_v30 = vsel %vm1529_vm2, %v8733_v56, %v23617_v52 }
 0x311   : > { %v6933_v63 = vrot.slane %v6879_v13, 1  ;;  %v7006_v22 = vrot.slane %v6879_v13, 2  ;;  %v21489_v51 = vor.u32 %v8479_v50, %v8477_v6 }
 0x312   : > { %v6932_v42 = vsel %vm1529_vm2, %v6929_v58, %v6931_v28  ;;  %v7005_v45 = vsel %vm1603_vm3, %v7002_v29, %v7004_v59  ;;  %v8478_v58 = vsel %vm8450_vm5, %v23898_v0, %v8477_v6  ;;  %v21479_v29 = vpop.f32.mrf.mxu0 }
 0x313   : > { %v6934_v17 = vsel %vm1529_vm2, %v6931_v28, %v6933_v63  ;;  %v6936_v32 = vsel %vm1529_vm2, %v6933_v63, %v6935_v55  ;;  %v6970_v38 = vmax.f32 %v21391_v14, %v6932_v42  ;;  %v7007_v26 = vsel %vm1603_vm3, %v7004_v59, %v7006_v22  ;;  %16184 = vmatmul.mubr.msk.bf16.gmra.mxu0 %vm1677_vm4, %v8478_v58  ;;  %v21483_v14 = vpop.f32.mrf.mxu1 }
 0x314   : > { %v6971_v24 = vmax.f32 %v6878_v57, %v6934_v17  ;;  %v6972_v53 = vmax.f32 %v6879_v13, %v6936_v32  ;;  %v7009_v61 = vsel %vm1603_vm3, %v7006_v22, %v7008_v33  ;;  %v21485_v36 = vpop.f32.mrf.mxu0  ;;  %16187 = vmatprep.mubr.msk.bf16.mxu0 %vm17549_vm6, %v23886_v8  ;;  %v8866_v32 = vld [vmem:[#allocation2 + $0x51] ss:$10 sm:$0xff] }
 0x315   : > { %v7043_v20 = vmax.f32 %v6970_v38, %v7005_v45  ;;  %v21496_v23 = vpop.f32.mrf.mxu1  ;;  %v8870_v38 = vld [vmem:[#allocation2 + $0xf1] ss:$10 sm:$0xff] }
 0x316   : > { %v7044_v41 = vmax.f32 %v6971_v24, %v7007_v26  ;;  %v7045_v35 = vmax.f32 %v6972_v53, %v7009_v61  ;;  %v21498_v7 = vpop.f32.mrf.mxu0  ;;  %v8864_v26 = vld [vmem:[#allocation2 + $0x1] ss:$10 sm:$0xff] }
 0x317   : > { %7061 = vst.msk [vmem:[#allocation2 + $0x2b8] sm:$0xff] %vm1677_vm4, %v7043_v20  ;;  %v21507_v57 = vpop.f32.mrf.mxu1  ;;  %v8868_v61 = vld [vmem:[#allocation2 + $0xa1] ss:$10 sm:$0xff]  ;;  %v21529_v58 = vpack.c.bf16 %v8866_v32, %v8864_v26  ;;  %v7485_v32 = vmax.f32 %v21181_v48, %v21445_v43  ;;  %v7488_v26 = vmax.f32 %v21218_v15, %v21460_v11 }
 0x318   : > { %7062 = vst.msk [vmem:[#allocation2 + $0x2c0] sm:$0xff] %vm1677_vm4, %v7044_v41  ;;  %7063 = vst.msk [vmem:[#allocation2 + $0x2c8] sm:$0xff] %vm1677_vm4, %v7045_v35  ;;  %v21509_v13 = vpop.f32.mrf.mxu0  ;;  %v21531_v50 = vpack.c.bf16 %v8870_v38, %v8868_v61  ;;  %v7484_v35 = vmax.f32 %v21130_v16, %v21417_v21  ;;  %v7483_v38 = vmax.f32 %v21201_v49, %v21451_v62 }
 0x319   : > { %v21511_v55 = vpop.f32.mrf.mxu1  ;;  %v7486_v16 = vmax.f32 %v21235_v27, %v21470_v46  ;;  %v8910_v43 = vshrl.u32 %v21529_v58, 16  ;;  %v7713_v15 = vmax.f32 %v7485_v32, %v21447_v34  ;;  %v7716_v11 = vmax.f32 %v7488_v26, %v21462_v10 }
 0x31a   : > { %v21513_v9 = vpop.f32.mrf.mxu0  ;;  %v8917_v52 = vshll.u32 %v21531_v50, 16  ;;  %v7711_v27 = vmax.f32 %v7483_v38, %v21456_v40 }
 0x31b   : > { %v21515_v28 = vpop.f32.mrf.mxu1  ;;  %v7493_v40 = vmax.f32 %v21319_v5, %v21513_v9 }
 0x31c   : > { %v21517_v59 = vpop.f32.mrf.mxu0  ;;  %v21554_v62 = vrot.slane %v8917_v52, 1  ;;  %v7490_v52 = vmax.f32 %v21297_v1, %v21509_v13 }
 0x31d   : > { %v21519_v63 = vpop.f32.mrf.mxu1 }
 0x31e   : > { %v16053_v22 = vpop.f32.mrf.mxu0 }
 0x31f   : > { %v16089_v33 = vpop.f32.mrf.mxu1 }
 0x320   : > { %v21521_v6 = vpop.f32.mrf.mxu0  ;;  %v7482_v33 = vmax.f32 %v21160_v2, %v21433_v18  ;;  %v7712_v2 = vmax.f32 %v7484_v35, %v21428_v39  ;;  %v7489_v18 = vmax.f32 %v21249_v19, %v21479_v29  ;;  %v7714_v19 = vmax.f32 %v7486_v16, %v21473_v3 }
 0x321   : > { %v21523_v42 = vpop.f32.mrf.mxu1  ;;  %v7492_v29 = vmax.f32 %v21279_v47, %v21498_v7  ;;  %v7491_v3 = vmax.f32 %v21330_v54, %v21517_v59  ;;  %v21583_v54 = vmax.f32 %v7490_v52, %v21511_v55 }
 0x322   : > { %v16054_v45 = vpop.f32.mrf.mxu0  ;;  %v7717_v34 = vmax.f32 %v7489_v18, %v21483_v14 }
 0x323   : > { %v16090_v17 = vpop.f32.mrf.mxu1  ;;  %v21580_v9 = vmax.f32 %v7492_v29, %v21507_v57 }
 0x324   : > { %v21525_v24 = vpop.f32.mrf.mxu0  ;;  %v8912_v17 = vshll.u32 %v21529_v58, 16 }
 0x325   : > { %v21527_v53 = vpop.f32.mrf.mxu1  ;;  %v7495_v47 = vmax.f32 %v21381_v4, %v21525_v24  ;;  %v21587_v24 = vmax.f32 %v7493_v40, %v21515_v28 }
 0x326   : > { %v16057_v0 = vpop.f32.mrf.mxu0  ;;  %v21552_v49 = vrot.slane %v8912_v17, 1 }
 0x327   : > { %v16093_v20 = vpop.f32.mrf.mxu1  ;;  %v21596_v55 = vmax.f32 %v7495_v47, %v21527_v53 }
 0x328   : > { %v7468_v41 = vpop.f32.mrf.mxu0  ;;  %v7710_v20 = vmax.f32 %v7482_v33, %v21438_v37  ;;  %v7487_v37 = vmax.f32 %v21268_v44, %v21485_v36  ;;  %v7494_v44 = vmax.f32 %v21350_v31, %v21521_v6 }
 0x329   : > { %v7696_v22 = vpop.f32.mrf.mxu1 }
 0x32a   : > { %v16058_v45 = vpop.f32.mrf.mxu0  ;;  %v21577_v5 = vmax.f32 %v7487_v37, %v21496_v23  ;;  %v21593_v57 = vmax.f32 %v7494_v44, %v21523_v42 }
 0x32b   : > { %v16094_v61 = vpop.f32.mrf.mxu1  ;;  %v21590_v45 = vmax.f32 %v7491_v3, %v21519_v63 }
 0x32c   : > { %v7471_v21 = vpop.f32.mrf.mxu0 }
 0x32d   : > { %v7699_v0 = vpop.f32.mrf.mxu1 }
 0x32e   : > { %v16113_v48 = vpop.f32.mrf.mxu0 }
 0x32f   : > { %v7940_v39 = vmax.f32 %v7712_v2, %v16113_v48  ;;  %v16149_v46 = vpop.f32.mrf.mxu1 }
 0x330   : > { %v7860_v41 = vpop.f32.mrf.mxu0 }
 0x331   : > { %v8168_v10 = vmax.f32 %v7940_v39, %v16149_v46  ;;  %v7938_v35 = vmax.f32 %v7710_v20, %v7860_v41  ;;  %v8088_v22 = vpop.f32.mrf.mxu1 }
 0x332   : > { %v16114_v36 = vpop.f32.mrf.mxu0 }
 0x333   : > { %v8187_v1 = vadd.f32 %v21312_v12, %v8168_v10  ;;  %v8166_v7 = vmax.f32 %v7938_v35, %v8088_v22  ;;  %v7941_v14 = vmax.f32 %v7713_v15, %v16114_v36  ;;  %v16150_v13 = vpop.f32.mrf.mxu1 }
 0x334   : > { %v7863_v59 = vpop.f32.mrf.mxu0 }
 0x335   : > { %v8185_v31 = vadd.f32 %v21312_v12, %v8166_v7  ;;  %v8169_v6 = vmax.f32 %v7941_v14, %v16150_v13  ;;  %v7939_v33 = vmax.f32 %v7711_v27, %v7863_v59  ;;  %v8091_v4 = vpop.f32.mrf.mxu1  ;;  %v8206_v23 = vmax.f32 %v8187_v1, 0.0 }
 0x336   : > { %v16117_v17 = vpop.f32.mrf.mxu0 }
 0x337   : > { %v8188_v32 = vadd.f32 %v21312_v12, %v8169_v6  ;;  %v16153_v38 = vpop.f32.mrf.mxu1  ;;  %v8204_v26 = vmax.f32 %v8185_v31, 0.0  ;;  %v8167_v61 = vmax.f32 %v7939_v33, %v8091_v4  ;;  %v7944_v16 = vmax.f32 %v7716_v11, %v16117_v17 }
 0x338   : > { %v7876_v21 = vpop.f32.mrf.mxu0  ;;  %v8245_v18 = vrot.slane %v8206_v23, 1  ;;  %v8318_v0 = vrot.slane %v8206_v23, 2 }
 0x339   : > { %v21599_v28 = vmax.f32 %v8188_v32, 0.0  ;;  %v7942_v2 = vmax.f32 %v7714_v19, %v7876_v21  ;;  %v8104_v63 = vpop.f32.mrf.mxu1  ;;  %v8186_v20 = vadd.f32 %v21312_v12, %v8167_v61  ;;  %v8172_v42 = vmax.f32 %v7944_v16, %v16153_v38 }
 0x33a   : > { %v16118_v48 = vpop.f32.mrf.mxu0  ;;  %v8242_v37 = vrot.slane %v8204_v26, 1  ;;  %v8315_v11 = vrot.slane %v8204_v26, 2 }
 0x33b   : > { %v8247_v53 = vrot.slane %v21599_v28, 1  ;;  %v8320_v15 = vrot.slane %v21599_v28, 2  ;;  %v8170_v27 = vmax.f32 %v7942_v2, %v8104_v63  ;;  %v7945_v39 = vmax.f32 %v7717_v34, %v16118_v48  ;;  %v16154_v46 = vpop.f32.mrf.mxu1 }
 0x33c   : > { %v8205_v29 = vmax.f32 %v8186_v20, 0.0  ;;  %v8191_v52 = vadd.f32 %v21312_v12, %v8172_v42  ;;  %v7879_v19 = vpop.f32.mrf.mxu0 }
 0x33d   : > { %v8248_v41 = vsel %vm1529_vm2, %v8245_v18, %v8247_v53  ;;  %v8321_v40 = vsel %vm1603_vm3, %v8318_v0, %v8320_v15  ;;  %v8189_v10 = vadd.f32 %v21312_v12, %v8170_v27  ;;  %v8173_v35 = vmax.f32 %v7945_v39, %v16154_v46  ;;  %v8107_v22 = vpop.f32.mrf.mxu1 }
 0x33e   : > { %v8299_v3 = vmax.f32 %v8206_v23, %v8248_v41  ;;  %v8243_v44 = vrot.slane %v8205_v29, 1  ;;  %v8316_v36 = vrot.slane %v8205_v29, 2  ;;  %v21608_v47 = vmax.f32 %v8191_v52, 0.0  ;;  %v16121_v34 = vpop.f32.mrf.mxu0 }
 0x33f   : > { %v21610_v1 = vmax.f32 %v8189_v10, 0.0  ;;  %v8192_v7 = vadd.f32 %v21312_v12, %v8173_v35  ;;  %v7943_v14 = vmax.f32 %v21577_v5, %v7879_v19  ;;  %v7948_v13 = vmax.f32 %v21580_v9, %v16121_v34  ;;  %v16157_v59 = vpop.f32.mrf.mxu1 }
 0x340   : > { %v8372_v31 = vmax.f32 %v8299_v3, %v8321_v40  ;;  %v8244_v6 = vsel %vm1529_vm2, %v8242_v37, %v8243_v44  ;;  %v8246_v33 = vsel %vm1529_vm2, %v8243_v44, %v8245_v18  ;;  %v8317_v4 = vsel %vm1603_vm3, %v8315_v11, %v8316_v36  ;;  %v7892_v23 = vpop.f32.mrf.mxu0 }
 0x341   : > { %v8297_v17 = vmax.f32 %v8204_v26, %v8244_v6  ;;  %v8298_v32 = vmax.f32 %v8205_v29, %v8246_v33  ;;  %v8319_v38 = vsel %vm1603_vm3, %v8316_v36, %v8318_v0  ;;  %v8253_v61 = vrot.slane %v21608_v47, 1  ;;  %v8120_v16 = vpop.f32.mrf.mxu1 }
 0x342   : > { %8390 = vst.msk [vmem:[#allocation2 + $0x2e0] sm:$0xff] %vm1677_vm4, %v8372_v31  ;;  %v8326_v5 = vrot.slane %v21608_v47, 2  ;;  %v8249_v9 = vrot.slane %v21610_v1, 1  ;;  %v8322_v21 = vrot.slane %v21610_v1, 2  ;;  %v21624_v2 = vmax.f32 %v8192_v7, 0.0  ;;  %v16122_v63 = vpop.f32.mrf.mxu0 }
 0x343   : > { %v8370_v18 = vmax.f32 %v8297_v17, %v8317_v4  ;;  %v8371_v20 = vmax.f32 %v8298_v32, %v8319_v38  ;;  %v8171_v26 = vmax.f32 %v7943_v14, %v8107_v22  ;;  %v8176_v42 = vmax.f32 %v7948_v13, %v16157_v59  ;;  %v16158_v48 = vpop.f32.mrf.mxu1 }
 0x344   : > { %v8250_v0 = vsel %vm1529_vm2, %v8247_v53, %v8249_v9  ;;  %v8323_v27 = vsel %vm1603_vm3, %v8320_v15, %v8322_v21  ;;  %v8255_v39 = vrot.slane %v21624_v2, 1  ;;  %v8328_v46 = vrot.slane %v21624_v2, 2  ;;  %v7895_v37 = vpop.f32.mrf.mxu0 }
 0x345   : > { %8388 = vst.msk [vmem:[#allocation2 + $0x2d0] sm:$0xff] %vm1677_vm4, %v8370_v18  ;;  %8389 = vst.msk [vmem:[#allocation2 + $0x2d8] sm:$0xff] %vm1677_vm4, %v8371_v20  ;;  %v8300_v11 = vmax.f32 %v21599_v28, %v8250_v0  ;;  %v8190_v29 = vadd.f32 %v21312_v12, %v8171_v26  ;;  %v8195_v52 = vadd.f32 %v21312_v12, %v8176_v42  ;;  %v8123_v53 = vpop.f32.mrf.mxu1 }
 0x346   : > { %v7946_v19 = vmax.f32 %v21583_v54, %v7892_v23  ;;  %v8256_v15 = vsel %vm1529_vm2, %v8253_v61, %v8255_v39  ;;  %v8329_v41 = vsel %vm1603_vm3, %v8326_v5, %v8328_v46  ;;  %v7949_v40 = vmax.f32 %v21587_v24, %v16122_v63  ;;  %v16125_v35 = vpop.f32.mrf.mxu0 }
 0x347   : > { %v7947_v10 = vmax.f32 %v21590_v45, %v7895_v37  ;;  %v8373_v22 = vmax.f32 %v8300_v11, %v8323_v27  ;;  %v8303_v3 = vmax.f32 %v21608_v47, %v8256_v15  ;;  %v8209_v28 = vmax.f32 %v8190_v29, 0.0  ;;  %v16161_v36 = vpop.f32.mrf.mxu1 }
 0x348   : > { %v21641_v44 = vmax.f32 %v8195_v52, 0.0  ;;  %v8174_v34 = vmax.f32 %v7946_v19, %v8120_v16  ;;  %v8177_v7 = vmax.f32 %v7949_v40, %v16158_v48  ;;  %v7908_v14 = vpop.f32.mrf.mxu0 }
 0x349   : > { %v8175_v54 = vmax.f32 %v7947_v10, %v8123_v53  ;;  %8391 = vst.msk [vmem:[#allocation2 + $0x2e8] sm:$0xff] %vm1677_vm4, %v8373_v22  ;;  %v8376_v13 = vmax.f32 %v8303_v3, %v8329_v41  ;;  %v8251_v59 = vrot.slane %v8209_v28, 1  ;;  %v8324_v31 = vrot.slane %v8209_v28, 2  ;;  %v8136_v45 = vpop.f32.mrf.mxu1 }
 0x34a   : > { %v8261_v24 = vrot.slane %v21641_v44, 1  ;;  %v8334_v6 = vrot.slane %v21641_v44, 2  ;;  %v8193_v47 = vadd.f32 %v21312_v12, %v8174_v34  ;;  %v8196_v33 = vadd.f32 %v21312_v12, %v8177_v7  ;;  %v16126_v23 = vpop.f32.mrf.mxu0 }
 0x34b   : > { %v8194_v4 = vadd.f32 %v21312_v12, %v8175_v54  ;;  %8394 = vst.msk [vmem:[#allocation2 + $0x300] sm:$0xff] %vm1677_vm4, %v8376_v13  ;;  %v8252_v17 = vsel %vm1529_vm2, %v8249_v9, %v8251_v59  ;;  %v8254_v32 = vsel %vm1529_vm2, %v8251_v59, %v8253_v61  ;;  %v8325_v38 = vsel %vm1603_vm3, %v8322_v21, %v8324_v31  ;;  %v16162_v63 = vpop.f32.mrf.mxu1 }
 0x34c   : > { %v8327_v16 = vsel %vm1603_vm3, %v8324_v31, %v8326_v5  ;;  %v8301_v18 = vmax.f32 %v21610_v1, %v8252_v17  ;;  %v8302_v20 = vmax.f32 %v8209_v28, %v8254_v32  ;;  %v8212_v26 = vmax.f32 %v8193_v47, 0.0  ;;  %v7911_v48 = vpop.f32.mrf.mxu0 }
 0x34d   : > { %v21655_v42 = vmax.f32 %v8196_v33, 0.0  ;;  %v8213_v0 = vmax.f32 %v8194_v4, 0.0  ;;  %v7950_v27 = vmax.f32 %v21593_v57, %v7908_v14  ;;  %v8139_v37 = vpop.f32.mrf.mxu1  ;;  %v8872_v4 = vld [vmem:[#allocation2 + $0x141] ss:$10 sm:$0xff] }
 0x34e   : > { %v8374_v11 = vmax.f32 %v8301_v18, %v8325_v38  ;;  %v8375_v9 = vmax.f32 %v8302_v20, %v8327_v16  ;;  %v8257_v29 = vrot.slane %v8212_v26, 1  ;;  %v8330_v61 = vrot.slane %v8212_v26, 2  ;;  %v16129_v52 = vpop.f32.mrf.mxu0 }
 0x34f   : > { %v8263_v21 = vrot.slane %v21655_v42, 1  ;;  %v8336_v5 = vrot.slane %v21655_v42, 2  ;;  %v8259_v19 = vrot.slane %v8213_v0, 1  ;;  %v8332_v1 = vrot.slane %v8213_v0, 2  ;;  %v16165_v53 = vpop.f32.mrf.mxu1 }
 0x350   : > { %8392 = vst.msk [vmem:[#allocation2 + $0x2f0] sm:$0xff] %vm1677_vm4, %v8374_v11  ;;  %8393 = vst.msk [vmem:[#allocation2 + $0x2f8] sm:$0xff] %vm1677_vm4, %v8375_v9  ;;  %v8258_v15 = vsel %vm1529_vm2, %v8255_v39, %v8257_v29  ;;  %v8331_v57 = vsel %vm1603_vm3, %v8328_v46, %v8330_v61  ;;  %v8178_v41 = vmax.f32 %v7950_v27, %v8136_v45  ;;  %v7924_v40 = vpop.f32.mrf.mxu0  ;;  %v8874_v46 = vld [vmem:[#allocation2 + $0x191] ss:$10 sm:$0xff] }
 0x351   : > { %v8304_v10 = vmax.f32 %v21624_v2, %v8258_v15  ;;  %v8264_v35 = vsel %vm1529_vm2, %v8261_v24, %v8263_v21  ;;  %v8337_v22 = vsel %vm1603_vm3, %v8334_v6, %v8336_v5  ;;  %v8260_v3 = vsel %vm1529_vm2, %v8257_v29, %v8259_v19  ;;  %v8152_v28 = vpop.f32.mrf.mxu1 }
 0x352   : > { %v8307_v36 = vmax.f32 %v21641_v44, %v8264_v35  ;;  %v8262_v34 = vsel %vm1529_vm2, %v8259_v19, %v8261_v24  ;;  %v8305_v7 = vmax.f32 %v8212_v26, %v8260_v3  ;;  %v8333_v39 = vsel %vm1603_vm3, %v8330_v61, %v8332_v1  ;;  %v16130_v54 = vpop.f32.mrf.mxu0 }
 0x353   : > { %v8377_v14 = vmax.f32 %v8304_v10, %v8331_v57  ;;  %v8306_v13 = vmax.f32 %v8213_v0, %v8262_v34  ;;  %v8335_v2 = vsel %vm1603_vm3, %v8332_v1, %v8334_v6  ;;  %v16166_v59 = vpop.f32.mrf.mxu1  ;;  %v8197_v47 = vadd.f32 %v21312_v12, %v8178_v41 }
 0x354   : > { %v8380_v31 = vmax.f32 %v8307_v36, %v8337_v22  ;;  %v8378_v45 = vmax.f32 %v8305_v7, %v8333_v39  ;;  %v7927_v33 = vpop.f32.mrf.mxu0  ;;  %v7951_v24 = vmax.f32 %v21596_v55, %v7911_v48  ;;  %v21675_v17 = vpack.c.bf16 %v8874_v46, %v8872_v4  ;;  %v17345_v46 = vld [vmem:[%s23512_s3 + $0x2b8] sm:$0xff]  }
 0x355   : > { %8395 = vst.msk [vmem:[#allocation2 + $0x308] sm:$0xff] %vm1677_vm4, %v8377_v14  ;;  %v8379_v44 = vmax.f32 %v8306_v13, %v8335_v2  ;;  %v8155_v23 = vpop.f32.mrf.mxu1  ;;  %v8216_v6 = vmax.f32 %v8197_v47, 0.0  ;;  %v8915_v34 = vor.u32 %v21552_v49, %v8910_v43  ;;  %v8878_v49 = vld [vmem:[#allocation2 + $0x231] ss:$10 sm:$0xff]  ;;  %v8921_v33 = vshrl.u32 %v21531_v50, 16 }
 0x356   : > { %8398 = vst.msk [vmem:[#allocation2 + $0x320] sm:$0xff] %vm1677_vm4, %v8380_v31  ;;  %8396 = vst.msk [vmem:[#allocation2 + $0x310] sm:$0xff] %vm1677_vm4, %v8378_v45  ;;  %v8568_v32 = vpop.f32.mrf.mxu0  ;;  %v8179_v38 = vmax.f32 %v7951_v24, %v8139_v37  ;;  %v8925_v54 = vshll.u32 %v21675_v17, 16  ;;  %v17346_v24 = vld [vmem:[%s23512_s3 + $0x2b0] sm:$0xff]  }
 0x357   : > { %8397 = vst.msk [vmem:[#allocation2 + $0x318] sm:$0xff] %vm1677_vm4, %v8379_v44  ;;  %v8675_v16 = vpop.f32.mrf.mxu1  ;;  %v8265_v63 = vrot.slane %v8216_v6, 1  ;;  %v8338_v18 = vrot.slane %v8216_v6, 2  ;;  %v8920_v59 = vsel %vm8450_vm5, %v8915_v34, %v21554_v62  ;;  %v8876_v44 = vld [vmem:[#allocation2 + $0x1e1] ss:$10 sm:$0xff] }
 0x358   : > { %v16177_v20 = vpop.f32.mrf.mxu0  ;;  %v8198_v26 = vadd.f32 %v21312_v12, %v8179_v38  ;;  %v21681_v0 = vadd.f32 %v8675_v16, %v8568_v32  ;;  %v8422_v12 = vld [vmem:[#allocation2 + $0x280] ss:$10 sm:$0xff]  ;;  %v8927_v4 = vrot.slane %v8925_v54, 1  ;;  %v21732_v16 = vpack.c.bf16 %v8878_v49, %v8876_v44 }
 0x359   : > { %v16205_v55 = vpop.f32.mrf.mxu1  ;;  %v8266_v48 = vsel %vm1529_vm2, %v8263_v21, %v8265_v63  ;;  %v8339_v27 = vsel %vm1603_vm3, %v8336_v5, %v8338_v18  ;;  %v17348_v34 = vld [vmem:[%s23512_s3 + $0x28] sm:$0xff]   ;;  %v9188_v49 = vrot.slane %v21531_v50, 1 }
 0x35a   : > { %v8571_v11 = vpop.f32.mrf.mxu0  ;;  %v8308_v9 = vmax.f32 %v21655_v42, %v8266_v48  ;;  %v8217_v29 = vmax.f32 %v8198_v26, 0.0  ;;  %v8923_v26 = vor.u32 %v8921_v33, %v21554_v62  ;;  %v17347_v55 = vld [vmem:[%s23512_s3 + $0x2a8] sm:$0xff]  }
 0x35b   : > { %v8678_v61 = vpop.f32.mrf.mxu1  ;;  %v8880_v62 = vld [vmem:[#allocation2 + $0x281] ss:$10 sm:$0xff] }
 0x35c   : > { %v21686_v52 = vadd.f32 %v8678_v61, %v8571_v11  ;;  %v16178_v37 = vpop.f32.mrf.mxu0  ;;  %v8381_v19 = vmax.f32 %v8308_v9, %v8339_v27  ;;  %v8267_v1 = vrot.slane %v8217_v29, 1  ;;  %v8340_v53 = vrot.slane %v8217_v29, 2  ;;  %v17349_v29 = vld [vmem:[%s23512_s3 + $0x2a0] sm:$0xff]   ;;  %v23900_v61 = vld [vmem:[#allocation18_spill] sm:$0xff]  ;;  %v17355_v44 = vld [vmem:[%s23512_s3 + $0x48] sm:$0xff]  }
 0x35d   : > { %v16206_v15 = vpop.f32.mrf.mxu1  ;;  %v8424_v57 = vld [vmem:[#allocation2 + $0x2d0] ss:$10 sm:$0xff]  ;;  %v8928_v27 = vsel %vm8450_vm5, %v8923_v26, %v8927_v4  ;;  %v8933_v11 = vshll.u32 %v21732_v16, 16  ;;  %v8882_v9 = vld [vmem:[#allocation2 + $0x2d1] ss:$10 sm:$0xff]  ;;  %v8731_v37 = vrot.slane %v23900_v61, 1 }
 0x35e   : > { %v21688_v41 = vpack.c.bf16 %v8424_v57, %v8422_v12  ;;  %8399 = vst.msk [vmem:[#allocation2 + $0x328] sm:$0xff] %vm1677_vm4, %v8381_v19  ;;  %v8268_v21 = vsel %vm1529_vm2, %v8265_v63, %v8267_v1  ;;  %v8341_v5 = vsel %vm1603_vm3, %v8338_v18, %v8340_v53  ;;  %v8929_v19 = vshrl.u32 %v21675_v17, 16  ;;  %v23901_v15 = vld [vmem:[#allocation33_spill] sm:$0xff]  ;;  %v17343_v57 = vld [vmem:[%s23512_s3 + $0x38] sm:$0xff]  }
 0x35f   : > { %v8683_v42 = vpop.f32.mrf.mxu1  ;;  %v8309_v40 = vmax.f32 %v8216_v6, %v8268_v21  ;;  %v8935_v1 = vrot.slane %v8933_v11, 1  ;;  %v21754_v53 = vpack.c.bf16 %v8882_v9, %v8880_v62  ;;  %v8730_v12 = vrot.slane %v23901_v15, 1  ;;  %v9323_v11 = vld [vmem:[#allocation2 + $0x52] ss:$10 sm:$0xff]  ;;  %v9321_v9 = vld [vmem:[#allocation2 + $0x2] ss:$10 sm:$0xff] }
 0x360   : > { %16220 = vmatmul.mubr.msk.bf16.gmra.mxu1 %vm1677_vm4, %v21688_v41  ;;  %v8483_v22 = vshll.u32 %v21688_v41, 16  ;;  %v8487_v32 = vshrl.u32 %v21688_v41, 16  ;;  %v8931_v21 = vor.u32 %v8929_v19, %v8927_v4  ;;  %v9190_v4 = vrot.slane %v21675_v17, 1  ;;  %v9325_v61 = vld [vmem:[#allocation2 + $0xa2] ss:$10 sm:$0xff] }
 0x361   : > { %v16209_v10 = vpop.f32.mrf.mxu1  ;;  %16259 = vmatprep.mubr.msk.bf16.mxu1 %vm17549_vm6, %v23886_v8  ;;  %v8382_v35 = vmax.f32 %v8309_v40, %v8341_v5  ;;  %v8732_v5 = vsel %vm1529_vm2, %v8730_v12, %v8731_v37  ;;  %v8941_v40 = vshll.u32 %v21754_v53, 16  ;;  %v9194_v26 = vrot.slane %v21754_v53, 1  ;;  %v9331_v12 = vld [vmem:[#allocation2 + $0x192] ss:$10 sm:$0xff] }
 0x362   : > { %v8485_v28 = vrot.slane %v8483_v22, 1  ;;  %v8576_v7 = vpop.f32.mrf.mxu0  ;;  %v8937_v22 = vshrl.u32 %v21732_v16, 16  ;;  %v21889_v62 = vpack.c.bf16 %v9323_v11, %v9321_v9  ;;  %v9788_v11 = vld [vmem:[#allocation2 + $0x193] ss:$10 sm:$0xff] }
 0x363   : > { %v8686_v3 = vpop.f32.mrf.mxu1  ;;  %8400 = vst.msk [vmem:[#allocation2 + $0x330] sm:$0xff] %vm1677_vm4, %v8382_v35  ;;  %v21706_v14 = vadd.f32 %v8683_v42, %v8576_v7  ;;  %v8936_v42 = vsel %vm8450_vm5, %v8931_v21, %v8935_v1  ;;  %v17344_v35 = vld [vmem:[%s23512_s3 + $0x30] sm:$0xff]   ;;  %v8734_v7 = vsel %vm1529_vm2, %v8731_v37, %v8733_v56  ;;  %v8945_v56 = vshrl.u32 %v21754_v53, 16 }
 0x364   : > { %v8486_v13 = vsel %vm8450_vm5, %v21489_v51, %v8485_v28  ;;  %v16181_v43 = vpop.f32.mrf.mxu0  ;;  %v8489_v18 = vor.u32 %v8487_v32, %v8485_v28  ;;  %v9191_v32 = vsel %vm1529_vm2, %v9188_v49, %v9190_v4  ;;  %v17362_v37 = vld [vmem:[%s23512_s3 + $0x1b0] sm:$0xff]  }
 0x365   : > { %v16210_v36 = vpop.f32.mrf.mxu1  ;;  %v8426_v39 = vld [vmem:[#allocation2 + $0x320] ss:$10 sm:$0x3]  ;;  %16188 = vmatmul.mubr.msk.bf16.gmra.mxu0 %vm1677_vm4, %v8486_v13  ;;  %v8884_v10 = vld [vmem:[#allocation2 + $0x321] ss:$10 sm:$0x3] }
 0x366   : > { %v21714_v31 = vpack.c.bf16 %v8426_v39, %v8426_v39  ;;  %16191 = vmatprep.mubr.msk.bf16.mxu0 %vm17549_vm6, %v23886_v8  ;;  %v8579_v51 = vpop.f32.mrf.mxu0  ;;  %v21776_v28 = vpack.c.bf16 %v8884_v10, %v8884_v10  ;;  %v8939_v36 = vor.u32 %v8937_v22, %v8935_v1  ;;  %v8737_v43 = vrot.slane %v21688_v41, 1  ;;  %v17354_v41 = vld [vmem:[%s23512_s3 + $0x50] sm:$0xff]   ;;  %v17363_v1 = vld [vmem:[%s23512_s3 + $0x1a8] sm:$0xff]  }
 0x367   : > { %v21710_v2 = vpop.f32.mrf.mxu1  ;;  %v21727_v23 = vadd.f32 %v8686_v3, %v8579_v51  ;;  %v8943_v3 = vrot.slane %v8941_v40, 1  ;;  %v9329_v21 = vld [vmem:[#allocation2 + $0x142] ss:$10 sm:$0xff] }
 0x368   : > { %16260 = vmatmul.mubr.msk.bf16.vlgmr.msra.gmra.mxu1 %vm1677_vm4, %v8920_v59  ;;  %v8491_v47 = vshll.u32 %v21714_v31, 16  ;;  %v16182_v63 = vpop.f32.mrf.mxu0  ;;  %v8949_v54 = vshll.u32 %v21776_v28, 16  ;;  %v21926_v40 = vpack.c.bf16 %v9331_v12, %v9329_v21 }
 0x369   : > { %v16213_v45 = vpop.f32.mrf.mxu1  ;;  %16263 = vmatprep.mubr.msk.bf16.mxu1 %vm17549_vm6, %v23886_v8  ;;  %16308 = vmatpush3.bf16.msra.mxu1 %v17345_v46  ;;  %v8944_v39 = vsel %vm8450_vm5, %v8939_v36, %v8943_v3  ;;  %v8947_v13 = vor.u32 %v8945_v56, %v8943_v3  ;;  %v17351_v63 = vld [vmem:[%s23512_s3 + $0x198] sm:$0xff]   ;;  %v17360_v36 = vld [vmem:[%s23512_s3 + $0x2d0] sm:$0xff]  }
 0x36a   : > { %v8493_v38 = vrot.slane %v8491_v47, 1  ;;  %16309 = vmatprep.subr.bf16.mxu1 %v23886_v8  ;;  %v8951_v46 = vrot.slane %v8949_v54, 1  ;;  %v9187_v45 = vrot.slane %v21529_v58, 1  ;;  %v17353_v47 = vld [vmem:[%s23512_s3 + $0x58] sm:$0xff]   ;;  %v9382_v3 = vshll.u32 %v21926_v40, 16 }
 0x36b   : > { %v21729_v6 = vpop.f32.mrf.mxu1 }
 0x36c   : > { %v8494_v48 = vsel %vm8450_vm5, %v8489_v18, %v8493_v38  ;;  %v8952_v59 = vsel %vm8450_vm5, %v8947_v13, %v8951_v46  ;;  %v9189_v33 = vsel %vm1529_vm2, %v9187_v45, %v9188_v49  ;;  %v9192_v38 = vrot.slane %v21732_v16, 1  ;;  %v17364_v13 = vld [vmem:[%s23512_s3 + $0x2c8] sm:$0xff]  }
 0x36d   : > { %v16214_v20 = vpop.f32.mrf.mxu1  ;;  %16310 = vmatpush3.bf16.msra.mxu1 %v17346_v24  ;;  %16192 = vmatmul.mubr.msk.bf16.gmra.mxu0 %vm1677_vm4, %v8494_v48  ;;  %v17358_v48 = vld [vmem:[%s23512_s3 + $0x180] sm:$0xff]  }
 0x36e   : > { %16311 = vmatprep.subr.bf16.mxu1 %v23886_v8  ;;  %16231 = vmatprep.mubr.msk.bf16.mxu0 %vm17549_vm6, %v23886_v8  ;;  %v9193_v18 = vsel %vm1529_vm2, %v9190_v4, %v9192_v38  ;;  %v17352_v20 = vld [vmem:[%s23512_s3 + $0x190] sm:$0xff]  }
 0x36f   : > { %v9784_v45 = vld [vmem:[#allocation2 + $0xf3] ss:$10 sm:$0xff]  ;;  %v9337_v4 = vld [vmem:[#allocation2 + $0x282] ss:$10 sm:$0xff] }
 0x370   : > { %16264 = vmatmul.mubr.msk.bf16.gmra.mxu1 %vm1677_vm4, %v8928_v27  ;;  %v9196_v27 = vrot.slane %v21776_v28, 1  ;;  %v9335_v28 = vld [vmem:[#allocation2 + $0x232] ss:$10 sm:$0xff] }
 0x371   : > { %16267 = vmatprep.mubr.msk.bf16.mxu1 %vm17549_vm6, %v23886_v8  ;;  %16312 = vmatpush3.bf16.msra.mxu1 %v17347_v55  ;;  %v9195_v55 = vsel %vm1529_vm2, %v9192_v38, %v9194_v26 }
 0x372   : > { %16313 = vmatprep.subr.bf16.mxu1 %v23886_v8 }
 0x375   : > { %16314 = vmatpush3.bf16.msra.mxu1 %v17349_v29  ;;  %16232 = vmatmul.mubr.msk.bf16.vlgmr.msra.gmra.mxu0 %vm1677_vm4, %v8732_v5  ;;  %v17361_v29 = vld [vmem:[%s23512_s3 + $0x1b8] sm:$0xff]   ;;  %v17365_v5 = vld [vmem:[%s23512_s3 + $0x1a0] sm:$0xff]  }
 0x376   : > { %16363 = vmatprep.subr.bf16.mxu1 %v23886_v8  ;;  %16280 = vmatpush3.bf16.msra.mxu0 %v17343_v57 }
 0x377   : > { %16235 = vmatprep.mubr.msk.bf16.mxu0 %vm17549_vm6, %v23886_v8  ;;  %16281 = vmatprep.subr.bf16.mxu0 %v23886_v8 }
 0x378   : > { %16268 = vmatmul.mubr.msk.bf16.gmra.mxu1 %vm1677_vm4, %v8936_v42  ;;  %v9367_v42 = vshrl.u32 %v21889_v62, 16 }
 0x379   : > { %16271 = vmatprep.mubr.msk.bf16.mxu1 %vm17549_vm6, %v23886_v8 }
 0x37a   : > { %16282 = vmatpush3.bf16.msra.mxu0 %v17344_v35  ;;  %v17359_v35 = vld [vmem:[%s23512_s3 + $0x2d8] sm:$0xff]  }
 0x37b   : > { %16283 = vmatprep.subr.bf16.mxu0 %v23886_v8 }
 0x37d   : > { %16236 = vmatmul.mubr.msk.bf16.gmra.mxu0 %vm1677_vm4, %v8734_v7 }
 0x37e   : > { %16239 = vmatprep.mubr.msk.bf16.mxu0 %vm17549_vm6, %v23886_v8  ;;  %16284 = vmatpush3.bf16.msra.mxu0 %v17348_v34  ;;  %v9333_v34 = vld [vmem:[#allocation2 + $0x1e2] ss:$10 sm:$0xff] }
 0x37f   : > { %16285 = vmatprep.subr.bf16.mxu0 %v23886_v8  ;;  %v21947_v54 = vpack.c.bf16 %v9335_v28, %v9333_v34  ;;  %v9790_v28 = vld [vmem:[#allocation2 + $0x1e3] ss:$10 sm:$0xff] }
 0x380   : > { %16272 = vmatmul.mubr.msk.bf16.gmra.mxu1 %vm1677_vm4, %v8944_v39  ;;  %v9384_v39 = vrot.slane %v9382_v3, 1 }
 0x381   : > { %16275 = vmatprep.mubr.msk.bf16.mxu1 %vm17549_vm6, %v23886_v8  ;;  %v9390_v49 = vshll.u32 %v21947_v54, 16 }
 0x382   : > { %16286 = vmatpush3.bf16.msra.mxu0 %v17350_v25 }
 0x383   : > { %16335 = vmatprep.subr.bf16.mxu0 %v23886_v8  ;;  %v9392_v38 = vrot.slane %v9390_v49, 1 }
 0x385   : > { %16240 = vmatmul.mubr.msk.bf16.gmra.mxu0 %vm1677_vm4, %v21505_v30  ;;  %v23902_v30 = vrot.slane %v21443_v60, 1  ;;  %v8739_v60 = vrot.slane %v21714_v31, 1  ;;  %v17357_v31 = vld [vmem:[%s23512_s3 + $0x40] sm:$0xff]  }
 0x386   : > { %16243 = vmatprep.mubr.msk.bf16.mxu0 %vm17549_vm6, %v23886_v8 }
 0x387   : > { %v8738_v51 = vsel %vm1529_vm2, %v23902_v30, %v8737_v43  ;;  %v8740_v24 = vsel %vm1529_vm2, %v8737_v43, %v8739_v60  ;;  %v9339_v30 = vld [vmem:[#allocation2 + $0x2d2] ss:$10 sm:$0xff] }
 0x388   : > { %16276 = vmatmul.mubr.msk.bf16.gmra.mxu1 %vm1677_vm4, %v8952_v59  ;;  %v9780_v59 = vld [vmem:[#allocation2 + $0x53] ss:$10 sm:$0xff] }
 0x389   : > { %16315 = vmatprep.mubr.msk.bf16.mxu1 %vm17549_vm6, %v23886_v8 }
 0x38d   : > { %16244 = vmatmul.mubr.msk.bf16.gmra.mxu0 %vm1677_vm4, %v8738_v51  ;;  %v9778_v51 = vld [vmem:[#allocation2 + $0x3] ss:$10 sm:$0xff] }
 0x38e   : > { %16247 = vmatprep.mubr.msk.bf16.mxu0 %vm17549_vm6, %v23886_v8 }
 0x390   : > { %16316 = vmatmul.mubr.msk.bf16.vlgmr.msra.gmra.mxu1 %vm1677_vm4, %v9189_v33  ;;  %v9782_v33 = vld [vmem:[#allocation2 + $0xa3] ss:$10 sm:$0xff] }
 0x391   : > { %16319 = vmatprep.mubr.msk.bf16.mxu1 %vm17549_vm6, %v23886_v8  ;;  %16364 = vmatpush3.bf16.msra.mxu1 %v17353_v47 }
 0x392   : > { %16365 = vmatprep.subr.bf16.mxu1 %v23886_v8 }
 0x395   : > { %16366 = vmatpush3.bf16.msra.mxu1 %v17354_v41  ;;  %16248 = vmatmul.mubr.msk.bf16.gmra.mxu0 %vm1677_vm4, %v8740_v24  ;;  %v21966_v41 = vpack.c.bf16 %v9780_v59, %v9778_v51  ;;  %v17366_v24 = vld [vmem:[%s23512_s3 + $0x2c0] sm:$0xff]   ;;  %v17371_v59 = vld [vmem:[%s23512_s3 + $0x2e8] sm:$0xff]  }
 0x396   : > { %16367 = vmatprep.subr.bf16.mxu1 %v23886_v8  ;;  %16287 = vmatprep.mubr.msk.bf16.mxu0 %vm17549_vm6, %v23886_v8  ;;  %v9794_v51 = vld [vmem:[#allocation2 + $0x283] ss:$10 sm:$0xff] }
 0x398   : > { %16320 = vmatmul.mubr.msk.bf16.gmra.mxu1 %vm1677_vm4, %v9191_v32 }
 0x399   : > { %16323 = vmatprep.mubr.msk.bf16.mxu1 %vm17549_vm6, %v23886_v8  ;;  %16368 = vmatpush3.bf16.msra.mxu1 %v17355_v44  ;;  %v21968_v44 = vpack.c.bf16 %v9784_v45, %v9782_v33  ;;  %v17373_v33 = vld [vmem:[%s23512_s3 + $0x2e0] sm:$0xff]  }
 0x39a   : > { %16369 = vmatprep.subr.bf16.mxu1 %v23886_v8 }
 0x39b   : > { %v9835_v3 = vshrl.u32 %v21968_v44, 16 }
 0x39d   : > { %16370 = vmatpush3.bf16.msra.mxu1 %v17357_v31  ;;  %16288 = vmatmul.mubr.msk.bf16.vlgmr.msra.gmra.mxu0 %vm1677_vm4, %v21529_v58  ;;  %v17356_v58 = vld [vmem:[%s23512_s3 + $0x188] sm:$0xff]   ;;  %v9386_v31 = vshrl.u32 %v21926_v40, 16 }
 0x39e   : > { %16419 = vmatprep.subr.bf16.mxu1 %v23886_v8  ;;  %16336 = vmatpush3.bf16.msra.mxu0 %v17351_v63  ;;  %v21976_v63 = vpack.c.bf16 %v9339_v30, %v9337_v4  ;;  %v9796_v30 = vld [vmem:[#allocation2 + $0x2d3] ss:$10 sm:$0xff] }
 0x39f   : > { %16291 = vmatprep.mubr.msk.bf16.mxu0 %vm17549_vm6, %v23886_v8  ;;  %16337 = vmatprep.subr.bf16.mxu0 %v23886_v8 }
 0x3a0   : > { %16324 = vmatmul.mubr.msk.bf16.gmra.mxu1 %vm1677_vm4, %v9193_v18  ;;  %v9402_v34 = vshrl.u32 %v21976_v63, 16 }
 0x3a1   : > { %16327 = vmatprep.mubr.msk.bf16.mxu1 %vm17549_vm6, %v23886_v8 }
 0x3a2   : > { %16338 = vmatpush3.bf16.msra.mxu0 %v17352_v20  ;;  %v9388_v20 = vor.u32 %v9386_v31, %v9384_v39  ;;  %v22038_v31 = vpack.c.bf16 %v9796_v30, %v9794_v51 }
 0x3a3   : > { %16339 = vmatprep.subr.bf16.mxu0 %v23886_v8 }
 0x3a5   : > { %16292 = vmatmul.mubr.msk.bf16.gmra.mxu0 %vm1677_vm4, %v21531_v50  ;;  %v9197_v50 = vsel %vm1529_vm2, %v9194_v26, %v9196_v27  ;;  %v9826_v26 = vshll.u32 %v21966_v41, 16  ;;  %v9398_v27 = vshll.u32 %v21976_v63, 16 }
 0x3a6   : > { %16295 = vmatprep.mubr.msk.bf16.mxu0 %vm17549_vm6, %v23886_v8  ;;  %16340 = vmatpush3.bf16.msra.mxu0 %v17356_v58  ;;  %v9831_v58 = vshll.u32 %v21968_v44, 16 }
 0x3a7   : > { %16341 = vmatprep.subr.bf16.mxu0 %v23886_v8 }
 0x3a8   : > { %16328 = vmatmul.mubr.msk.bf16.gmra.mxu1 %vm1677_vm4, %v9195_v55 }
 0x3a9   : > { %16331 = vmatprep.mubr.msk.bf16.mxu1 %vm17549_vm6, %v23886_v8 }
 0x3aa   : > { %16342 = vmatpush3.bf16.msra.mxu0 %v17358_v48  ;;  %v9393_v48 = vsel %vm8450_vm5, %v9388_v20, %v9392_v38 }
 0x3ab   : > { %16391 = vmatprep.subr.bf16.mxu0 %v23886_v8 }
 0x3ad   : > { %16296 = vmatmul.mubr.msk.bf16.gmra.mxu0 %vm1677_vm4, %v21675_v17  ;;  %v9327_v17 = vld [vmem:[#allocation2 + $0xf2] ss:$10 sm:$0xff] }
 0x3ae   : > { %16299 = vmatprep.mubr.msk.bf16.mxu0 %vm17549_vm6, %v23886_v8  ;;  %v21905_v19 = vpack.c.bf16 %v9327_v17, %v9325_v61  ;;  %v9824_v17 = vshrl.u32 %v21966_v41, 16  ;;  %v9833_v61 = vrot.slane %v9831_v58, 1 }
 0x3b0   : > { %16332 = vmatmul.mubr.msk.bf16.gmra.mxu1 %vm1677_vm4, %v9197_v50  ;;  %v9374_v15 = vshll.u32 %v21905_v19, 16  ;;  %v9378_v7 = vshrl.u32 %v21905_v19, 16  ;;  %v9341_v50 = vld [vmem:[#allocation2 + $0x322] ss:$10 sm:$0x3] }
 0x3b1   : > { %16371 = vmatprep.mubr.msk.bf16.mxu1 %vm17549_vm6, %v23886_v8 }
 0x3b5   : > { %16300 = vmatmul.mubr.msk.bf16.gmra.mxu0 %vm1677_vm4, %v21732_v16  ;;  %v9369_v16 = vshll.u32 %v21889_v62, 16 }
 0x3b6   : > { %16303 = vmatprep.mubr.msk.bf16.mxu0 %vm17549_vm6, %v23886_v8 }
 0x3b7   : > { %v9371_v57 = vrot.slane %v9369_v16, 1  ;;  %v9394_v16 = vshrl.u32 %v21947_v54, 16 }
 0x3b8   : > { %16372 = vmatmul.mubr.msk.bf16.vlgmr.msra.gmra.mxu1 %vm1677_vm4, %v21889_v62 }
 0x3b9   : > { %16375 = vmatprep.mubr.msk.bf16.mxu1 %vm17549_vm6, %v23886_v8  ;;  %16420 = vmatpush3.bf16.msra.mxu1 %v17361_v29  ;;  %v9372_v10 = vor.u32 %v9371_v57, %v9367_v42  ;;  %v9828_v29 = vrot.slane %v9826_v26, 1  ;;  %v9396_v57 = vor.u32 %v9394_v16, %v9392_v38  ;;  %v9644_v38 = vrot.slane %v21889_v62, 1  ;;  %v17368_v62 = vld [vmem:[%s23512_s3 + $0x70] sm:$0xff]  }
 0x3ba   : > { %16421 = vmatprep.subr.bf16.mxu1 %v23886_v8 }
 0x3bb   : > { %v9829_v21 = vor.u32 %v9828_v29, %v9824_v17  ;;  %v17372_v17 = vld [vmem:[%s23512_s3 + $0x68] sm:$0xff]  }
 0x3bd   : > { %16422 = vmatpush3.bf16.msra.mxu1 %v17362_v37  ;;  %16304 = vmatmul.mubr.msk.bf16.gmra.mxu0 %vm1677_vm4, %v21754_v53  ;;  %v9376_v53 = vrot.slane %v9374_v15, 1  ;;  %v9786_v37 = vld [vmem:[#allocation2 + $0x143] ss:$10 sm:$0xff]  ;;  %v21995_v15 = vpack.c.bf16 %v9341_v50, %v9341_v50 }
 0x3be   : > { %16423 = vmatprep.subr.bf16.mxu1 %v23886_v8  ;;  %16343 = vmatprep.mubr.msk.bf16.mxu0 %vm17549_vm6, %v23886_v8  ;;  %v21997_v12 = vpack.c.bf16 %v9788_v11, %v9786_v37 }
 0x3bf   : > { %v9377_v22 = vsel %vm8450_vm5, %v9372_v10, %v9376_v53  ;;  %v9380_v56 = vor.u32 %v9378_v7, %v9376_v53  ;;  %v9834_v53 = vsel %vm8450_vm5, %v9829_v21, %v9833_v61  ;;  %v9406_v10 = vshll.u32 %v21995_v15, 16 }
 0x3c0   : > { %16376 = vmatmul.mubr.msk.bf16.gmra.mxu1 %vm1677_vm4, %v21905_v19  ;;  %v9843_v4 = vshrl.u32 %v21997_v12, 16 }
 0x3c1   : > { %16379 = vmatprep.mubr.msk.bf16.mxu1 %vm17549_vm6, %v23886_v8  ;;  %16424 = vmatpush3.bf16.msra.mxu1 %v17363_v1  ;;  %v9385_v43 = vsel %vm8450_vm5, %v9380_v56, %v9384_v39  ;;  %v9400_v1 = vrot.slane %v9398_v27, 1  ;;  %v9408_v7 = vrot.slane %v9406_v10, 1  ;;  %v9647_v27 = vrot.slane %v21926_v40, 1 }
 0x3c2   : > { %16425 = vmatprep.subr.bf16.mxu1 %v23886_v8  ;;  %v10102_v10 = vrot.slane %v21968_v44, 1 }
 0x3c3   : > { %v9401_v42 = vsel %vm8450_vm5, %v9396_v57, %v9400_v1  ;;  %v9859_v57 = vshrl.u32 %v22038_v31, 16 }
 0x3c5   : > { %16426 = vmatpush3.bf16.msra.mxu1 %v17365_v5  ;;  %16344 = vmatmul.mubr.msk.bf16.vlgmr.msra.gmra.mxu0 %vm1677_vm4, %v9377_v22  ;;  %v17369_v5 = vld [vmem:[%s23512_s3 + $0x2f8] sm:$0xff]  }
 0x3c6   : > { %16475 = vmatprep.subr.bf16.mxu1 %v23886_v8  ;;  %16392 = vmatpush3.bf16.msra.mxu0 %v17359_v35  ;;  %v9839_v35 = vshll.u32 %v21997_v12, 16  ;;  %v9792_v22 = vld [vmem:[#allocation2 + $0x233] ss:$10 sm:$0xff] }
 0x3c7   : > { %16347 = vmatprep.mubr.msk.bf16.mxu0 %vm17549_vm6, %v23886_v8  ;;  %16393 = vmatprep.subr.bf16.mxu0 %v23886_v8  ;;  %v22017_v56 = vpack.c.bf16 %v9792_v22, %v9790_v28  ;;  %v17377_v22 = vld [vmem:[%s23512_s3 + $0x98] sm:$0xff]  }
 0x3c8   : > { %16380 = vmatmul.mubr.msk.bf16.gmra.mxu1 %vm1677_vm4, %v21926_v40  ;;  %v9841_v39 = vrot.slane %v9839_v35, 1  ;;  %v17374_v40 = vld [vmem:[%s23512_s3 + $0x60] sm:$0xff]   ;;  %v10101_v35 = vrot.slane %v21966_v41, 1 }
 0x3c9   : > { %16383 = vmatprep.mubr.msk.bf16.mxu1 %vm17549_vm6, %v23886_v8  ;;  %v9847_v45 = vshll.u32 %v22017_v56, 16  ;;  %v9851_v50 = vshrl.u32 %v22017_v56, 16 }
 0x3ca   : > { %16394 = vmatpush3.bf16.msra.mxu0 %v17360_v36  ;;  %v17370_v36 = vld [vmem:[%s23512_s3 + $0x2f0] sm:$0xff]   ;;  %v9845_v20 = vor.u32 %v9843_v4, %v9841_v39  ;;  %v10103_v28 = vsel %vm1529_vm2, %v10101_v35, %v10102_v10  ;;  %v17387_v35 = vld [vmem:[%s23512_s3 + $0xa8] sm:$0xff]  }
 0x3cb   : > { %16395 = vmatprep.subr.bf16.mxu0 %v23886_v8 }
 0x3cd   : > { %v21949_v25 = vpop.f32.mrf.mxu1  ;;  %16348 = vmatmul.mubr.msk.bf16.gmra.mxu0 %vm1677_vm4, %v9385_v43 }
 0x3ce   : > { %16351 = vmatprep.mubr.msk.bf16.mxu0 %vm17549_vm6, %v23886_v8  ;;  %16396 = vmatpush3.bf16.msra.mxu0 %v17364_v13  ;;  %v9837_v13 = vor.u32 %v9835_v3, %v9833_v61 }
 0x3cf   : > { %v16217_v46 = vpop.f32.mrf.mxu1  ;;  %16397 = vmatprep.subr.bf16.mxu0 %v23886_v8 }
 0x3d0   : > { %16384 = vmatmul.mubr.msk.bf16.gmra.mxu1 %vm1677_vm4, %v21947_v54  ;;  %v9404_v46 = vor.u32 %v9402_v34, %v9400_v1  ;;  %v9842_v49 = vsel %vm8450_vm5, %v9837_v13, %v9841_v39  ;;  %v9649_v1 = vrot.slane %v21947_v54, 1  ;;  %v9651_v54 = vrot.slane %v21976_v63, 1 }
 0x3d1   : > { %v21957_v47 = vpop.f32.mrf.mxu1  ;;  %16387 = vmatprep.mubr.msk.bf16.mxu1 %vm17549_vm6, %v23886_v8  ;;  %v10104_v34 = vrot.slane %v21997_v12, 1  ;;  %v10106_v13 = vrot.slane %v22017_v56, 1 }
 0x3d2   : > { %16398 = vmatpush3.bf16.msra.mxu0 %v17366_v24  ;;  %v9409_v43 = vsel %vm8450_vm5, %v9404_v46, %v9408_v7  ;;  %v9849_v24 = vrot.slane %v9847_v45, 1  ;;  %v9652_v3 = vsel %vm1529_vm2, %v9649_v1, %v9651_v54  ;;  %v17379_v7 = vld [vmem:[%s23512_s3 + $0x88] sm:$0xff]   ;;  %v10108_v45 = vrot.slane %v22038_v31, 1 }
 0x3d3   : > { %v16218_v60 = vpop.f32.mrf.mxu1  ;;  %v21973_v32 = vpop.f32.mrf.mxu0  ;;  %16447 = vmatprep.subr.bf16.mxu0 %v23886_v8  ;;  %v10105_v46 = vsel %vm1529_vm2, %v10102_v10, %v10104_v34 }
 0x3d4   : > { %v9645_v60 = vrot.slane %v21905_v19, 1  ;;  %v9850_v58 = vsel %vm8450_vm5, %v9845_v20, %v9849_v24  ;;  %v9855_v19 = vshll.u32 %v22038_v31, 16  ;;  %v9853_v29 = vor.u32 %v9851_v50, %v9849_v24 }
 0x3d5   : > { %v16185_v18 = vpop.f32.mrf.mxu0  ;;  %16352 = vmatmul.mubr.msk.bf16.gmra.mxu0 %vm1677_vm4, %v9393_v48  ;;  %v9798_v48 = vld [vmem:[#allocation2 + $0x323] ss:$10 sm:$0x3]  ;;  %v10109_v30 = vsel %vm1529_vm2, %v10106_v13, %v10108_v45 }
 0x3d6   : > { %16355 = vmatprep.mubr.msk.bf16.mxu0 %vm17549_vm6, %v23886_v8  ;;  %v17367_v18 = vld [vmem:[%s23512_s3 + $0x78] sm:$0xff]   ;;  %v9646_v26 = vsel %vm1529_vm2, %v9644_v38, %v9645_v60  ;;  %v9857_v11 = vrot.slane %v9855_v19, 1  ;;  %v9648_v61 = vsel %vm1529_vm2, %v9645_v60, %v9647_v27  ;;  %v17382_v60 = vld [vmem:[%s23512_s3 + $0x1c0] sm:$0xff]  }
 0x3d7   : > { %v21981_v55 = vpop.f32.mrf.mxu0  ;;  %v10237_v19 = vld [vmem:[#allocation2 + $0x54] ss:$10 sm:$0xff] }
 0x3d8   : > { %16388 = vmatmul.mubr.msk.bf16.gmra.mxu1 %vm1677_vm4, %v21976_v63  ;;  %v9858_v37 = vsel %vm8450_vm5, %v9853_v29, %v9857_v11  ;;  %v17378_v63 = vld [vmem:[%s23512_s3 + $0x90] sm:$0xff]  }
 0x3d9   : > { %v16186_v9 = vpop.f32.mrf.mxu0  ;;  %16427 = vmatprep.mubr.msk.bf16.mxu1 %vm17549_vm6, %v23886_v8 }
 0x3da   : > { %v22061_v9 = vpack.c.bf16 %v9798_v48, %v9798_v48 }
 0x3dc   : > { %v9863_v16 = vshll.u32 %v22061_v9, 16  ;;  %v10110_v4 = vrot.slane %v22061_v9, 1  ;;  %v17385_v9 = vld [vmem:[%s23512_s3 + $0xb8] sm:$0xff]  }
 0x3dd   : > { %16356 = vmatmul.mubr.msk.bf16.gmra.mxu0 %vm1677_vm4, %v9401_v42  ;;  %v9650_v42 = vsel %vm1529_vm2, %v9647_v27, %v9649_v1  ;;  %v10235_v27 = vld [vmem:[#allocation2 + $0x4] ss:$10 sm:$0xff] }
 0x3de   : > { %16359 = vmatprep.mubr.msk.bf16.mxu0 %vm17549_vm6, %v23886_v8  ;;  %v9865_v21 = vrot.slane %v9863_v16, 1  ;;  %v10111_v38 = vsel %vm1529_vm2, %v10108_v45, %v10110_v4  ;;  %v10239_v1 = vld [vmem:[#allocation2 + $0xa4] ss:$10 sm:$0xff] }
 0x3e0   : > { %16428 = vmatmul.mubr.msk.bf16.vlgmr.msra.gmra.mxu1 %vm1677_vm4, %v9834_v53 }
 0x3e1   : > { %16431 = vmatprep.mubr.msk.bf16.mxu1 %vm17549_vm6, %v23886_v8  ;;  %16476 = vmatpush3.bf16.msra.mxu1 %v17369_v5  ;;  %v9861_v5 = vor.u32 %v9859_v57, %v9857_v11  ;;  %v22179_v11 = vpack.c.bf16 %v10237_v19, %v10235_v27  ;;  %v10247_v19 = vld [vmem:[#allocation2 + $0x1e4] ss:$10 sm:$0xff] }
 0x3e2   : > { %16477 = vmatprep.subr.bf16.mxu1 %v23886_v8 }
 0x3e3   : > { %v9866_v53 = vsel %vm8450_vm5, %v9861_v5, %v9865_v21 }
 0x3e5   : > { %16478 = vmatpush3.bf16.msra.mxu1 %v17370_v36  ;;  %16360 = vmatmul.mubr.msk.bf16.gmra.mxu0 %vm1677_vm4, %v9409_v43  ;;  %v9653_v36 = vrot.slane %v21995_v15, 1  ;;  %v17381_v15 = vld [vmem:[%s23512_s3 + $0x80] sm:$0xff]   ;;  %v10107_v43 = vsel %vm1529_vm2, %v10104_v34, %v10106_v13 }
 0x3e6   : > { %16479 = vmatprep.subr.bf16.mxu1 %v23886_v8  ;;  %16399 = vmatprep.mubr.msk.bf16.mxu0 %vm17549_vm6, %v23886_v8 }
 0x3e7   : > { %v9654_v39 = vsel %vm1529_vm2, %v9651_v54, %v9653_v36 }
 0x3e8   : > { %16432 = vmatmul.mubr.msk.bf16.gmra.mxu1 %vm1677_vm4, %v9842_v49  ;;  %v17376_v49 = vld [vmem:[%s23512_s3 + $0x1d0] sm:$0xff]  }
 0x3e9   : > { %16435 = vmatprep.mubr.msk.bf16.mxu1 %vm17549_vm6, %v23886_v8  ;;  %16480 = vmatpush3.bf16.msra.mxu1 %v17371_v59  ;;  %v17375_v59 = vld [vmem:[%s23512_s3 + $0x1d8] sm:$0xff]  }
 0x3ea   : > { %16481 = vmatprep.subr.bf16.mxu1 %v23886_v8 }
 0x3ed   : > { %16482 = vmatpush3.bf16.msra.mxu1 %v17373_v33  ;;  %16400 = vmatmul.mubr.msk.bf16.vlgmr.msra.gmra.mxu0 %vm1677_vm4, %v9646_v26 }
 0x3ee   : > { %16531 = vmatprep.subr.bf16.mxu1 %v23886_v8  ;;  %16448 = vmatpush3.bf16.msra.mxu0 %v17367_v18 }
 0x3ef   : > { %16403 = vmatprep.mubr.msk.bf16.mxu0 %vm17549_vm6, %v23886_v8  ;;  %16449 = vmatprep.subr.bf16.mxu0 %v23886_v8 }
 0x3f0   : > { %16436 = vmatmul.mubr.msk.bf16.gmra.mxu1 %vm1677_vm4, %v9850_v58 }
 0x3f1   : > { %16439 = vmatprep.mubr.msk.bf16.mxu1 %vm17549_vm6, %v23886_v8 }
 0x3f2   : > { %16450 = vmatpush3.bf16.msra.mxu0 %v17368_v62 }
 0x3f3   : > { %16451 = vmatprep.subr.bf16.mxu0 %v23886_v8 }
 0x3f5   : > { %16404 = vmatmul.mubr.msk.bf16.gmra.mxu0 %vm1677_vm4, %v9648_v61  ;;  %v10241_v61 = vld [vmem:[#allocation2 + $0xf4] ss:$10 sm:$0xff] }
 0x3f6   : > { %16407 = vmatprep.mubr.msk.bf16.mxu0 %vm17549_vm6, %v23886_v8  ;;  %16452 = vmatpush3.bf16.msra.mxu0 %v17372_v17  ;;  %v22199_v57 = vpack.c.bf16 %v10241_v61, %v10239_v1  ;;  %v17388_v1 = vld [vmem:[%s23512_s3 + $0x308] sm:$0xff]  }
 0x3f7   : > { %16453 = vmatprep.subr.bf16.mxu0 %v23886_v8 }
 0x3f8   : > { %16440 = vmatmul.mubr.msk.bf16.gmra.mxu1 %vm1677_vm4, %v9858_v37  ;;  %v10292_v27 = vshrl.u32 %v22199_v57, 16 }
 0x3f9   : > { %16443 = vmatprep.mubr.msk.bf16.mxu1 %vm17549_vm6, %v23886_v8 }
 0x3fa   : > { %16454 = vmatpush3.bf16.msra.mxu0 %v17374_v40 }
 0x3fb   : > { %16503 = vmatprep.subr.bf16.mxu0 %v23886_v8 }
 0x3fd   : > { %16408 = vmatmul.mubr.msk.bf16.gmra.mxu0 %vm1677_vm4, %v9650_v42 }
 0x3fe   : > { %16411 = vmatprep.mubr.msk.bf16.mxu0 %vm17549_vm6, %v23886_v8 }
 0x400   : > { %16444 = vmatmul.mubr.msk.bf16.gmra.mxu1 %vm1677_vm4, %v9866_v53  ;;  %v10283_v53 = vshll.u32 %v22179_v11, 16 }
 0x401   : > { %16483 = vmatprep.mubr.msk.bf16.mxu1 %vm17549_vm6, %v23886_v8 }
 0x402   : > { %v10285_v34 = vrot.slane %v10283_v53, 1 }
 0x405   : > { %16412 = vmatmul.mubr.msk.bf16.gmra.mxu0 %vm1677_vm4, %v9652_v3 }
 0x406   : > { %16415 = vmatprep.mubr.msk.bf16.mxu0 %vm17549_vm6, %v23886_v8 }
 0x408   : > { %16484 = vmatmul.mubr.msk.bf16.vlgmr.msra.gmra.mxu1 %vm1677_vm4, %v10103_v28 }
 0x409   : > { %16487 = vmatprep.mubr.msk.bf16.mxu1 %vm17549_vm6, %v23886_v8  ;;  %16532 = vmatpush3.bf16.msra.mxu1 %v17377_v22  ;;  %v10288_v22 = vshll.u32 %v22199_v57, 16 }
 0x40a   : > { %16533 = vmatprep.subr.bf16.mxu1 %v23886_v8 }
 0x40b   : > { %v10290_v13 = vrot.slane %v10288_v22, 1  ;;  %v10251_v22 = vld [vmem:[#allocation2 + $0x284] ss:$10 sm:$0xff] }
 0x40d   : > { %16534 = vmatpush3.bf16.msra.mxu1 %v17378_v63  ;;  %16416 = vmatmul.mubr.msk.bf16.gmra.mxu0 %vm1677_vm4, %v9654_v39  ;;  %v10245_v63 = vld [vmem:[#allocation2 + $0x194] ss:$10 sm:$0xff]  ;;  %v10294_v61 = vor.u32 %v10292_v27, %v10290_v13 }
 0x40e   : > { %16535 = vmatprep.subr.bf16.mxu1 %v23886_v8  ;;  %16455 = vmatprep.mubr.msk.bf16.mxu0 %vm17549_vm6, %v23886_v8 }
 0x410   : > { %16488 = vmatmul.mubr.msk.bf16.gmra.mxu1 %vm1677_vm4, %v10105_v46  ;;  %v10243_v46 = vld [vmem:[#allocation2 + $0x144] ss:$10 sm:$0xff] }
 0x411   : > { %16491 = vmatprep.mubr.msk.bf16.mxu1 %vm17549_vm6, %v23886_v8  ;;  %16536 = vmatpush3.bf16.msra.mxu1 %v17379_v7 }
 0x412   : > { %16537 = vmatprep.subr.bf16.mxu1 %v23886_v8 }
 0x415   : > { %16538 = vmatpush3.bf16.msra.mxu1 %v17381_v15  ;;  %16456 = vmatmul.mubr.msk.bf16.vlgmr.msra.gmra.mxu0 %vm1677_vm4, %v21966_v41  ;;  %v17380_v41 = vld [vmem:[%s23512_s3 + $0x1c8] sm:$0xff]   ;;  %v10281_v15 = vshrl.u32 %v22179_v11, 16 }
 0x416   : > { %16587 = vmatprep.subr.bf16.mxu1 %v23886_v8  ;;  %16504 = vmatpush3.bf16.msra.mxu0 %v17375_v59 }
 0x417   : > { %16459 = vmatprep.mubr.msk.bf16.mxu0 %vm17549_vm6, %v23886_v8  ;;  %16505 = vmatprep.subr.bf16.mxu0 %v23886_v8  ;;  %v10286_v45 = vor.u32 %v10285_v34, %v10281_v15 }
 0x418   : > { %16492 = vmatmul.mubr.msk.bf16.gmra.mxu1 %vm1677_vm4, %v10107_v43 }
 0x419   : > { %16495 = vmatprep.mubr.msk.bf16.mxu1 %vm17549_vm6, %v23886_v8 }
 0x41a   : > { %16506 = vmatpush3.bf16.msra.mxu0 %v17376_v49 }
 0x41b   : > { %16507 = vmatprep.subr.bf16.mxu0 %v23886_v8 }
 0x41d   : > { %16460 = vmatmul.mubr.msk.bf16.gmra.mxu0 %vm1677_vm4, %v21968_v44 }
 0x41e   : > { %16463 = vmatprep.mubr.msk.bf16.mxu0 %vm17549_vm6, %v23886_v8  ;;  %16508 = vmatpush3.bf16.msra.mxu0 %v17380_v41  ;;  %v17383_v41 = vld [vmem:[%s23512_s3 + $0x318] sm:$0xff]  }
 0x41f   : > { %16509 = vmatprep.subr.bf16.mxu0 %v23886_v8 }
 0x420   : > { %v8707_v51 = vpop.f32.mrf.mxu1  ;;  %16496 = vmatmul.mubr.msk.bf16.gmra.mxu1 %vm1677_vm4, %v10109_v30 }
 0x421   : > { %16499 = vmatprep.mubr.msk.bf16.mxu1 %vm17549_vm6, %v23886_v8 }
 0x422   : > { %v16221_v33 = vpop.f32.mrf.mxu1  ;;  %16510 = vmatpush3.bf16.msra.mxu0 %v17382_v60 }
 0x423   : > { %16559 = vmatprep.subr.bf16.mxu0 %v23886_v8  ;;  %v10291_v33 = vsel %vm8450_vm5, %v10286_v45, %v10290_v13 }
 0x424   : > { %v8710_v44 = vpop.f32.mrf.mxu1 }
 0x425   : > { %v22164_v18 = vpop.f32.mrf.mxu0  ;;  %16464 = vmatmul.mubr.msk.bf16.gmra.mxu0 %vm1677_vm4, %v21997_v12 }
 0x426   : > { %v16222_v24 = vpop.f32.mrf.mxu1  ;;  %16467 = vmatprep.mubr.msk.bf16.mxu0 %vm17549_vm6, %v23886_v8 }
 0x427   : > { %v16189_v26 = vpop.f32.mrf.mxu0 }
 0x428   : > { %v22168_v20 = vpop.f32.mrf.mxu1  ;;  %16500 = vmatmul.mubr.msk.bf16.gmra.mxu1 %vm1677_vm4, %v10111_v38  ;;  %v17384_v38 = vld [vmem:[%s23512_s3 + $0x310] sm:$0xff]  }
 0x429   : > { %16539 = vmatprep.mubr.msk.bf16.mxu1 %vm17549_vm6, %v23886_v8  ;;  %v22175_v48 = vpop.f32.mrf.mxu0 }
 0x42a   : > { %v16261_v58 = vpop.f32.mrf.mxu1 }
 0x42b   : > { %v16190_v50 = vpop.f32.mrf.mxu0 }
 0x42c   : > { %v22177_v62 = vpop.f32.mrf.mxu1 }
 0x42d   : > { %v8600_v29 = vpop.f32.mrf.mxu0  ;;  %16468 = vmatmul.mubr.msk.bf16.gmra.mxu0 %vm1677_vm4, %v22017_v56  ;;  %v17386_v56 = vld [vmem:[%s23512_s3 + $0xb0] sm:$0xff]  }
 0x42e   : > { %v16262_v12 = vpop.f32.mrf.mxu1  ;;  %v22190_v37 = vadd.f32 %v8707_v51, %v8600_v29  ;;  %16471 = vmatprep.mubr.msk.bf16.mxu0 %vm17549_vm6, %v23886_v8 }
 0x42f   : > { %v16193_v16 = vpop.f32.mrf.mxu0 }
 0x430   : > { %v22186_v17 = vpop.f32.mrf.mxu1  ;;  %16540 = vmatmul.mubr.msk.bf16.vlgmr.msra.gmra.mxu1 %vm1677_vm4, %v22179_v11 }
 0x431   : > { %16543 = vmatprep.mubr.msk.bf16.mxu1 %vm17549_vm6, %v23886_v8  ;;  %16588 = vmatpush3.bf16.msra.mxu1 %v17385_v9  ;;  %v8603_v21 = vpop.f32.mrf.mxu0 }
 0x432   : > { %v16265_v40 = vpop.f32.mrf.mxu1  ;;  %16589 = vmatprep.subr.bf16.mxu1 %v23886_v8  ;;  %v22204_v42 = vadd.f32 %v8710_v44, %v8603_v21 }
 0x433   : > { %v16194_v54 = vpop.f32.mrf.mxu0 }
 0x434   : > { %v22202_v5 = vpop.f32.mrf.mxu1 }
 0x435   : > { %16590 = vmatpush3.bf16.msra.mxu1 %v17386_v56  ;;  %v8814_v3 = vpop.f32.mrf.mxu0  ;;  %16472 = vmatmul.mubr.msk.bf16.gmra.mxu0 %vm1677_vm4, %v22038_v31  ;;  %v17389_v31 = vld [vmem:[%s23512_s3 + $0xa0] sm:$0xff]   ;;  %v8692_v56 = vadd.f32 %v21710_v2, %v21973_v32 }
 0x436   : > { %v16266_v10 = vpop.f32.mrf.mxu1  ;;  %16591 = vmatprep.subr.bf16.mxu1 %v23886_v8  ;;  %v22219_v36 = vadd.f32 %v8814_v3, %v21681_v0  ;;  %16511 = vmatprep.mubr.msk.bf16.mxu0 %vm17549_vm6, %v23886_v8  ;;  %v22229_v0 = vpack.c.bf16 %v10245_v63, %v10243_v46  ;;  %v17390_v3 = vld [vmem:[%s23512_s3 + $0x300] sm:$0xff]   ;;  %v8695_v63 = vadd.f32 %v21729_v6, %v21981_v55 }
 0x437   : > { %v16233_v7 = vpop.f32.mrf.mxu0  ;;  %v10253_v10 = vld [vmem:[#allocation2 + $0x2d4] ss:$10 sm:$0xff] }
 0x438   : > { %v22214_v28 = vpop.f32.mrf.mxu1  ;;  %16544 = vmatmul.mubr.msk.bf16.gmra.mxu1 %vm1677_vm4, %v22199_v57  ;;  %v10296_v60 = vshll.u32 %v22229_v0, 16  ;;  %v10300_v34 = vshrl.u32 %v22229_v0, 16 }
 0x439   : > { %16547 = vmatprep.mubr.msk.bf16.mxu1 %vm17549_vm6, %v23886_v8  ;;  %16592 = vmatpush3.bf16.msra.mxu1 %v17387_v35  ;;  %v8817_v59 = vpop.f32.mrf.mxu0 }
 0x43a   : > { %v16269_v39 = vpop.f32.mrf.mxu1  ;;  %16593 = vmatprep.subr.bf16.mxu1 %v23886_v8  ;;  %v22235_v49 = vadd.f32 %v8817_v59, %v21686_v52  ;;  %v10249_v52 = vld [vmem:[#allocation2 + $0x234] ss:$10 sm:$0xff] }
 0x43b   : > { %v16234_v30 = vpop.f32.mrf.mxu0  ;;  %v22260_v50 = vpack.c.bf16 %v10249_v52, %v10247_v19  ;;  %v22292_v39 = vpack.c.bf16 %v10253_v10, %v10251_v22 }
 0x43c   : > { %v22232_v43 = vpop.f32.mrf.mxu1 }
 0x43d   : > { %16594 = vmatpush3.bf16.msra.mxu1 %v17389_v31  ;;  %v8822_v4 = vpop.f32.mrf.mxu0  ;;  %16512 = vmatmul.mubr.msk.bf16.vlgmr.msra.gmra.mxu0 %vm1677_vm4, %v10291_v33  ;;  %v10304_v53 = vshll.u32 %v22260_v50, 16  ;;  %v10312_v55 = vshll.u32 %v22292_v39, 16  ;;  %v10255_v33 = vld [vmem:[#allocation2 + $0x324] ss:$10 sm:$0x3]  ;;  %v10308_v52 = vshrl.u32 %v22260_v50, 16 }
 0x43e   : > { %v16270_v51 = vpop.f32.mrf.mxu1  ;;  %16643 = vmatprep.subr.bf16.mxu1 %v23886_v8  ;;  %v22249_v24 = vadd.f32 %v8822_v4, %v21706_v14  ;;  %16560 = vmatpush3.bf16.msra.mxu0 %v17383_v41  ;;  %v10298_v14 = vrot.slane %v10296_v60, 1  ;;  %v8700_v41 = vadd.f32 %v21949_v25, %v22164_v18  ;;  %v8703_v4 = vadd.f32 %v21957_v47, %v22175_v48  ;;  %v17393_v47 = vld [vmem:[%s23512_s3 + $0xd8] sm:$0xff]  }
 0x43f   : > { %16515 = vmatprep.mubr.msk.bf16.mxu0 %vm17549_vm6, %v23886_v8  ;;  %v16237_v26 = vpop.f32.mrf.mxu0  ;;  %16561 = vmatprep.subr.bf16.mxu0 %v23886_v8  ;;  %v10306_v7 = vrot.slane %v10304_v53, 1  ;;  %v10316_v22 = vshrl.u32 %v22292_v39, 16 }
 0x440   : > { %v22244_v44 = vpop.f32.mrf.mxu1  ;;  %16548 = vmatmul.mubr.msk.bf16.gmra.mxu1 %vm1677_vm4, %v22229_v0  ;;  %v10299_v21 = vsel %vm8450_vm5, %v10294_v61, %v10298_v14  ;;  %v10302_v13 = vor.u32 %v10300_v34, %v10298_v14  ;;  %v10694_v26 = vld [vmem:[#allocation2 + $0x55] ss:$10 sm:$0xff]  ;;  %v10692_v61 = vld [vmem:[#allocation2 + $0x5] ss:$10 sm:$0xff] }
 0x441   : > { %16551 = vmatprep.mubr.msk.bf16.mxu1 %vm17549_vm6, %v23886_v8  ;;  %v8825_v12 = vpop.f32.mrf.mxu0 }
 0x442   : > { %v16273_v58 = vpop.f32.mrf.mxu1  ;;  %v22265_v29 = vadd.f32 %v8825_v12, %v21727_v23  ;;  %16562 = vmatpush3.bf16.msra.mxu0 %v17384_v38  ;;  %v10307_v6 = vsel %vm8450_vm5, %v10302_v13, %v10306_v7  ;;  %v10314_v38 = vrot.slane %v10312_v55, 1  ;;  %v10310_v12 = vor.u32 %v10308_v52, %v10306_v7  ;;  %v10696_v13 = vld [vmem:[#allocation2 + $0xa5] ss:$10 sm:$0xff] }
 0x443   : > { %v16238_v16 = vpop.f32.mrf.mxu0  ;;  %16563 = vmatprep.subr.bf16.mxu0 %v23886_v8  ;;  %v22318_v58 = vpack.c.bf16 %v10255_v33, %v10255_v33  ;;  %v10559_v52 = vrot.slane %v22199_v57, 1 }
 0x444   : > { %v22262_v9 = vpop.f32.mrf.mxu1  ;;  %v10315_v48 = vsel %vm8450_vm5, %v10310_v12, %v10314_v38 }
 0x445   : > { %v8830_v54 = vpop.f32.mrf.mxu0  ;;  %16516 = vmatmul.mubr.msk.bf16.gmra.mxu0 %vm1677_vm4, %v10299_v21 }
 0x446   : > { %v16274_v40 = vpop.f32.mrf.mxu1  ;;  %v22280_v35 = vadd.f32 %v8830_v54, %v8692_v56  ;;  %16519 = vmatprep.mubr.msk.bf16.mxu0 %vm17549_vm6, %v23886_v8  ;;  %16564 = vmatpush3.bf16.msra.mxu0 %v17388_v1  ;;  %v22324_v1 = vpack.c.bf16 %v10694_v26, %v10692_v61  ;;  %v10320_v56 = vshll.u32 %v22318_v58, 16  ;;  %v10558_v61 = vrot.slane %v22179_v11, 1 }
 0x447   : > { %v16241_v2 = vpop.f32.mrf.mxu0  ;;  %16565 = vmatprep.subr.bf16.mxu0 %v23886_v8 }
 0x448   : > { %v22276_v23 = vpop.f32.mrf.mxu1  ;;  %16552 = vmatmul.mubr.msk.bf16.gmra.mxu1 %vm1677_vm4, %v22260_v50 }
 0x449   : > { %16555 = vmatprep.mubr.msk.bf16.mxu1 %vm17549_vm6, %v23886_v8  ;;  %v8833_v46 = vpop.f32.mrf.mxu0 }
 0x44a   : > { %v16277_v32 = vpop.f32.mrf.mxu1  ;;  %v22297_v15 = vadd.f32 %v8833_v46, %v8695_v63  ;;  %16566 = vmatpush3.bf16.msra.mxu0 %v17390_v3  ;;  %v10322_v3 = vrot.slane %v10320_v56, 1  ;;  %v10698_v63 = vld [vmem:[#allocation2 + $0xf5] ss:$10 sm:$0xff]  ;;  %v10318_v46 = vor.u32 %v10316_v22, %v10314_v38 }
 0x44b   : > { %v16242_v59 = vpop.f32.mrf.mxu0  ;;  %16615 = vmatprep.subr.bf16.mxu0 %v23886_v8  ;;  %v17394_v32 = vld [vmem:[%s23512_s3 + $0xd0] sm:$0xff]  }
 0x44c   : > { %v22295_v31 = vpop.f32.mrf.mxu1  ;;  %v10323_v55 = vsel %vm8450_vm5, %v10318_v46, %v10322_v3  ;;  %v10702_v38 = vld [vmem:[#allocation2 + $0x195] ss:$10 sm:$0xff]  ;;  %v10704_v46 = vld [vmem:[#allocation2 + $0x1e5] ss:$10 sm:$0xff] }
 0x44d   : > { %v8838_v30 = vpop.f32.mrf.mxu0  ;;  %16520 = vmatmul.mubr.msk.bf16.gmra.mxu0 %vm1677_vm4, %v10307_v6  ;;  %v17395_v6 = vld [vmem:[%s23512_s3 + $0xc8] sm:$0xff]  }
 0x44e   : > { %v16278_v45 = vpop.f32.mrf.mxu1  ;;  %v22309_v60 = vadd.f32 %v8838_v30, %v8700_v41  ;;  %16523 = vmatprep.mubr.msk.bf16.mxu0 %vm17549_vm6, %v23886_v8  ;;  %v22353_v41 = vpack.c.bf16 %v10698_v63, %v10696_v13  ;;  %v10706_v22 = vld [vmem:[#allocation2 + $0x235] ss:$10 sm:$0xff] }
 0x44f   : > { %v16245_v25 = vpop.f32.mrf.mxu0 }
 0x450   : > { %v22305_v51 = vpop.f32.mrf.mxu1  ;;  %16556 = vmatmul.mubr.msk.bf16.gmra.mxu1 %vm1677_vm4, %v22292_v39 }
 0x451   : > { %16595 = vmatprep.mubr.msk.bf16.mxu1 %vm17549_vm6, %v23886_v8  ;;  %v8841_v19 = vpop.f32.mrf.mxu0 }
 0x452   : > { %v16317_v18 = vpop.f32.mrf.mxu1  ;;  %v22322_v14 = vadd.f32 %v8841_v19, %v8703_v4  ;;  %v17397_v4 = vld [vmem:[%s23512_s3 + $0xc0] sm:$0xff]  }
 0x453   : > { %v16246_v16 = vpop.f32.mrf.mxu0 }
 0x454   : > { %v22320_v27 = vpop.f32.mrf.mxu1  ;;  %v17391_v16 = vld [vmem:[%s23512_s3 + $0x1f8] sm:$0xff]  }
 0x455   : > { %v8846_v21 = vpop.f32.mrf.mxu0  ;;  %16524 = vmatmul.mubr.msk.bf16.gmra.mxu0 %vm1677_vm4, %v10315_v48 }
 0x456   : > { %v16318_v40 = vpop.f32.mrf.mxu1  ;;  %v22337_v54 = vadd.f32 %v8846_v21, %v22190_v37  ;;  %16527 = vmatprep.mubr.msk.bf16.mxu0 %vm17549_vm6, %v23886_v8 }
 0x457   : > { %v16249_v10 = vpop.f32.mrf.mxu0  ;;  %v10700_v40 = vld [vmem:[#allocation2 + $0x145] ss:$10 sm:$0xff] }
 0x458   : > { %v22332_v53 = vpop.f32.mrf.mxu1  ;;  %16596 = vmatmul.mubr.msk.bf16.vlgmr.msra.gmra.mxu1 %vm1677_vm4, %v22324_v1  ;;  %v22385_v48 = vpack.c.bf16 %v10702_v38, %v10700_v40  ;;  %v17392_v10 = vld [vmem:[%s23512_s3 + $0x1f0] sm:$0xff]  }
 0x459   : > { %16599 = vmatprep.mubr.msk.bf16.mxu1 %vm17549_vm6, %v23886_v8  ;;  %16644 = vmatpush3.bf16.msra.mxu1 %v17393_v47  ;;  %v8849_v37 = vpop.f32.mrf.mxu0 }
 0x45a   : > { %v16321_v2 = vpop.f32.mrf.mxu1  ;;  %16645 = vmatprep.subr.bf16.mxu1 %v23886_v8  ;;  %v22351_v7 = vadd.f32 %v8849_v37, %v22204_v42 }
 0x45b   : > { %v16250_v59 = vpop.f32.mrf.mxu0 }
 0x45c   : > { %v22348_v34 = vpop.f32.mrf.mxu1 }
 0x45d   : > { %16646 = vmatpush3.bf16.msra.mxu1 %v17394_v32  ;;  %v9133_v30 = vpop.f32.mrf.mxu0  ;;  %16528 = vmatmul.mubr.msk.bf16.gmra.mxu0 %vm1677_vm4, %v10323_v55  ;;  %v10561_v32 = vrot.slane %v22229_v0, 1  ;;  %v17396_v0 = vld [vmem:[%s23512_s3 + $0x1e8] sm:$0xff]  }
 0x45e   : > { %v16322_v45 = vpop.f32.mrf.mxu1  ;;  %16647 = vmatprep.subr.bf16.mxu1 %v23886_v8  ;;  %v9134_v33 = vadd.f32 %v9133_v30, %v22168_v20  ;;  %16567 = vmatprep.mubr.msk.bf16.mxu0 %vm17549_vm6, %v23886_v8 }
 0x45f   : > { %v16289_v25 = vpop.f32.mrf.mxu0  ;;  %v22409_v45 = vpack.c.bf16 %v10706_v22, %v10704_v46  ;;  %v11021_v22 = vld [vmem:[#allocation2 + $0x6] ss:$10 sm:$0xff] }
 0x460   : > { %v22361_v42 = vpop.f32.mrf.mxu1  ;;  %16600 = vmatmul.mubr.msk.bf16.gmra.mxu1 %vm1677_vm4, %v22353_v41  ;;  %v22376_v20 = vadd.f32 %v22305_v51, %v9134_v33  ;;  %v10560_v51 = vsel %vm1529_vm2, %v10558_v61, %v10559_v52  ;;  %v17401_v46 = vld [vmem:[%s23512_s3 + $0xf8] sm:$0xff]  }
 0x461   : > { %16603 = vmatprep.mubr.msk.bf16.mxu1 %vm17549_vm6, %v23886_v8  ;;  %16648 = vmatpush3.bf16.msra.mxu1 %v17395_v6  ;;  %v9136_v26 = vpop.f32.mrf.mxu0  ;;  %v10562_v6 = vsel %vm1529_vm2, %v10559_v52, %v10561_v32 }
 0x462   : > { %v16325_v18 = vpop.f32.mrf.mxu1  ;;  %16649 = vmatprep.subr.bf16.mxu1 %v23886_v8  ;;  %v9137_v12 = vadd.f32 %v9136_v26, %v22177_v62 }
 0x463   : > { %v16290_v47 = vpop.f32.mrf.mxu0  ;;  %v10563_v18 = vrot.slane %v22260_v50, 1 }
 0x464   : > { %v22378_v19 = vpop.f32.mrf.mxu1  ;;  %v22390_v56 = vadd.f32 %v22320_v27, %v9137_v12  ;;  %v10708_v12 = vld [vmem:[#allocation2 + $0x285] ss:$10 sm:$0xff] }
 0x465   : > { %16650 = vmatpush3.bf16.msra.mxu1 %v17397_v4  ;;  %v9141_v62 = vpop.f32.mrf.mxu0  ;;  %16568 = vmatmul.mubr.msk.bf16.vlgmr.msra.gmra.mxu0 %vm1677_vm4, %v10560_v51  ;;  %v10710_v4 = vld [vmem:[#allocation2 + $0x2d5] ss:$10 sm:$0xff]  ;;  %v10564_v47 = vsel %vm1529_vm2, %v10561_v32, %v10563_v18 }
 0x466   : > { %v16326_v57 = vpop.f32.mrf.mxu1  ;;  %16699 = vmatprep.subr.bf16.mxu1 %v23886_v8  ;;  %v9142_v21 = vadd.f32 %v9141_v62, %v22186_v17  ;;  %16616 = vmatpush3.bf16.msra.mxu0 %v17391_v16  ;;  %v22436_v40 = vpack.c.bf16 %v10710_v4, %v10708_v12  ;;  %v10861_v4 = vshll.u32 %v22324_v1, 16 }
 0x467   : > { %16571 = vmatprep.mubr.msk.bf16.mxu0 %vm17549_vm6, %v23886_v8  ;;  %v16293_v2 = vpop.f32.mrf.mxu0  ;;  %16617 = vmatprep.subr.bf16.mxu0 %v23886_v8 }
 0x468   : > { %v9295_v11 = vpop.f32.mrf.mxu1  ;;  %16604 = vmatmul.mubr.msk.bf16.gmra.mxu1 %vm1677_vm4, %v22385_v48  ;;  %v22406_v17 = vadd.f32 %v22332_v53, %v9142_v21  ;;  %v11023_v21 = vld [vmem:[#allocation2 + $0x56] ss:$10 sm:$0xff] }
 0x469   : > { %16607 = vmatprep.mubr.msk.bf16.mxu1 %vm17549_vm6, %v23886_v8  ;;  %v9144_v3 = vpop.f32.mrf.mxu0 }
 0x46a   : > { %v16329_v27 = vpop.f32.mrf.mxu1  ;;  %v9145_v37 = vadd.f32 %v9144_v3, %v22202_v5  ;;  %16618 = vmatpush3.bf16.msra.mxu0 %v17392_v10 }
 0x46b   : > { %v16294_v13 = vpop.f32.mrf.mxu0  ;;  %16619 = vmatprep.subr.bf16.mxu0 %v23886_v8 }
 0x46c   : > { %v9298_v63 = vpop.f32.mrf.mxu1  ;;  %v22417_v53 = vadd.f32 %v22348_v34, %v9145_v37  ;;  %v17398_v34 = vld [vmem:[%s23512_s3 + $0x1e0] sm:$0xff]   ;;  %v22455_v37 = vpack.c.bf16 %v11023_v21, %v11021_v22 }
 0x46d   : > { %v9149_v55 = vpop.f32.mrf.mxu0  ;;  %16572 = vmatmul.mubr.msk.bf16.gmra.mxu0 %vm1677_vm4, %v10562_v6 }
 0x46e   : > { %v16330_v59 = vpop.f32.mrf.mxu1  ;;  %v9150_v30 = vadd.f32 %v9149_v55, %v22214_v28  ;;  %16575 = vmatprep.mubr.msk.bf16.mxu0 %vm17549_vm6, %v23886_v8  ;;  %16620 = vmatpush3.bf16.msra.mxu0 %v17396_v0  ;;  %v10567_v55 = vrot.slane %v22318_v58, 1  ;;  %v17403_v58 = vld [vmem:[%s23512_s3 + $0xe8] sm:$0xff]  }
 0x46f   : > { %v16297_v33 = vpop.f32.mrf.mxu0  ;;  %16621 = vmatprep.subr.bf16.mxu0 %v23886_v8 }
 0x470   : > { %v9303_v5 = vpop.f32.mrf.mxu1  ;;  %16608 = vmatmul.mubr.msk.bf16.gmra.mxu1 %vm1677_vm4, %v22409_v45  ;;  %v22433_v28 = vadd.f32 %v22361_v42, %v9150_v30  ;;  %v11027_v30 = vld [vmem:[#allocation2 + $0xf6] ss:$10 sm:$0xff] }
 0x471   : > { %16611 = vmatprep.mubr.msk.bf16.mxu1 %vm17549_vm6, %v23886_v8  ;;  %v9152_v52 = vpop.f32.mrf.mxu0 }
 0x472   : > { %v16333_v25 = vpop.f32.mrf.mxu1  ;;  %v9153_v26 = vadd.f32 %v9152_v52, %v22232_v43  ;;  %16622 = vmatpush3.bf16.msra.mxu0 %v17398_v34 }
 0x473   : > { %v16298_v61 = vpop.f32.mrf.mxu0  ;;  %16671 = vmatprep.subr.bf16.mxu0 %v23886_v8 }
 0x474   : > { %v9306_v38 = vpop.f32.mrf.mxu1  ;;  %v22441_v50 = vadd.f32 %v22378_v19, %v9153_v26  ;;  %v10565_v19 = vrot.slane %v22292_v39, 1  ;;  %v10865_v61 = vshll.u32 %v22353_v41, 16 }
 0x475   : > { %v9157_v57 = vpop.f32.mrf.mxu0  ;;  %16576 = vmatmul.mubr.msk.bf16.gmra.mxu0 %vm1677_vm4, %v10564_v47 }
 0x476   : > { %v16334_v16 = vpop.f32.mrf.mxu1  ;;  %v9158_v43 = vadd.f32 %v9157_v57, %v22244_v44  ;;  %16579 = vmatprep.mubr.msk.bf16.mxu0 %vm17549_vm6, %v23886_v8  ;;  %v10566_v13 = vsel %vm1529_vm2, %v10563_v18, %v10565_v19  ;;  %v11025_v18 = vld [vmem:[#allocation2 + $0xa6] ss:$10 sm:$0xff]  ;;  %v10867_v21 = vrot.slane %v10865_v61, 1 }
 0x477   : > { %v16301_v51 = vpop.f32.mrf.mxu0  ;;  %v22480_v12 = vpack.c.bf16 %v11027_v30, %v11025_v18  ;;  %v11033_v61 = vld [vmem:[#allocation2 + $0x1e6] ss:$10 sm:$0xff] }
 0x478   : > { %v9590_v42 = vpop.f32.mrf.mxu1  ;;  %16612 = vmatmul.mubr.msk.bf16.gmra.mxu1 %vm1677_vm4, %v22436_v40  ;;  %v22452_v10 = vadd.f32 %v9295_v11, %v9158_v43  ;;  %v10863_v43 = vrot.slane %v10861_v4, 1 }
 0x479   : > { %16651 = vmatprep.mubr.msk.bf16.mxu1 %vm17549_vm6, %v23886_v8  ;;  %v9160_v2 = vpop.f32.mrf.mxu0 }
 0x47a   : > { %v16373_v62 = vpop.f32.mrf.mxu1  ;;  %v9161_v32 = vadd.f32 %v9160_v2, %v22262_v9  ;;  %v11031_v2 = vld [vmem:[#allocation2 + $0x196] ss:$10 sm:$0xff] }
 0x47b   : > { %v16302_v3 = vpop.f32.mrf.mxu0 }
 0x47c   : > { %v9593_v27 = vpop.f32.mrf.mxu1  ;;  %v22461_v59 = vadd.f32 %v9298_v63, %v9161_v32  ;;  %v17402_v63 = vld [vmem:[%s23512_s3 + $0xf0] sm:$0xff]  }
 0x47d   : > { %v9165_v39 = vpop.f32.mrf.mxu0  ;;  %16580 = vmatmul.mubr.msk.bf16.gmra.mxu0 %vm1677_vm4, %v10566_v13 }
 0x47e   : > { %v16374_v44 = vpop.f32.mrf.mxu1  ;;  %v9166_v9 = vadd.f32 %v9165_v39, %v22276_v23  ;;  %16583 = vmatprep.mubr.msk.bf16.mxu0 %vm17549_vm6, %v23886_v8 }
 0x47f   : > { %v16305_v0 = vpop.f32.mrf.mxu0  ;;  %v17399_v44 = vld [vmem:[%s23512_s3 + $0x218] sm:$0xff]  }
 0x480   : > { %v9598_v11 = vpop.f32.mrf.mxu1  ;;  %16652 = vmatmul.mubr.msk.bf16.vlgmr.msra.gmra.mxu1 %vm1677_vm4, %v22455_v37  ;;  %v22476_v33 = vadd.f32 %v9303_v5, %v9166_v9  ;;  %v10568_v5 = vsel %vm1529_vm2, %v10565_v19, %v10567_v55  ;;  %v10859_v19 = vshrl.u32 %v22324_v1, 16  ;;  %v10872_v0 = vshll.u32 %v22385_v48, 16  ;;  %v17400_v55 = vld [vmem:[%s23512_s3 + $0x210] sm:$0xff]  }
 0x481   : > { %16655 = vmatprep.mubr.msk.bf16.mxu1 %vm17549_vm6, %v23886_v8  ;;  %16700 = vmatpush3.bf16.msra.mxu1 %v17401_v46  ;;  %v9168_v23 = vpop.f32.mrf.mxu0  ;;  %v11029_v46 = vld [vmem:[#allocation2 + $0x146] ss:$10 sm:$0xff] }
 0x482   : > { %v16377_v6 = vpop.f32.mrf.mxu1  ;;  %16701 = vmatprep.subr.bf16.mxu1 %v23886_v8  ;;  %v9169_v34 = vadd.f32 %v9168_v23, %v22295_v31  ;;  %v10864_v3 = vor.u32 %v10863_v43, %v10859_v19  ;;  %v22509_v9 = vpack.c.bf16 %v11031_v2, %v11029_v46  ;;  %v10874_v18 = vrot.slane %v10872_v0, 1  ;;  %v11039_v46 = vld [vmem:[#allocation2 + $0x2d6] ss:$10 sm:$0xff]  ;;  %v11037_v0 = vld [vmem:[#allocation2 + $0x286] ss:$10 sm:$0xff] }
 0x483   : > { %v16306_v52 = vpop.f32.mrf.mxu0 }
 0x484   : > { %v9601_v25 = vpop.f32.mrf.mxu1  ;;  %v22488_v16 = vadd.f32 %v9306_v38, %v9169_v34  ;;  %v17405_v38 = vld [vmem:[%s23512_s3 + $0xe0] sm:$0xff]   ;;  %v10868_v1 = vsel %vm8450_vm5, %v10864_v3, %v10867_v21  ;;  %v10869_v34 = vshrl.u32 %v22353_v41, 16  ;;  %v10876_v3 = vshrl.u32 %v22385_v48, 16 }
 0x485   : > { %16702 = vmatpush3.bf16.msra.mxu1 %v17402_v63  ;;  %v9483_v31 = vpop.f32.mrf.mxu0  ;;  %16584 = vmatmul.mubr.msk.bf16.gmra.mxu0 %vm1677_vm4, %v10568_v5 }
 0x486   : > { %v16378_v26 = vpop.f32.mrf.mxu1  ;;  %16703 = vmatprep.subr.bf16.mxu1 %v23886_v8  ;;  %v22493_v57 = vadd.f32 %v9590_v42, %v9483_v31  ;;  %16623 = vmatprep.mubr.msk.bf16.mxu0 %vm17549_vm6, %v23886_v8 }
 0x487   : > { %v16345_v51 = vpop.f32.mrf.mxu0 }
 0x488   : > { %v9606_v47 = vpop.f32.mrf.mxu1  ;;  %16656 = vmatmul.mubr.msk.bf16.gmra.mxu1 %vm1677_vm4, %v22480_v12  ;;  %v17404_v51 = vld [vmem:[%s23512_s3 + $0x208] sm:$0xff]  }
 0x489   : > { %16659 = vmatprep.mubr.msk.bf16.mxu1 %vm17549_vm6, %v23886_v8  ;;  %16704 = vmatpush3.bf16.msra.mxu1 %v17403_v58  ;;  %v9486_v42 = vpop.f32.mrf.mxu0  ;;  %v10871_v58 = vor.u32 %v10869_v34, %v10867_v21  ;;  %v10886_v34 = vshll.u32 %v22436_v40, 16 }
 0x48a   : > { %v16381_v62 = vpop.f32.mrf.mxu1  ;;  %16705 = vmatprep.subr.bf16.mxu1 %v23886_v8  ;;  %v22504_v22 = vadd.f32 %v9593_v27, %v9486_v42  ;;  %v17406_v42 = vld [vmem:[%s23512_s3 + $0x200] sm:$0xff]  }
 0x48b   : > { %v16346_v13 = vpop.f32.mrf.mxu0  ;;  %v10875_v41 = vsel %vm8450_vm5, %v10871_v58, %v10874_v18  ;;  %v10879_v62 = vshll.u32 %v22409_v45, 16 }
 0x48c   : > { %v9609_v32 = vpop.f32.mrf.mxu1 }
 0x48d   : > { %16706 = vmatpush3.bf16.msra.mxu1 %v17405_v38  ;;  %v9491_v6 = vpop.f32.mrf.mxu0  ;;  %16624 = vmatmul.mubr.msk.bf16.vlgmr.msra.gmra.mxu0 %vm1677_vm4, %v10868_v1  ;;  %v10878_v1 = vor.u32 %v10876_v3, %v10874_v18 }
 0x48e   : > { %v16382_v39 = vpop.f32.mrf.mxu1  ;;  %16755 = vmatprep.subr.bf16.mxu1 %v23886_v8  ;;  %v22517_v63 = vadd.f32 %v9598_v11, %v9491_v6  ;;  %16672 = vmatpush3.bf16.msra.mxu0 %v17399_v44  ;;  %v11035_v11 = vld [vmem:[#allocation2 + $0x236] ss:$10 sm:$0xff]  ;;  %v10881_v44 = vrot.slane %v10879_v62, 1 }
 0x48f   : > { %16627 = vmatprep.mubr.msk.bf16.mxu0 %vm17549_vm6, %v23886_v8  ;;  %v16349_v30 = vpop.f32.mrf.mxu0  ;;  %16673 = vmatprep.subr.bf16.mxu0 %v23886_v8  ;;  %v22530_v43 = vpack.c.bf16 %v11035_v11, %v11033_v61  ;;  %v10883_v61 = vshrl.u32 %v22409_v45, 16 }
 0x490   : > { %v9614_v27 = vpop.f32.mrf.mxu1  ;;  %16660 = vmatmul.mubr.msk.bf16.gmra.mxu1 %vm1677_vm4, %v22509_v9  ;;  %v22554_v30 = vpack.c.bf16 %v11039_v46, %v11037_v0  ;;  %v17409_v46 = vld [vmem:[%s23512_s3 + $0x118] sm:$0xff]  }
 0x491   : > { %16663 = vmatprep.mubr.msk.bf16.mxu1 %vm17549_vm6, %v23886_v8  ;;  %v9494_v4 = vpop.f32.mrf.mxu0 }
 0x492   : > { %v16385_v23 = vpop.f32.mrf.mxu1  ;;  %v22528_v26 = vadd.f32 %v9601_v25, %v9494_v4  ;;  %16674 = vmatpush3.bf16.msra.mxu0 %v17400_v55 }
 0x493   : > { %v16350_v5 = vpop.f32.mrf.mxu0  ;;  %16675 = vmatprep.subr.bf16.mxu0 %v23886_v8  ;;  %v10882_v23 = vsel %vm8450_vm5, %v10878_v1, %v10881_v44 }
 0x494   : > { %v9617_v52 = vpop.f32.mrf.mxu1  ;;  %v10888_v5 = vrot.slane %v10886_v34, 1 }
 0x495   : > { %v9499_v38 = vpop.f32.mrf.mxu0  ;;  %16628 = vmatmul.mubr.msk.bf16.gmra.mxu0 %vm1677_vm4, %v10875_v41 }
 0x496   : > { %v16386_v31 = vpop.f32.mrf.mxu1  ;;  %v22541_v19 = vadd.f32 %v9606_v47, %v9499_v38  ;;  %16631 = vmatprep.mubr.msk.bf16.mxu0 %vm17549_vm6, %v23886_v8  ;;  %16676 = vmatpush3.bf16.msra.mxu0 %v17404_v51 }
 0x497   : > { %v16353_v21 = vpop.f32.mrf.mxu0  ;;  %16677 = vmatprep.subr.bf16.mxu0 %v23886_v8  ;;  %v11352_v31 = vld [vmem:[#allocation2 + $0x57] ss:$10 sm:$0xff] }
 0x498   : > { %v9622_v25 = vpop.f32.mrf.mxu1  ;;  %16664 = vmatmul.mubr.msk.bf16.gmra.mxu1 %vm1677_vm4, %v22530_v43  ;;  %v11350_v21 = vld [vmem:[#allocation2 + $0x7] ss:$10 sm:$0xff] }
 0x499   : > { %16667 = vmatprep.mubr.msk.bf16.mxu1 %vm17549_vm6, %v23886_v8  ;;  %v9502_v47 = vpop.f32.mrf.mxu0  ;;  %v22575_v3 = vpack.c.bf16 %v11352_v31, %v11350_v21  ;;  %v11190_v31 = vshll.u32 %v22455_v37, 16  ;;  %v11194_v21 = vshll.u32 %v22480_v12, 16 }
 0x49a   : > { %v16389_v2 = vpop.f32.mrf.mxu1  ;;  %v22552_v39 = vadd.f32 %v9609_v32, %v9502_v47  ;;  %16678 = vmatpush3.bf16.msra.mxu0 %v17406_v42  ;;  %v10712_v32 = vld [vmem:[#allocation2 + $0x325] ss:$10 sm:$0x3] }
 0x49b   : > { %v16354_v6 = vpop.f32.mrf.mxu0  ;;  %16727 = vmatprep.subr.bf16.mxu0 %v23886_v8  ;;  %v10849_v51 = vpack.c.bf16 %v10712_v32, %v10712_v32 }
 0x49c   : > { %v9625_v13 = vpop.f32.mrf.mxu1 }
 0x49d   : > { %v9507_v48 = vpop.f32.mrf.mxu0  ;;  %16632 = vmatmul.mubr.msk.bf16.gmra.mxu0 %vm1677_vm4, %v10882_v23  ;;  %v10894_v47 = vshll.u32 %v10849_v51, 16  ;;  %v10890_v23 = vshrl.u32 %v22436_v40, 16  ;;  %v17411_v40 = vld [vmem:[%s23512_s3 + $0x108] sm:$0xff]  }
 0x49e   : > { %v16390_v55 = vpop.f32.mrf.mxu1  ;;  %v22564_v18 = vadd.f32 %v9614_v27, %v9507_v48  ;;  %16635 = vmatprep.mubr.msk.bf16.mxu0 %vm17549_vm6, %v23886_v8  ;;  %v10885_v27 = vor.u32 %v10883_v61, %v10881_v44  ;;  %v11356_v48 = vld [vmem:[#allocation2 + $0xf7] ss:$10 sm:$0xff]  ;;  %v11354_v61 = vld [vmem:[#allocation2 + $0xa7] ss:$10 sm:$0xff] }
 0x49f   : > { %v16357_v4 = vpop.f32.mrf.mxu0  ;;  %v17410_v55 = vld [vmem:[%s23512_s3 + $0x110] sm:$0xff]   ;;  %v10896_v34 = vrot.slane %v10894_v47, 1 }
 0x4a0   : > { %v22560_v11 = vpop.f32.mrf.mxu1  ;;  %16668 = vmatmul.mubr.msk.bf16.gmra.mxu1 %vm1677_vm4, %v22554_v30  ;;  %v10889_v45 = vsel %vm8450_vm5, %v10885_v27, %v10888_v5  ;;  %v22602_v27 = vpack.c.bf16 %v11356_v48, %v11354_v61 }
 0x4a1   : > { %16707 = vmatprep.mubr.msk.bf16.mxu1 %vm17549_vm6, %v23886_v8  ;;  %v9510_v41 = vpop.f32.mrf.mxu0 }
 0x4a2   : > { %v16429_v58 = vpop.f32.mrf.mxu1  ;;  %v22573_v38 = vadd.f32 %v9617_v52, %v9510_v41 }
 0x4a3   : > { %v16358_v2 = vpop.f32.mrf.mxu0  ;;  %v10892_v58 = vor.u32 %v10890_v23, %v10888_v5 }
 0x4a4   : > { %v22571_v62 = vpop.f32.mrf.mxu1 }
 0x4a5   : > { %v9515_v1 = vpop.f32.mrf.mxu0  ;;  %16636 = vmatmul.mubr.msk.bf16.gmra.mxu0 %vm1677_vm4, %v10889_v45  ;;  %v10897_v2 = vsel %vm8450_vm5, %v10892_v58, %v10896_v34  ;;  %v11358_v58 = vld [vmem:[#allocation2 + $0x147] ss:$10 sm:$0xff] }
 0x4a6   : > { %v16430_v42 = vpop.f32.mrf.mxu1  ;;  %v22586_v52 = vadd.f32 %v9622_v25, %v9515_v1  ;;  %16639 = vmatprep.mubr.msk.bf16.mxu0 %vm17549_vm6, %v23886_v8  ;;  %v17413_v1 = vld [vmem:[%s23512_s3 + $0x100] sm:$0xff]  }
 0x4a7   : > { %v16361_v44 = vpop.f32.mrf.mxu0 }
 0x4a8   : > { %v22582_v0 = vpop.f32.mrf.mxu1  ;;  %16708 = vmatmul.mubr.msk.bf16.vlgmr.msra.gmra.mxu1 %vm1677_vm4, %v22575_v3  ;;  %v11188_v44 = vshrl.u32 %v22455_v37, 16 }
 0x4a9   : > { %16711 = vmatprep.mubr.msk.bf16.mxu1 %vm17549_vm6, %v23886_v8  ;;  %16756 = vmatpush3.bf16.msra.mxu1 %v17409_v46  ;;  %v9518_v25 = vpop.f32.mrf.mxu0  ;;  %v11192_v46 = vrot.slane %v11190_v31, 1 }
 0x4aa   : > { %v16433_v6 = vpop.f32.mrf.mxu1  ;;  %16757 = vmatprep.subr.bf16.mxu1 %v23886_v8  ;;  %v22599_v4 = vadd.f32 %v9625_v13, %v9518_v25  ;;  %v17407_v25 = vld [vmem:[%s23512_s3 + $0x238] sm:$0xff]  }
 0x4ab   : > { %v16362_v51 = vpop.f32.mrf.mxu0  ;;  %v11196_v6 = vrot.slane %v11194_v21, 1  ;;  %v11193_v48 = vor.u32 %v11192_v46, %v11188_v44 }
 0x4ac   : > { %v22597_v32 = vpop.f32.mrf.mxu1 }
 0x4ad   : > { %16758 = vmatpush3.bf16.msra.mxu1 %v17410_v55  ;;  %v9728_v13 = vpop.f32.mrf.mxu0  ;;  %16640 = vmatmul.mubr.msk.bf16.gmra.mxu0 %vm1677_vm4, %v10897_v2  ;;  %v11360_v55 = vld [vmem:[#allocation2 + $0x197] ss:$10 sm:$0xff]  ;;  %v11197_v37 = vsel %vm8450_vm5, %v11193_v48, %v11196_v6  ;;  %v11362_v48 = vld [vmem:[#allocation2 + $0x1e7] ss:$10 sm:$0xff] }
 0x4ae   : > { %v16434_v41 = vpop.f32.mrf.mxu1  ;;  %16759 = vmatprep.subr.bf16.mxu1 %v23886_v8  ;;  %v22616_v42 = vadd.f32 %v9728_v13, %v22493_v57  ;;  %16679 = vmatprep.mubr.msk.bf16.mxu0 %vm17549_vm6, %v23886_v8  ;;  %v22635_v51 = vpack.c.bf16 %v11360_v55, %v11358_v58  ;;  %v17408_v2 = vld [vmem:[%s23512_s3 + $0x230] sm:$0xff]  }
 0x4af   : > { %v16401_v45 = vpop.f32.mrf.mxu0  ;;  %v11201_v41 = vshll.u32 %v22509_v9, 16 }
 0x4b0   : > { %v22611_v5 = vpop.f32.mrf.mxu1  ;;  %16712 = vmatmul.mubr.msk.bf16.gmra.mxu1 %vm1677_vm4, %v22602_v27  ;;  %v11198_v45 = vshrl.u32 %v22480_v12, 16  ;;  %v17412_v12 = vld [vmem:[%s23512_s3 + $0x228] sm:$0xff]  }
 0x4b1   : > { %16715 = vmatprep.mubr.msk.bf16.mxu1 %vm17549_vm6, %v23886_v8  ;;  %16760 = vmatpush3.bf16.msra.mxu1 %v17411_v40  ;;  %v9731_v57 = vpop.f32.mrf.mxu0 }
 0x4b2   : > { %v16437_v47 = vpop.f32.mrf.mxu1  ;;  %16761 = vmatprep.subr.bf16.mxu1 %v23886_v8  ;;  %v22630_v34 = vadd.f32 %v9731_v57, %v22504_v22  ;;  %v11200_v57 = vor.u32 %v11198_v45, %v11196_v6 }
 0x4b3   : > { %v16402_v61 = vpop.f32.mrf.mxu0  ;;  %v11203_v47 = vrot.slane %v11201_v41, 1 }
 0x4b4   : > { %v22627_v23 = vpop.f32.mrf.mxu1 }
 0x4b5   : > { %16762 = vmatpush3.bf16.msra.mxu1 %v17413_v1  ;;  %v9736_v40 = vpop.f32.mrf.mxu0  ;;  %16680 = vmatmul.mubr.msk.bf16.vlgmr.msra.gmra.mxu0 %vm1677_vm4, %v11197_v37  ;;  %v11208_v37 = vshll.u32 %v22530_v43, 16 }
 0x4b6   : > { %v16438_v31 = vpop.f32.mrf.mxu1  ;;  %16811 = vmatprep.subr.bf16.mxu1 %v23886_v8  ;;  %v22646_v21 = vadd.f32 %v9736_v40, %v22517_v63  ;;  %16728 = vmatpush3.bf16.msra.mxu0 %v17407_v25  ;;  %v11364_v63 = vld [vmem:[#allocation2 + $0x237] ss:$10 sm:$0xff] }
 0x4b7   : > { %16683 = vmatprep.mubr.msk.bf16.mxu0 %vm17549_vm6, %v23886_v8  ;;  %v16405_v13 = vpop.f32.mrf.mxu0  ;;  %16729 = vmatprep.subr.bf16.mxu0 %v23886_v8  ;;  %v22662_v61 = vpack.c.bf16 %v11364_v63, %v11362_v48  ;;  %v11204_v31 = vsel %vm8450_vm5, %v11200_v57, %v11203_v47  ;;  %v11210_v45 = vrot.slane %v11208_v37, 1  ;;  %v11368_v63 = vld [vmem:[#allocation2 + $0x2d7] ss:$10 sm:$0xff] }
 0x4b8   : > { %v22641_v22 = vpop.f32.mrf.mxu1  ;;  %16716 = vmatmul.mubr.msk.bf16.gmra.mxu1 %vm1677_vm4, %v22635_v51  ;;  %v17414_v13 = vld [vmem:[%s23512_s3 + $0x220] sm:$0xff]  }
 0x4b9   : > { %16719 = vmatprep.mubr.msk.bf16.mxu1 %vm17549_vm6, %v23886_v8  ;;  %v9739_v1 = vpop.f32.mrf.mxu0 }
 0x4ba   : > { %v16441_v46 = vpop.f32.mrf.mxu1  ;;  %v22660_v55 = vadd.f32 %v9739_v1, %v22528_v26  ;;  %16730 = vmatpush3.bf16.msra.mxu0 %v17408_v2 }
 0x4bb   : > { %v16406_v25 = vpop.f32.mrf.mxu0  ;;  %16731 = vmatprep.subr.bf16.mxu0 %v23886_v8  ;;  %v11205_v46 = vshrl.u32 %v22509_v9, 16  ;;  %v11215_v9 = vshll.u32 %v22554_v30, 16 }
 0x4bc   : > { %v22657_v44 = vpop.f32.mrf.mxu1  ;;  %v11366_v25 = vld [vmem:[#allocation2 + $0x287] ss:$10 sm:$0xff] }
 0x4bd   : > { %v9744_v41 = vpop.f32.mrf.mxu0  ;;  %16684 = vmatmul.mubr.msk.bf16.gmra.mxu0 %vm1677_vm4, %v11204_v31  ;;  %v11207_v48 = vor.u32 %v11205_v46, %v11203_v47  ;;  %v22692_v31 = vpack.c.bf16 %v11368_v63, %v11366_v25  ;;  %v11212_v46 = vshrl.u32 %v22530_v43, 16  ;;  %v11217_v63 = vrot.slane %v11215_v9, 1 }
 0x4be   : > { %v16442_v58 = vpop.f32.mrf.mxu1  ;;  %v22676_v6 = vadd.f32 %v9744_v41, %v22541_v19  ;;  %16687 = vmatprep.mubr.msk.bf16.mxu0 %vm17549_vm6, %v23886_v8  ;;  %16732 = vmatpush3.bf16.msra.mxu0 %v17412_v12 }
 0x4bf   : > { %v16409_v40 = vpop.f32.mrf.mxu0  ;;  %16733 = vmatprep.subr.bf16.mxu0 %v23886_v8  ;;  %v11211_v41 = vsel %vm8450_vm5, %v11207_v48, %v11210_v45 }
 0x4c0   : > { %v22671_v26 = vpop.f32.mrf.mxu1  ;;  %16720 = vmatmul.mubr.msk.bf16.gmra.mxu1 %vm1677_vm4, %v22662_v61 }
 0x4c1   : > { %16723 = vmatprep.mubr.msk.bf16.mxu1 %vm17549_vm6, %v23886_v8  ;;  %v9747_v19 = vpop.f32.mrf.mxu0 }
 0x4c2   : > { %v16445_v2 = vpop.f32.mrf.mxu1  ;;  %v22690_v57 = vadd.f32 %v9747_v19, %v22552_v39  ;;  %16734 = vmatpush3.bf16.msra.mxu0 %v17414_v13  ;;  %v11041_v39 = vld [vmem:[#allocation2 + $0x326] ss:$10 sm:$0x3]  ;;  %v11681_v19 = vld [vmem:[#allocation2 + $0x58] ss:$10 sm:$0xff] }
 0x4c3   : > { %v16410_v58 = vpop.f32.mrf.mxu0  ;;  %16783 = vmatprep.subr.bf16.mxu0 %v23886_v8  ;;  %v11178_v48 = vpack.c.bf16 %v11041_v39, %v11041_v39 }
 0x4c4   : > { %v22687_v1 = vpop.f32.mrf.mxu1  ;;  %23903 = vst [vmem:[#allocation16_spill] sm:$0xff] %v22690_v57 }
 0x4c5   : > { %v9752_v37 = vpop.f32.mrf.mxu0  ;;  %16688 = vmatmul.mubr.msk.bf16.gmra.mxu0 %vm1677_vm4, %v11211_v41  ;;  %v11679_v41 = vld [vmem:[#allocation2 + $0x8] ss:$10 sm:$0xff]  ;;  %v11223_v9 = vshll.u32 %v11178_v48, 16 }
 0x4c6   : > { %v16446_v12 = vpop.f32.mrf.mxu1  ;;  %v22703_v47 = vadd.f32 %v9752_v37, %v22564_v18  ;;  %16691 = vmatprep.mubr.msk.bf16.mxu0 %vm17549_vm6, %v23886_v8  ;;  %v11214_v18 = vor.u32 %v11212_v46, %v11210_v45  ;;  %v22715_v57 = vpack.c.bf16 %v11681_v19, %v11679_v41  ;;  %v17418_v46 = vld [vmem:[%s23512_s3 + $0x130] sm:$0xff]   ;;  %v11219_v19 = vshrl.u32 %v22554_v30, 16  ;;  %v17419_v30 = vld [vmem:[%s23512_s3 + $0x128] sm:$0xff]  }
 0x4c7   : > { %v16413_v2 = vpop.f32.mrf.mxu0  ;;  %v11225_v48 = vrot.slane %v11223_v9, 1  ;;  %v11523_v9 = vshll.u32 %v22602_v27, 16 }
 0x4c8   : > { %v22698_v40 = vpop.f32.mrf.mxu1  ;;  %16724 = vmatmul.mubr.msk.bf16.gmra.mxu1 %vm1677_vm4, %v22692_v31  ;;  %23904 = vst [vmem:[#allocation11_spill] sm:$0xff] %v22703_v47  ;;  %v17417_v2 = vld [vmem:[%s23512_s3 + $0x138] sm:$0xff]   ;;  %v11218_v43 = vsel %vm8450_vm5, %v11214_v18, %v11217_v63 }
 0x4c9   : > { %16763 = vmatprep.mubr.msk.bf16.mxu1 %vm17549_vm6, %v23886_v8  ;;  %v9755_v25 = vpop.f32.mrf.mxu0 }
 0x4ca   : > { %v16485_v13 = vpop.f32.mrf.mxu1  ;;  %v22713_v12 = vadd.f32 %v9755_v25, %v22573_v38  ;;  %v11685_v25 = vld [vmem:[#allocation2 + $0xf8] ss:$10 sm:$0xff] }
 0x4cb   : > { %v16414_v37 = vpop.f32.mrf.mxu0 }
 0x4cc   : > { %v22710_v58 = vpop.f32.mrf.mxu1  ;;  %v11221_v37 = vor.u32 %v11219_v19, %v11217_v63 }
 0x4cd   : > { %v9760_v39 = vpop.f32.mrf.mxu0  ;;  %16692 = vmatmul.mubr.msk.bf16.gmra.mxu0 %vm1677_vm4, %v11218_v43  ;;  %v11683_v43 = vld [vmem:[#allocation2 + $0xa8] ss:$10 sm:$0xff] }
 0x4ce   : > { %v16486_v47 = vpop.f32.mrf.mxu1  ;;  %v22727_v38 = vadd.f32 %v9760_v39, %v22586_v52  ;;  %16695 = vmatprep.mubr.msk.bf16.mxu0 %vm17549_vm6, %v23886_v8 }
 0x4cf   : > { %v16417_v45 = vpop.f32.mrf.mxu0 }
 0x4d0   : > { %v22722_v13 = vpop.f32.mrf.mxu1  ;;  %16764 = vmatmul.mubr.msk.bf16.vlgmr.msra.gmra.mxu1 %vm1677_vm4, %v22715_v57  ;;  %23905 = vst [vmem:[#allocation10_spill] sm:$0xff] %v22727_v38  ;;  %v11226_v38 = vsel %vm8450_vm5, %v11221_v37, %v11225_v48  ;;  %v11525_v37 = vrot.slane %v11523_v9, 1 }
 0x4d1   : > { %16767 = vmatprep.mubr.msk.bf16.mxu1 %vm17549_vm6, %v23886_v8  ;;  %16812 = vmatpush3.bf16.msra.mxu1 %v17417_v2  ;;  %v9763_v52 = vpop.f32.mrf.mxu0  ;;  %v11519_v2 = vshll.u32 %v22575_v3, 16 }
 0x4d2   : > { %v16489_v47 = vpop.f32.mrf.mxu1  ;;  %16813 = vmatprep.subr.bf16.mxu1 %v23886_v8  ;;  %v22741_v41 = vadd.f32 %v9763_v52, %v22599_v4  ;;  %v11517_v52 = vshrl.u32 %v22575_v3, 16 }
 0x4d3   : > { %v16418_v39 = vpop.f32.mrf.mxu0  ;;  %v22744_v47 = vpack.c.bf16 %v11685_v25, %v11683_v43  ;;  %v11521_v19 = vrot.slane %v11519_v2, 1  ;;  %v11689_v43 = vld [vmem:[#allocation2 + $0x198] ss:$10 sm:$0xff] }
 0x4d4   : > { %v22738_v18 = vpop.f32.mrf.mxu1  ;;  %23906 = vst [vmem:[#allocation25_spill] sm:$0xff] %v22741_v41 }
 0x4d5   : > { %16814 = vmatpush3.bf16.msra.mxu1 %v17418_v46  ;;  %v10047_v4 = vpop.f32.mrf.mxu0  ;;  %16696 = vmatmul.mubr.msk.bf16.gmra.mxu0 %vm1677_vm4, %v11226_v38  ;;  %v17421_v38 = vld [vmem:[%s23512_s3 + $0x120] sm:$0xff]  }
 0x4d6   : > { %v16490_v45 = vpop.f32.mrf.mxu1  ;;  %16815 = vmatprep.subr.bf16.mxu1 %v23886_v8  ;;  %v10048_v46 = vadd.f32 %v10047_v4, %v22560_v11  ;;  %16735 = vmatprep.mubr.msk.bf16.mxu0 %vm17549_vm6, %v23886_v8  ;;  %v11522_v4 = vor.u32 %v11521_v19, %v11517_v52 }
 0x4d7   : > { %v16457_v48 = vpop.f32.mrf.mxu0 }
 0x4d8   : > { %v22753_v63 = vpop.f32.mrf.mxu1  ;;  %16768 = vmatmul.mubr.msk.bf16.gmra.mxu1 %vm1677_vm4, %v22744_v47  ;;  %v22768_v11 = vadd.f32 %v22698_v40, %v10048_v46  ;;  %v11687_v48 = vld [vmem:[#allocation2 + $0x148] ss:$10 sm:$0xff]  ;;  %v11526_v41 = vsel %vm8450_vm5, %v11522_v4, %v11525_v37  ;;  %v11530_v40 = vshll.u32 %v22635_v51, 16 }
 0x4d9   : > { %16771 = vmatprep.mubr.msk.bf16.mxu1 %vm17549_vm6, %v23886_v8  ;;  %16816 = vmatpush3.bf16.msra.mxu1 %v17419_v30  ;;  %v10050_v2 = vpop.f32.mrf.mxu0  ;;  %v17415_v30 = vld [vmem:[%s23512_s3 + $0x258] sm:$0xff]   ;;  %v22776_v9 = vpack.c.bf16 %v11689_v43, %v11687_v48 }
 0x4da   : > { %v16493_v25 = vpop.f32.mrf.mxu1  ;;  %16817 = vmatprep.subr.bf16.mxu1 %v23886_v8  ;;  %v10051_v45 = vadd.f32 %v10050_v2, %v22571_v62  ;;  %v11532_v2 = vrot.slane %v11530_v40, 1  ;;  %v11537_v40 = vshll.u32 %v22662_v61, 16 }
 0x4db   : > { %v16458_v25 = vpop.f32.mrf.mxu0 }
 0x4dc   : > { %v22770_v39 = vpop.f32.mrf.mxu1  ;;  %v22781_v46 = vadd.f32 %v22710_v58, %v10051_v45  ;;  %v17416_v58 = vld [vmem:[%s23512_s3 + $0x250] sm:$0xff]  }
 0x4dd   : > { %16818 = vmatpush3.bf16.msra.mxu1 %v17421_v38  ;;  %v10055_v62 = vpop.f32.mrf.mxu0  ;;  %16736 = vmatmul.mubr.msk.bf16.vlgmr.msra.gmra.mxu0 %vm1677_vm4, %v11526_v41  ;;  %v11527_v41 = vshrl.u32 %v22602_v27, 16  ;;  %v11693_v45 = vld [vmem:[#allocation2 + $0x238] ss:$10 sm:$0xff] }
 0x4de   : > { %v16494_v3 = vpop.f32.mrf.mxu1  ;;  %16867 = vmatprep.subr.bf16.mxu1 %v23886_v8  ;;  %v10056_v52 = vadd.f32 %v10055_v62, %v22582_v0  ;;  %16784 = vmatpush3.bf16.msra.mxu0 %v17415_v30  ;;  %v17420_v27 = vld [vmem:[%s23512_s3 + $0x248] sm:$0xff]  }
 0x4df   : > { %16739 = vmatprep.mubr.msk.bf16.mxu0 %vm17549_vm6, %v23886_v8  ;;  %v16461_v38 = vpop.f32.mrf.mxu0  ;;  %16785 = vmatprep.subr.bf16.mxu0 %v23886_v8  ;;  %v11529_v25 = vor.u32 %v11527_v41, %v11525_v37  ;;  %v11691_v3 = vld [vmem:[#allocation2 + $0x1e8] ss:$10 sm:$0xff] }
 0x4e0   : > { %v22785_v19 = vpop.f32.mrf.mxu1  ;;  %16772 = vmatmul.mubr.msk.bf16.gmra.mxu1 %vm1677_vm4, %v22776_v9  ;;  %v22800_v0 = vadd.f32 %v22722_v13, %v10056_v52 }
 0x4e1   : > { %16775 = vmatprep.mubr.msk.bf16.mxu1 %vm17549_vm6, %v23886_v8  ;;  %v10058_v4 = vpop.f32.mrf.mxu0  ;;  %v11533_v13 = vsel %vm8450_vm5, %v11529_v25, %v11532_v2  ;;  %v11697_v25 = vld [vmem:[#allocation2 + $0x2d8] ss:$10 sm:$0xff] }
 0x4e2   : > { %v16497_v43 = vpop.f32.mrf.mxu1  ;;  %23907 = vst [vmem:[#allocation24_spill] sm:$0xff] %v22800_v0  ;;  %v10059_v48 = vadd.f32 %v10058_v4, %v22597_v32  ;;  %16786 = vmatpush3.bf16.msra.mxu0 %v17416_v58  ;;  %v11534_v4 = vshrl.u32 %v22635_v51, 16 }
 0x4e3   : > { %v16462_v62 = vpop.f32.mrf.mxu0  ;;  %v22805_v43 = vpack.c.bf16 %v11693_v45, %v11691_v3  ;;  %16787 = vmatprep.subr.bf16.mxu0 %v23886_v8 }
 0x4e4   : > { %v22802_v30 = vpop.f32.mrf.mxu1  ;;  %v22814_v52 = vadd.f32 %v22738_v18, %v10059_v48  ;;  %v17422_v18 = vld [vmem:[%s23512_s3 + $0x240] sm:$0xff]   ;;  %v11539_v48 = vrot.slane %v11537_v40, 1  ;;  %v11544_v40 = vshll.u32 %v22692_v31, 16 }
 0x4e5   : > { %v10063_v32 = vpop.f32.mrf.mxu0  ;;  %16740 = vmatmul.mubr.msk.bf16.gmra.mxu0 %vm1677_vm4, %v11533_v13  ;;  %v11536_v13 = vor.u32 %v11534_v4, %v11532_v2  ;;  %v11370_v2 = vld [vmem:[#allocation2 + $0x327] ss:$10 sm:$0x3] }
 0x4e6   : > { %v16498_v38 = vpop.f32.mrf.mxu1  ;;  %23908 = vst [vmem:[#allocation15_spill] sm:$0xff] %v22814_v52  ;;  %v10064_v58 = vadd.f32 %v10063_v32, %v22611_v5  ;;  %16743 = vmatprep.mubr.msk.bf16.mxu0 %vm17549_vm6, %v23886_v8  ;;  %16788 = vmatpush3.bf16.msra.mxu0 %v17420_v27  ;;  %v11695_v27 = vld [vmem:[#allocation2 + $0x288] ss:$10 sm:$0xff] }
 0x4e7   : > { %v16465_v41 = vpop.f32.mrf.mxu0  ;;  %16789 = vmatprep.subr.bf16.mxu0 %v23886_v8  ;;  %v11540_v51 = vsel %vm8450_vm5, %v11536_v13, %v11539_v48  ;;  %v11507_v13 = vpack.c.bf16 %v11370_v2, %v11370_v2  ;;  %v12014_v2 = vld [vmem:[#allocation2 + $0xf9] ss:$10 sm:$0xff] }
 0x4e8   : > { %v22817_v37 = vpop.f32.mrf.mxu1  ;;  %16776 = vmatmul.mubr.msk.bf16.gmra.mxu1 %vm1677_vm4, %v22805_v43  ;;  %v22832_v5 = vadd.f32 %v22753_v63, %v10064_v58 }
 0x4e9   : > { %16779 = vmatprep.mubr.msk.bf16.mxu1 %vm17549_vm6, %v23886_v8  ;;  %v10066_v3 = vpop.f32.mrf.mxu0 }
 0x4ea   : > { %v16501_v45 = vpop.f32.mrf.mxu1  ;;  %23909 = vst [vmem:[#allocation26_spill] sm:$0xff] %v22832_v5  ;;  %v10067_v38 = vadd.f32 %v10066_v3, %v22627_v23  ;;  %16790 = vmatpush3.bf16.msra.mxu0 %v17422_v18  ;;  %v11546_v3 = vrot.slane %v11544_v40, 1 }
 0x4eb   : > { %v16466_v32 = vpop.f32.mrf.mxu0  ;;  %v22837_v45 = vpack.c.bf16 %v11697_v25, %v11695_v27  ;;  %16839 = vmatprep.subr.bf16.mxu0 %v23886_v8 }
 0x4ec   : > { %v22834_v62 = vpop.f32.mrf.mxu1  ;;  %v22843_v63 = vadd.f32 %v22770_v39, %v10067_v38  ;;  %v11541_v39 = vshrl.u32 %v22662_v61, 16  ;;  %v12010_v38 = vld [vmem:[#allocation2 + $0x59] ss:$10 sm:$0xff] }
 0x4ed   : > { %v10071_v58 = vpop.f32.mrf.mxu0  ;;  %16744 = vmatmul.mubr.msk.bf16.gmra.mxu0 %vm1677_vm4, %v11540_v51 }
 0x4ee   : > { %v16502_v41 = vpop.f32.mrf.mxu1  ;;  %23910 = vst [vmem:[#allocation20_spill] sm:$0xff] %v22843_v63  ;;  %v10072_v4 = vadd.f32 %v10071_v58, %v22641_v22  ;;  %16747 = vmatprep.mubr.msk.bf16.mxu0 %vm17549_vm6, %v23886_v8  ;;  %v11543_v51 = vor.u32 %v11541_v39, %v11539_v48  ;;  %v12008_v58 = vld [vmem:[#allocation2 + $0x9] ss:$10 sm:$0xff] }
 0x4ef   : > { %v16469_v18 = vpop.f32.mrf.mxu0  ;;  %v22858_v52 = vpack.c.bf16 %v12010_v38, %v12008_v58 }
 0x4f0   : > { %v10504_v23 = vpop.f32.mrf.mxu1  ;;  %16780 = vmatmul.mubr.msk.bf16.gmra.mxu1 %vm1677_vm4, %v22837_v45  ;;  %v22855_v27 = vadd.f32 %v22785_v19, %v10072_v4  ;;  %v11547_v18 = vsel %vm8450_vm5, %v11543_v51, %v11546_v3 }
 0x4f1   : > { %16819 = vmatprep.mubr.msk.bf16.mxu1 %vm17549_vm6, %v23886_v8  ;;  %v10074_v32 = vpop.f32.mrf.mxu0 }
 0x4f2   : > { %v16541_v25 = vpop.f32.mrf.mxu1  ;;  %23911 = vst [vmem:[#allocation32_spill] sm:$0xff] %v22855_v27  ;;  %v10075_v22 = vadd.f32 %v10074_v32, %v22657_v44  ;;  %v12012_v32 = vld [vmem:[#allocation2 + $0xa9] ss:$10 sm:$0xff] }
 0x4f3   : > { %v16470_v63 = vpop.f32.mrf.mxu0  ;;  %v11552_v25 = vshll.u32 %v11507_v13, 16 }
 0x4f4   : > { %v10507_v41 = vpop.f32.mrf.mxu1  ;;  %v22862_v61 = vadd.f32 %v22802_v30, %v10075_v22  ;;  %v11548_v30 = vshrl.u32 %v22692_v31, 16  ;;  %v11848_v22 = vshll.u32 %v22715_v57, 16 }
 0x4f5   : > { %v10079_v40 = vpop.f32.mrf.mxu0  ;;  %16748 = vmatmul.mubr.msk.bf16.gmra.mxu0 %vm1677_vm4, %v11547_v18  ;;  %v11554_v63 = vrot.slane %v11552_v25, 1  ;;  %v22878_v18 = vpack.c.bf16 %v12014_v2, %v12012_v32  ;;  %v12016_v32 = vld [vmem:[#allocation2 + $0x149] ss:$10 sm:$0xff] }
 0x4f6   : > { %v16542_v5 = vpop.f32.mrf.mxu1  ;;  %23912 = vst [vmem:[#allocation17_spill] sm:$0xff] %v22862_v61  ;;  %v10080_v44 = vadd.f32 %v10079_v40, %v22671_v26  ;;  %16751 = vmatprep.mubr.msk.bf16.mxu0 %vm17549_vm6, %v23886_v8  ;;  %v11550_v26 = vor.u32 %v11548_v30, %v11546_v3  ;;  %v11852_v40 = vshll.u32 %v22744_v47, 16  ;;  %v11850_v3 = vrot.slane %v11848_v22, 1 }
 0x4f7   : > { %v16473_v48 = vpop.f32.mrf.mxu0 }
 0x4f8   : > { %v10512_v19 = vpop.f32.mrf.mxu1  ;;  %16820 = vmatmul.mubr.msk.bf16.vlgmr.msra.gmra.mxu1 %vm1677_vm4, %v22858_v52  ;;  %v22874_v4 = vadd.f32 %v22817_v37, %v10080_v44  ;;  %v11555_v31 = vsel %vm8450_vm5, %v11550_v26, %v11554_v63  ;;  %v11854_v30 = vrot.slane %v11852_v40, 1  ;;  %v12018_v63 = vld [vmem:[#allocation2 + $0x199] ss:$10 sm:$0xff] }
 0x4f9   : > { %16823 = vmatprep.mubr.msk.bf16.mxu1 %vm17549_vm6, %v23886_v8  ;;  %v10082_v39 = vpop.f32.mrf.mxu0 }
 0x4fa   : > { %v16545_v5 = vpop.f32.mrf.mxu1  ;;  %23913 = vst [vmem:[#allocation12_spill] sm:$0xff] %v22874_v4  ;;  %v10083_v13 = vadd.f32 %v10082_v39, %v22687_v1  ;;  %v11873_v4 = vshll.u32 %v22837_v45, 16 }
 0x4fb   : > { %v16474_v51 = vpop.f32.mrf.mxu0 }
 0x4fc   : > { %v10515_v38 = vpop.f32.mrf.mxu1  ;;  %v22883_v25 = vadd.f32 %v22834_v62, %v10083_v13  ;;  %v11846_v62 = vshrl.u32 %v22715_v57, 16  ;;  %v11859_v57 = vshll.u32 %v22776_v9, 16 }
 0x4fd   : > { %v10397_v37 = vpop.f32.mrf.mxu0  ;;  %16752 = vmatmul.mubr.msk.bf16.gmra.mxu0 %vm1677_vm4, %v11555_v31 }
 0x4fe   : > { %v16546_v58 = vpop.f32.mrf.mxu1  ;;  %23914 = vst [vmem:[#allocation19_spill] sm:$0xff] %v22883_v25  ;;  %v22888_v1 = vadd.f32 %v10504_v23, %v10397_v37  ;;  %16791 = vmatprep.mubr.msk.bf16.mxu0 %vm17549_vm6, %v23886_v8  ;;  %v11851_v26 = vor.u32 %v11850_v3, %v11846_v62  ;;  %v17423_v23 = vld [vmem:[%s23512_s3 + $0x278] sm:$0xff]   ;;  %v17424_v3 = vld [vmem:[%s23512_s3 + $0x270] sm:$0xff]   ;;  %v11856_v62 = vshrl.u32 %v22744_v47, 16 }
 0x4ff   : > { %v16513_v48 = vpop.f32.mrf.mxu0  ;;  %v22900_v58 = vpack.c.bf16 %v12018_v63, %v12016_v32  ;;  %v11861_v63 = vrot.slane %v11859_v57, 1  ;;  %v11866_v57 = vshll.u32 %v22805_v43, 16 }
 0x500   : > { %v10520_v44 = vpop.f32.mrf.mxu1  ;;  %16824 = vmatmul.mubr.msk.bf16.gmra.mxu1 %vm1677_vm4, %v22878_v18  ;;  %v11855_v31 = vsel %vm8450_vm5, %v11851_v26, %v11854_v30  ;;  %v11858_v32 = vor.u32 %v11856_v62, %v11854_v30 }
 0x501   : > { %16827 = vmatprep.mubr.msk.bf16.mxu1 %vm17549_vm6, %v23886_v8  ;;  %v10400_v2 = vpop.f32.mrf.mxu0 }
 0x502   : > { %v16549_v5 = vpop.f32.mrf.mxu1  ;;  %v22895_v13 = vadd.f32 %v10507_v41, %v10400_v2  ;;  %v11862_v47 = vsel %vm8450_vm5, %v11858_v32, %v11861_v63  ;;  %v11868_v32 = vrot.slane %v11866_v57, 1 }
 0x503   : > { %v16514_v22 = vpop.f32.mrf.mxu0 }
 0x504   : > { %v10523_v39 = vpop.f32.mrf.mxu1  ;;  %v12020_v22 = vld [vmem:[#allocation2 + $0x1e9] ss:$10 sm:$0xff] }
 0x505   : > { %v10405_v40 = vpop.f32.mrf.mxu0  ;;  %16792 = vmatmul.mubr.msk.bf16.vlgmr.msra.gmra.mxu0 %vm1677_vm4, %v11855_v31 }
 0x506   : > { %v16550_v51 = vpop.f32.mrf.mxu1  ;;  %v22907_v41 = vadd.f32 %v10512_v19, %v10405_v40  ;;  %16840 = vmatpush3.bf16.msra.mxu0 %v17423_v23  ;;  %16795 = vmatprep.mubr.msk.bf16.mxu0 %vm17549_vm6, %v23886_v8  ;;  %v12022_v19 = vld [vmem:[#allocation2 + $0x239] ss:$10 sm:$0xff] }
 0x507   : > { %v16517_v48 = vpop.f32.mrf.mxu0  ;;  %16841 = vmatprep.subr.bf16.mxu0 %v23886_v8  ;;  %v22920_v40 = vpack.c.bf16 %v12022_v19, %v12020_v22  ;;  %v17426_v19 = vld [vmem:[%s23512_s3 + $0x260] sm:$0xff]  }
 0x508   : > { %v10528_v37 = vpop.f32.mrf.mxu1  ;;  %16828 = vmatmul.mubr.msk.bf16.gmra.mxu1 %vm1677_vm4, %v22900_v58  ;;  %v17425_v48 = vld [vmem:[%s23512_s3 + $0x268] sm:$0xff]  }
 0x509   : > { %16831 = vmatprep.mubr.msk.bf16.mxu1 %vm17549_vm6, %v23886_v8  ;;  %v10408_v2 = vpop.f32.mrf.mxu0  ;;  %v12026_v22 = vld [vmem:[#allocation2 + $0x2d9] ss:$10 sm:$0xff] }
 0x50a   : > { %v16553_v5 = vpop.f32.mrf.mxu1  ;;  %v22918_v23 = vadd.f32 %v10515_v38, %v10408_v2  ;;  %16842 = vmatpush3.bf16.msra.mxu0 %v17424_v3  ;;  %v11863_v2 = vshrl.u32 %v22776_v9, 16 }
 0x50b   : > { %v16518_v51 = vpop.f32.mrf.mxu0  ;;  %16843 = vmatprep.subr.bf16.mxu0 %v23886_v8 }
 0x50c   : > { %v10531_v26 = vpop.f32.mrf.mxu1 }
 0x50d   : > { %v10413_v5 = vpop.f32.mrf.mxu0  ;;  %16796 = vmatmul.mubr.msk.bf16.gmra.mxu0 %vm1677_vm4, %v11862_v47  ;;  %v11865_v47 = vor.u32 %v11863_v2, %v11861_v63 }
 0x50e   : > { %v16554_v31 = vpop.f32.mrf.mxu1  ;;  %v22931_v30 = vadd.f32 %v10520_v44, %v10413_v5  ;;  %16799 = vmatprep.mubr.msk.bf16.mxu0 %vm17549_vm6, %v23886_v8  ;;  %16844 = vmatpush3.bf16.msra.mxu0 %v17425_v48  ;;  %v12024_v5 = vld [vmem:[#allocation2 + $0x289] ss:$10 sm:$0xff] }
 0x50f   : > { %v16521_v3 = vpop.f32.mrf.mxu0  ;;  %16845 = vmatprep.subr.bf16.mxu0 %v23886_v8  ;;  %v11869_v48 = vsel %vm8450_vm5, %v11865_v47, %v11868_v32 }
 0x510   : > { %v10536_v38 = vpop.f32.mrf.mxu1  ;;  %16832 = vmatmul.mubr.msk.bf16.gmra.mxu1 %vm1677_vm4, %v22920_v40 }
 0x511   : > { %16835 = vmatprep.mubr.msk.bf16.mxu1 %vm17549_vm6, %v23886_v8  ;;  %v10416_v44 = vpop.f32.mrf.mxu0 }
 0x512   : > { %v16557_v62 = vpop.f32.mrf.mxu1  ;;  %v22942_v31 = vadd.f32 %v10523_v39, %v10416_v44  ;;  %16846 = vmatpush3.bf16.msra.mxu0 %v17426_v19  ;;  %v11699_v39 = vld [vmem:[#allocation2 + $0x328] ss:$10 sm:$0x3]  ;;  %v11875_v44 = vrot.slane %v11873_v4, 1 }
 0x513   : > { %v16522_v25 = vpop.f32.mrf.mxu0  ;;  %v22944_v62 = vpack.c.bf16 %v12026_v22, %v12024_v5  ;;  %16907 = vmatprep.subr.bf16.mxu0 %v23886_v8  ;;  %v11870_v22 = vshrl.u32 %v22805_v43, 16  ;;  %v11836_v47 = vpack.c.bf16 %v11699_v39, %v11699_v39 }
 0x514   : > { %v10539_v51 = vpop.f32.mrf.mxu1 }
 0x515   : > { %v10421_v9 = vpop.f32.mrf.mxu0  ;;  %16800 = vmatmul.mubr.msk.bf16.gmra.mxu0 %vm1677_vm4, %v11869_v48  ;;  %v11881_v27 = vshll.u32 %v11836_v47, 16 }
 0x516   : > { %v16558_v3 = vpop.f32.mrf.mxu1  ;;  %v22952_v63 = vadd.f32 %v10528_v37, %v10421_v9  ;;  %16803 = vmatprep.mubr.msk.bf16.mxu0 %vm17549_vm6, %v23886_v8 }
 0x517   : > { %v16525_v19 = vpop.f32.mrf.mxu0  ;;  %v11883_v39 = vrot.slane %v11881_v27, 1 }
 0x518   : > { %v10800_v57 = vpop.f32.mrf.mxu1  ;;  %16836 = vmatmul.mubr.msk.bf16.gmra.mxu1 %vm1677_vm4, %v22944_v62 }
 0x519   : > { %v22955_v25 = vadd.f32 %v10800_v57, %v22219_v36  ;;  %16871 = vmatprep.mubr.msk.bf16.mxu1 %vm17549_vm6, %v23886_v8  ;;  %v10424_v5 = vpop.f32.mrf.mxu0  ;;  %v11872_v36 = vor.u32 %v11870_v22, %v11868_v32  ;;  %v11877_v32 = vshrl.u32 %v22837_v45, 16 }
 0x51a   : > { %v16597_v2 = vpop.f32.mrf.mxu1  ;;  %v22962_v48 = vadd.f32 %v10531_v26, %v10424_v5 }
 0x51b   : > { %v16526_v9 = vpop.f32.mrf.mxu0  ;;  %v11876_v61 = vsel %vm8450_vm5, %v11872_v36, %v11875_v44 }
 0x51c   : > { %v10803_v3 = vpop.f32.mrf.mxu1 }
 0x51d   : > { %v22965_v37 = vadd.f32 %v10803_v3, %v22235_v49  ;;  %v10429_v0 = vpop.f32.mrf.mxu0  ;;  %16804 = vmatmul.mubr.msk.bf16.gmra.mxu0 %vm1677_vm4, %v11876_v61  ;;  %v12181_v3 = vshll.u32 %v22878_v18, 16 }
 0x51e   : > { %v16598_v57 = vpop.f32.mrf.mxu1  ;;  %v22969_v43 = vadd.f32 %v10536_v38, %v10429_v0  ;;  %16807 = vmatprep.mubr.msk.bf16.mxu0 %vm17549_vm6, %v23886_v8  ;;  %v11879_v0 = vor.u32 %v11877_v32, %v11875_v44  ;;  %v12177_v38 = vshll.u32 %v22858_v52, 16 }
 0x51f   : > { %v16529_v49 = vpop.f32.mrf.mxu0 }
 0x520   : > { %v10808_v19 = vpop.f32.mrf.mxu1  ;;  %v11884_v36 = vsel %vm8450_vm5, %v11879_v0, %v11883_v39  ;;  %v12183_v49 = vrot.slane %v12181_v3, 1 }
 0x521   : > { %v22972_v4 = vadd.f32 %v10808_v19, %v22249_v24  ;;  %v10432_v2 = vpop.f32.mrf.mxu0  ;;  %v12175_v19 = vshrl.u32 %v22858_v52, 16 }
 0x522   : > { %v16601_v26 = vpop.f32.mrf.mxu1  ;;  %v22977_v47 = vadd.f32 %v10539_v51, %v10432_v2 }
 0x523   : > { %v16530_v24 = vpop.f32.mrf.mxu0 }
 0x524   : > { %v10811_v22 = vpop.f32.mrf.mxu1 }
 0x525   : > { %v22980_v61 = vadd.f32 %v10811_v22, %v22265_v29  ;;  %v10642_v9 = vpop.f32.mrf.mxu0  ;;  %16808 = vmatmul.mubr.msk.bf16.gmra.mxu0 %vm1677_vm4, %v11884_v36  ;;  %v12179_v29 = vrot.slane %v12177_v38, 1  ;;  %v12188_v38 = vshll.u32 %v22900_v58, 16  ;;  %v12185_v36 = vshrl.u32 %v22878_v18, 16 }
 0x526   : > { %v16602_v5 = vpop.f32.mrf.mxu1  ;;  %v22987_v27 = vadd.f32 %v10642_v9, %v22888_v1  ;;  %16847 = vmatprep.mubr.msk.bf16.mxu0 %vm17549_vm6, %v23886_v8 }
 0x527   : > { %v16569_v44 = vpop.f32.mrf.mxu0  ;;  %v12180_v2 = vor.u32 %v12179_v29, %v12175_v19  ;;  %v12190_v9 = vrot.slane %v12188_v38, 1 }
 0x528   : > { %v10816_v45 = vpop.f32.mrf.mxu1 }
 0x529   : > { %v22990_v51 = vadd.f32 %v10816_v45, %v22280_v35  ;;  %v10645_v26 = vpop.f32.mrf.mxu0  ;;  %v12184_v0 = vsel %vm8450_vm5, %v12180_v2, %v12183_v49 }
 0x52a   : > { %v16605_v57 = vpop.f32.mrf.mxu1  ;;  %v22996_v39 = vadd.f32 %v10645_v26, %v22895_v13 }
 0x52b   : > { %v16570_v35 = vpop.f32.mrf.mxu0 }
 0x52c   : > { %v10819_v32 = vpop.f32.mrf.mxu1 }
 0x52d   : > { %v22999_v1 = vadd.f32 %v10819_v32, %v22297_v15  ;;  %v10650_v24 = vpop.f32.mrf.mxu0  ;;  %16848 = vmatmul.mubr.msk.bf16.vlgmr.msra.gmra.mxu0 %vm1677_vm4, %v12184_v0  ;;  %v12195_v32 = vshll.u32 %v22920_v40, 16 }
 0x52e   : > { %v16606_v22 = vpop.f32.mrf.mxu1  ;;  %v23005_v5 = vadd.f32 %v10650_v24, %v22907_v41  ;;  %16851 = vmatprep.mubr.msk.bf16.mxu0 %vm17549_vm6, %v23886_v8  ;;  %v12187_v41 = vor.u32 %v12185_v36, %v12183_v49 }
 0x52f   : > { %v16573_v15 = vpop.f32.mrf.mxu0  ;;  %v12192_v22 = vshrl.u32 %v22900_v58, 16  ;;  %v12197_v0 = vrot.slane %v12195_v32, 1 }
 0x530   : > { %v10824_v52 = vpop.f32.mrf.mxu1  ;;  %v12191_v26 = vsel %vm8450_vm5, %v12187_v41, %v12190_v9  ;;  %v12028_v41 = vld [vmem:[#allocation2 + $0x329] ss:$10 sm:$0x3] }
 0x531   : > { %v23008_v13 = vadd.f32 %v10824_v52, %v22309_v60  ;;  %v10653_v45 = vpop.f32.mrf.mxu0  ;;  %v12165_v32 = vpack.c.bf16 %v12028_v41, %v12028_v41 }
 0x532   : > { %v16609_v3 = vpop.f32.mrf.mxu1  ;;  %v23014_v44 = vadd.f32 %v10653_v45, %v22918_v23  ;;  %v12202_v45 = vshll.u32 %v22944_v62, 16 }
 0x533   : > { %v16574_v19 = vpop.f32.mrf.mxu0 }
 0x534   : > { %v10827_v29 = vpop.f32.mrf.mxu1 }
 0x535   : > { %v23017_v57 = vadd.f32 %v10827_v29, %v22322_v14  ;;  %v10658_v2 = vpop.f32.mrf.mxu0  ;;  %16852 = vmatmul.mubr.msk.bf16.gmra.mxu0 %vm1677_vm4, %v12191_v26  ;;  %v12204_v26 = vrot.slane %v12202_v45, 1 }
 0x536   : > { %v16610_v60 = vpop.f32.mrf.mxu1  ;;  %v23023_v35 = vadd.f32 %v10658_v2, %v22931_v30  ;;  %16855 = vmatprep.mubr.msk.bf16.mxu0 %vm17549_vm6, %v23886_v8  ;;  %v12194_v30 = vor.u32 %v12192_v22, %v12190_v9 }
 0x537   : > { %v16577_v14 = vpop.f32.mrf.mxu0  ;;  %v12199_v60 = vshrl.u32 %v22920_v40, 16 }
 0x538   : > { %v10832_v18 = vpop.f32.mrf.mxu1  ;;  %v12198_v36 = vsel %vm8450_vm5, %v12194_v30, %v12197_v0 }
 0x539   : > { %v23026_v23 = vadd.f32 %v10832_v18, %v22337_v54  ;;  %v10661_v38 = vpop.f32.mrf.mxu0 }
 0x53a   : > { %v16613_v49 = vpop.f32.mrf.mxu1  ;;  %v23032_v52 = vadd.f32 %v10661_v38, %v22942_v31 }
 0x53b   : > { %v16578_v3 = vpop.f32.mrf.mxu0  ;;  %v12201_v49 = vor.u32 %v12199_v60, %v12197_v0  ;;  %v12206_v0 = vshrl.u32 %v22944_v62, 16 }
 0x53c   : > { %v10835_v24 = vpop.f32.mrf.mxu1 }
 0x53d   : > { %v23035_v15 = vadd.f32 %v10835_v24, %v22351_v7  ;;  %v10666_v29 = vpop.f32.mrf.mxu0  ;;  %16856 = vmatmul.mubr.msk.bf16.gmra.mxu0 %vm1677_vm4, %v12198_v36  ;;  %v12205_v38 = vsel %vm8450_vm5, %v12201_v49, %v12204_v26  ;;  %v12210_v24 = vshll.u32 %v12165_v32, 16 }
 0x53e   : > { %v16614_v54 = vpop.f32.mrf.mxu1  ;;  %v23041_v19 = vadd.f32 %v10666_v29, %v22952_v63  ;;  %16859 = vmatprep.mubr.msk.bf16.mxu0 %vm17549_vm6, %v23886_v8 }
 0x53f   : > { %v16581_v7 = vpop.f32.mrf.mxu0  ;;  %v12212_v36 = vrot.slane %v12210_v24, 1 }
 0x540   : > { %v11129_v58 = vpop.f32.mrf.mxu1 }
 0x541   : > { %v23044_v31 = vadd.f32 %v11129_v58, %v22376_v20  ;;  %v10669_v2 = vpop.f32.mrf.mxu0 }
 0x542   : > { %v16653_v9 = vpop.f32.mrf.mxu1  ;;  %v23050_v14 = vadd.f32 %v10669_v2, %v22962_v48 }
 0x543   : > { %v16582_v20 = vpop.f32.mrf.mxu0 }
 0x544   : > { %v11132_v18 = vpop.f32.mrf.mxu1 }
 0x545   : > { %v23053_v63 = vadd.f32 %v11132_v18, %v22390_v56  ;;  %v10674_v30 = vpop.f32.mrf.mxu0  ;;  %16860 = vmatmul.mubr.msk.bf16.gmra.mxu0 %vm1677_vm4, %v12205_v38 }
 0x546   : > { %v16654_v22 = vpop.f32.mrf.mxu1  ;;  %v23058_v3 = vadd.f32 %v10674_v30, %v22969_v43  ;;  %16863 = vmatprep.mubr.msk.bf16.mxu0 %vm17549_vm6, %v23886_v8  ;;  %v12208_v43 = vor.u32 %v12206_v0, %v12204_v26 }
 0x547   : > { %v16585_v56 = vpop.f32.mrf.mxu0 }
 0x548   : > { %v11137_v40 = vpop.f32.mrf.mxu1  ;;  %v12213_v9 = vsel %vm8450_vm5, %v12208_v43, %v12212_v36 }
 0x549   : > { %v23061_v54 = vadd.f32 %v11137_v40, %v22406_v17  ;;  %v10677_v45 = vpop.f32.mrf.mxu0 }
 0x54a   : > { %v16657_v48 = vpop.f32.mrf.mxu1  ;;  %v23067_v58 = vadd.f32 %v10677_v45, %v22977_v47 }
 0x54b   : > { %v16586_v7 = vpop.f32.mrf.mxu0 }
 0x54c   : > { %v11140_v29 = vpop.f32.mrf.mxu1 }
 0x54d   : > { %v23070_v41 = vadd.f32 %v11140_v29, %v22417_v53  ;;  %v10971_v60 = vpop.f32.mrf.mxu0  ;;  %16864 = vmatmul.mubr.msk.bf16.gmra.mxu0 %vm1677_vm4, %v12213_v9 }
 0x54e   : > { %v16658_v17 = vpop.f32.mrf.mxu1  ;;  %v23075_v62 = vadd.f32 %v10971_v60, %v22955_v25  ;;  %16911 = vmatprep.mubr.msk.bf16.mxu0 %vm17549_vm6, %v23886_v8 }
 0x54f   : > { %v16625_v53 = vpop.f32.mrf.mxu0 }
 0x550   : > { %v11145_v32 = vpop.f32.mrf.mxu1 }
 0x551   : > { %v23078_v2 = vadd.f32 %v11145_v32, %v22433_v28  ;;  %v10974_v26 = vpop.f32.mrf.mxu0 }
 0x552   : > { %v16661_v47 = vpop.f32.mrf.mxu1  ;;  %v23083_v49 = vadd.f32 %v10974_v26, %v22965_v37 }
 0x553   : > { %v16626_v22 = vpop.f32.mrf.mxu0 }
 0x554   : > { %v11148_v18 = vpop.f32.mrf.mxu1 }
 0x555   : > { %v23086_v20 = vadd.f32 %v11148_v18, %v22441_v50  ;;  %v10979_v25 = vpop.f32.mrf.mxu0 }
 0x556   : > { %v16662_v38 = vpop.f32.mrf.mxu1  ;;  %v23089_v28 = vadd.f32 %v10979_v25, %v22972_v4 }
 0x557   : > { %v16629_v40 = vpop.f32.mrf.mxu0 }
 0x558   : > { %v11153_v24 = vpop.f32.mrf.mxu1 }
 0x559   : > { %v23092_v30 = vadd.f32 %v11153_v24, %v22452_v10  ;;  %v10982_v48 = vpop.f32.mrf.mxu0 }
 0x55a   : > { %v16665_v56 = vpop.f32.mrf.mxu1  ;;  %v23095_v37 = vadd.f32 %v10982_v48, %v22980_v61 }
 0x55b   : > { %v16630_v36 = vpop.f32.mrf.mxu0 }
 0x55c   : > { %v11156_v0 = vpop.f32.mrf.mxu1 }
 0x55d   : > { %v23098_v50 = vadd.f32 %v11156_v0, %v22461_v59  ;;  %v10987_v29 = vpop.f32.mrf.mxu0 }
 0x55e   : > { %v16666_v45 = vpop.f32.mrf.mxu1  ;;  %v23101_v4 = vadd.f32 %v10987_v29, %v22990_v51 }
 0x55f   : > { %v16633_v7 = vpop.f32.mrf.mxu0 }
 0x560   : > { %v11161_v43 = vpop.f32.mrf.mxu1 }
 0x561   : > { %v23104_v10 = vadd.f32 %v11161_v43, %v22476_v33  ;;  %v10990_v9 = vpop.f32.mrf.mxu0 }
 0x562   : > { %v16669_v17 = vpop.f32.mrf.mxu1  ;;  %v23107_v61 = vadd.f32 %v10990_v9, %v22999_v1 }
 0x563   : > { %v16634_v32 = vpop.f32.mrf.mxu0 }
 0x564   : > { %v11164_v60 = vpop.f32.mrf.mxu1 }
 0x565   : > { %v23110_v59 = vadd.f32 %v11164_v60, %v22488_v16  ;;  %v10995_v47 = vpop.f32.mrf.mxu0 }
 0x566   : > { %v16670_v53 = vpop.f32.mrf.mxu1  ;;  %v23113_v51 = vadd.f32 %v10995_v47, %v23008_v13 }
 0x567   : > { %v16637_v18 = vpop.f32.mrf.mxu0 }
 0x568   : > { %v11458_v26 = vpop.f32.mrf.mxu1 }
 0x569   : > { %v23116_v33 = vadd.f32 %v11458_v26, %v22616_v42  ;;  %v10998_v38 = vpop.f32.mrf.mxu0 }
 0x56a   : > { %v16709_v22 = vpop.f32.mrf.mxu1  ;;  %v23119_v1 = vadd.f32 %v10998_v38, %v23017_v57 }
 0x56b   : > { %v16638_v24 = vpop.f32.mrf.mxu0 }
 0x56c   : > { %v11461_v25 = vpop.f32.mrf.mxu1 }
 0x56d   : > { %v23122_v16 = vadd.f32 %v11461_v25, %v22630_v34  ;;  %v11003_v56 = vpop.f32.mrf.mxu0 }
 0x56e   : > { %v16710_v40 = vpop.f32.mrf.mxu1  ;;  %v23125_v13 = vadd.f32 %v11003_v56, %v23026_v23 }
 0x56f   : > { %v16641_v0 = vpop.f32.mrf.mxu0  ;;  %v23916_v40 = vld [vmem:[#allocation11_spill] sm:$0xff] }
 0x570   : > { %v11466_v48 = vpop.f32.mrf.mxu1 }
 0x571   : > { %v23128_v42 = vadd.f32 %v11466_v48, %v22646_v21  ;;  %v11006_v45 = vpop.f32.mrf.mxu0 }
 0x572   : > { %v16713_v36 = vpop.f32.mrf.mxu1  ;;  %v23131_v57 = vadd.f32 %v11006_v45, %v23035_v15 }
 0x573   : > { %v16642_v43 = vpop.f32.mrf.mxu0 }
 0x574   : > { %v11469_v29 = vpop.f32.mrf.mxu1 }
 0x575   : > { %v23134_v34 = vadd.f32 %v11469_v29, %v22660_v55  ;;  %v11300_v17 = vpop.f32.mrf.mxu0  ;;  %v23915_v55 = vld [vmem:[#allocation16_spill] sm:$0xff] }
 0x576   : > { %v16714_v7 = vpop.f32.mrf.mxu1  ;;  %v11339_v23 = vadd.f32 %v11300_v17, %v23044_v31 }
 0x577   : > { %v16681_v21 = vpop.f32.mrf.mxu0 }
 0x578   : > { %v11474_v9 = vpop.f32.mrf.mxu1  ;;  %v23141_v53 = vadd.f32 %v11339_v23, %v23075_v62  ;;  %v23917_v23 = vld [vmem:[#allocation10_spill] sm:$0xff] }
 0x579   : > { %v23138_v60 = vadd.f32 %v11474_v9, %v22676_v6  ;;  %v11303_v47 = vpop.f32.mrf.mxu0 }
 0x57a   : > { %v16717_v32 = vpop.f32.mrf.mxu1  ;;  %v11340_v26 = vadd.f32 %v11303_v47, %v23053_v63 }
 0x57b   : > { %v16682_v22 = vpop.f32.mrf.mxu0 }
 0x57c   : > { %v11477_v15 = vpop.f32.mrf.mxu1  ;;  %v23148_v25 = vadd.f32 %v11340_v26, %v23083_v49  ;;  %v23918_v26 = vld [vmem:[#allocation25_spill] sm:$0xff] }
 0x57d   : > { %v23145_v18 = vadd.f32 %v11477_v15, %v23915_v55  ;;  %v11308_v31 = vpop.f32.mrf.mxu0 }
 0x57e   : > { %v16718_v38 = vpop.f32.mrf.mxu1  ;;  %v11341_v24 = vadd.f32 %v11308_v31, %v23061_v54 }
 0x57f   : > { %v16685_v62 = vpop.f32.mrf.mxu0 }
 0x580   : > { %v11482_v6 = vpop.f32.mrf.mxu1  ;;  %v23155_v0 = vadd.f32 %v11341_v24, %v23089_v28 }
 0x581   : > { %v23152_v56 = vadd.f32 %v11482_v6, %v23916_v40  ;;  %v11311_v63 = vpop.f32.mrf.mxu0 }
 0x582   : > { %v16721_v48 = vpop.f32.mrf.mxu1  ;;  %v11342_v45 = vadd.f32 %v11311_v63, %v23070_v41 }
 0x583   : > { %v16686_v49 = vpop.f32.mrf.mxu0 }
 0x584   : > { %v11485_v36 = vpop.f32.mrf.mxu1  ;;  %v23162_v7 = vadd.f32 %v11342_v45, %v23095_v37 }
 0x585   : > { %v23159_v29 = vadd.f32 %v11485_v36, %v22713_v12  ;;  %v11316_v54 = vpop.f32.mrf.mxu0 }
 0x586   : > { %v16722_v43 = vpop.f32.mrf.mxu1  ;;  %v11343_v9 = vadd.f32 %v11316_v54, %v23078_v2  ;;  %v23919_v54 = vld [vmem:[#allocation24_spill] sm:$0xff] }
 0x587   : > { %v16689_v28 = vpop.f32.mrf.mxu0 }
 0x588   : > { %v11490_v17 = vpop.f32.mrf.mxu1  ;;  %v23169_v47 = vadd.f32 %v11343_v9, %v23101_v4 }
 0x589   : > { %v23166_v21 = vadd.f32 %v11490_v17, %v23917_v23  ;;  %v11319_v41 = vpop.f32.mrf.mxu0 }
 0x58a   : > { %v16725_v32 = vpop.f32.mrf.mxu1  ;;  %v11344_v15 = vadd.f32 %v11319_v41, %v23086_v20 }
 0x58b   : > { %v16690_v37 = vpop.f32.mrf.mxu0  ;;  %v23920_v32 = vld [vmem:[#allocation15_spill] sm:$0xff] }
 0x58c   : > { %v11493_v12 = vpop.f32.mrf.mxu1  ;;  %v23176_v38 = vadd.f32 %v11344_v15, %v23107_v61 }
 0x58d   : > { %v23173_v55 = vadd.f32 %v11493_v12, %v23918_v26  ;;  %v11324_v2 = vpop.f32.mrf.mxu0 }
 0x58e   : > { %v16726_v22 = vpop.f32.mrf.mxu1  ;;  %v11345_v6 = vadd.f32 %v11324_v2, %v23092_v30 }
 0x58f   : > { %v16693_v4 = vpop.f32.mrf.mxu0  ;;  %v23921_v22 = vld [vmem:[#allocation26_spill] sm:$0xff] }
 0x590   : > { %v11787_v31 = vpop.f32.mrf.mxu1  ;;  %v23183_v62 = vadd.f32 %v11345_v6, %v23113_v51 }
 0x591   : > { %v23180_v24 = vadd.f32 %v11787_v31, %v22768_v11  ;;  %v11327_v20 = vpop.f32.mrf.mxu0 }
 0x592   : > { %v16765_v40 = vpop.f32.mrf.mxu1  ;;  %v11346_v63 = vadd.f32 %v11327_v20, %v23098_v50 }
 0x593   : > { %v16694_v61 = vpop.f32.mrf.mxu0 }
 0x594   : > { %v11790_v48 = vpop.f32.mrf.mxu1  ;;  %v23190_v49 = vadd.f32 %v11346_v63, %v23119_v1 }
 0x595   : > { %v23187_v36 = vadd.f32 %v11790_v48, %v22781_v46  ;;  %v11332_v30 = vpop.f32.mrf.mxu0 }
 0x596   : > { %v16766_v45 = vpop.f32.mrf.mxu1  ;;  %v11347_v43 = vadd.f32 %v11332_v30, %v23104_v10  ;;  %v23923_v30 = vld [vmem:[#allocation32_spill] sm:$0xff] }
 0x597   : > { %v16697_v51 = vpop.f32.mrf.mxu0 }
 0x598   : > { %v11795_v11 = vpop.f32.mrf.mxu1  ;;  %v23197_v23 = vadd.f32 %v11347_v43, %v23125_v13 }
 0x599   : > { %v23194_v17 = vadd.f32 %v11795_v11, %v23919_v54  ;;  %v11335_v50 = vpop.f32.mrf.mxu0 }
 0x59a   : > { %v16769_v9 = vpop.f32.mrf.mxu1  ;;  %v11348_v28 = vadd.f32 %v11335_v50, %v23110_v59  ;;  %v17427_v59 = vld [vmem:[%s23514_s5 + $0x28] sm:$0xff]  }
 0x59b   : > { %v16698_v1 = vpop.f32.mrf.mxu0  ;;  %16868 = vmatpush3.bf16.msra.mxu1 %v17427_v59  ;;  %v23924_v50 = vld [vmem:[#allocation17_spill] sm:$0xff] }
 0x59c   : > { %v11798_v46 = vpop.f32.mrf.mxu1  ;;  %v23204_v15 = vadd.f32 %v11348_v28, %v23131_v57  ;;  %v23922_v57 = vld [vmem:[#allocation20_spill] sm:$0xff]  ;;  %16869 = vmatprep.subr.bf16.mxu1 %v23886_v8 }
 0x59d   : > { %v23201_v41 = vadd.f32 %v11798_v46, %v23920_v32  ;;  %v11629_v10 = vpop.f32.mrf.mxu0 }
 0x59e   : > { %v16770_v12 = vpop.f32.mrf.mxu1  ;;  %v23207_v37 = vadd.f32 %v11629_v10, %v23116_v33  ;;  %v23925_v10 = vld [vmem:[#allocation12_spill] sm:$0xff] }
 0x59f   : > { %v16737_v2 = vpop.f32.mrf.mxu0 }
 0x5a0   : > { %v11803_v26 = vpop.f32.mrf.mxu1 }
 0x5a1   : > { %v23210_v13 = vadd.f32 %v11803_v26, %v23921_v22  ;;  %v11632_v6 = vpop.f32.mrf.mxu0 }
 0x5a2   : > { %v16773_v31 = vpop.f32.mrf.mxu1  ;;  %v23216_v40 = vadd.f32 %v11632_v6, %v23122_v16  ;;  %v23926_v6 = vld [vmem:[#allocation19_spill] sm:$0xff] }
 0x5a3   : > { %v16738_v33 = vpop.f32.mrf.mxu0 }
 0x5a4   : > { %v11806_v4 = vpop.f32.mrf.mxu1 }
 0x5a5   : > { %v23219_v20 = vadd.f32 %v11806_v4, %v23922_v57  ;;  %v11637_v63 = vpop.f32.mrf.mxu0  ;;  %v17428_v57 = vld [vmem:[%s23514_s5 + $0x20] sm:$0xff]  }
 0x5a6   : > { %v16774_v48 = vpop.f32.mrf.mxu1  ;;  %v23223_v45 = vadd.f32 %v11637_v63, %v23128_v42  ;;  %16870 = vmatpush3.bf16.msra.mxu1 %v17428_v57 }
 0x5a7   : > { %v16741_v43 = vpop.f32.mrf.mxu0  ;;  %16875 = vmatprep.subr.bf16.mxu1 %v23886_v8 }
 0x5a8   : > { %v11811_v61 = vpop.f32.mrf.mxu1 }
 0x5a9   : > { %v23226_v11 = vadd.f32 %v11811_v61, %v23923_v30  ;;  %v11640_v16 = vpop.f32.mrf.mxu0 }
 0x5aa   : > { %v16777_v54 = vpop.f32.mrf.mxu1  ;;  %v23229_v9 = vadd.f32 %v11640_v16, %v23134_v34 }
 0x5ab   : > { %v16742_v28 = vpop.f32.mrf.mxu0  ;;  %v17434_v54 = vld [vmem:[%s23514_s5 + $0x50] sm:$0xff]  }
 0x5ac   : > { %v11814_v51 = vpop.f32.mrf.mxu1 }
 0x5ad   : > { %v23232_v46 = vadd.f32 %v11814_v51, %v23924_v50  ;;  %v11645_v1 = vpop.f32.mrf.mxu0 }
 0x5ae   : > { %v16778_v32 = vpop.f32.mrf.mxu1  ;;  %v23235_v42 = vadd.f32 %v11645_v1, %v23138_v60  ;;  %v17429_v60 = vld [vmem:[%s23514_s5 + $0x58] sm:$0xff]  }
 0x5af   : > { %v16745_v22 = vpop.f32.mrf.mxu0  ;;  %16908 = vmatpush3.bf16.msra.mxu0 %v17429_v60 }
 0x5b0   : > { %v11819_v12 = vpop.f32.mrf.mxu1  ;;  %16909 = vmatprep.subr.bf16.mxu0 %v23886_v8 }
 0x5b1   : > { %v23238_v26 = vadd.f32 %v11819_v12, %v23925_v10  ;;  %v11648_v31 = vpop.f32.mrf.mxu0 }
 0x5b2   : > { %v16781_v2 = vpop.f32.mrf.mxu1  ;;  %v23241_v34 = vadd.f32 %v11648_v31, %v23145_v18 }
 0x5b3   : > { %v16746_v33 = vpop.f32.mrf.mxu0  ;;  %16910 = vmatpush3.bf16.msra.mxu0 %v17434_v54 }
 0x5b4   : > { %v11822_v59 = vpop.f32.mrf.mxu1  ;;  %16923 = vmatprep.subr.bf16.mxu0 %v23886_v8 }
 0x5b5   : > { %v23244_v4 = vadd.f32 %v11822_v59, %v23926_v6  ;;  %v11653_v63 = vpop.f32.mrf.mxu0 }
 0x5b6   : > { %v16782_v48 = vpop.f32.mrf.mxu1  ;;  %v23257_v18 = vadd.f32 %v11653_v63, %v23152_v56 }
 0x5b7   : > { %v16749_v30 = vpop.f32.mrf.mxu0 }
 0x5b8   : > { %v23252_v61 = vpop.f32.mrf.mxu1 }
 0x5b9   : > { %v11656_v16 = vpop.f32.mrf.mxu0 }
 0x5ba   : > { %v16821_v43 = vpop.f32.mrf.mxu1  ;;  %v23265_v50 = vadd.f32 %v11656_v16, %v23159_v29 }
 0x5bb   : > { %v16750_v28 = vpop.f32.mrf.mxu0 }
 0x5bc   : > { %v23262_v51 = vpop.f32.mrf.mxu1 }
 0x5bd   : > { %v11661_v1 = vpop.f32.mrf.mxu0 }
 0x5be   : > { %v16822_v32 = vpop.f32.mrf.mxu1  ;;  %v23271_v12 = vadd.f32 %v11661_v1, %v23166_v21 }
 0x5bf   : > { %v16753_v10 = vpop.f32.mrf.mxu0 }
 0x5c0   : > { %v23268_v56 = vpop.f32.mrf.mxu1 }
 0x5c1   : > { %v11664_v2 = vpop.f32.mrf.mxu0 }
 0x5c2   : > { %v16825_v22 = vpop.f32.mrf.mxu1  ;;  %v23276_v59 = vadd.f32 %v11664_v2, %v23173_v55 }
 0x5c3   : > { %v16754_v29 = vpop.f32.mrf.mxu0 }
 0x5c4   : > { %v23273_v31 = vpop.f32.mrf.mxu1 }
 0x5c5   : > { %v11958_v57 = vpop.f32.mrf.mxu0 }
 0x5c6   : > { %v16826_v6 = vpop.f32.mrf.mxu1  ;;  %v11997_v33 = vadd.f32 %v11958_v57, %v23180_v24 }
 0x5c7   : > { %v16793_v48 = vpop.f32.mrf.mxu0 }
 0x5c8   : > { %v23278_v60 = vpop.f32.mrf.mxu1  ;;  %v12346_v21 = vadd.f32 %v11997_v33, %v23207_v37 }
 0x5c9   : > { %v11961_v30 = vpop.f32.mrf.mxu0 }
 0x5ca   : > { %v16829_v63 = vpop.f32.mrf.mxu1  ;;  %v11998_v54 = vadd.f32 %v11961_v30, %v23187_v36  ;;  %v12356_v16 = vadd.f32 %v12346_v21, %v23141_v53 }
 0x5cb   : > { %v16794_v55 = vpop.f32.mrf.mxu0 }
 0x5cc   : > { %v23282_v43 = vpop.f32.mrf.mxu1  ;;  %v12347_v32 = vadd.f32 %v11998_v54, %v23216_v40 }
 0x5cd   : > { %v11966_v1 = vpop.f32.mrf.mxu0 }
 0x5ce   : > { %v16830_v28 = vpop.f32.mrf.mxu1  ;;  %v11999_v24 = vadd.f32 %v11966_v1, %v23194_v17  ;;  %v12357_v22 = vadd.f32 %v12347_v32, %v23148_v25 }
 0x5cf   : > { %v16797_v2 = vpop.f32.mrf.mxu0 }
 0x5d0   : > { %v23287_v10 = vpop.f32.mrf.mxu1  ;;  %v12348_v29 = vadd.f32 %v11999_v24, %v23223_v45 }
 0x5d1   : > { %v11969_v6 = vpop.f32.mrf.mxu0 }
 0x5d2   : > { %v16833_v37 = vpop.f32.mrf.mxu1  ;;  %v12000_v53 = vadd.f32 %v11969_v6, %v23201_v41  ;;  %v12358_v36 = vadd.f32 %v12348_v29, %v23155_v0 }
 0x5d3   : > { %v16798_v33 = vpop.f32.mrf.mxu0 }
 0x5d4   : > { %v23292_v57 = vpop.f32.mrf.mxu1  ;;  %v12349_v48 = vadd.f32 %v12000_v53, %v23229_v9 }
 0x5d5   : > { %v11974_v63 = vpop.f32.mrf.mxu0 }
 0x5d6   : > { %v16834_v40 = vpop.f32.mrf.mxu1  ;;  %v12001_v25 = vadd.f32 %v11974_v63, %v23210_v13  ;;  %v12359_v17 = vadd.f32 %v12349_v48, %v23162_v7  ;;  %v12155_v48 = vadd.f32 %v23252_v61, %v22987_v27 }
 0x5d7   : > { %v16801_v30 = vpop.f32.mrf.mxu0 }
 0x5d8   : > { %v23297_v21 = vpop.f32.mrf.mxu1  ;;  %v12350_v54 = vadd.f32 %v12001_v25, %v23235_v42 }
 0x5d9   : > { %v11977_v55 = vpop.f32.mrf.mxu0 }
 0x5da   : > { %v16837_v45 = vpop.f32.mrf.mxu1  ;;  %v12002_v0 = vadd.f32 %v11977_v55, %v23219_v20  ;;  %v23306_v41 = vadd.f32 %v12350_v54, %v23169_v47 }
 0x5db   : > { %v16802_v9 = vpop.f32.mrf.mxu0 }
 0x5dc   : > { %v23302_v28 = vpop.f32.mrf.mxu1  ;;  %v12351_v1 = vadd.f32 %v12002_v0, %v23241_v34 }
 0x5dd   : > { %v11982_v24 = vpop.f32.mrf.mxu0 }
 0x5de   : > { %v16838_v32 = vpop.f32.mrf.mxu1  ;;  %v12003_v13 = vadd.f32 %v11982_v24, %v23226_v11  ;;  %v23311_v7 = vadd.f32 %v12351_v1, %v23176_v38 }
 0x5df   : > { %v16805_v2 = vpop.f32.mrf.mxu0 }
 0x5e0   : > { %v12352_v42 = vadd.f32 %v12003_v13, %v23257_v18 }
 0x5e1   : > { %v11985_v37 = vpop.f32.mrf.mxu0 }
 0x5e2   : > { %v12004_v29 = vadd.f32 %v11985_v37, %v23232_v46  ;;  %v23316_v20 = vadd.f32 %v12352_v42, %v23183_v62 }
 0x5e3   : > { %v16806_v47 = vpop.f32.mrf.mxu0 }
 0x5e4   : > { %v12353_v6 = vadd.f32 %v12004_v29, %v23265_v50 }
 0x5e5   : > { %v11990_v53 = vpop.f32.mrf.mxu0 }
 0x5e6   : > { %v12005_v34 = vadd.f32 %v11990_v53, %v23238_v26  ;;  %v23321_v11 = vadd.f32 %v12353_v6, %v23190_v49  ;;  %v12161_v53 = vadd.f32 %v23287_v10, %v23041_v19 }
 0x5e7   : > { %v16809_v38 = vpop.f32.mrf.mxu0 }
 0x5e8   : > { %v12354_v33 = vadd.f32 %v12005_v34, %v23271_v12  ;;  %v23337_v12 = vld [vmem:[%s23513_s4] ss:$0 sm:$0xff] }
 0x5e9   : > { %v11993_v40 = vpop.f32.mrf.mxu0 }
 0x5ea   : > { %v12006_v18 = vadd.f32 %v11993_v40, %v23244_v4  ;;  %v23326_v46 = vadd.f32 %v12354_v33, %v23197_v23  ;;  %v12156_v23 = vadd.f32 %v23262_v51, %v22996_v39  ;;  %v12158_v39 = vadd.f32 %v23273_v31, %v23014_v44 }
 0x5eb   : > { %v16810_v62 = vpop.f32.mrf.mxu0  ;;  %v12162_v40 = vadd.f32 %v23292_v57, %v23050_v14 }
 0x5ec   : > { %v12355_v50 = vadd.f32 %v12006_v18, %v23276_v59 }
 0x5ed   : > { %v12287_v63 = vpop.f32.mrf.mxu0 }
 0x5ee   : > { %v12326_v26 = vadd.f32 %v12287_v63, %v12155_v48  ;;  %v23332_v49 = vadd.f32 %v12355_v50, %v23204_v15  ;;  %v12157_v15 = vadd.f32 %v23268_v56, %v23005_v5  ;;  %v12163_v50 = vadd.f32 %v23297_v21, %v23058_v3 }
 0x5ef   : > { %v16849_v4 = vpop.f32.mrf.mxu0 }
 0x5f0   : > { %v12366_v25 = vadd.f32 %v12356_v16, %v12326_v26 }
 0x5f1   : > { %v12290_v30 = vpop.f32.mrf.mxu0 }
 0x5f2   : > { %v12382_v27 = vadd.f32 %v23337_v12, %v12366_v25  ;;  %v12327_v61 = vadd.f32 %v12290_v30, %v12156_v23 }
 0x5f3   : > { %v16850_v59 = vpop.f32.mrf.mxu0 }
 0x5f4   : > { %v12392_v45 = vmax.f32 %v12382_v27, 0.0  ;;  %v12367_v54 = vadd.f32 %v12357_v22, %v12327_v61  ;;  %v12159_v22 = vadd.f32 %v23278_v60, %v23023_v35  ;;  %v12164_v61 = vadd.f32 %v23302_v28, %v23067_v58 }
 0x5f5   : > { %v12295_v55 = vpop.f32.mrf.mxu0 }
 0x5f6   : > { %12403 = vst.msk [vmem:[#allocation3] sm:$0xff] %vm12402_vm7, %v12392_v45  ;;  %v12383_v0 = vadd.f32 %v23337_v12, %v12367_v54  ;;  %v12328_v9 = vadd.f32 %v12295_v55, %v12157_v15 }
 0x5f7   : > { %v16853_v32 = vpop.f32.mrf.mxu0 }
 0x5f8   : > { %v12393_v51 = vmax.f32 %v12383_v0, 0.0  ;;  %v12368_v16 = vadd.f32 %v12358_v36, %v12328_v9  ;;  %v12160_v36 = vadd.f32 %v23282_v43, %v23032_v52 }
 0x5f9   : > { %v12298_v1 = vpop.f32.mrf.mxu0 }
 0x5fa   : > { %12404 = vst.msk [vmem:[#allocation3 + $0x8] sm:$0xff] %vm12402_vm7, %v12393_v51  ;;  %v12384_v24 = vadd.f32 %v23337_v12, %v12368_v16  ;;  %v12329_v5 = vadd.f32 %v12298_v1, %v12158_v39 }
 0x5fb   : > { %v16854_v56 = vpop.f32.mrf.mxu0 }
 0x5fc   : > { %v12394_v13 = vmax.f32 %v12384_v24, 0.0  ;;  %v12369_v2 = vadd.f32 %v12359_v17, %v12329_v5 }
 0x5fd   : > { %v12303_v42 = vpop.f32.mrf.mxu0 }
 0x5fe   : > { %12405 = vst.msk [vmem:[#allocation3 + $0x10] sm:$0xff] %vm12402_vm7, %v12394_v13  ;;  %v12385_v37 = vadd.f32 %v23337_v12, %v12369_v2  ;;  %v12330_v44 = vadd.f32 %v12303_v42, %v12159_v22 }
 0x5ff   : > { %v16857_v31 = vpop.f32.mrf.mxu0 }
 0x600   : > { %v12395_v29 = vmax.f32 %v12385_v37, 0.0  ;;  %v12370_v47 = vadd.f32 %v23306_v41, %v12330_v44 }
 0x601   : > { %v12306_v6 = vpop.f32.mrf.mxu0 }
 0x602   : > { %12406 = vst.msk [vmem:[#allocation3 + $0x18] sm:$0xff] %vm12402_vm7, %v12395_v29  ;;  %v12386_v35 = vadd.f32 %v23337_v12, %v12370_v47  ;;  %v12331_v60 = vadd.f32 %v12306_v6, %v12160_v36 }
 0x603   : > { %v16858_v17 = vpop.f32.mrf.mxu0 }
 0x604   : > { %v12396_v34 = vmax.f32 %v12386_v35, 0.0  ;;  %v12371_v38 = vadd.f32 %v23311_v7, %v12331_v60  ;;  %v17430_v35 = vld [vmem:[%s23514_s5 + $0x8] sm:$0xff]  }
 0x605   : > { %v12311_v33 = vpop.f32.mrf.mxu0 }
 0x606   : > { %12407 = vst.msk [vmem:[#allocation3 + $0x20] sm:$0xff] %vm12402_vm7, %v12396_v34  ;;  %v12387_v52 = vadd.f32 %v23337_v12, %v12371_v38  ;;  %v12332_v43 = vadd.f32 %v12311_v33, %v12161_v53 }
 0x607   : > { %v16861_v41 = vpop.f32.mrf.mxu0 }
 0x608   : > { %v12397_v18 = vmax.f32 %v12387_v52, 0.0  ;;  %v12372_v62 = vadd.f32 %v23316_v20, %v12332_v43  ;;  %v17431_v43 = vld [vmem:[%s23514_s5] sm:$0xff]  }
 0x609   : > { %v12314_v48 = vpop.f32.mrf.mxu0 }
 0x60a   : > { %12408 = vst.msk [vmem:[#allocation3 + $0x28] sm:$0xff] %vm12402_vm7, %v12397_v18  ;;  %v12388_v19 = vadd.f32 %v23337_v12, %v12372_v62  ;;  %v12333_v10 = vadd.f32 %v12314_v48, %v12162_v40 }
 0x60b   : > { %v16862_v7 = vpop.f32.mrf.mxu0 }
 0x60c   : > { %v12398_v63 = vmax.f32 %v12388_v19, 0.0  ;;  %v12373_v26 = vadd.f32 %v23321_v11, %v12333_v10  ;;  %v17432_v19 = vld [vmem:[%s23514_s5 + $0x38] sm:$0xff]  }
 0x60d   : > { %v12413_v4 = vld [vmem:[#allocation3] ss:$5 sm:$0xff]  ;;  %v12417_v23 = vld [vmem:[#allocation3 + $0x1] ss:$5 sm:$0xff]  ;;  %v12319_v25 = vpop.f32.mrf.mxu0 }
 0x60e   : > { %v12420_v14 = vmax.f32 %v12413_v4, %v12417_v23  ;;  %12409 = vst.msk [vmem:[#allocation3 + $0x30] sm:$0xff] %vm12402_vm7, %v12398_v63  ;;  %v12389_v57 = vadd.f32 %v23337_v12, %v12373_v26  ;;  %v12334_v20 = vadd.f32 %v12319_v25, %v12163_v50  ;;  %v12423_v30 = vld [vmem:[#allocation3 + $0x2] ss:$5 sm:$0xff]  ;;  %v12429_v21 = vld [vmem:[#allocation3 + $0x3] ss:$5 sm:$0xff] }
 0x60f   : > { %v16865_v27 = vpop.f32.mrf.mxu0  ;;  %v12435_v0 = vld [vmem:[#allocation3 + $0x4] ss:$5 sm:$0xff] }
 0x610   : > { %v12426_v59 = vmax.f32 %v12420_v14, %v12423_v30  ;;  %v12399_v15 = vmax.f32 %v12389_v57, 0.0  ;;  %v12374_v3 = vadd.f32 %v23326_v46, %v12334_v20  ;;  %v17433_v50 = vld [vmem:[%s23514_s5 + $0x30] sm:$0xff]   ;;  %v17435_v63 = vld [vmem:[%s23514_s5 + $0x18] sm:$0xff]  }
 0x611   : > { %v12322_v11 = vpop.f32.mrf.mxu0  ;;  %v12441_v16 = vld [vmem:[#allocation3 + $0x5] ss:$5 sm:$0xff]  ;;  %v12447_v46 = vld [vmem:[#allocation3 + $0x6] ss:$5 sm:$0xff] }
 0x612   : > { %v12432_v45 = vmax.f32 %v12426_v59, %v12429_v21  ;;  %12410 = vst.msk [vmem:[#allocation3 + $0x38] sm:$0xff] %vm12402_vm7, %v12399_v15  ;;  %v12390_v54 = vadd.f32 %v23337_v12, %v12374_v3  ;;  %v12335_v55 = vadd.f32 %v12322_v11, %v12164_v61  ;;  %v12453_v5 = vld [vmem:[#allocation3 + $0x7] ss:$5 sm:$0xff]  ;;  %v12459_v22 = vld [vmem:[#allocation3 + $0x8] ss:$5 sm:$0xff] }
 0x613   : > { %v16866_v9 = vpop.f32.mrf.mxu0  ;;  %v12465_v2 = vld [vmem:[#allocation3 + $0x9] ss:$5 sm:$0xff] }
 0x614   : > { %v12438_v32 = vmax.f32 %v12432_v45, %v12435_v0  ;;  %v12400_v39 = vmax.f32 %v12390_v54, 0.0  ;;  %v12375_v51 = vadd.f32 %v23332_v49, %v12335_v55  ;;  %v17436_v26 = vld [vmem:[%s23514_s5 + $0x78] sm:$0xff]   ;;  %v17437_v57 = vld [vmem:[%s23514_s5 + $0x10] sm:$0xff]   ;;  %v17439_v61 = vld [vmem:[%s23514_s5 + $0x48] sm:$0xff]  }
 0x615   : > { %v17438_v20 = vld [vmem:[%s23514_s5 + $0x70] sm:$0xff]   ;;  %v17440_v59 = vld [vmem:[%s23514_s5 + $0x98] sm:$0xff]   ;;  %v17441_v21 = vld [vmem:[%s23514_s5 + $0x40] sm:$0xff]  }
 0x616   : > { %v12444_v58 = vmax.f32 %v12438_v32, %v12441_v16  ;;  %12411 = vst.msk [vmem:[#allocation3 + $0x40] sm:$0xff] %vm12402_vm7, %v12400_v39  ;;  %v12391_v28 = vadd.f32 %v23337_v12, %v12375_v51  ;;  %v17442_v11 = vld [vmem:[%s23514_s5 + $0x90] sm:$0xff]   ;;  %v17443_v55 = vld [vmem:[%s23514_s5 + $0x68] sm:$0xff]   ;;  %v17444_v32 = vld [vmem:[%s23514_s5 + $0x60] sm:$0xff]  }
 0x617   : > { %v17445_v51 = vld [vmem:[%s23514_s5 + $0x88] sm:$0xff]  }
 0x618   : > { %v12450_v1 = vmax.f32 %v12444_v58, %v12447_v46  ;;  %v12401_v24 = vmax.f32 %v12391_v28, 0.0  ;;  %v17446_v58 = vld [vmem:[%s23514_s5 + $0x80] sm:$0xff]  }
 0x61a   : > { %v12456_v56 = vmax.f32 %v12450_v1, %v12453_v5  ;;  %12412 = vst.msk [vmem:[#allocation3 + $0x48] sm:$0xff] %vm12402_vm7, %v12401_v24 }
 0x61c   : > { %v12462_v13 = vmax.f32 %v12456_v56, %v12459_v22 }
 0x61d   : > { %v12415_v42 = vld [vmem:[#allocation3 + $0x28] ss:$5 sm:$0x7f]  ;;  %v12419_v37 = vld [vmem:[#allocation3 + $0x29] ss:$5 sm:$0x7f] }
 0x61e   : > { %v12468_v44 = vmax.f32 %v12462_v13, %v12465_v2  ;;  %v12421_v49 = vmax.f32 %v12415_v42, %v12419_v37 }
 0x620   : > { %12470 = vst.msk [vmem:[#allocation4] sm:$0xff] %vm12402_vm7, %v12468_v44 }
 0x621   : > { %v12425_v31 = vld [vmem:[#allocation3 + $0x2a] ss:$5 sm:$0x7f]  ;;  %v12431_v29 = vld [vmem:[#allocation3 + $0x2b] ss:$5 sm:$0x7f] }
 0x622   : > { %v12427_v36 = vmax.f32 %v12421_v49, %v12425_v31  ;;  %v12437_v47 = vld [vmem:[#allocation3 + $0x2c] ss:$5 sm:$0x7f]  ;;  %v12443_v60 = vld [vmem:[#allocation3 + $0x2d] ss:$5 sm:$0x7f] }
 0x623   : > { %v12449_v38 = vld [vmem:[#allocation3 + $0x2e] ss:$5 sm:$0x7f]  ;;  %v12455_v52 = vld [vmem:[#allocation3 + $0x2f] ss:$5 sm:$0x7f] }
 0x624   : > { %v12433_v12 = vmax.f32 %v12427_v36, %v12431_v29  ;;  %v12461_v40 = vld [vmem:[#allocation3 + $0x30] ss:$5 sm:$0x7f]  ;;  %v12467_v48 = vld [vmem:[#allocation3 + $0x31] ss:$5 sm:$0x7f] }
 0x626   : > { %v12439_v6 = vmax.f32 %v12433_v12, %v12437_v47 }
 0x627   : > { %v12488_v17 = vld [vmem:[#allocation4 + $0x2] ss:$5 sm:$0x3]  ;;  %v12473_v18 = vld [vmem:[#allocation4] ss:$5 sm:$0x3] }
 0x628   : > { %v12445_v53 = vmax.f32 %v12439_v6, %v12443_v60  ;;  %v12489_v34 = vpack.c.bf16 %v12488_v17, %v12488_v17  ;;  %v12474_v7 = vpack.c.bf16 %v12473_v18, %v12473_v18  ;;  %v12480_v30 = vld [vmem:[#allocation4 + $0x1] ss:$5 sm:$0x3] }
 0x629   : > { %v12481_v15 = vpack.c.bf16 %v12480_v30, %v12480_v30 }
 0x62a   : > { %v12451_v33 = vmax.f32 %v12445_v53, %v12449_v38  ;;  %16872 = vmatmul.mubr.msk.bf16.vlgmr.msra.gmra.mxu1 %vm12402_vm7, %v12489_v34 }
 0x62b   : > { %16876 = vmatpush3.bf16.msra.mxu1 %v17430_v35  ;;  %16879 = vmatprep.mubr.msk.bf16.mxu1 %vm17549_vm6, %v23886_v8 }
 0x62c   : > { %v12457_v41 = vmax.f32 %v12451_v33, %v12455_v52  ;;  %16877 = vmatprep.subr.bf16.mxu1 %v23886_v8 }
 0x62e   : > { %v12463_v62 = vmax.f32 %v12457_v41, %v12461_v40 }
 0x62f   : > { %16878 = vmatpush3.bf16.msra.mxu1 %v17431_v43 }
 0x630   : > { %v12469_v10 = vmax.f32 %v12463_v62, %v12467_v48  ;;  %16883 = vmatprep.subr.bf16.mxu1 %v23886_v8 }
 0x632   : > { %12472 = vst.msk [vmem:[#allocation4 + $0x8] sm:$0x7f] %vm12471_vm8, %v12469_v10  ;;  %16880 = vmatmul.mubr.msk.bf16.vlgmr.msra.gmra.mxu1 %vm12402_vm7, %v12474_v7 }
 0x633   : > { %16884 = vmatpush3.bf16.msra.mxu1 %v17432_v19  ;;  %16887 = vmatprep.mubr.msk.bf16.mxu1 %vm17549_vm6, %v23886_v8 }
 0x634   : > { %16885 = vmatprep.subr.bf16.mxu1 %v23886_v8 }
 0x637   : > { %16886 = vmatpush3.bf16.msra.mxu1 %v17433_v50 }
 0x638   : > { %16891 = vmatprep.subr.bf16.mxu1 %v23886_v8 }
 0x639   : > { %v12606_v4 = vld [vmem:[#allocation4 + $0x3] ss:$5 sm:$0x3]  ;;  %v12788_v23 = vld [vmem:[#allocation4 + $0x5] ss:$5 sm:$0x3] }
 0x63a   : > { %v12607_v25 = vpack.c.bf16 %v12606_v4, %v12606_v4  ;;  %v12789_v14 = vpack.c.bf16 %v12788_v23, %v12788_v23  ;;  %v12916_v27 = vld [vmem:[#allocation4 + $0x7] ss:$5 sm:$0x3]  ;;  %v12724_v45 = vld [vmem:[#allocation4 + $0x4] ss:$5 sm:$0x3] }
 0x63b   : > { %v12917_v3 = vpack.c.bf16 %v12916_v27, %v12916_v27  ;;  %v13044_v54 = vld [vmem:[#allocation4 + $0x9] ss:$5 sm:$0x3]  ;;  %v12725_v0 = vpack.c.bf16 %v12724_v45, %v12724_v45  ;;  %v12852_v39 = vld [vmem:[#allocation4 + $0x6] ss:$5 sm:$0x3] }
 0x63c   : > { %16888 = vmatmul.mubr.msk.bf16.vlgmr.msra.gmra.mxu1 %vm12402_vm7, %v12607_v25  ;;  %16912 = vmatmul.mubr.msk.bf16.vlgmr.msra.gmra.mxu0 %vm12402_vm7, %v12789_v14  ;;  %v13045_v9 = vpack.c.bf16 %v13044_v54, %v13044_v54  ;;  %v12853_v16 = vpack.c.bf16 %v12852_v39, %v12852_v39  ;;  %v12980_v28 = vld [vmem:[#allocation4 + $0x8] ss:$5 sm:$0x3]  ;;  %v14288_v27 = vld [vmem:[%s23515_s6] ss:$0 sm:$0xff] }
 0x63d   : > { %16892 = vmatpush3.bf16.msra.mxu1 %v17435_v63  ;;  %16924 = vmatpush3.bf16.msra.mxu0 %v17436_v26  ;;  %v12981_v46 = vpack.c.bf16 %v12980_v28, %v12980_v28 }
 0x63e   : > { %16893 = vmatprep.subr.bf16.mxu1 %v23886_v8  ;;  %16925 = vmatprep.subr.bf16.mxu0 %v23886_v8 }
 0x63f   : > { %16895 = vmatprep.mubr.msk.bf16.mxu1 %vm17549_vm6, %v23886_v8  ;;  %16927 = vmatprep.mubr.msk.bf16.mxu0 %vm17549_vm6, %v23886_v8 }
 0x641   : > { %16894 = vmatpush3.bf16.msra.mxu1 %v17437_v57  ;;  %16926 = vmatpush3.bf16.msra.mxu0 %v17438_v20 }
 0x642   : > { %16899 = vmatprep.subr.bf16.mxu1 %v23886_v8  ;;  %16939 = vmatprep.subr.bf16.mxu0 %v23886_v8 }
 0x644   : > { %16896 = vmatmul.mubr.msk.bf16.vlgmr.msra.gmra.mxu1 %vm12402_vm7, %v12481_v15  ;;  %16928 = vmatmul.mubr.msk.bf16.vlgmr.msra.gmra.mxu0 %vm12402_vm7, %v12917_v3 }
 0x645   : > { %16900 = vmatpush3.bf16.msra.mxu1 %v17439_v61  ;;  %16940 = vmatpush3.bf16.msra.mxu0 %v17440_v59 }
 0x646   : > { %16901 = vmatprep.subr.bf16.mxu1 %v23886_v8  ;;  %16941 = vmatprep.subr.bf16.mxu0 %v23886_v8 }
 0x647   : > { %16903 = vmatprep.mubr.msk.bf16.mxu1 %vm17549_vm6, %v23886_v8  ;;  %16943 = vmatprep.mubr.msk.bf16.mxu0 %vm17549_vm6, %v23886_v8 }
 0x649   : > { %16902 = vmatpush3.bf16.msra.mxu1 %v17441_v21  ;;  %16942 = vmatpush3.bf16.msra.mxu0 %v17442_v11 }
 0x64a   : > { %16915 = vmatprep.subr.bf16.mxu1 %v23886_v8 }
 0x64c   : > { %16904 = vmatmul.mubr.msk.bf16.vlgmr.msra.gmra.mxu1 %vm12402_vm7, %v12725_v0  ;;  %16944 = vmatmul.mubr.msk.bf16.vlgmr.msra.gmra.mxu0 %vm12402_vm7, %v13045_v9 }
 0x64d   : > { %16916 = vmatpush3.bf16.msra.mxu1 %v17443_v55  ;;  %16919 = vmatprep.mubr.msk.bf16.mxu1 %vm17549_vm6, %v23886_v8 }
 0x64e   : > { %16917 = vmatprep.subr.bf16.mxu1 %v23886_v8 }
 0x651   : > { %16918 = vmatpush3.bf16.msra.mxu1 %v17444_v32 }
 0x652   : > { %16931 = vmatprep.subr.bf16.mxu1 %v23886_v8 }
 0x654   : > { %16920 = vmatmul.mubr.msk.bf16.vlgmr.msra.gmra.mxu1 %vm12402_vm7, %v12853_v16 }
 0x655   : > { %16932 = vmatpush3.bf16.msra.mxu1 %v17445_v51  ;;  %16935 = vmatprep.mubr.msk.bf16.mxu1 %vm17549_vm6, %v23886_v8 }
 0x656   : > { %16933 = vmatprep.subr.bf16.mxu1 %v23886_v8 }
 0x659   : > { %16934 = vmatpush3.bf16.msra.mxu1 %v17446_v58 }
 0x65c   : > { %16936 = vmatmul.mubr.msk.bf16.vlgmr.msra.gmra.mxu1 %vm12402_vm7, %v12981_v46 }
 0x6ea   : > { %v12544_v1 = vpop.f32.mrf.mxu1 }
 0x6ec   : > { %v16873_v24 = vpop.f32.mrf.mxu1 }
 0x6ee   : > { %v12547_v5 = vpop.f32.mrf.mxu1 }
 0x6f0   : > { %v16874_v56 = vpop.f32.mrf.mxu1 }
 0x6f2   : > { %v12599_v22 = vpop.f32.mrf.mxu1 }
 0x6f3   : > { %v12600_v50 = vadd.f32 %v12599_v22, %v12544_v1 }
 0x6f4   : > { %v16881_v13 = vpop.f32.mrf.mxu1 }
 0x6f6   : > { %v12602_v2 = vpop.f32.mrf.mxu1 }
 0x6f8   : > { %v16882_v42 = vpop.f32.mrf.mxu1 }
 0x6fc   : > { %v12662_v37 = vpop.f32.mrf.mxu1  ;;  %v12844_v44 = vpop.f32.mrf.mxu0 }
 0x6fe   : > { %v16889_v49 = vpop.f32.mrf.mxu1  ;;  %v16913_v31 = vpop.f32.mrf.mxu0 }
 0x700   : > { %v12665_v36 = vpop.f32.mrf.mxu1  ;;  %v12847_v29 = vpop.f32.mrf.mxu0 }
 0x702   : > { %v16890_v8 = vpop.f32.mrf.mxu1  ;;  %v16914_v12 = vpop.f32.mrf.mxu0 }
 0x704   : > { %v12717_v47 = vpop.f32.mrf.mxu1  ;;  %v12972_v6 = vpop.f32.mrf.mxu0 }
 0x705   : > { %v12718_v19 = vadd.f32 %v12717_v47, %v12662_v37 }
 0x706   : > { %v16897_v35 = vpop.f32.mrf.mxu1  ;;  %v16929_v60 = vpop.f32.mrf.mxu0 }
 0x707   : > { %v12850_v63 = vadd.f32 %v12844_v44, %v12718_v19 }
 0x708   : > { %v12720_v17 = vpop.f32.mrf.mxu1  ;;  %v12975_v53 = vpop.f32.mrf.mxu0 }
 0x709   : > { %v12978_v25 = vadd.f32 %v12972_v6, %v12850_v63 }
 0x70a   : > { %v16898_v34 = vpop.f32.mrf.mxu1  ;;  %v16930_v38 = vpop.f32.mrf.mxu0 }
 0x70c   : > { %v12780_v33 = vpop.f32.mrf.mxu1  ;;  %v13100_v52 = vpop.f32.mrf.mxu0 }
 0x70d   : > { %v12786_v4 = vadd.f32 %v12780_v33, %v12600_v50  ;;  %v13106_v20 = vadd.f32 %v13100_v52, %v12978_v25 }
 0x70e   : > { %v16905_v43 = vpop.f32.mrf.mxu1  ;;  %v16945_v41 = vpop.f32.mrf.mxu0 }
 0x710   : > { %v12783_v40 = vpop.f32.mrf.mxu1  ;;  %v13103_v18 = vpop.f32.mrf.mxu0 }
 0x712   : > { %v16906_v62 = vpop.f32.mrf.mxu1  ;;  %v16946_v48 = vpop.f32.mrf.mxu0 }
 0x714   : > { %v12908_v10 = vpop.f32.mrf.mxu1 }
 0x715   : > { %v12914_v14 = vadd.f32 %v12908_v10, %v12786_v4 }
 0x716   : > { %v16921_v7 = vpop.f32.mrf.mxu1 }
 0x718   : > { %v12911_v26 = vpop.f32.mrf.mxu1 }
 0x71a   : > { %v16922_v23 = vpop.f32.mrf.mxu1 }
 0x71c   : > { %v13036_v57 = vpop.f32.mrf.mxu1 }
 0x71d   : > { %v13042_v30 = vadd.f32 %v13036_v57, %v12914_v14 }
 0x71e   : > { %v16937_v61 = vpop.f32.mrf.mxu1 }
 0x71f   : > { %v13107_v59 = vadd.f32 %v13106_v20, %v13042_v30 }
 0x720   : > { %v13039_v15 = vpop.f32.mrf.mxu1 }
 0x721   : > { %v13114_v3 = vadd.f32 %v14288_v27, %v13107_v59 }
 0x722   : > { %v16938_v21 = vpop.f32.mrf.mxu1 }
 0x723   : > { %v13115_v11 = vmax.f32 %v13114_v3, 0.0 }
 0x725   : > { %v13117_v45 = vrot.slane %v13115_v11, 1 }
 0x727   : > { %v13119_v54 = vmax.f32 %v13115_v11, %v13117_v45 }
 0x729   : > { %13121 = vst.msk [vmem:[%s270_s17] sm:$0x1] %vm13120_vm9, %v13119_v54 }
 0x72a   : > { %17499 = shalt.err (!%p17496_p3)
}
 0x72b   : > { %s17500_s9 = scalar_lea.hbm %s13133_s21, 16  ;;  %s17504_s15 = scalar_lea.hbm %s23516_s7, 32 }
 0x72c   : > { %p17501_p4 = scmp.ne.s32.totalorder %s13133_s21, %s17500_s9  ;;  %p17505_p9 = scmp.lt.s32.totalorder %s13133_s21, %s23516_s7 }
 0x72d   : > { %p17506_p10 = scmp.lt.s32.totalorder %s17504_s15, %s17500_s9 }
 0x72e   : > { %p17502_p7 = pnand %p17501_p4, %p17629_p5 }
 0x72f   : > { %p17507_p11 = por %p17506_p10, %p17505_p9 }
 0x730   : > { %p17503_p8 = pneg %p17502_p7 }
 0x732   : > { %p17508_p12 = pnand %p17507_p11, %p17503_p8 }
 0x734   : > { %17511 = shalt.err (!%p17508_p12)
}
 0x735   : > { %16978 = dma.vmem_to_hbm [thread:$0]  (%p17629_p5), %s13136_s18, 16, %s13133_s21, %s13123_s22  }
 0x736 PF: > { %p16984_p13 = scmp.ge.s32.totalorder %s17546_s27, 2  ;;  %s13147_s19 = sand.u32 1, %s17534_s24  }
 0x737   : > { %s13148_s20 = scalar_lea.sflag [#allocation6], %s13147_s19 }
 0x738   : > { %p16981_p0 = pnand %p16984_p13, %p17633_p6 }
 0x73a   : > { %p16982_p1 = pneg %p16981_p0 }
 0x73c   : > { %17529 = dma.done.wait (%p16982_p1), %s13148_s20, 16  }
 0x73d   : > { %17531 = vsyncadd (%p16982_p1), %s13148_s20, 4294967280  ;;  %p17_p2 = scmp.ge.s32.totalorder %s17616_s30, 4   ;;  %s23927_s24 = smov %s17538_s25 }
 0x73e   : > { %s23928_s25 = smov %s17542_s26  ;;  %s23929_s26 = smov %s17627_s10 }
 0x73f   : > { %s23930_s27 = smov %s17616_s30  ;;  %19 = sbr.rel (!%p17_p2) target bundleno = 3 (0x3), region = 253 }
 0x744   :  { %13152 = vsyncpa [#allocation6], 1 }
 0x745   :  { %13154 = vsyncpa [#allocation6 + $0x1], 1 }

</bundles_post_ra>
